<compile_context>
chip_gen: v6e
topology: v6e:2x2x1
jax: 0.10.0
libtpu: 0.0.40
codegen_flags: <defaults>
</compile_context>

<pallas_src>
import numpy as np
import jax
import jax.numpy as jnp
from jax.experimental import pallas as pl
from jax.experimental.pallas import tpu as pltpu

# ---- module hyper-parameters (PyTorch defaults of SequenceLSTM) ------------
D_EMBED = 20                      # d_embed
D_MODEL = 128                     # d_model == LSTM hidden (bidirectional=False)
D_LOC = 531                       # d_another_input
D_LOC_EMBED = 128                 # d_another_embed
D_IN = D_EMBED + D_LOC_EMBED      # LSTM input size (d_input must be 148)
GH = 4 * D_MODEL                  # gate width (i, f, g, o)
B_TILE = 16                       # batch tile (8 on v5e)


# ------------------------------ Pallas kernel -------------------------------

def make_kernel(L, bt, vocab):
    """L, bt (batch tile), vocab are compile-time constants."""
    H = D_MODEL
    m = L * bt

    def kernel(tok_ref, loc_ref, gemb_ref, wfold_ref, whh_ref, posb_ref,
               out_ref, gates_scr):
        # tok_ref  : (L, bt, 1)   int32   token ids (time-major)
        # loc_ref  : (L, bt, 531) bf16    loc_feat (time-major)
        # gemb_ref : (V, 512)     f32     E @ W_ih_emb.T
        # wfold_ref: (531, 512)   bf16    (W_ih_loc @ W_proj).T
        # whh_ref  : (128, 512)   bf16    W_hh.T
        # posb_ref : (L, 512)     f32     pe@W_ih_emb.T + b_proj@W_ih_loc.T + b_ih + b_hh
        # out_ref  : (L, bt, 128) f32     LSTM outputs (time-major)
        # gates_scr: (L, bt, 512) f32     VMEM scratch for input-side gates

        # ---- parallel phase: input-side gate pre-activations, M = L*bt rows
        tok = tok_ref[...]                                          # (L, bt, 1)
        iota = jax.lax.broadcasted_iota(jnp.int32, (L, bt, vocab), 2)
        onehot = (tok == iota).astype(jnp.float32).reshape(m, vocab)
        g_emb = jnp.dot(onehot, gemb_ref[...],
                        preferred_element_type=jnp.float32)         # (m, 512)

        loc2d = loc_ref[...].reshape(m, D_LOC)                      # bf16
        g_loc = jnp.dot(loc2d, wfold_ref[...],
                        preferred_element_type=jnp.float32)         # (m, 512)

        gates_x = (g_emb + g_loc).reshape(L, bt, GH)
        gates_x = gates_x + posb_ref[...][:, None, :]               # hoisted bias
        gates_scr[...] = gates_x

        # ---- sequential phase: LSTM recurrence over time (static unroll)
        whh = whh_ref[...]                                          # hoisted load
        h = jnp.zeros((bt, H), jnp.float32)
        c = jnp.zeros((bt, H), jnp.float32)
        for t in range(L):
            g = gates_scr[t] + jnp.dot(h.astype(whh.dtype), whh,
                                       preferred_element_type=jnp.float32)
            i_g = jax.nn.sigmoid(g[:, 0 * H:1 * H])
            f_g = jax.nn.sigmoid(g[:, 1 * H:2 * H])
            g_g = jnp.tanh(g[:, 2 * H:3 * H])
            o_g = jax.nn.sigmoid(g[:, 3 * H:4 * H])
            c = f_g * c + i_g * g_g
            h = o_g * jnp.tanh(c)
            out_ref[t] = h.astype(out_ref.dtype)                    # lane-dense

    return kernel


def forward_pallas(tokens, loc_feat, kp, *, b_tile=B_TILE):
    """tokens: (B, L) int32, loc_feat: (B, L, 531) f32, kp: folded params."""
    B, L = tokens.shape
    vocab = kp['gemb'].shape[0]

    Bp = ((B + b_tile - 1) // b_tile) * b_tile
    if Bp != B:
        tokens = jnp.pad(tokens, ((0, Bp - B), (0, 0)))
        loc_feat = jnp.pad(loc_feat, ((0, Bp - B), (0, 0), (0, 0)))

    # time-major (mirrors the module's x.transpose(0, 1) before the LSTM)
    tok_t = jnp.transpose(tokens, (1, 0))[:, :, None].astype(jnp.int32)
    loc_t = jnp.transpose(loc_feat, (1, 0, 2)).astype(jnp.bfloat16)

    kernel = make_kernel(L, b_tile, vocab)
    out = pl.pallas_call(
        kernel,
        out_shape=jax.ShapeDtypeStruct((L, Bp, D_MODEL), jnp.float32),
        grid_spec=pltpu.PrefetchScalarGridSpec(
            num_scalar_prefetch=0,
            grid=(Bp // b_tile,),
            in_specs=[
                pl.BlockSpec((L, b_tile, 1), lambda b: (0, b, 0)),       # tokens
                pl.BlockSpec((L, b_tile, D_LOC), lambda b: (0, b, 0)),   # loc_feat
                pl.BlockSpec((vocab, GH), lambda b: (0, 0)),             # gemb
                pl.BlockSpec((D_LOC, GH), lambda b: (0, 0)),             # wfold
                pl.BlockSpec((D_MODEL, GH), lambda b: (0, 0)),           # whh.T
                pl.BlockSpec((L, GH), lambda b: (0, 0)),                 # posb
            ],
            out_specs=pl.BlockSpec((L, b_tile, D_MODEL), lambda b: (0, b, 0)),
            scratch_shapes=[pltpu.VMEM((L, b_tile, GH), jnp.float32)]),
        compiler_params=pltpu.CompilerParams(
            dimension_semantics=("parallel",),
            vmem_limit_bytes=32 * 1024 * 1024),
    )(tok_t, loc_t, kp['gemb'], kp['wfold'], kp['whh_t'], kp['posb'])

    out = jnp.transpose(out, (1, 0, 2))[:B]        # (B, L, 128)
    return out


# --------------------------- parameter construction -------------------------

def positional_embedding(L, d):
    pos = np.arange(L, dtype=np.float32)[:, None]
    div = np.exp(np.arange(0, d, 2, dtype=np.float32) * -(np.log(10000.0) / d))
    pe = np.zeros((L, d), np.float32)
    pe[:, 0::2] = np.sin(pos * div)
    pe[:, 1::2] = np.cos(pos * div)
    return jnp.asarray(pe)


def init_params(key, *, vocab, L):
    ks = jax.random.split(key, 7)
    kl = 1.0 / np.sqrt(D_MODEL)
    kp_ = 1.0 / np.sqrt(D_LOC)
    return dict(
        E=jax.random.normal(ks[0], (vocab, D_EMBED), jnp.float32),   # nn.Embedding N(0,1)
        pe=positional_embedding(L, D_EMBED),
        W_proj=jax.random.uniform(ks[1], (D_LOC_EMBED, D_LOC), jnp.float32, -kp_, kp_),
        b_proj=jax.random.uniform(ks[2], (D_LOC_EMBED,), jnp.float32, -kp_, kp_),
        W_ih=jax.random.uniform(ks[3], (GH, D_IN), jnp.float32, -kl, kl),
        W_hh=jax.random.uniform(ks[4], (GH, D_MODEL), jnp.float32, -kl, kl),
        b_ih=jax.random.uniform(ks[5], (GH,), jnp.float32, -kl, kl),
        b_hh=jax.random.uniform(ks[6], (GH,), jnp.float32, -kl, kl),
    )


def fold_params(p):
    """Fold embedding / positional / proj_loc / LSTM input weights for the kernel."""
    W_ih_e = p['W_ih'][:, :D_EMBED]                       # (512, 20)
    W_ih_l = p['W_ih'][:, D_EMBED:]                       # (512, 128)
    gemb = (p['E'] @ W_ih_e.T).astype(jnp.float32)        # (V, 512)
    wfold = (W_ih_l @ p['W_proj']).T.astype(jnp.bfloat16)  # (531, 512)
    whh_t = p['W_hh'].T.astype(jnp.bfloat16)              # (128, 512)
    posb = (p['pe'] @ W_ih_e.T + p['b_proj'] @ W_ih_l.T
            + p['b_ih'] + p['b_hh']).astype(jnp.float32)  # (L, 512)
    return dict(gemb=gemb, wfold=wfold, whh_t=whh_t, posb=posb)


# ----------------------------- pure-JAX reference ---------------------------

def forward_reference(tokens, loc_feat, p):
    H = D_MODEL
    x = p['E'][tokens] + p['pe'][None, :, :]              # embed + positional
    loc = loc_feat @ p['W_proj'].T + p['b_proj']          # proj_loc_layer
    x = jnp.concatenate([x, loc], axis=2)                 # (B, L, 148)
    x = jnp.transpose(x, (1, 0, 2))                       # (L, B, 148)
    B = tokens.shape[0]

    def step(carry, xt):
        h, c = carry
        g = xt @ p['W_ih'].T + p['b_ih'] + h @ p['W_hh'].T + p['b_hh']
        i = jax.nn.sigmoid(g[:, 0 * H:1 * H])
        f = jax.nn.sigmoid(g[:, 1 * H:2 * H])
        gg = jnp.tanh(g[:, 2 * H:3 * H])
        o = jax.nn.sigmoid(g[:, 3 * H:4 * H])
        c = f * c + i * gg
        h = o * jnp.tanh(c)
        return (h, c), h

    init = (jnp.zeros((B, H), jnp.float32), jnp.zeros((B, H), jnp.float32))
    _, ys = jax.lax.scan(step, init, x)
    return jnp.transpose(ys, (1, 0, 2))                   # (B, L, 128); dropout = identity


# ----------------------------------- main -----------------------------------

if __name__ == "__main__":
    B, L, VOCAB = 32, 16, 25       # 2 batch tiles of 16 -> 2 grid steps, M=256
    key = jax.random.PRNGKey(0)
    key, kt, kl_, kp = jax.random.split(key, 4)
    tokens = jax.random.randint(kt, (B, L), 0, VOCAB, jnp.int32)
    loc_feat = jax.random.normal(kl_, (B, L, D_LOC), jnp.float32)

    params = init_params(kp, vocab=VOCAB, L=L)
    kparams = fold_params(params)

    out = forward_pallas(tokens, loc_feat, kparams)
    out = jax.block_until_ready(out)
    assert out.shape == (B, L, D_MODEL), out.shape

    ref = forward_reference(tokens, loc_feat, params)
    np.testing.assert_allclose(np.asarray(out), np.asarray(ref),
                               rtol=2e-2, atol=2.5e-2)   # bf16 matmuls vs f32 ref
    print("KERNEL_OK")
</pallas_src>

<mosaic_0001>
module attributes {stable_mosaic.version = 11 : i64} {
  func.func @kernel(%arg0: i32, %arg1: memref<16x16x1xi32, #tpu.memory_space<vmem>>, %arg2: memref<16x16x531xbf16, #tpu.memory_space<vmem>>, %arg3: memref<25x512xf32, #tpu.memory_space<vmem>>, %arg4: memref<531x512xbf16, #tpu.memory_space<vmem>>, %arg5: memref<128x512xbf16, #tpu.memory_space<vmem>>, %arg6: memref<16x512xf32, #tpu.memory_space<vmem>>, %arg7: memref<16x16x128xf32, #tpu.memory_space<vmem>>, %arg8: memref<16x16x512xf32, #tpu.memory_space<vmem>>) attributes {dimension_semantics = [#tpu.dimension_semantics<parallel>], iteration_bounds = array<i64: 2>, scalar_prefetch = 0 : i64, scratch_operands = 1 : i64, tpu.core_type = #tpu.core_type<tc>, window_params = [{transform_indices = @transform_0, window_bounds = array<i64: 16, 16, 1>}, {transform_indices = @transform_1, window_bounds = array<i64: 16, 16, 531>}, {pipeline_mode = #tpu.pipeline_mode<synchronous>, transform_indices = @transform_2, window_bounds = array<i64: 25, 512>}, {pipeline_mode = #tpu.pipeline_mode<synchronous>, transform_indices = @transform_3, window_bounds = array<i64: 531, 512>}, {pipeline_mode = #tpu.pipeline_mode<synchronous>, transform_indices = @transform_4, window_bounds = array<i64: 128, 512>}, {pipeline_mode = #tpu.pipeline_mode<synchronous>, transform_indices = @transform_5, window_bounds = array<i64: 16, 512>}, {transform_indices = @transform_6, window_bounds = array<i64: 16, 16, 128>}]} {
    %c0 = arith.constant 0 : index
    %c0_0 = arith.constant 0 : index
    %c0_1 = arith.constant 0 : index
    %0 = vector.load %arg1[%c0, %c0_0, %c0_1] : memref<16x16x1xi32, #tpu.memory_space<vmem>>, vector<16x16x1xi32>
    %1 = tpu.iota {dimensions = array<i32: 2>} : vector<16x16x25xi32>
    %2 = vector.broadcast %0 : vector<16x16x1xi32> to vector<16x16x25xi32>
    %3 = arith.cmpi eq, %2, %1 : vector<16x16x25xi32>
    %4 = arith.extui %3 : vector<16x16x25xi1> to vector<16x16x25xi32>
    %5 = arith.sitofp %4 : vector<16x16x25xi32> to vector<16x16x25xf32>
    %6 = vector.shape_cast %5 : vector<16x16x25xf32> to vector<256x25xf32>
    %c0_2 = arith.constant 0 : index
    %c0_3 = arith.constant 0 : index
    %7 = vector.load %arg3[%c0_2, %c0_3] : memref<25x512xf32, #tpu.memory_space<vmem>>, vector<25x512xf32>
    %cst = arith.constant dense<0.000000e+00> : vector<256x512xf32>
    %8 = tpu.matmul %6, %7, %cst {dimension_numbers = #tpu.dot_dimension_numbers<[1], [0], [0], [1], [0, 0, 1, 1], [], []>} : vector<256x25xf32>, vector<25x512xf32>, vector<256x512xf32> -> vector<256x512xf32>
    %c0_4 = arith.constant 0 : index
    %c0_5 = arith.constant 0 : index
    %c0_6 = arith.constant 0 : index
    %9 = vector.load %arg2[%c0_4, %c0_5, %c0_6] : memref<16x16x531xbf16, #tpu.memory_space<vmem>>, vector<16x16x531xbf16>
    %10 = vector.shape_cast %9 : vector<16x16x531xbf16> to vector<256x531xbf16>
    %c0_7 = arith.constant 0 : index
    %c0_8 = arith.constant 0 : index
    %11 = vector.load %arg4[%c0_7, %c0_8] : memref<531x512xbf16, #tpu.memory_space<vmem>>, vector<531x512xbf16>
    %cst_9 = arith.constant dense<0.000000e+00> : vector<256x512xf32>
    %12 = tpu.matmul %10, %11, %cst_9 {dimension_numbers = #tpu.dot_dimension_numbers<[1], [0], [0], [1], [0, 0, 1, 1], [], []>} : vector<256x531xbf16>, vector<531x512xbf16>, vector<256x512xf32> -> vector<256x512xf32>
    %13 = arith.addf %8, %12 : vector<256x512xf32>
    %14 = vector.shape_cast %13 : vector<256x512xf32> to vector<16x16x512xf32>
    %c0_10 = arith.constant 0 : index
    %c0_11 = arith.constant 0 : index
    %15 = vector.load %arg6[%c0_10, %c0_11] : memref<16x512xf32, #tpu.memory_space<vmem>>, vector<16x512xf32>
    %16 = vector.shape_cast %15 : vector<16x512xf32> to vector<16x1x512xf32>
    %17 = vector.broadcast %16 : vector<16x1x512xf32> to vector<16x16x512xf32>
    %18 = arith.addf %14, %17 : vector<16x16x512xf32>
    %c0_12 = arith.constant 0 : index
    %c0_13 = arith.constant 0 : index
    %c0_14 = arith.constant 0 : index
    %19 = vector.load %arg8[%c0_12, %c0_13, %c0_14] : memref<16x16x512xf32, #tpu.memory_space<vmem>>, vector<16x16x512xf32>
    tpu.vector_store %arg8[%c0_12, %c0_13, %c0_14], %18 {strides = array<i32>} : memref<16x16x512xf32, #tpu.memory_space<vmem>>, vector<16x16x512xf32>,
    %c0_15 = arith.constant 0 : index
    %c0_16 = arith.constant 0 : index
    %20 = vector.load %arg5[%c0_15, %c0_16] : memref<128x512xbf16, #tpu.memory_space<vmem>>, vector<128x512xbf16>
    %cst_17 = arith.constant 0.000000e+00 : f32
    %21 = vector.broadcast %cst_17 : f32 to vector<16x128xf32>
    %cst_18 = arith.constant 0.000000e+00 : f32
    %22 = vector.broadcast %cst_18 : f32 to vector<16x128xf32>
    %c0_19 = arith.constant 0 : index
    %c0_20 = arith.constant 0 : index
    %c0_21 = arith.constant 0 : index
    %23 = vector.load %arg8[%c0_19, %c0_20, %c0_21] : memref<16x16x512xf32, #tpu.memory_space<vmem>>, vector<1x16x512xf32>
    %24 = vector.shape_cast %23 : vector<1x16x512xf32> to vector<16x512xf32>
    %25 = arith.truncf %21 : vector<16x128xf32> to vector<16x128xbf16>
    %cst_22 = arith.constant dense<0.000000e+00> : vector<16x512xf32>
    %26 = tpu.matmul %25, %20, %cst_22 {dimension_numbers = #tpu.dot_dimension_numbers<[1], [0], [0], [1], [0, 0, 1, 1], [], []>} : vector<16x128xbf16>, vector<128x512xbf16>, vector<16x512xf32> -> vector<16x512xf32>
    %27 = arith.addf %24, %26 : vector<16x512xf32>
    %28 = vector.extract_strided_slice %27 {offsets = [0, 0], sizes = [16, 128], strides = [1, 1]} : vector<16x512xf32> to vector<16x128xf32>
    %29 = arith.negf %28 : vector<16x128xf32>
    %30 = math.exp %29 : vector<16x128xf32>
    %cst_23 = arith.constant 1.000000e+00 : f32
    %31 = vector.broadcast %cst_23 : f32 to vector<16x128xf32>
    %32 = arith.addf %31, %30 : vector<16x128xf32>
    %33 = arith.divf %31, %32 : vector<16x128xf32>
    %34 = vector.extract_strided_slice %27 {offsets = [0, 128], sizes = [16, 128], strides = [1, 1]} : vector<16x512xf32> to vector<16x128xf32>
    %35 = arith.negf %34 : vector<16x128xf32>
    %36 = math.exp %35 : vector<16x128xf32>
    %cst_24 = arith.constant 1.000000e+00 : f32
    %37 = vector.broadcast %cst_24 : f32 to vector<16x128xf32>
    %38 = arith.addf %37, %36 : vector<16x128xf32>
    %39 = arith.divf %37, %38 : vector<16x128xf32>
    %40 = vector.extract_strided_slice %27 {offsets = [0, 256], sizes = [16, 128], strides = [1, 1]} : vector<16x512xf32> to vector<16x128xf32>
    %41 = math.tanh %40 : vector<16x128xf32>
    %42 = vector.extract_strided_slice %27 {offsets = [0, 384], sizes = [16, 128], strides = [1, 1]} : vector<16x512xf32> to vector<16x128xf32>
    %43 = arith.negf %42 : vector<16x128xf32>
    %44 = math.exp %43 : vector<16x128xf32>
    %cst_25 = arith.constant 1.000000e+00 : f32
    %45 = vector.broadcast %cst_25 : f32 to vector<16x128xf32>
    %46 = arith.addf %45, %44 : vector<16x128xf32>
    %47 = arith.divf %45, %46 : vector<16x128xf32>
    %48 = arith.mulf %39, %22 : vector<16x128xf32>
    %49 = arith.mulf %33, %41 : vector<16x128xf32>
    %50 = arith.addf %48, %49 : vector<16x128xf32>
    %51 = math.tanh %50 : vector<16x128xf32>
    %52 = arith.mulf %47, %51 : vector<16x128xf32>
    %c0_26 = arith.constant 0 : index
    %c0_27 = arith.constant 0 : index
    %c0_28 = arith.constant 0 : index
    %53 = vector.load %arg7[%c0_26, %c0_27, %c0_28] : memref<16x16x128xf32, #tpu.memory_space<vmem>>, vector<1x16x128xf32>
    %54 = vector.shape_cast %53 : vector<1x16x128xf32> to vector<16x128xf32>
    %55 = vector.shape_cast %52 : vector<16x128xf32> to vector<1x16x128xf32>
    tpu.vector_store %arg7[%c0_26, %c0_27, %c0_28], %55 {strides = array<i32>} : memref<16x16x128xf32, #tpu.memory_space<vmem>>, vector<1x16x128xf32>,
    %c1 = arith.constant 1 : index
    %c0_29 = arith.constant 0 : index
    %c0_30 = arith.constant 0 : index
    %56 = vector.load %arg8[%c1, %c0_29, %c0_30] : memref<16x16x512xf32, #tpu.memory_space<vmem>>, vector<1x16x512xf32>
    %57 = vector.shape_cast %56 : vector<1x16x512xf32> to vector<16x512xf32>
    %58 = arith.truncf %52 : vector<16x128xf32> to vector<16x128xbf16>
    %cst_31 = arith.constant dense<0.000000e+00> : vector<16x512xf32>
    %59 = tpu.matmul %58, %20, %cst_31 {dimension_numbers = #tpu.dot_dimension_numbers<[1], [0], [0], [1], [0, 0, 1, 1], [], []>} : vector<16x128xbf16>, vector<128x512xbf16>, vector<16x512xf32> -> vector<16x512xf32>
    %60 = arith.addf %57, %59 : vector<16x512xf32>
    %61 = vector.extract_strided_slice %60 {offsets = [0, 0], sizes = [16, 128], strides = [1, 1]} : vector<16x512xf32> to vector<16x128xf32>
    %62 = arith.negf %61 : vector<16x128xf32>
    %63 = math.exp %62 : vector<16x128xf32>
    %cst_32 = arith.constant 1.000000e+00 : f32
    %64 = vector.broadcast %cst_32 : f32 to vector<16x128xf32>
    %65 = arith.addf %64, %63 : vector<16x128xf32>
    %66 = arith.divf %64, %65 : vector<16x128xf32>
    %67 = vector.extract_strided_slice %60 {offsets = [0, 128], sizes = [16, 128], strides = [1, 1]} : vector<16x512xf32> to vector<16x128xf32>
    %68 = arith.negf %67 : vector<16x128xf32>
    %69 = math.exp %68 : vector<16x128xf32>
    %cst_33 = arith.constant 1.000000e+00 : f32
    %70 = vector.broadcast %cst_33 : f32 to vector<16x128xf32>
    %71 = arith.addf %70, %69 : vector<16x128xf32>
    %72 = arith.divf %70, %71 : vector<16x128xf32>
    %73 = vector.extract_strided_slice %60 {offsets = [0, 256], sizes = [16, 128], strides = [1, 1]} : vector<16x512xf32> to vector<16x128xf32>
    %74 = math.tanh %73 : vector<16x128xf32>
    %75 = vector.extract_strided_slice %60 {offsets = [0, 384], sizes = [16, 128], strides = [1, 1]} : vector<16x512xf32> to vector<16x128xf32>
    %76 = arith.negf %75 : vector<16x128xf32>
    %77 = math.exp %76 : vector<16x128xf32>
    %cst_34 = arith.constant 1.000000e+00 : f32
    %78 = vector.broadcast %cst_34 : f32 to vector<16x128xf32>
    %79 = arith.addf %78, %77 : vector<16x128xf32>
    %80 = arith.divf %78, %79 : vector<16x128xf32>
    %81 = arith.mulf %72, %50 : vector<16x128xf32>
    %82 = arith.mulf %66, %74 : vector<16x128xf32>
    %83 = arith.addf %81, %82 : vector<16x128xf32>
    %84 = math.tanh %83 : vector<16x128xf32>
    %85 = arith.mulf %80, %84 : vector<16x128xf32>
    %c1_35 = arith.constant 1 : index
    %c0_36 = arith.constant 0 : index
    %c0_37 = arith.constant 0 : index
    %86 = vector.load %arg7[%c1_35, %c0_36, %c0_37] : memref<16x16x128xf32, #tpu.memory_space<vmem>>, vector<1x16x128xf32>
    %87 = vector.shape_cast %86 : vector<1x16x128xf32> to vector<16x128xf32>
    %88 = vector.shape_cast %85 : vector<16x128xf32> to vector<1x16x128xf32>
    tpu.vector_store %arg7[%c1_35, %c0_36, %c0_37], %88 {strides = array<i32>} : memref<16x16x128xf32, #tpu.memory_space<vmem>>, vector<1x16x128xf32>,
    %c2 = arith.constant 2 : index
    %c0_38 = arith.constant 0 : index
    %c0_39 = arith.constant 0 : index
    %89 = vector.load %arg8[%c2, %c0_38, %c0_39] : memref<16x16x512xf32, #tpu.memory_space<vmem>>, vector<1x16x512xf32>
    %90 = vector.shape_cast %89 : vector<1x16x512xf32> to vector<16x512xf32>
    %91 = arith.truncf %85 : vector<16x128xf32> to vector<16x128xbf16>
    %cst_40 = arith.constant dense<0.000000e+00> : vector<16x512xf32>
    %92 = tpu.matmul %91, %20, %cst_40 {dimension_numbers = #tpu.dot_dimension_numbers<[1], [0], [0], [1], [0, 0, 1, 1], [], []>} : vector<16x128xbf16>, vector<128x512xbf16>, vector<16x512xf32> -> vector<16x512xf32>
    %93 = arith.addf %90, %92 : vector<16x512xf32>
    %94 = vector.extract_strided_slice %93 {offsets = [0, 0], sizes = [16, 128], strides = [1, 1]} : vector<16x512xf32> to vector<16x128xf32>
    %95 = arith.negf %94 : vector<16x128xf32>
    %96 = math.exp %95 : vector<16x128xf32>
    %cst_41 = arith.constant 1.000000e+00 : f32
    %97 = vector.broadcast %cst_41 : f32 to vector<16x128xf32>
    %98 = arith.addf %97, %96 : vector<16x128xf32>
    %99 = arith.divf %97, %98 : vector<16x128xf32>
    %100 = vector.extract_strided_slice %93 {offsets = [0, 128], sizes = [16, 128], strides = [1, 1]} : vector<16x512xf32> to vector<16x128xf32>
    %101 = arith.negf %100 : vector<16x128xf32>
    %102 = math.exp %101 : vector<16x128xf32>
    %cst_42 = arith.constant 1.000000e+00 : f32
    %103 = vector.broadcast %cst_42 : f32 to vector<16x128xf32>
    %104 = arith.addf %103, %102 : vector<16x128xf32>
    %105 = arith.divf %103, %104 : vector<16x128xf32>
    %106 = vector.extract_strided_slice %93 {offsets = [0, 256], sizes = [16, 128], strides = [1, 1]} : vector<16x512xf32> to vector<16x128xf32>
    %107 = math.tanh %106 : vector<16x128xf32>
    %108 = vector.extract_strided_slice %93 {offsets = [0, 384], sizes = [16, 128], strides = [1, 1]} : vector<16x512xf32> to vector<16x128xf32>
    %109 = arith.negf %108 : vector<16x128xf32>
    %110 = math.exp %109 : vector<16x128xf32>
    %cst_43 = arith.constant 1.000000e+00 : f32
    %111 = vector.broadcast %cst_43 : f32 to vector<16x128xf32>
    %112 = arith.addf %111, %110 : vector<16x128xf32>
    %113 = arith.divf %111, %112 : vector<16x128xf32>
    %114 = arith.mulf %105, %83 : vector<16x128xf32>
    %115 = arith.mulf %99, %107 : vector<16x128xf32>
    %116 = arith.addf %114, %115 : vector<16x128xf32>
    %117 = math.tanh %116 : vector<16x128xf32>
    %118 = arith.mulf %113, %117 : vector<16x128xf32>
    %c2_44 = arith.constant 2 : index
    %c0_45 = arith.constant 0 : index
    %c0_46 = arith.constant 0 : index
    %119 = vector.load %arg7[%c2_44, %c0_45, %c0_46] : memref<16x16x128xf32, #tpu.memory_space<vmem>>, vector<1x16x128xf32>
    %120 = vector.shape_cast %119 : vector<1x16x128xf32> to vector<16x128xf32>
    %121 = vector.shape_cast %118 : vector<16x128xf32> to vector<1x16x128xf32>
    tpu.vector_store %arg7[%c2_44, %c0_45, %c0_46], %121 {strides = array<i32>} : memref<16x16x128xf32, #tpu.memory_space<vmem>>, vector<1x16x128xf32>,
    %c3 = arith.constant 3 : index
    %c0_47 = arith.constant 0 : index
    %c0_48 = arith.constant 0 : index
    %122 = vector.load %arg8[%c3, %c0_47, %c0_48] : memref<16x16x512xf32, #tpu.memory_space<vmem>>, vector<1x16x512xf32>
    %123 = vector.shape_cast %122 : vector<1x16x512xf32> to vector<16x512xf32>
    %124 = arith.truncf %118 : vector<16x128xf32> to vector<16x128xbf16>
    %cst_49 = arith.constant dense<0.000000e+00> : vector<16x512xf32>
    %125 = tpu.matmul %124, %20, %cst_49 {dimension_numbers = #tpu.dot_dimension_numbers<[1], [0], [0], [1], [0, 0, 1, 1], [], []>} : vector<16x128xbf16>, vector<128x512xbf16>, vector<16x512xf32> -> vector<16x512xf32>
    %126 = arith.addf %123, %125 : vector<16x512xf32>
    %127 = vector.extract_strided_slice %126 {offsets = [0, 0], sizes = [16, 128], strides = [1, 1]} : vector<16x512xf32> to vector<16x128xf32>
    %128 = arith.negf %127 : vector<16x128xf32>
    %129 = math.exp %128 : vector<16x128xf32>
    %cst_50 = arith.constant 1.000000e+00 : f32
    %130 = vector.broadcast %cst_50 : f32 to vector<16x128xf32>
    %131 = arith.addf %130, %129 : vector<16x128xf32>
    %132 = arith.divf %130, %131 : vector<16x128xf32>
    %133 = vector.extract_strided_slice %126 {offsets = [0, 128], sizes = [16, 128], strides = [1, 1]} : vector<16x512xf32> to vector<16x128xf32>
    %134 = arith.negf %133 : vector<16x128xf32>
    %135 = math.exp %134 : vector<16x128xf32>
    %cst_51 = arith.constant 1.000000e+00 : f32
    %136 = vector.broadcast %cst_51 : f32 to vector<16x128xf32>
    %137 = arith.addf %136, %135 : vector<16x128xf32>
    %138 = arith.divf %136, %137 : vector<16x128xf32>
    %139 = vector.extract_strided_slice %126 {offsets = [0, 256], sizes = [16, 128], strides = [1, 1]} : vector<16x512xf32> to vector<16x128xf32>
    %140 = math.tanh %139 : vector<16x128xf32>
    %141 = vector.extract_strided_slice %126 {offsets = [0, 384], sizes = [16, 128], strides = [1, 1]} : vector<16x512xf32> to vector<16x128xf32>
    %142 = arith.negf %141 : vector<16x128xf32>
    %143 = math.exp %142 : vector<16x128xf32>
    %cst_52 = arith.constant 1.000000e+00 : f32
    %144 = vector.broadcast %cst_52 : f32 to vector<16x128xf32>
    %145 = arith.addf %144, %143 : vector<16x128xf32>
    %146 = arith.divf %144, %145 : vector<16x128xf32>
    %147 = arith.mulf %138, %116 : vector<16x128xf32>
    %148 = arith.mulf %132, %140 : vector<16x128xf32>
    %149 = arith.addf %147, %148 : vector<16x128xf32>
    %150 = math.tanh %149 : vector<16x128xf32>
    %151 = arith.mulf %146, %150 : vector<16x128xf32>
    %c3_53 = arith.constant 3 : index
    %c0_54 = arith.constant 0 : index
    %c0_55 = arith.constant 0 : index
    %152 = vector.load %arg7[%c3_53, %c0_54, %c0_55] : memref<16x16x128xf32, #tpu.memory_space<vmem>>, vector<1x16x128xf32>
    %153 = vector.shape_cast %152 : vector<1x16x128xf32> to vector<16x128xf32>
    %154 = vector.shape_cast %151 : vector<16x128xf32> to vector<1x16x128xf32>
    tpu.vector_store %arg7[%c3_53, %c0_54, %c0_55], %154 {strides = array<i32>} : memref<16x16x128xf32, #tpu.memory_space<vmem>>, vector<1x16x128xf32>,
    %c4 = arith.constant 4 : index
    %c0_56 = arith.constant 0 : index
    %c0_57 = arith.constant 0 : index
    %155 = vector.load %arg8[%c4, %c0_56, %c0_57] : memref<16x16x512xf32, #tpu.memory_space<vmem>>, vector<1x16x512xf32>
    %156 = vector.shape_cast %155 : vector<1x16x512xf32> to vector<16x512xf32>
    %157 = arith.truncf %151 : vector<16x128xf32> to vector<16x128xbf16>
    %cst_58 = arith.constant dense<0.000000e+00> : vector<16x512xf32>
    %158 = tpu.matmul %157, %20, %cst_58 {dimension_numbers = #tpu.dot_dimension_numbers<[1], [0], [0], [1], [0, 0, 1, 1], [], []>} : vector<16x128xbf16>, vector<128x512xbf16>, vector<16x512xf32> -> vector<16x512xf32>
    %159 = arith.addf %156, %158 : vector<16x512xf32>
    %160 = vector.extract_strided_slice %159 {offsets = [0, 0], sizes = [16, 128], strides = [1, 1]} : vector<16x512xf32> to vector<16x128xf32>
    %161 = arith.negf %160 : vector<16x128xf32>
    %162 = math.exp %161 : vector<16x128xf32>
    %cst_59 = arith.constant 1.000000e+00 : f32
    %163 = vector.broadcast %cst_59 : f32 to vector<16x128xf32>
    %164 = arith.addf %163, %162 : vector<16x128xf32>
    %165 = arith.divf %163, %164 : vector<16x128xf32>
    %166 = vector.extract_strided_slice %159 {offsets = [0, 128], sizes = [16, 128], strides = [1, 1]} : vector<16x512xf32> to vector<16x128xf32>
    %167 = arith.negf %166 : vector<16x128xf32>
    %168 = math.exp %167 : vector<16x128xf32>
    %cst_60 = arith.constant 1.000000e+00 : f32
    %169 = vector.broadcast %cst_60 : f32 to vector<16x128xf32>
    %170 = arith.addf %169, %168 : vector<16x128xf32>
    %171 = arith.divf %169, %170 : vector<16x128xf32>
    %172 = vector.extract_strided_slice %159 {offsets = [0, 256], sizes = [16, 128], strides = [1, 1]} : vector<16x512xf32> to vector<16x128xf32>
    %173 = math.tanh %172 : vector<16x128xf32>
    %174 = vector.extract_strided_slice %159 {offsets = [0, 384], sizes = [16, 128], strides = [1, 1]} : vector<16x512xf32> to vector<16x128xf32>
    %175 = arith.negf %174 : vector<16x128xf32>
    %176 = math.exp %175 : vector<16x128xf32>
    %cst_61 = arith.constant 1.000000e+00 : f32
    %177 = vector.broadcast %cst_61 : f32 to vector<16x128xf32>
    %178 = arith.addf %177, %176 : vector<16x128xf32>
    %179 = arith.divf %177, %178 : vector<16x128xf32>
    %180 = arith.mulf %171, %149 : vector<16x128xf32>
    %181 = arith.mulf %165, %173 : vector<16x128xf32>
    %182 = arith.addf %180, %181 : vector<16x128xf32>
    %183 = math.tanh %182 : vector<16x128xf32>
    %184 = arith.mulf %179, %183 : vector<16x128xf32>
    %c4_62 = arith.constant 4 : index
    %c0_63 = arith.constant 0 : index
    %c0_64 = arith.constant 0 : index
    %185 = vector.load %arg7[%c4_62, %c0_63, %c0_64] : memref<16x16x128xf32, #tpu.memory_space<vmem>>, vector<1x16x128xf32>
    %186 = vector.shape_cast %185 : vector<1x16x128xf32> to vector<16x128xf32>
    %187 = vector.shape_cast %184 : vector<16x128xf32> to vector<1x16x128xf32>
    tpu.vector_store %arg7[%c4_62, %c0_63, %c0_64], %187 {strides = array<i32>} : memref<16x16x128xf32, #tpu.memory_space<vmem>>, vector<1x16x128xf32>,
    %c5 = arith.constant 5 : index
    %c0_65 = arith.constant 0 : index
    %c0_66 = arith.constant 0 : index
    %188 = vector.load %arg8[%c5, %c0_65, %c0_66] : memref<16x16x512xf32, #tpu.memory_space<vmem>>, vector<1x16x512xf32>
    %189 = vector.shape_cast %188 : vector<1x16x512xf32> to vector<16x512xf32>
    %190 = arith.truncf %184 : vector<16x128xf32> to vector<16x128xbf16>
    %cst_67 = arith.constant dense<0.000000e+00> : vector<16x512xf32>
    %191 = tpu.matmul %190, %20, %cst_67 {dimension_numbers = #tpu.dot_dimension_numbers<[1], [0], [0], [1], [0, 0, 1, 1], [], []>} : vector<16x128xbf16>, vector<128x512xbf16>, vector<16x512xf32> -> vector<16x512xf32>
    %192 = arith.addf %189, %191 : vector<16x512xf32>
    %193 = vector.extract_strided_slice %192 {offsets = [0, 0], sizes = [16, 128], strides = [1, 1]} : vector<16x512xf32> to vector<16x128xf32>
    %194 = arith.negf %193 : vector<16x128xf32>
    %195 = math.exp %194 : vector<16x128xf32>
    %cst_68 = arith.constant 1.000000e+00 : f32
    %196 = vector.broadcast %cst_68 : f32 to vector<16x128xf32>
    %197 = arith.addf %196, %195 : vector<16x128xf32>
    %198 = arith.divf %196, %197 : vector<16x128xf32>
    %199 = vector.extract_strided_slice %192 {offsets = [0, 128], sizes = [16, 128], strides = [1, 1]} : vector<16x512xf32> to vector<16x128xf32>
    %200 = arith.negf %199 : vector<16x128xf32>
    %201 = math.exp %200 : vector<16x128xf32>
    %cst_69 = arith.constant 1.000000e+00 : f32
    %202 = vector.broadcast %cst_69 : f32 to vector<16x128xf32>
    %203 = arith.addf %202, %201 : vector<16x128xf32>
    %204 = arith.divf %202, %203 : vector<16x128xf32>
    %205 = vector.extract_strided_slice %192 {offsets = [0, 256], sizes = [16, 128], strides = [1, 1]} : vector<16x512xf32> to vector<16x128xf32>
    %206 = math.tanh %205 : vector<16x128xf32>
    %207 = vector.extract_strided_slice %192 {offsets = [0, 384], sizes = [16, 128], strides = [1, 1]} : vector<16x512xf32> to vector<16x128xf32>
    %208 = arith.negf %207 : vector<16x128xf32>
    %209 = math.exp %208 : vector<16x128xf32>
    %cst_70 = arith.constant 1.000000e+00 : f32
    %210 = vector.broadcast %cst_70 : f32 to vector<16x128xf32>
    %211 = arith.addf %210, %209 : vector<16x128xf32>
    %212 = arith.divf %210, %211 : vector<16x128xf32>
    %213 = arith.mulf %204, %182 : vector<16x128xf32>
    %214 = arith.mulf %198, %206 : vector<16x128xf32>
    %215 = arith.addf %213, %214 : vector<16x128xf32>
    %216 = math.tanh %215 : vector<16x128xf32>
    %217 = arith.mulf %212, %216 : vector<16x128xf32>
    %c5_71 = arith.constant 5 : index
    %c0_72 = arith.constant 0 : index
    %c0_73 = arith.constant 0 : index
    %218 = vector.load %arg7[%c5_71, %c0_72, %c0_73] : memref<16x16x128xf32, #tpu.memory_space<vmem>>, vector<1x16x128xf32>
    %219 = vector.shape_cast %218 : vector<1x16x128xf32> to vector<16x128xf32>
    %220 = vector.shape_cast %217 : vector<16x128xf32> to vector<1x16x128xf32>
    tpu.vector_store %arg7[%c5_71, %c0_72, %c0_73], %220 {strides = array<i32>} : memref<16x16x128xf32, #tpu.memory_space<vmem>>, vector<1x16x128xf32>,
    %c6 = arith.constant 6 : index
    %c0_74 = arith.constant 0 : index
    %c0_75 = arith.constant 0 : index
    %221 = vector.load %arg8[%c6, %c0_74, %c0_75] : memref<16x16x512xf32, #tpu.memory_space<vmem>>, vector<1x16x512xf32>
    %222 = vector.shape_cast %221 : vector<1x16x512xf32> to vector<16x512xf32>
    %223 = arith.truncf %217 : vector<16x128xf32> to vector<16x128xbf16>
    %cst_76 = arith.constant dense<0.000000e+00> : vector<16x512xf32>
    %224 = tpu.matmul %223, %20, %cst_76 {dimension_numbers = #tpu.dot_dimension_numbers<[1], [0], [0], [1], [0, 0, 1, 1], [], []>} : vector<16x128xbf16>, vector<128x512xbf16>, vector<16x512xf32> -> vector<16x512xf32>
    %225 = arith.addf %222, %224 : vector<16x512xf32>
    %226 = vector.extract_strided_slice %225 {offsets = [0, 0], sizes = [16, 128], strides = [1, 1]} : vector<16x512xf32> to vector<16x128xf32>
    %227 = arith.negf %226 : vector<16x128xf32>
    %228 = math.exp %227 : vector<16x128xf32>
    %cst_77 = arith.constant 1.000000e+00 : f32
    %229 = vector.broadcast %cst_77 : f32 to vector<16x128xf32>
    %230 = arith.addf %229, %228 : vector<16x128xf32>
    %231 = arith.divf %229, %230 : vector<16x128xf32>
    %232 = vector.extract_strided_slice %225 {offsets = [0, 128], sizes = [16, 128], strides = [1, 1]} : vector<16x512xf32> to vector<16x128xf32>
    %233 = arith.negf %232 : vector<16x128xf32>
    %234 = math.exp %233 : vector<16x128xf32>
    %cst_78 = arith.constant 1.000000e+00 : f32
    %235 = vector.broadcast %cst_78 : f32 to vector<16x128xf32>
    %236 = arith.addf %235, %234 : vector<16x128xf32>
    %237 = arith.divf %235, %236 : vector<16x128xf32>
    %238 = vector.extract_strided_slice %225 {offsets = [0, 256], sizes = [16, 128], strides = [1, 1]} : vector<16x512xf32> to vector<16x128xf32>
    %239 = math.tanh %238 : vector<16x128xf32>
    %240 = vector.extract_strided_slice %225 {offsets = [0, 384], sizes = [16, 128], strides = [1, 1]} : vector<16x512xf32> to vector<16x128xf32>
    %241 = arith.negf %240 : vector<16x128xf32>
    %242 = math.exp %241 : vector<16x128xf32>
    %cst_79 = arith.constant 1.000000e+00 : f32
    %243 = vector.broadcast %cst_79 : f32 to vector<16x128xf32>
    %244 = arith.addf %243, %242 : vector<16x128xf32>
    %245 = arith.divf %243, %244 : vector<16x128xf32>
    %246 = arith.mulf %237, %215 : vector<16x128xf32>
    %247 = arith.mulf %231, %239 : vector<16x128xf32>
    %248 = arith.addf %246, %247 : vector<16x128xf32>
    %249 = math.tanh %248 : vector<16x128xf32>
    %250 = arith.mulf %245, %249 : vector<16x128xf32>
    %c6_80 = arith.constant 6 : index
    %c0_81 = arith.constant 0 : index
    %c0_82 = arith.constant 0 : index
    %251 = vector.load %arg7[%c6_80, %c0_81, %c0_82] : memref<16x16x128xf32, #tpu.memory_space<vmem>>, vector<1x16x128xf32>
    %252 = vector.shape_cast %251 : vector<1x16x128xf32> to vector<16x128xf32>
    %253 = vector.shape_cast %250 : vector<16x128xf32> to vector<1x16x128xf32>
    tpu.vector_store %arg7[%c6_80, %c0_81, %c0_82], %253 {strides = array<i32>} : memref<16x16x128xf32, #tpu.memory_space<vmem>>, vector<1x16x128xf32>,
    %c7 = arith.constant 7 : index
    %c0_83 = arith.constant 0 : index
    %c0_84 = arith.constant 0 : index
    %254 = vector.load %arg8[%c7, %c0_83, %c0_84] : memref<16x16x512xf32, #tpu.memory_space<vmem>>, vector<1x16x512xf32>
    %255 = vector.shape_cast %254 : vector<1x16x512xf32> to vector<16x512xf32>
    %256 = arith.truncf %250 : vector<16x128xf32> to vector<16x128xbf16>
    %cst_85 = arith.constant dense<0.000000e+00> : vector<16x512xf32>
    %257 = tpu.matmul %256, %20, %cst_85 {dimension_numbers = #tpu.dot_dimension_numbers<[1], [0], [0], [1], [0, 0, 1, 1], [], []>} : vector<16x128xbf16>, vector<128x512xbf16>, vector<16x512xf32> -> vector<16x512xf32>
    %258 = arith.addf %255, %257 : vector<16x512xf32>
    %259 = vector.extract_strided_slice %258 {offsets = [0, 0], sizes = [16, 128], strides = [1, 1]} : vector<16x512xf32> to vector<16x128xf32>
    %260 = arith.negf %259 : vector<16x128xf32>
    %261 = math.exp %260 : vector<16x128xf32>
    %cst_86 = arith.constant 1.000000e+00 : f32
    %262 = vector.broadcast %cst_86 : f32 to vector<16x128xf32>
    %263 = arith.addf %262, %261 : vector<16x128xf32>
    %264 = arith.divf %262, %263 : vector<16x128xf32>
    %265 = vector.extract_strided_slice %258 {offsets = [0, 128], sizes = [16, 128], strides = [1, 1]} : vector<16x512xf32> to vector<16x128xf32>
    %266 = arith.negf %265 : vector<16x128xf32>
    %267 = math.exp %266 : vector<16x128xf32>
    %cst_87 = arith.constant 1.000000e+00 : f32
    %268 = vector.broadcast %cst_87 : f32 to vector<16x128xf32>
    %269 = arith.addf %268, %267 : vector<16x128xf32>
    %270 = arith.divf %268, %269 : vector<16x128xf32>
    %271 = vector.extract_strided_slice %258 {offsets = [0, 256], sizes = [16, 128], strides = [1, 1]} : vector<16x512xf32> to vector<16x128xf32>
    %272 = math.tanh %271 : vector<16x128xf32>
    %273 = vector.extract_strided_slice %258 {offsets = [0, 384], sizes = [16, 128], strides = [1, 1]} : vector<16x512xf32> to vector<16x128xf32>
    %274 = arith.negf %273 : vector<16x128xf32>
    %275 = math.exp %274 : vector<16x128xf32>
    %cst_88 = arith.constant 1.000000e+00 : f32
    %276 = vector.broadcast %cst_88 : f32 to vector<16x128xf32>
    %277 = arith.addf %276, %275 : vector<16x128xf32>
    %278 = arith.divf %276, %277 : vector<16x128xf32>
    %279 = arith.mulf %270, %248 : vector<16x128xf32>
    %280 = arith.mulf %264, %272 : vector<16x128xf32>
    %281 = arith.addf %279, %280 : vector<16x128xf32>
    %282 = math.tanh %281 : vector<16x128xf32>
    %283 = arith.mulf %278, %282 : vector<16x128xf32>
    %c7_89 = arith.constant 7 : index
    %c0_90 = arith.constant 0 : index
    %c0_91 = arith.constant 0 : index
    %284 = vector.load %arg7[%c7_89, %c0_90, %c0_91] : memref<16x16x128xf32, #tpu.memory_space<vmem>>, vector<1x16x128xf32>
    %285 = vector.shape_cast %284 : vector<1x16x128xf32> to vector<16x128xf32>
    %286 = vector.shape_cast %283 : vector<16x128xf32> to vector<1x16x128xf32>
    tpu.vector_store %arg7[%c7_89, %c0_90, %c0_91], %286 {strides = array<i32>} : memref<16x16x128xf32, #tpu.memory_space<vmem>>, vector<1x16x128xf32>,
    %c8 = arith.constant 8 : index
    %c0_92 = arith.constant 0 : index
    %c0_93 = arith.constant 0 : index
    %287 = vector.load %arg8[%c8, %c0_92, %c0_93] : memref<16x16x512xf32, #tpu.memory_space<vmem>>, vector<1x16x512xf32>
    %288 = vector.shape_cast %287 : vector<1x16x512xf32> to vector<16x512xf32>
    %289 = arith.truncf %283 : vector<16x128xf32> to vector<16x128xbf16>
    %cst_94 = arith.constant dense<0.000000e+00> : vector<16x512xf32>
    %290 = tpu.matmul %289, %20, %cst_94 {dimension_numbers = #tpu.dot_dimension_numbers<[1], [0], [0], [1], [0, 0, 1, 1], [], []>} : vector<16x128xbf16>, vector<128x512xbf16>, vector<16x512xf32> -> vector<16x512xf32>
    %291 = arith.addf %288, %290 : vector<16x512xf32>
    %292 = vector.extract_strided_slice %291 {offsets = [0, 0], sizes = [16, 128], strides = [1, 1]} : vector<16x512xf32> to vector<16x128xf32>
    %293 = arith.negf %292 : vector<16x128xf32>
    %294 = math.exp %293 : vector<16x128xf32>
    %cst_95 = arith.constant 1.000000e+00 : f32
    %295 = vector.broadcast %cst_95 : f32 to vector<16x128xf32>
    %296 = arith.addf %295, %294 : vector<16x128xf32>
    %297 = arith.divf %295, %296 : vector<16x128xf32>
    %298 = vector.extract_strided_slice %291 {offsets = [0, 128], sizes = [16, 128], strides = [1, 1]} : vector<16x512xf32> to vector<16x128xf32>
    %299 = arith.negf %298 : vector<16x128xf32>
    %300 = math.exp %299 : vector<16x128xf32>
    %cst_96 = arith.constant 1.000000e+00 : f32
    %301 = vector.broadcast %cst_96 : f32 to vector<16x128xf32>
    %302 = arith.addf %301, %300 : vector<16x128xf32>
    %303 = arith.divf %301, %302 : vector<16x128xf32>
    %304 = vector.extract_strided_slice %291 {offsets = [0, 256], sizes = [16, 128], strides = [1, 1]} : vector<16x512xf32> to vector<16x128xf32>
    %305 = math.tanh %304 : vector<16x128xf32>
    %306 = vector.extract_strided_slice %291 {offsets = [0, 384], sizes = [16, 128], strides = [1, 1]} : vector<16x512xf32> to vector<16x128xf32>
    %307 = arith.negf %306 : vector<16x128xf32>
    %308 = math.exp %307 : vector<16x128xf32>
    %cst_97 = arith.constant 1.000000e+00 : f32
    %309 = vector.broadcast %cst_97 : f32 to vector<16x128xf32>
    %310 = arith.addf %309, %308 : vector<16x128xf32>
    %311 = arith.divf %309, %310 : vector<16x128xf32>
    %312 = arith.mulf %303, %281 : vector<16x128xf32>
    %313 = arith.mulf %297, %305 : vector<16x128xf32>
    %314 = arith.addf %312, %313 : vector<16x128xf32>
    %315 = math.tanh %314 : vector<16x128xf32>
    %316 = arith.mulf %311, %315 : vector<16x128xf32>
    %c8_98 = arith.constant 8 : index
    %c0_99 = arith.constant 0 : index
    %c0_100 = arith.constant 0 : index
    %317 = vector.load %arg7[%c8_98, %c0_99, %c0_100] : memref<16x16x128xf32, #tpu.memory_space<vmem>>, vector<1x16x128xf32>
    %318 = vector.shape_cast %317 : vector<1x16x128xf32> to vector<16x128xf32>
    %319 = vector.shape_cast %316 : vector<16x128xf32> to vector<1x16x128xf32>
    tpu.vector_store %arg7[%c8_98, %c0_99, %c0_100], %319 {strides = array<i32>} : memref<16x16x128xf32, #tpu.memory_space<vmem>>, vector<1x16x128xf32>,
    %c9 = arith.constant 9 : index
    %c0_101 = arith.constant 0 : index
    %c0_102 = arith.constant 0 : index
    %320 = vector.load %arg8[%c9, %c0_101, %c0_102] : memref<16x16x512xf32, #tpu.memory_space<vmem>>, vector<1x16x512xf32>
    %321 = vector.shape_cast %320 : vector<1x16x512xf32> to vector<16x512xf32>
    %322 = arith.truncf %316 : vector<16x128xf32> to vector<16x128xbf16>
    %cst_103 = arith.constant dense<0.000000e+00> : vector<16x512xf32>
    %323 = tpu.matmul %322, %20, %cst_103 {dimension_numbers = #tpu.dot_dimension_numbers<[1], [0], [0], [1], [0, 0, 1, 1], [], []>} : vector<16x128xbf16>, vector<128x512xbf16>, vector<16x512xf32> -> vector<16x512xf32>
    %324 = arith.addf %321, %323 : vector<16x512xf32>
    %325 = vector.extract_strided_slice %324 {offsets = [0, 0], sizes = [16, 128], strides = [1, 1]} : vector<16x512xf32> to vector<16x128xf32>
    %326 = arith.negf %325 : vector<16x128xf32>
    %327 = math.exp %326 : vector<16x128xf32>
    %cst_104 = arith.constant 1.000000e+00 : f32
    %328 = vector.broadcast %cst_104 : f32 to vector<16x128xf32>
    %329 = arith.addf %328, %327 : vector<16x128xf32>
    %330 = arith.divf %328, %329 : vector<16x128xf32>
    %331 = vector.extract_strided_slice %324 {offsets = [0, 128], sizes = [16, 128], strides = [1, 1]} : vector<16x512xf32> to vector<16x128xf32>
    %332 = arith.negf %331 : vector<16x128xf32>
    %333 = math.exp %332 : vector<16x128xf32>
    %cst_105 = arith.constant 1.000000e+00 : f32
    %334 = vector.broadcast %cst_105 : f32 to vector<16x128xf32>
    %335 = arith.addf %334, %333 : vector<16x128xf32>
    %336 = arith.divf %334, %335 : vector<16x128xf32>
    %337 = vector.extract_strided_slice %324 {offsets = [0, 256], sizes = [16, 128], strides = [1, 1]} : vector<16x512xf32> to vector<16x128xf32>
    %338 = math.tanh %337 : vector<16x128xf32>
    %339 = vector.extract_strided_slice %324 {offsets = [0, 384], sizes = [16, 128], strides = [1, 1]} : vector<16x512xf32> to vector<16x128xf32>
    %340 = arith.negf %339 : vector<16x128xf32>
    %341 = math.exp %340 : vector<16x128xf32>
    %cst_106 = arith.constant 1.000000e+00 : f32
    %342 = vector.broadcast %cst_106 : f32 to vector<16x128xf32>
    %343 = arith.addf %342, %341 : vector<16x128xf32>
    %344 = arith.divf %342, %343 : vector<16x128xf32>
    %345 = arith.mulf %336, %314 : vector<16x128xf32>
    %346 = arith.mulf %330, %338 : vector<16x128xf32>
    %347 = arith.addf %345, %346 : vector<16x128xf32>
    %348 = math.tanh %347 : vector<16x128xf32>
    %349 = arith.mulf %344, %348 : vector<16x128xf32>
    %c9_107 = arith.constant 9 : index
    %c0_108 = arith.constant 0 : index
    %c0_109 = arith.constant 0 : index
    %350 = vector.load %arg7[%c9_107, %c0_108, %c0_109] : memref<16x16x128xf32, #tpu.memory_space<vmem>>, vector<1x16x128xf32>
    %351 = vector.shape_cast %350 : vector<1x16x128xf32> to vector<16x128xf32>
    %352 = vector.shape_cast %349 : vector<16x128xf32> to vector<1x16x128xf32>
    tpu.vector_store %arg7[%c9_107, %c0_108, %c0_109], %352 {strides = array<i32>} : memref<16x16x128xf32, #tpu.memory_space<vmem>>, vector<1x16x128xf32>,
    %c10 = arith.constant 10 : index
    %c0_110 = arith.constant 0 : index
    %c0_111 = arith.constant 0 : index
    %353 = vector.load %arg8[%c10, %c0_110, %c0_111] : memref<16x16x512xf32, #tpu.memory_space<vmem>>, vector<1x16x512xf32>
    %354 = vector.shape_cast %353 : vector<1x16x512xf32> to vector<16x512xf32>
    %355 = arith.truncf %349 : vector<16x128xf32> to vector<16x128xbf16>
    %cst_112 = arith.constant dense<0.000000e+00> : vector<16x512xf32>
    %356 = tpu.matmul %355, %20, %cst_112 {dimension_numbers = #tpu.dot_dimension_numbers<[1], [0], [0], [1], [0, 0, 1, 1], [], []>} : vector<16x128xbf16>, vector<128x512xbf16>, vector<16x512xf32> -> vector<16x512xf32>
    %357 = arith.addf %354, %356 : vector<16x512xf32>
    %358 = vector.extract_strided_slice %357 {offsets = [0, 0], sizes = [16, 128], strides = [1, 1]} : vector<16x512xf32> to vector<16x128xf32>
    %359 = arith.negf %358 : vector<16x128xf32>
    %360 = math.exp %359 : vector<16x128xf32>
    %cst_113 = arith.constant 1.000000e+00 : f32
    %361 = vector.broadcast %cst_113 : f32 to vector<16x128xf32>
    %362 = arith.addf %361, %360 : vector<16x128xf32>
    %363 = arith.divf %361, %362 : vector<16x128xf32>
    %364 = vector.extract_strided_slice %357 {offsets = [0, 128], sizes = [16, 128], strides = [1, 1]} : vector<16x512xf32> to vector<16x128xf32>
    %365 = arith.negf %364 : vector<16x128xf32>
    %366 = math.exp %365 : vector<16x128xf32>
    %cst_114 = arith.constant 1.000000e+00 : f32
    %367 = vector.broadcast %cst_114 : f32 to vector<16x128xf32>
    %368 = arith.addf %367, %366 : vector<16x128xf32>
    %369 = arith.divf %367, %368 : vector<16x128xf32>
    %370 = vector.extract_strided_slice %357 {offsets = [0, 256], sizes = [16, 128], strides = [1, 1]} : vector<16x512xf32> to vector<16x128xf32>
    %371 = math.tanh %370 : vector<16x128xf32>
    %372 = vector.extract_strided_slice %357 {offsets = [0, 384], sizes = [16, 128], strides = [1, 1]} : vector<16x512xf32> to vector<16x128xf32>
    %373 = arith.negf %372 : vector<16x128xf32>
    %374 = math.exp %373 : vector<16x128xf32>
    %cst_115 = arith.constant 1.000000e+00 : f32
    %375 = vector.broadcast %cst_115 : f32 to vector<16x128xf32>
    %376 = arith.addf %375, %374 : vector<16x128xf32>
    %377 = arith.divf %375, %376 : vector<16x128xf32>
    %378 = arith.mulf %369, %347 : vector<16x128xf32>
    %379 = arith.mulf %363, %371 : vector<16x128xf32>
    %380 = arith.addf %378, %379 : vector<16x128xf32>
    %381 = math.tanh %380 : vector<16x128xf32>
    %382 = arith.mulf %377, %381 : vector<16x128xf32>
    %c10_116 = arith.constant 10 : index
    %c0_117 = arith.constant 0 : index
    %c0_118 = arith.constant 0 : index
    %383 = vector.load %arg7[%c10_116, %c0_117, %c0_118] : memref<16x16x128xf32, #tpu.memory_space<vmem>>, vector<1x16x128xf32>
    %384 = vector.shape_cast %383 : vector<1x16x128xf32> to vector<16x128xf32>
    %385 = vector.shape_cast %382 : vector<16x128xf32> to vector<1x16x128xf32>
    tpu.vector_store %arg7[%c10_116, %c0_117, %c0_118], %385 {strides = array<i32>} : memref<16x16x128xf32, #tpu.memory_space<vmem>>, vector<1x16x128xf32>,
    %c11 = arith.constant 11 : index
    %c0_119 = arith.constant 0 : index
    %c0_120 = arith.constant 0 : index
    %386 = vector.load %arg8[%c11, %c0_119, %c0_120] : memref<16x16x512xf32, #tpu.memory_space<vmem>>, vector<1x16x512xf32>
    %387 = vector.shape_cast %386 : vector<1x16x512xf32> to vector<16x512xf32>
    %388 = arith.truncf %382 : vector<16x128xf32> to vector<16x128xbf16>
    %cst_121 = arith.constant dense<0.000000e+00> : vector<16x512xf32>
    %389 = tpu.matmul %388, %20, %cst_121 {dimension_numbers = #tpu.dot_dimension_numbers<[1], [0], [0], [1], [0, 0, 1, 1], [], []>} : vector<16x128xbf16>, vector<128x512xbf16>, vector<16x512xf32> -> vector<16x512xf32>
    %390 = arith.addf %387, %389 : vector<16x512xf32>
    %391 = vector.extract_strided_slice %390 {offsets = [0, 0], sizes = [16, 128], strides = [1, 1]} : vector<16x512xf32> to vector<16x128xf32>
    %392 = arith.negf %391 : vector<16x128xf32>
    %393 = math.exp %392 : vector<16x128xf32>
    %cst_122 = arith.constant 1.000000e+00 : f32
    %394 = vector.broadcast %cst_122 : f32 to vector<16x128xf32>
    %395 = arith.addf %394, %393 : vector<16x128xf32>
    %396 = arith.divf %394, %395 : vector<16x128xf32>
    %397 = vector.extract_strided_slice %390 {offsets = [0, 128], sizes = [16, 128], strides = [1, 1]} : vector<16x512xf32> to vector<16x128xf32>
    %398 = arith.negf %397 : vector<16x128xf32>
    %399 = math.exp %398 : vector<16x128xf32>
    %cst_123 = arith.constant 1.000000e+00 : f32
    %400 = vector.broadcast %cst_123 : f32 to vector<16x128xf32>
    %401 = arith.addf %400, %399 : vector<16x128xf32>
    %402 = arith.divf %400, %401 : vector<16x128xf32>
    %403 = vector.extract_strided_slice %390 {offsets = [0, 256], sizes = [16, 128], strides = [1, 1]} : vector<16x512xf32> to vector<16x128xf32>
    %404 = math.tanh %403 : vector<16x128xf32>
    %405 = vector.extract_strided_slice %390 {offsets = [0, 384], sizes = [16, 128], strides = [1, 1]} : vector<16x512xf32> to vector<16x128xf32>
    %406 = arith.negf %405 : vector<16x128xf32>
    %407 = math.exp %406 : vector<16x128xf32>
    %cst_124 = arith.constant 1.000000e+00 : f32
    %408 = vector.broadcast %cst_124 : f32 to vector<16x128xf32>
    %409 = arith.addf %408, %407 : vector<16x128xf32>
    %410 = arith.divf %408, %409 : vector<16x128xf32>
    %411 = arith.mulf %402, %380 : vector<16x128xf32>
    %412 = arith.mulf %396, %404 : vector<16x128xf32>
    %413 = arith.addf %411, %412 : vector<16x128xf32>
    %414 = math.tanh %413 : vector<16x128xf32>
    %415 = arith.mulf %410, %414 : vector<16x128xf32>
    %c11_125 = arith.constant 11 : index
    %c0_126 = arith.constant 0 : index
    %c0_127 = arith.constant 0 : index
    %416 = vector.load %arg7[%c11_125, %c0_126, %c0_127] : memref<16x16x128xf32, #tpu.memory_space<vmem>>, vector<1x16x128xf32>
    %417 = vector.shape_cast %416 : vector<1x16x128xf32> to vector<16x128xf32>
    %418 = vector.shape_cast %415 : vector<16x128xf32> to vector<1x16x128xf32>
    tpu.vector_store %arg7[%c11_125, %c0_126, %c0_127], %418 {strides = array<i32>} : memref<16x16x128xf32, #tpu.memory_space<vmem>>, vector<1x16x128xf32>,
    %c12 = arith.constant 12 : index
    %c0_128 = arith.constant 0 : index
    %c0_129 = arith.constant 0 : index
    %419 = vector.load %arg8[%c12, %c0_128, %c0_129] : memref<16x16x512xf32, #tpu.memory_space<vmem>>, vector<1x16x512xf32>
    %420 = vector.shape_cast %419 : vector<1x16x512xf32> to vector<16x512xf32>
    %421 = arith.truncf %415 : vector<16x128xf32> to vector<16x128xbf16>
    %cst_130 = arith.constant dense<0.000000e+00> : vector<16x512xf32>
    %422 = tpu.matmul %421, %20, %cst_130 {dimension_numbers = #tpu.dot_dimension_numbers<[1], [0], [0], [1], [0, 0, 1, 1], [], []>} : vector<16x128xbf16>, vector<128x512xbf16>, vector<16x512xf32> -> vector<16x512xf32>
    %423 = arith.addf %420, %422 : vector<16x512xf32>
    %424 = vector.extract_strided_slice %423 {offsets = [0, 0], sizes = [16, 128], strides = [1, 1]} : vector<16x512xf32> to vector<16x128xf32>
    %425 = arith.negf %424 : vector<16x128xf32>
    %426 = math.exp %425 : vector<16x128xf32>
    %cst_131 = arith.constant 1.000000e+00 : f32
    %427 = vector.broadcast %cst_131 : f32 to vector<16x128xf32>
    %428 = arith.addf %427, %426 : vector<16x128xf32>
    %429 = arith.divf %427, %428 : vector<16x128xf32>
    %430 = vector.extract_strided_slice %423 {offsets = [0, 128], sizes = [16, 128], strides = [1, 1]} : vector<16x512xf32> to vector<16x128xf32>
    %431 = arith.negf %430 : vector<16x128xf32>
    %432 = math.exp %431 : vector<16x128xf32>
    %cst_132 = arith.constant 1.000000e+00 : f32
    %433 = vector.broadcast %cst_132 : f32 to vector<16x128xf32>
    %434 = arith.addf %433, %432 : vector<16x128xf32>
    %435 = arith.divf %433, %434 : vector<16x128xf32>
    %436 = vector.extract_strided_slice %423 {offsets = [0, 256], sizes = [16, 128], strides = [1, 1]} : vector<16x512xf32> to vector<16x128xf32>
    %437 = math.tanh %436 : vector<16x128xf32>
    %438 = vector.extract_strided_slice %423 {offsets = [0, 384], sizes = [16, 128], strides = [1, 1]} : vector<16x512xf32> to vector<16x128xf32>
    %439 = arith.negf %438 : vector<16x128xf32>
    %440 = math.exp %439 : vector<16x128xf32>
    %cst_133 = arith.constant 1.000000e+00 : f32
    %441 = vector.broadcast %cst_133 : f32 to vector<16x128xf32>
    %442 = arith.addf %441, %440 : vector<16x128xf32>
    %443 = arith.divf %441, %442 : vector<16x128xf32>
    %444 = arith.mulf %435, %413 : vector<16x128xf32>
    %445 = arith.mulf %429, %437 : vector<16x128xf32>
    %446 = arith.addf %444, %445 : vector<16x128xf32>
    %447 = math.tanh %446 : vector<16x128xf32>
    %448 = arith.mulf %443, %447 : vector<16x128xf32>
    %c12_134 = arith.constant 12 : index
    %c0_135 = arith.constant 0 : index
    %c0_136 = arith.constant 0 : index
    %449 = vector.load %arg7[%c12_134, %c0_135, %c0_136] : memref<16x16x128xf32, #tpu.memory_space<vmem>>, vector<1x16x128xf32>
    %450 = vector.shape_cast %449 : vector<1x16x128xf32> to vector<16x128xf32>
    %451 = vector.shape_cast %448 : vector<16x128xf32> to vector<1x16x128xf32>
    tpu.vector_store %arg7[%c12_134, %c0_135, %c0_136], %451 {strides = array<i32>} : memref<16x16x128xf32, #tpu.memory_space<vmem>>, vector<1x16x128xf32>,
    %c13 = arith.constant 13 : index
    %c0_137 = arith.constant 0 : index
    %c0_138 = arith.constant 0 : index
    %452 = vector.load %arg8[%c13, %c0_137, %c0_138] : memref<16x16x512xf32, #tpu.memory_space<vmem>>, vector<1x16x512xf32>
    %453 = vector.shape_cast %452 : vector<1x16x512xf32> to vector<16x512xf32>
    %454 = arith.truncf %448 : vector<16x128xf32> to vector<16x128xbf16>
    %cst_139 = arith.constant dense<0.000000e+00> : vector<16x512xf32>
    %455 = tpu.matmul %454, %20, %cst_139 {dimension_numbers = #tpu.dot_dimension_numbers<[1], [0], [0], [1], [0, 0, 1, 1], [], []>} : vector<16x128xbf16>, vector<128x512xbf16>, vector<16x512xf32> -> vector<16x512xf32>
    %456 = arith.addf %453, %455 : vector<16x512xf32>
    %457 = vector.extract_strided_slice %456 {offsets = [0, 0], sizes = [16, 128], strides = [1, 1]} : vector<16x512xf32> to vector<16x128xf32>
    %458 = arith.negf %457 : vector<16x128xf32>
    %459 = math.exp %458 : vector<16x128xf32>
    %cst_140 = arith.constant 1.000000e+00 : f32
    %460 = vector.broadcast %cst_140 : f32 to vector<16x128xf32>
    %461 = arith.addf %460, %459 : vector<16x128xf32>
    %462 = arith.divf %460, %461 : vector<16x128xf32>
    %463 = vector.extract_strided_slice %456 {offsets = [0, 128], sizes = [16, 128], strides = [1, 1]} : vector<16x512xf32> to vector<16x128xf32>
    %464 = arith.negf %463 : vector<16x128xf32>
    %465 = math.exp %464 : vector<16x128xf32>
    %cst_141 = arith.constant 1.000000e+00 : f32
    %466 = vector.broadcast %cst_141 : f32 to vector<16x128xf32>
    %467 = arith.addf %466, %465 : vector<16x128xf32>
    %468 = arith.divf %466, %467 : vector<16x128xf32>
    %469 = vector.extract_strided_slice %456 {offsets = [0, 256], sizes = [16, 128], strides = [1, 1]} : vector<16x512xf32> to vector<16x128xf32>
    %470 = math.tanh %469 : vector<16x128xf32>
    %471 = vector.extract_strided_slice %456 {offsets = [0, 384], sizes = [16, 128], strides = [1, 1]} : vector<16x512xf32> to vector<16x128xf32>
    %472 = arith.negf %471 : vector<16x128xf32>
    %473 = math.exp %472 : vector<16x128xf32>
    %cst_142 = arith.constant 1.000000e+00 : f32
    %474 = vector.broadcast %cst_142 : f32 to vector<16x128xf32>
    %475 = arith.addf %474, %473 : vector<16x128xf32>
    %476 = arith.divf %474, %475 : vector<16x128xf32>
    %477 = arith.mulf %468, %446 : vector<16x128xf32>
    %478 = arith.mulf %462, %470 : vector<16x128xf32>
    %479 = arith.addf %477, %478 : vector<16x128xf32>
    %480 = math.tanh %479 : vector<16x128xf32>
    %481 = arith.mulf %476, %480 : vector<16x128xf32>
    %c13_143 = arith.constant 13 : index
    %c0_144 = arith.constant 0 : index
    %c0_145 = arith.constant 0 : index
    %482 = vector.load %arg7[%c13_143, %c0_144, %c0_145] : memref<16x16x128xf32, #tpu.memory_space<vmem>>, vector<1x16x128xf32>
    %483 = vector.shape_cast %482 : vector<1x16x128xf32> to vector<16x128xf32>
    %484 = vector.shape_cast %481 : vector<16x128xf32> to vector<1x16x128xf32>
    tpu.vector_store %arg7[%c13_143, %c0_144, %c0_145], %484 {strides = array<i32>} : memref<16x16x128xf32, #tpu.memory_space<vmem>>, vector<1x16x128xf32>,
    %c14 = arith.constant 14 : index
    %c0_146 = arith.constant 0 : index
    %c0_147 = arith.constant 0 : index
    %485 = vector.load %arg8[%c14, %c0_146, %c0_147] : memref<16x16x512xf32, #tpu.memory_space<vmem>>, vector<1x16x512xf32>
    %486 = vector.shape_cast %485 : vector<1x16x512xf32> to vector<16x512xf32>
    %487 = arith.truncf %481 : vector<16x128xf32> to vector<16x128xbf16>
    %cst_148 = arith.constant dense<0.000000e+00> : vector<16x512xf32>
    %488 = tpu.matmul %487, %20, %cst_148 {dimension_numbers = #tpu.dot_dimension_numbers<[1], [0], [0], [1], [0, 0, 1, 1], [], []>} : vector<16x128xbf16>, vector<128x512xbf16>, vector<16x512xf32> -> vector<16x512xf32>
    %489 = arith.addf %486, %488 : vector<16x512xf32>
    %490 = vector.extract_strided_slice %489 {offsets = [0, 0], sizes = [16, 128], strides = [1, 1]} : vector<16x512xf32> to vector<16x128xf32>
    %491 = arith.negf %490 : vector<16x128xf32>
    %492 = math.exp %491 : vector<16x128xf32>
    %cst_149 = arith.constant 1.000000e+00 : f32
    %493 = vector.broadcast %cst_149 : f32 to vector<16x128xf32>
    %494 = arith.addf %493, %492 : vector<16x128xf32>
    %495 = arith.divf %493, %494 : vector<16x128xf32>
    %496 = vector.extract_strided_slice %489 {offsets = [0, 128], sizes = [16, 128], strides = [1, 1]} : vector<16x512xf32> to vector<16x128xf32>
    %497 = arith.negf %496 : vector<16x128xf32>
    %498 = math.exp %497 : vector<16x128xf32>
    %cst_150 = arith.constant 1.000000e+00 : f32
    %499 = vector.broadcast %cst_150 : f32 to vector<16x128xf32>
    %500 = arith.addf %499, %498 : vector<16x128xf32>
    %501 = arith.divf %499, %500 : vector<16x128xf32>
    %502 = vector.extract_strided_slice %489 {offsets = [0, 256], sizes = [16, 128], strides = [1, 1]} : vector<16x512xf32> to vector<16x128xf32>
    %503 = math.tanh %502 : vector<16x128xf32>
    %504 = vector.extract_strided_slice %489 {offsets = [0, 384], sizes = [16, 128], strides = [1, 1]} : vector<16x512xf32> to vector<16x128xf32>
    %505 = arith.negf %504 : vector<16x128xf32>
    %506 = math.exp %505 : vector<16x128xf32>
    %cst_151 = arith.constant 1.000000e+00 : f32
    %507 = vector.broadcast %cst_151 : f32 to vector<16x128xf32>
    %508 = arith.addf %507, %506 : vector<16x128xf32>
    %509 = arith.divf %507, %508 : vector<16x128xf32>
    %510 = arith.mulf %501, %479 : vector<16x128xf32>
    %511 = arith.mulf %495, %503 : vector<16x128xf32>
    %512 = arith.addf %510, %511 : vector<16x128xf32>
    %513 = math.tanh %512 : vector<16x128xf32>
    %514 = arith.mulf %509, %513 : vector<16x128xf32>
    %c14_152 = arith.constant 14 : index
    %c0_153 = arith.constant 0 : index
    %c0_154 = arith.constant 0 : index
    %515 = vector.load %arg7[%c14_152, %c0_153, %c0_154] : memref<16x16x128xf32, #tpu.memory_space<vmem>>, vector<1x16x128xf32>
    %516 = vector.shape_cast %515 : vector<1x16x128xf32> to vector<16x128xf32>
    %517 = vector.shape_cast %514 : vector<16x128xf32> to vector<1x16x128xf32>
    tpu.vector_store %arg7[%c14_152, %c0_153, %c0_154], %517 {strides = array<i32>} : memref<16x16x128xf32, #tpu.memory_space<vmem>>, vector<1x16x128xf32>,
    %c15 = arith.constant 15 : index
    %c0_155 = arith.constant 0 : index
    %c0_156 = arith.constant 0 : index
    %518 = vector.load %arg8[%c15, %c0_155, %c0_156] : memref<16x16x512xf32, #tpu.memory_space<vmem>>, vector<1x16x512xf32>
    %519 = vector.shape_cast %518 : vector<1x16x512xf32> to vector<16x512xf32>
    %520 = arith.truncf %514 : vector<16x128xf32> to vector<16x128xbf16>
    %cst_157 = arith.constant dense<0.000000e+00> : vector<16x512xf32>
    %521 = tpu.matmul %520, %20, %cst_157 {dimension_numbers = #tpu.dot_dimension_numbers<[1], [0], [0], [1], [0, 0, 1, 1], [], []>} : vector<16x128xbf16>, vector<128x512xbf16>, vector<16x512xf32> -> vector<16x512xf32>
    %522 = arith.addf %519, %521 : vector<16x512xf32>
    %523 = vector.extract_strided_slice %522 {offsets = [0, 0], sizes = [16, 128], strides = [1, 1]} : vector<16x512xf32> to vector<16x128xf32>
    %524 = arith.negf %523 : vector<16x128xf32>
    %525 = math.exp %524 : vector<16x128xf32>
    %cst_158 = arith.constant 1.000000e+00 : f32
    %526 = vector.broadcast %cst_158 : f32 to vector<16x128xf32>
    %527 = arith.addf %526, %525 : vector<16x128xf32>
    %528 = arith.divf %526, %527 : vector<16x128xf32>
    %529 = vector.extract_strided_slice %522 {offsets = [0, 128], sizes = [16, 128], strides = [1, 1]} : vector<16x512xf32> to vector<16x128xf32>
    %530 = arith.negf %529 : vector<16x128xf32>
    %531 = math.exp %530 : vector<16x128xf32>
    %cst_159 = arith.constant 1.000000e+00 : f32
    %532 = vector.broadcast %cst_159 : f32 to vector<16x128xf32>
    %533 = arith.addf %532, %531 : vector<16x128xf32>
    %534 = arith.divf %532, %533 : vector<16x128xf32>
    %535 = vector.extract_strided_slice %522 {offsets = [0, 256], sizes = [16, 128], strides = [1, 1]} : vector<16x512xf32> to vector<16x128xf32>
    %536 = math.tanh %535 : vector<16x128xf32>
    %537 = vector.extract_strided_slice %522 {offsets = [0, 384], sizes = [16, 128], strides = [1, 1]} : vector<16x512xf32> to vector<16x128xf32>
    %538 = arith.negf %537 : vector<16x128xf32>
    %539 = math.exp %538 : vector<16x128xf32>
    %cst_160 = arith.constant 1.000000e+00 : f32
    %540 = vector.broadcast %cst_160 : f32 to vector<16x128xf32>
    %541 = arith.addf %540, %539 : vector<16x128xf32>
    %542 = arith.divf %540, %541 : vector<16x128xf32>
    %543 = arith.mulf %534, %512 : vector<16x128xf32>
    %544 = arith.mulf %528, %536 : vector<16x128xf32>
    %545 = arith.addf %543, %544 : vector<16x128xf32>
    %546 = math.tanh %545 : vector<16x128xf32>
    %547 = arith.mulf %542, %546 : vector<16x128xf32>
    %c15_161 = arith.constant 15 : index
    %c0_162 = arith.constant 0 : index
    %c0_163 = arith.constant 0 : index
    %548 = vector.load %arg7[%c15_161, %c0_162, %c0_163] : memref<16x16x128xf32, #tpu.memory_space<vmem>>, vector<1x16x128xf32>
    %549 = vector.shape_cast %548 : vector<1x16x128xf32> to vector<16x128xf32>
    %550 = vector.shape_cast %547 : vector<16x128xf32> to vector<1x16x128xf32>
    tpu.vector_store %arg7[%c15_161, %c0_162, %c0_163], %550 {strides = array<i32>} : memref<16x16x128xf32, #tpu.memory_space<vmem>>, vector<1x16x128xf32>,
    return
  }
  func.func @transform_0(%arg0: i32) -> (i32, i32, i32) {
    %c0_i32 = arith.constant 0 : i32
    %c0_i32_0 = arith.constant 0 : i32
    %c0_i32_1 = arith.constant 0 : i32
    return %c0_i32, %arg0, %c0_i32_0 : i32, i32, i32
  }
  func.func @transform_1(%arg0: i32) -> (i32, i32, i32) {
    %c0_i32 = arith.constant 0 : i32
    %c0_i32_0 = arith.constant 0 : i32
    %c0_i32_1 = arith.constant 0 : i32
    return %c0_i32, %arg0, %c0_i32_0 : i32, i32, i32
  }
  func.func @transform_2(%arg0: i32) -> (i32, i32) {
    %c0_i32 = arith.constant 0 : i32
    %c0_i32_0 = arith.constant 0 : i32
    %c0_i32_1 = arith.constant 0 : i32
    return %c0_i32, %c0_i32_0 : i32, i32
  }
  func.func @transform_3(%arg0: i32) -> (i32, i32) {
    %c0_i32 = arith.constant 0 : i32
    %c0_i32_0 = arith.constant 0 : i32
    %c0_i32_1 = arith.constant 0 : i32
    return %c0_i32, %c0_i32_0 : i32, i32
  }
  func.func @transform_4(%arg0: i32) -> (i32, i32) {
    %c0_i32 = arith.constant 0 : i32
    %c0_i32_0 = arith.constant 0 : i32
    %c0_i32_1 = arith.constant 0 : i32
    return %c0_i32, %c0_i32_0 : i32, i32
  }
  func.func @transform_5(%arg0: i32) -> (i32, i32) {
    %c0_i32 = arith.constant 0 : i32
    %c0_i32_0 = arith.constant 0 : i32
    %c0_i32_1 = arith.constant 0 : i32
    return %c0_i32, %c0_i32_0 : i32, i32
  }
  func.func @transform_6(%arg0: i32) -> (i32, i32, i32) {
    %c0_i32 = arith.constant 0 : i32
    %c0_i32_0 = arith.constant 0 : i32
    %c0_i32_1 = arith.constant 0 : i32
    return %c0_i32, %arg0, %c0_i32_0 : i32, i32, i32
  }
}

</mosaic_0001>

<bundles_post_ra>
// kernel: tpu_custom_call.1
= control target key start
LH: loop header
LB: loop body
LE: loop exit
PB: predicated region body
PF: predicated region fallthrough
CT: control target
= control target key end

     0   :  { %s12802_s0 = inlined_call_operand.vmem [shape: s32[16,32,1], index: 0, kind: input, shape index: {}]   ;;  %s12803_s1 = inlined_call_operand.hbm [shape: bf16[16,32,531], index: 1, kind: input, shape index: {}]   ;;  %s12804_s2 = inlined_call_operand.vmem [shape: f32[25,512], index: 2, kind: input, shape index: {}]   ;;  %s12805_s3 = inlined_call_operand.hbm [shape: bf16[531,512], index: 3, kind: input, shape index: {}]   ;;  %s12806_s4 = inlined_call_operand.vmem [shape: bf16[128,512], index: 4, kind: input, shape index: {}]   ;;  %s12807_s5 = inlined_call_operand.vmem [shape: f32[16,512], index: 5, kind: input, shape index: {}]   ;;  %s12808_s6 = inlined_call_operand.hbm [shape: f32[16,32,128], index: 6, kind: output, shape index: {}]  }
   0x1   :  { %12854 = sst [smem:[#allocation161_spill]] %s12802_s0 }
   0x2   :  { %12855 = sst [smem:[#allocation162_spill]] %s12805_s3 }
   0x3   :  { %11 = vsyncpa [#allocation5], 0 }
   0x4   :  { %13 = vsyncpa [#allocation5 + $0x1], 0 }
   0x5   :  { %14 = vsyncpa [#allocation8], 0 }
   0x6   :  { %15 = vsyncpa [#allocation6], 0 }
   0x7   :  { %17 = vsyncpa [#allocation6 + $0x1], 0  ;;  %s9184_s21 = smov 0   ;;  %s9186_s22 = smov 0  }
   0x8   :  { %s9188_s23 = smov 0   ;;  %s9190_s24 = smov 0  }
   0x9 LB: > { %s9205_s25 = sadd.s32 4294967295, %s9127_s24   ;;  %s7418_s26 = sadd.s32 4294967294, %s9127_s24   ;;  %s9127_s24 = sphi %s9190_s24, %s13469_s24   ;;  %s9123_s23 = sphi %s9188_s23, %s13468_s23   ;;  %s9119_s22 = sphi %s9186_s22, %s13467_s22   ;;  %s9115_s21 = sphi %s9184_s21, %s13466_s21  }
   0xa   : > { %s9209_s27 = sadd.s32 1, %s9127_s24   ;;  %s30_s28 = sadd.s32 1, %s9123_s23 }
   0xb   : > { %s27_s29 = ssub.s32 %s9127_s24, %s9209_s27  ;;  %p37_p0 = scmp.ne.s32.totalorder %s9123_s23, %s9119_s22 }
   0xc   : > { %p28_p1 = scmp.eq.s32.totalorder %s27_s29, 0  ;;  %p38_p2 = scmp.eq.s32.totalorder %s9127_s24, 0 }
   0xd   : > { %p69_p3 = scmp.ne.s32.totalorder %s9119_s22, %s9115_s21  ;;  %p70_p4 = scmp.eq.s32.totalorder %s9205_s25, 0 }
   0xe   : > { %s9221_s30 = scalar_select %p28_p1, %s9123_s23, %s30_s28  }
   0xf   : > { %p9223_p5 = por %p38_p2, %p37_p0  ;;  %p9229_p6 = por %p70_p4, %p69_p3 }
  0x10   : > { %p177_p7 = scmp.eq.s32.totalorder %s9205_s25, 1  ;;  %p183_p8 = scmp.eq.s32.totalorder %s7418_s26, 1 }
  0x11   : > { %s12857_s8 = scalar_select %p9229_p6, 1, 0 }
  0x12   : > { %p7419_p9 = scmp.ge.s32.totalorder %s9127_s24, 1  ;;  %p190_p10 = scmp.lt.s32.totalorder %s9127_s24, 3 }
  0x13   : > { %p9236_p11 = por %p177_p7, %p37_p0  ;;  %p9240_p12 = por %p183_p8, %p69_p3 }
  0x14   : > { %p9244_p13 = pnand %p7419_p9, %p190_p10  ;;  %s9129_s12 = smov [#allocation7]  }
  0x15   : > { %s12858_s9 = scalar_select %p9236_p11, 1, 0 }
  0x16   : > { %s12859_s10 = scalar_select %p9240_p12, 1, 0 }
  0x17   : > { %p7971_p1 = pneg %p9244_p13  ;;  %s205_s13 = sshll.u32 %s9129_s12, 4  ;;  %s206_s13 = int_to_ptr.vmem [resolvable:$true] %s205_s13 }
  0x18   : > { %s9070_s14 = scalar_lea.vmem %s206_s13, 17152  ;;  %p9078_p8 = scmp.lt.s32.totalorder %s206_s13, %s206_s13 }
  0x19   : > { %p7972_p2 = pnand %p7971_p1, %p70_p4  ;;  %p9071_p7 = scmp.ne.s32.totalorder %s206_s13, %s9070_s14 }
  0x1a   : > { %p9079_p6 = scmp.lt.s32.totalorder %s9070_s14, %s9070_s14 }
  0x1b   : > { %p9061_p0 = pneg %p7972_p2 }
  0x1c   : > { %p9080_p12 = por %p9079_p6, %p9078_p8 }
  0x1d   : > { %p9073_p11 = pnand %p9071_p7, %p9061_p0 }
  0x1f   : > { %p9074_p3 = pneg %p9073_p11 }
  0x21   : > { %p9081_p9 = pnand %p9080_p12, %p9074_p3 }
  0x23   : > { %9084 = shalt.err (!%p9081_p9)
}
  0x24   : > { %s9130_s15 = smov 256   ;;  %s9131_s16 = smov 16  }
  0x25   : > { %s12861_s3 = sld [smem:[#allocation162_spill]]  ;;  %p7421_p10 = scmp.ge.s32.totalorder %s9127_s24, 2 }
  0x27   : > { %221 = sbr.rel (%p7421_p10) target bundleno = 84 (0x54), region = 32 }
  0x2b   : > { %7974 = dma.hbm_to_vmem [thread:$0]  (!%p7972_p2), %s12861_s3, 17152, %s206_s13, [#allocation8], %s9130_s15, %s9130_s15, %s9131_s16  }
  0x2c   : > { %224 = sbr.rel (!%p9223_p5) target bundleno = 70 (0x46), region = 36  ;;  %s226_s19 = sand.u32 (%p9223_p5), 1, %s9123_s23  }
  0x2d   : > { %s7945_s20 = sshll.u32 (%p9223_p5), %s9127_s24, 4  ;;  %s7422_s26 = sshll.u32 (%p9223_p5), %s226_s19, 8 }
  0x2e   : > { %s12862_s0 = sld [smem:[#allocation161_spill]] (%p9223_p5)  ;;  %s9270_s13 = scalar_lea.vmem (%p9223_p5), [#allocation3], %s7422_s26 }
  0x34   : > { %s9265_s12 = scalar_lea.vmem %s12862_s0, %s7945_s20 }
  0x35   : > { %v322_v0 = vld [vmem:[%s9265_s12] sm:$0xff]  ;;  %v324_v1 = vld [vmem:[%s9265_s12 + $0x8] sm:$0xff] }
  0x36   : > { %v326_v2 = vld [vmem:[%s9265_s12 + $0x20] sm:$0xff]  ;;  %323 = vst [vmem:[%s9270_s13] sm:$0xff] %v322_v0  ;;  %325 = vst [vmem:[%s9270_s13 + $0x8] sm:$0xff] %v324_v1  ;;  %v328_v3 = vld [vmem:[%s9265_s12 + $0x28] sm:$0xff] }
  0x37   : > { %327 = vst [vmem:[%s9270_s13 + $0x10] sm:$0xff] %v326_v2  ;;  %v330_v4 = vld [vmem:[%s9265_s12 + $0x40] sm:$0xff]  ;;  %v332_v5 = vld [vmem:[%s9265_s12 + $0x48] sm:$0xff]  ;;  %329 = vst [vmem:[%s9270_s13 + $0x18] sm:$0xff] %v328_v3 }
  0x38   : > { %331 = vst [vmem:[%s9270_s13 + $0x20] sm:$0xff] %v330_v4  ;;  %333 = vst [vmem:[%s9270_s13 + $0x28] sm:$0xff] %v332_v5  ;;  %v334_v6 = vld [vmem:[%s9265_s12 + $0x60] sm:$0xff]  ;;  %v336_v7 = vld [vmem:[%s9265_s12 + $0x68] sm:$0xff] }
  0x39   : > { %v338_v8 = vld [vmem:[%s9265_s12 + $0x80] sm:$0xff]  ;;  %335 = vst [vmem:[%s9270_s13 + $0x30] sm:$0xff] %v334_v6  ;;  %337 = vst [vmem:[%s9270_s13 + $0x38] sm:$0xff] %v336_v7  ;;  %v340_v9 = vld [vmem:[%s9265_s12 + $0x88] sm:$0xff] }
  0x3a   : > { %339 = vst [vmem:[%s9270_s13 + $0x40] sm:$0xff] %v338_v8  ;;  %v342_v10 = vld [vmem:[%s9265_s12 + $0xa0] sm:$0xff]  ;;  %v344_v11 = vld [vmem:[%s9265_s12 + $0xa8] sm:$0xff]  ;;  %341 = vst [vmem:[%s9270_s13 + $0x48] sm:$0xff] %v340_v9 }
  0x3b   : > { %343 = vst [vmem:[%s9270_s13 + $0x50] sm:$0xff] %v342_v10  ;;  %345 = vst [vmem:[%s9270_s13 + $0x58] sm:$0xff] %v344_v11  ;;  %v346_v12 = vld [vmem:[%s9265_s12 + $0xc0] sm:$0xff]  ;;  %v348_v13 = vld [vmem:[%s9265_s12 + $0xc8] sm:$0xff] }
  0x3c   : > { %v350_v14 = vld [vmem:[%s9265_s12 + $0xe0] sm:$0xff]  ;;  %347 = vst [vmem:[%s9270_s13 + $0x60] sm:$0xff] %v346_v12  ;;  %349 = vst [vmem:[%s9270_s13 + $0x68] sm:$0xff] %v348_v13  ;;  %v352_v15 = vld [vmem:[%s9265_s12 + $0xe8] sm:$0xff] }
  0x3d   : > { %351 = vst [vmem:[%s9270_s13 + $0x70] sm:$0xff] %v350_v14  ;;  %v354_v16 = vld [vmem:[%s9265_s12 + $0x100] sm:$0xff]  ;;  %v356_v17 = vld [vmem:[%s9265_s12 + $0x108] sm:$0xff]  ;;  %353 = vst [vmem:[%s9270_s13 + $0x78] sm:$0xff] %v352_v15 }
  0x3e   : > { %355 = vst [vmem:[%s9270_s13 + $0x80] sm:$0xff] %v354_v16  ;;  %357 = vst [vmem:[%s9270_s13 + $0x88] sm:$0xff] %v356_v17  ;;  %v358_v18 = vld [vmem:[%s9265_s12 + $0x120] sm:$0xff]  ;;  %v360_v19 = vld [vmem:[%s9265_s12 + $0x128] sm:$0xff] }
  0x3f   : > { %v362_v20 = vld [vmem:[%s9265_s12 + $0x140] sm:$0xff]  ;;  %359 = vst [vmem:[%s9270_s13 + $0x90] sm:$0xff] %v358_v18  ;;  %361 = vst [vmem:[%s9270_s13 + $0x98] sm:$0xff] %v360_v19  ;;  %v364_v21 = vld [vmem:[%s9265_s12 + $0x148] sm:$0xff] }
  0x40   : > { %363 = vst [vmem:[%s9270_s13 + $0xa0] sm:$0xff] %v362_v20  ;;  %v366_v22 = vld [vmem:[%s9265_s12 + $0x160] sm:$0xff]  ;;  %v368_v23 = vld [vmem:[%s9265_s12 + $0x168] sm:$0xff]  ;;  %365 = vst [vmem:[%s9270_s13 + $0xa8] sm:$0xff] %v364_v21 }
  0x41   : > { %367 = vst [vmem:[%s9270_s13 + $0xb0] sm:$0xff] %v366_v22  ;;  %369 = vst [vmem:[%s9270_s13 + $0xb8] sm:$0xff] %v368_v23  ;;  %v370_v24 = vld [vmem:[%s9265_s12 + $0x180] sm:$0xff]  ;;  %v372_v25 = vld [vmem:[%s9265_s12 + $0x188] sm:$0xff] }
  0x42   : > { %v374_v26 = vld [vmem:[%s9265_s12 + $0x1a0] sm:$0xff]  ;;  %371 = vst [vmem:[%s9270_s13 + $0xc0] sm:$0xff] %v370_v24  ;;  %373 = vst [vmem:[%s9270_s13 + $0xc8] sm:$0xff] %v372_v25  ;;  %v376_v27 = vld [vmem:[%s9265_s12 + $0x1a8] sm:$0xff] }
  0x43   : > { %375 = vst [vmem:[%s9270_s13 + $0xd0] sm:$0xff] %v374_v26  ;;  %v378_v28 = vld [vmem:[%s9265_s12 + $0x1c0] sm:$0xff]  ;;  %v380_v29 = vld [vmem:[%s9265_s12 + $0x1c8] sm:$0xff]  ;;  %377 = vst [vmem:[%s9270_s13 + $0xd8] sm:$0xff] %v376_v27 }
  0x44   : > { %379 = vst [vmem:[%s9270_s13 + $0xe0] sm:$0xff] %v378_v28  ;;  %381 = vst [vmem:[%s9270_s13 + $0xe8] sm:$0xff] %v380_v29  ;;  %v382_v30 = vld [vmem:[%s9265_s12 + $0x1e0] sm:$0xff]  ;;  %v384_v31 = vld [vmem:[%s9265_s12 + $0x1e8] sm:$0xff] }
  0x45   : > { %383 = vst [vmem:[%s9270_s13 + $0xf0] sm:$0xff] %v382_v30  ;;  %385 = vst [vmem:[%s9270_s13 + $0xf8] sm:$0xff] %v384_v31 }
  0x46 PF: > { %s392_s14 = sand.u32 1, %s9123_s23   ;;  %s7948_s15 = smul.u32 640, %s9127_s24 }
  0x47   : > { %s7947_s16 = smul.u32 640, %s392_s14  ;;  %s9132_s17 = smov 1280  }
  0x48   : > { %7953 = sst [smem:[#allocation11]] (%p9223_p5), %s9132_s17  ;;  %s403_s26 = scalar_lea.hbm %s12803_s1, %s7948_s15 }
  0x49   : > { %s7952_s18 = scalar_select %p9223_p5, [#allocation0], [#allocation14] }
  0x4a   : > { %s396_s29 = scalar_lea.vmem [#allocation4], %s7947_s16  ;;  %s9133_s13 = smov 640  }
  0x4b   : > { %s408_s28 = sld [smem:[%s7952_s18]]   ;;  %s416_s12 = sshll.u32 %s396_s29, 4  ;;  %s417_s12 = int_to_ptr.vmem [resolvable:$true] %s416_s12 }
  0x4c   : > { %7954 = sst [smem:[#allocation11 + $0x1]] (%p9223_p5), %s9133_s13  ;;  %s9134_s0 = smov 2  }
  0x4d   : > { %7955 = sst [smem:[#allocation11 + $0x2]] (%p9223_p5), %s9134_s0  ;;  %s9135_s3 = smov 320  }
  0x4e   : > { %7956 = sst [smem:[#allocation11 + $0x3]] (%p9223_p5), %s9135_s3  ;;  %s9136_s17 = smov 20  }
  0x4f   : > { %7957 = sst [smem:[#allocation11 + $0x4]] (%p9223_p5), %s9135_s3  ;;  %s393_s16 = scalar_lea.sflag [#allocation5], %s392_s14 }
  0x50   : > { %7958 = sst [smem:[#allocation11 + $0x5]] (%p9223_p5), %s9136_s17  ;;  %s9137_s19 = smov 131072  }
  0x51   : > { %s7428_s15 = sshll.u32 %s408_s28, 26 }
  0x52   : > { %s7429_s18 = sadd.s32 134217728, %s7428_s15 }
  0x53   : > { %7959 = dma.general (%p9223_p5), %s403_s26, 10240, %s417_s12, %s393_s16, %s9137_s19, [#allocation11], %s7429_s18, 0  }
  0x54 PF: > { %441 = sbr.rel (%p9244_p13) target bundleno = 4764 (0x129c), region = 78 }
  0x59   : > { %s9357_s0 = sand.u32 1, %s9119_s22   ;;  %p12863_p5 = scmp.ne.s32.totalorder %s12857_s8, 0 }
  0x5a   : > { %s7431_s3 = sshll.u32 %s9357_s0, 8  ;;  %s7949_s20 = smul.u32 640, %s9357_s0 }
  0x5b   : > { %s9363_s28 = scalar_lea.vmem [#allocation3], %s7431_s3  ;;  %s451_s14 = scalar_lea.sflag [#allocation5], %s9357_s0 }
  0x5c   : > { %s9366_s7 = scalar_lea.vmem [#allocation4], %s7949_s20 }
  0x5d   : > { %9102 = dma.done.wait (%p12863_p5), %s451_s14, 10240  }
  0x5e   : > { %9104 = vsyncadd (%p12863_p5), %s451_s14, 4294957056 }
  0x5f   : > { %9106 = dma.done.wait (%p70_p4), [#allocation8], 17152  }
  0x60   : > { %9108 = vsyncadd (%p70_p4), [#allocation8], 4294950144  ;;  %v8036_v32 = vld [vmem:[#allocation7 + $0xe4] ss:$16 sps:$4 sm:$0xff]   ;;  %v8040_v34 = vld [vmem:[#allocation7 + $0xe0] ss:$16 sps:$4 sm:$0xff]  }
  0x61   : > { %v8038_v33 = vld [vmem:[#allocation7 + $0x2e4] ss:$16 sps:$4 sm:$0xff]   ;;  %2102 = vmatprep.subr.bf16.mxu0 %v8036_v32  ;;  %v8041_v35 = vld [vmem:[#allocation7 + $0x2e0] ss:$16 sps:$4 sm:$0xff]   ;;  %vm2086_vm0 = vcmask 1040384   ;;  %vm2087_vm1 = vcmask 1041408  }
  0x62   : > { %2295 = vmatprep.subr.bf16.mxu1 %v8038_v33  ;;  %v8042_v36 = vld [vmem:[#allocation7 + $0xc4] ss:$16 sps:$4 sm:$0xff]   ;;  %2103 = vmatpush1.bf16.msra.mxu0 %v8040_v34  ;;  %v8046_v38 = vld [vmem:[#allocation7 + $0xc0] ss:$16 sps:$4 sm:$0xff]   ;;  %v9138_v31 = vmov 65535   ;;  %vm2037_vm2 = vcmask 154624  }
  0x63   : > { %2296 = vmatpush1.bf16.msra.mxu1 %v8041_v35  ;;  %v8044_v37 = vld [vmem:[#allocation7 + $0x2c4] ss:$16 sps:$4 sm:$0xff]   ;;  %2104 = vmatprep.subr.bf16.mxu0 %v8042_v36  ;;  %v8047_v39 = vld [vmem:[#allocation7 + $0x2c0] ss:$16 sps:$4 sm:$0xff]   ;;  %v2088_v32 = vsel %vm2086_vm0, 4294967295, %v9138_v31  ;;  %vm3260_vm4 = vcmask 203776  }
  0x64   : > { %2297 = vmatprep.subr.bf16.mxu1 %v8044_v37  ;;  %v8048_v40 = vld [vmem:[#allocation7 + $0xa4] ss:$16 sps:$4 sm:$0xff]   ;;  %v8052_v42 = vld [vmem:[#allocation7 + $0xa0] ss:$16 sps:$4 sm:$0xff]   ;;  %v9382_v36 = vsel %vm2087_vm1, %v2088_v32, 0  ;;  %s11512_s20 = scalar_lea.vmem [#allocation9], %s7431_s3 }
  0x65   : > { %v8050_v41 = vld [vmem:[#allocation7 + $0x2a4] ss:$16 sps:$4 sm:$0xff]   ;;  %v8053_v43 = vld [vmem:[#allocation7 + $0x2a0] ss:$16 sps:$4 sm:$0xff]   ;;  %v8265_v31 = vld [vmem:[#allocation7 + $0x16c] ss:$16 sps:$4 sm:$0xff]  }
  0x66   : > { %2105 = vmatpush1.bf16.msra.mxu0 %v8046_v38  ;;  %v8054_v44 = vld [vmem:[#allocation7 + $0x84] ss:$16 sps:$4 sm:$0xff]   ;;  %v8058_v46 = vld [vmem:[#allocation7 + $0x80] ss:$16 sps:$4 sm:$0xff]   ;;  %v8284_v32 = vld [vmem:[#allocation7 + $0x2ec] ss:$16 sps:$4 sm:$0xff]  }
  0x67   : > { %2298 = vmatpush1.bf16.msra.mxu1 %v8047_v39  ;;  %2106 = vmatprep.subr.bf16.mxu0 %v8048_v40  ;;  %v8056_v45 = vld [vmem:[#allocation7 + $0x284] ss:$16 sps:$4 sm:$0xff]   ;;  %v8059_v47 = vld [vmem:[#allocation7 + $0x280] ss:$16 sps:$4 sm:$0xff]   ;;  %s7281_s18 = scalar_lea.sflag [#allocation6], %s9357_s0 }
  0x68   : > { %2299 = vmatprep.subr.bf16.mxu1 %v8050_v41  ;;  %v8060_v48 = vld [vmem:[#allocation7 + $0x64] ss:$16 sps:$4 sm:$0xff]   ;;  %v8064_v50 = vld [vmem:[#allocation7 + $0x60] ss:$16 sps:$4 sm:$0xff]   ;;  %v8154_v41 = vld [vmem:[#allocation7 + $0xec] ss:$16 sps:$4 sm:$0xff]  }
  0x69   : > { %v8062_v49 = vld [vmem:[#allocation7 + $0x264] ss:$16 sps:$4 sm:$0xff]   ;;  %v8065_v51 = vld [vmem:[#allocation7 + $0x260] ss:$16 sps:$4 sm:$0xff]  }
  0x6a   : > { %2107 = vmatpush1.bf16.msra.mxu0 %v8052_v42  ;;  %v8066_v52 = vld [vmem:[#allocation7 + $0x44] ss:$16 sps:$4 sm:$0xff]   ;;  %v8070_v54 = vld [vmem:[#allocation7 + $0x40] ss:$16 sps:$4 sm:$0xff]  }
  0x6b   : > { %2300 = vmatpush1.bf16.msra.mxu1 %v8053_v43  ;;  %2108 = vmatprep.subr.bf16.mxu0 %v8054_v44  ;;  %v8068_v53 = vld [vmem:[#allocation7 + $0x244] ss:$16 sps:$4 sm:$0xff]   ;;  %v8071_v55 = vld [vmem:[#allocation7 + $0x240] ss:$16 sps:$4 sm:$0xff]   ;;  %v8135_v43 = vld [vmem:[%s9366_s7 + $0x8] ss:$20 sps:$4 sm:$0xff]  }
  0x6c   : > { %2301 = vmatprep.subr.bf16.mxu1 %v8056_v45  ;;  %v8072_v56 = vld [vmem:[#allocation7 + $0x24] ss:$16 sps:$4 sm:$0xff]   ;;  %v8076_v58 = vld [vmem:[#allocation7 + $0x20] ss:$16 sps:$4 sm:$0xff]   ;;  %v12811_v44 = vmov 0  }
  0x6d   : > { %v8074_v57 = vld [vmem:[#allocation7 + $0x224] ss:$16 sps:$4 sm:$0xff]   ;;  %v8077_v59 = vld [vmem:[#allocation7 + $0x220] ss:$16 sps:$4 sm:$0xff]   ;;  %8034 = vset.pattern.permute.xlu0 %v12811_v44  ;;  %8035 = vset.pattern.permute.xlu1 %v12811_v44 }
  0x6e   : > { %2109 = vmatpush1.bf16.msra.mxu0 %v8058_v46  ;;  %v8078_v60 = vld [vmem:[#allocation7 + $0x4] ss:$16 sps:$4 sm:$0xff]   ;;  %v8082_v62 = vld [vmem:[#allocation7] ss:$16 sps:$4 sm:$0xff]  }
  0x6f   : > { %2302 = vmatpush1.bf16.msra.mxu1 %v8059_v47  ;;  %2110 = vmatprep.subr.bf16.mxu0 %v8060_v48  ;;  %v8080_v61 = vld [vmem:[#allocation7 + $0x204] ss:$16 sps:$4 sm:$0xff]   ;;  %v8083_v63 = vld [vmem:[#allocation7 + $0x200] ss:$16 sps:$4 sm:$0xff]   ;;  %v8152_v48 = vld [vmem:[#allocation7 + $0xe8] ss:$16 sps:$4 sm:$0xff]  }
  0x70   : > { %2303 = vmatprep.subr.bf16.mxu1 %v8062_v49  ;;  %v8084_v0 = vld [vmem:[#allocation7 + $0x1e4] ss:$16 sps:$4 sm:$0xff]   ;;  %v8088_v2 = vld [vmem:[#allocation7 + $0x1e0] ss:$16 sps:$4 sm:$0xff]   ;;  %v8163_v49 = vld [vmem:[#allocation7 + $0xcc] ss:$16 sps:$4 sm:$0xff]  }
  0x71   : > { %v8086_v1 = vld [vmem:[#allocation7 + $0x3e4] ss:$16 sps:$4 sm:$0xff]   ;;  %v8089_v3 = vld [vmem:[#allocation7 + $0x3e0] ss:$16 sps:$4 sm:$0xff]  }
  0x72   : > { %2111 = vmatpush1.bf16.msra.mxu0 %v8064_v50  ;;  %v8090_v4 = vld [vmem:[#allocation7 + $0x1c4] ss:$16 sps:$4 sm:$0xff]   ;;  %v8094_v6 = vld [vmem:[#allocation7 + $0x1c0] ss:$16 sps:$4 sm:$0xff]   ;;  %v8161_v50 = vld [vmem:[#allocation7 + $0xc8] ss:$16 sps:$4 sm:$0xff]  }
  0x73   : > { %2304 = vmatpush1.bf16.msra.mxu1 %v8065_v51  ;;  %2112 = vmatprep.subr.bf16.mxu0 %v8066_v52  ;;  %v8092_v5 = vld [vmem:[#allocation7 + $0x3c4] ss:$16 sps:$4 sm:$0xff]   ;;  %v8095_v7 = vld [vmem:[#allocation7 + $0x3c0] ss:$16 sps:$4 sm:$0xff]   ;;  %v9399_v51 = vld [vmem:[%s9366_s7 + $0x28] ss:$20 sps:$4 sm:$0xff]  }
  0x74   : > { %2305 = vmatprep.subr.bf16.mxu1 %v8068_v53  ;;  %v8096_v8 = vld [vmem:[#allocation7 + $0x1a4] ss:$16 sps:$4 sm:$0xff]   ;;  %v8100_v10 = vld [vmem:[#allocation7 + $0x1a0] ss:$16 sps:$4 sm:$0xff]   ;;  %v8172_v53 = vld [vmem:[#allocation7 + $0xac] ss:$16 sps:$4 sm:$0xff]  }
  0x75   : > { %v8098_v9 = vld [vmem:[#allocation7 + $0x3a4] ss:$16 sps:$4 sm:$0xff]   ;;  %v8101_v11 = vld [vmem:[#allocation7 + $0x3a0] ss:$16 sps:$4 sm:$0xff]  }
  0x76   : > { %2113 = vmatpush1.bf16.msra.mxu0 %v8070_v54  ;;  %v8102_v12 = vld [vmem:[#allocation7 + $0x184] ss:$16 sps:$4 sm:$0xff]   ;;  %v8106_v14 = vld [vmem:[#allocation7 + $0x180] ss:$16 sps:$4 sm:$0xff]  }
  0x77   : > { %2306 = vmatpush1.bf16.msra.mxu1 %v8071_v55  ;;  %2114 = vmatprep.subr.bf16.mxu0 %v8072_v56  ;;  %v8104_v13 = vld [vmem:[#allocation7 + $0x384] ss:$16 sps:$4 sm:$0xff]   ;;  %v8107_v15 = vld [vmem:[#allocation7 + $0x380] ss:$16 sps:$4 sm:$0xff]   ;;  %v8170_v56 = vld [vmem:[#allocation7 + $0xa8] ss:$16 sps:$4 sm:$0xff]  }
  0x78   : > { %2307 = vmatprep.subr.bf16.mxu1 %v8074_v57  ;;  %v9377_v16 = vld [vmem:[%s9366_s7 + $0x4] ss:$20 sps:$4 sm:$0xff]   ;;  %v8137_v19 = vld [vmem:[%s9366_s7 + $0xc] ss:$20 sps:$4 sm:$0xff]   ;;  %v8142_v47 = vld [vmem:[%s9366_s7 + $0x34] ss:$20 sps:$4 sm:$0xff]  }
  0x79   : > { %v8108_v17 = vld [vmem:[#allocation7 + $0x164] ss:$16 sps:$4 sm:$0xff]   ;;  %2134 = vmatprep.mubr.bf16.mxu0 %v9377_v16  ;;  %v8112_v20 = vld [vmem:[#allocation7 + $0x160] ss:$16 sps:$4 sm:$0xff]   ;;  %2327 = vmatprep.mubr.bf16.mxu1 %v8137_v19  ;;  %v8181_v57 = vld [vmem:[#allocation7 + $0x8c] ss:$16 sps:$4 sm:$0xff]  }
  0x7a   : > { %2115 = vmatpush1.bf16.msra.mxu0 %v8076_v58  ;;  %v8110_v18 = vld [vmem:[#allocation7 + $0x364] ss:$16 sps:$4 sm:$0xff]   ;;  %v8113_v21 = vld [vmem:[#allocation7 + $0x360] ss:$16 sps:$4 sm:$0xff]   ;;  %v8227_v19 = vld [vmem:[#allocation7 + $0x1e8] ss:$16 sps:$4 sm:$0xff]  }
  0x7b   : > { %2308 = vmatpush1.bf16.msra.mxu1 %v8077_v59  ;;  %2116 = vmatprep.subr.bf16.mxu0 %v8078_v60  ;;  %v8114_v22 = vld [vmem:[#allocation7 + $0x144] ss:$16 sps:$4 sm:$0xff]   ;;  %v8118_v24 = vld [vmem:[#allocation7 + $0x140] ss:$16 sps:$4 sm:$0xff]  }
  0x7c   : > { %2309 = vmatprep.subr.bf16.mxu1 %v8080_v61  ;;  %v8116_v23 = vld [vmem:[#allocation7 + $0x344] ss:$16 sps:$4 sm:$0xff]   ;;  %v8119_v25 = vld [vmem:[#allocation7 + $0x340] ss:$16 sps:$4 sm:$0xff]   ;;  %v8179_v61 = vld [vmem:[#allocation7 + $0x88] ss:$16 sps:$4 sm:$0xff]  }
  0x7d   : > { %v8120_v26 = vld [vmem:[#allocation7 + $0x124] ss:$16 sps:$4 sm:$0xff]   ;;  %v8124_v28 = vld [vmem:[#allocation7 + $0x120] ss:$16 sps:$4 sm:$0xff]  }
  0x7e   : > { %2117 = vmatpush1.bf16.msra.mxu0 %v8082_v62  ;;  %v8122_v27 = vld [vmem:[#allocation7 + $0x324] ss:$16 sps:$4 sm:$0xff]   ;;  %v8125_v30 = vld [vmem:[#allocation7 + $0x320] ss:$16 sps:$4 sm:$0xff]   ;;  %v8190_v62 = vld [vmem:[#allocation7 + $0x6c] ss:$16 sps:$4 sm:$0xff]  }
  0x7f   : > { %2310 = vmatpush1.bf16.msra.mxu1 %v8083_v63  ;;  %2118 = vmatprep.subr.bf16.mxu0 %v8084_v0  ;;  %v965_v29 = vld [vmem:[#allocation7 + $0x420] sm:$0x33]  ;;  %v9403_v54 = vld [vmem:[%s9366_s7 + $0x54] ss:$20 sps:$4 sm:$0xff]   ;;  %v8148_v55 = vld [vmem:[%s9366_s7 + $0x5c] ss:$20 sps:$4 sm:$0xff]  }
  0x80   : > { %2311 = vmatprep.subr.bf16.mxu1 %v8086_v1  ;;  %v8126_v33 = vld [vmem:[#allocation7 + $0x104] ss:$16 sps:$4 sm:$0xff]   ;;  %v7679_v35 = vcombine.high %v965_v29, %v965_v29  ;;  %v8130_v37 = vld [vmem:[#allocation7 + $0x100] ss:$16 sps:$4 sm:$0xff]   ;;  %v7678_v39 = vcombine.low %v965_v29, %v965_v29  ;;  %v8151_v63 = vld [vmem:[%s9366_s7 + $0x58] ss:$20 sps:$4 sm:$0xff]  }
  0x81   : > { %v8128_v34 = vld [vmem:[#allocation7 + $0x304] ss:$16 sps:$4 sm:$0xff]   ;;  %v8131_v38 = vld [vmem:[#allocation7 + $0x300] ss:$16 sps:$4 sm:$0xff]  }
  0x82   : > { %2119 = vmatpush2.bf16.msra.mxu0 %v8088_v2  ;;  %v2094_v40 = vand.u32 %v7679_v35, %v9382_v36  ;;  %v9386_v42 = vld [vmem:[%s9366_s7] ss:$20 sps:$4 sm:$0xff]   ;;  %v2091_v46 = vand.u32 %v7678_v39, %v9382_v36  ;;  %v8145_v52 = vld [vmem:[%s9366_s7 + $0x30] ss:$20 sps:$4 sm:$0xff]   ;;  %v8188_v2 = vld [vmem:[#allocation7 + $0x68] ss:$16 sps:$4 sm:$0xff]  }
  0x83   : > { %2312 = vmatpush2.bf16.msra.mxu1 %v8089_v3  ;;  %2120 = vmatprep.subr.bf16.mxu0 %v8090_v4  ;;  %v9392_v45 = vld [vmem:[%s9366_s7 + $0x2c] ss:$20 sps:$4 sm:$0xff]   ;;  %v8208_v59 = vld [vmem:[#allocation7 + $0x404] ss:$16 sps:$4 sm:$0xff]   ;;  %v9413_v0 = vld [vmem:[%s9366_s7 + $0x7c] ss:$20 sps:$4 sm:$0xff]  }
  0x84   : > { %2313 = vmatprep.subr.bf16.mxu1 %v8092_v5  ;;  %v8206_v58 = vld [vmem:[#allocation7 + $0x400] ss:$16 sps:$4 sm:$0xff]   ;;  %v8157_v1 = vld [vmem:[%s9366_s7 + $0x84] ss:$20 sps:$4 sm:$0xff]   ;;  %v8199_v3 = vld [vmem:[#allocation7 + $0x4c] ss:$16 sps:$4 sm:$0xff]  }
  0x85   : > { %v9409_v60 = vld [vmem:[%s9366_s7 + $0x50] ss:$20 sps:$4 sm:$0xff]   ;;  %v9419_v4 = vld [vmem:[%s9366_s7 + $0x78] ss:$20 sps:$4 sm:$0xff]  }
  0x86   : > { %2121 = vmatpush2.bf16.msra.mxu0 %v8094_v6  ;;  %v8197_v5 = vld [vmem:[#allocation7 + $0x48] ss:$16 sps:$4 sm:$0xff]   ;;  %v8211_v6 = vld [vmem:[#allocation7 + $0x2c] ss:$16 sps:$4 sm:$0xff]   ;;  %v9449_v29 = vld [vmem:[%s9366_s7 + $0xf0] ss:$20 sps:$4 sm:$0xff]  }
  0x87   : > { %2314 = vmatpush2.bf16.msra.mxu1 %v8095_v7  ;;  %2122 = vmatprep.subr.bf16.mxu0 %v8096_v8  ;;  %v8160_v7 = vld [vmem:[%s9366_s7 + $0x80] ss:$20 sps:$4 sm:$0xff]   ;;  %v9423_v8 = vld [vmem:[%s9366_s7 + $0xa4] ss:$20 sps:$4 sm:$0xff]  }
  0x88   : > { %2315 = vmatprep.subr.bf16.mxu1 %v8098_v9  ;;  %v8166_v9 = vld [vmem:[%s9366_s7 + $0xac] ss:$20 sps:$4 sm:$0xff]   ;;  %v8193_v35 = vld [vmem:[%s9366_s7 + $0x124] ss:$20 sps:$4 sm:$0xff]  }
  0x89   : > { %v9459_v39 = vld [vmem:[%s9366_s7 + $0x118] ss:$20 sps:$4 sm:$0xff]  }
  0x8a   : > { %2123 = vmatpush2.bf16.msra.mxu0 %v8100_v10  ;;  %v8209_v10 = vld [vmem:[#allocation7 + $0x28] ss:$16 sps:$4 sm:$0xff]  }
  0x8b   : > { %2316 = vmatpush2.bf16.msra.mxu1 %v8101_v11  ;;  %2124 = vmatprep.subr.bf16.mxu0 %v8102_v12  ;;  %v8220_v11 = vld [vmem:[#allocation7 + $0xc] ss:$16 sps:$4 sm:$0xff]   ;;  %v9429_v12 = vld [vmem:[%s9366_s7 + $0xa0] ss:$20 sps:$4 sm:$0xff]  }
  0x8c   : > { %2317 = vmatprep.subr.bf16.mxu1 %v8104_v13  ;;  %v8218_v13 = vld [vmem:[#allocation7 + $0x8] ss:$16 sps:$4 sm:$0xff]  }
  0x8e   : > { %2125 = vmatpush2.bf16.msra.mxu0 %v8106_v14  ;;  %v8229_v14 = vld [vmem:[#allocation7 + $0x1ec] ss:$16 sps:$4 sm:$0xff]  }
  0x8f   : > { %2318 = vmatpush2.bf16.msra.mxu1 %v8107_v15  ;;  %2126 = vmatprep.subr.bf16.mxu0 %v8108_v17  ;;  %v8169_v15 = vld [vmem:[%s9366_s7 + $0xa8] ss:$20 sps:$4 sm:$0xff]   ;;  %v9433_v17 = vld [vmem:[%s9366_s7 + $0xcc] ss:$20 sps:$4 sm:$0xff]  }
  0x90   : > { %2319 = vmatprep.subr.bf16.mxu1 %v8110_v18  ;;  %v8175_v18 = vld [vmem:[%s9366_s7 + $0xd4] ss:$20 sps:$4 sm:$0xff]  }
  0x92   : > { %2127 = vmatpush2.bf16.msra.mxu0 %v8112_v20  ;;  %v8238_v20 = vld [vmem:[#allocation7 + $0x1cc] ss:$16 sps:$4 sm:$0xff]  }
  0x93   : > { %2320 = vmatpush2.bf16.msra.mxu1 %v8113_v21  ;;  %2128 = vmatprep.subr.bf16.mxu0 %v8114_v22  ;;  %v9439_v21 = vld [vmem:[%s9366_s7 + $0xc8] ss:$20 sps:$4 sm:$0xff]  }
  0x94   : > { %2321 = vmatprep.subr.bf16.mxu1 %v8116_v23  ;;  %v8236_v22 = vld [vmem:[#allocation7 + $0x1c8] ss:$16 sps:$4 sm:$0xff]   ;;  %v8178_v23 = vld [vmem:[%s9366_s7 + $0xd0] ss:$20 sps:$4 sm:$0xff]  }
  0x96   : > { %2129 = vmatpush2.bf16.msra.mxu0 %v8118_v24  ;;  %v8247_v24 = vld [vmem:[#allocation7 + $0x1ac] ss:$16 sps:$4 sm:$0xff]  }
  0x97   : > { %2322 = vmatpush2.bf16.msra.mxu1 %v8119_v25  ;;  %2130 = vmatprep.subr.bf16.mxu0 %v8120_v26  ;;  %v9443_v25 = vld [vmem:[%s9366_s7 + $0xf4] ss:$20 sps:$4 sm:$0xff]   ;;  %v8184_v26 = vld [vmem:[%s9366_s7 + $0xfc] ss:$20 sps:$4 sm:$0xff]  }
  0x98   : > { %2323 = vmatprep.subr.bf16.mxu1 %v8122_v27  ;;  %v8245_v27 = vld [vmem:[#allocation7 + $0x1a8] ss:$16 sps:$4 sm:$0xff]  }
  0x9a   : > { %2131 = vmatpush2.bf16.msra.mxu0 %v8124_v28  ;;  %v8256_v28 = vld [vmem:[#allocation7 + $0x18c] ss:$16 sps:$4 sm:$0xff]  }
  0x9b   : > { %2324 = vmatpush2.bf16.msra.mxu1 %v8125_v30  ;;  %2132 = vmatprep.subr.bf16.mxu0 %v8126_v33  ;;  %v8254_v30 = vld [vmem:[#allocation7 + $0x188] ss:$16 sps:$4 sm:$0xff]  }
  0x9c   : > { %2325 = vmatprep.subr.bf16.mxu1 %v8128_v34  ;;  %v8187_v33 = vld [vmem:[%s9366_s7 + $0xf8] ss:$20 sps:$4 sm:$0xff]   ;;  %v9453_v34 = vld [vmem:[%s9366_s7 + $0x11c] ss:$20 sps:$4 sm:$0xff]  }
  0x9e   : > { %2133 = vmatpush2.bf16.msra.mxu0 %v8130_v37  ;;  %v8263_v37 = vld [vmem:[#allocation7 + $0x168] ss:$16 sps:$4 sm:$0xff]  }
  0x9f   : > { %2326 = vmatpush2.bf16.msra.mxu1 %v8131_v38  ;;  %2500 = vmatprep.subr.bf16.mxu0 %v2094_v40  ;;  %v8268_v38 = vld [vmem:[#allocation7 + $0x14c] ss:$16 sps:$4 sm:$0xff]   ;;  %v8196_v40 = vld [vmem:[%s9366_s7 + $0x120] ss:$20 sps:$4 sm:$0xff]  }
  0xa0   : > { %2681 = vmatprep.subr.bf16.mxu1 %v8154_v41  ;;  %v8266_v41 = vld [vmem:[#allocation7 + $0x148] ss:$16 sps:$4 sm:$0xff]  }
  0xa1   : > { %2135 = vmatmul.mubr.bf16.vlgmr.msra.gmra.mxu0 %v9386_v42 }
  0xa2   : > { %2328 = vmatmul.mubr.bf16.vlgmr.msra.gmra.mxu1 %v8135_v43  ;;  %2501 = vmatpush1.bf16.msra.mxu0 %v2091_v46  ;;  %v9463_v43 = vld [vmem:[%s9366_s7 + $0x144] ss:$20 sps:$4 sm:$0xff]   ;;  %v8277_v46 = vld [vmem:[#allocation7 + $0x12c] ss:$16 sps:$4 sm:$0xff]  }
  0xa3   : > { %2144 = vmatprep.mubr.bf16.mxu0 %v9392_v45  ;;  %2337 = vmatprep.mubr.bf16.mxu1 %v8142_v47  ;;  %v9465_v47 = vld [vmem:[#allocation7 + $0x428] sm:$0x33] }
  0xa4   : > { %2682 = vmatpush1.bf16.msra.mxu1 %v8152_v48  ;;  %2502 = vmatprep.subr.bf16.mxu0 %v8208_v59  ;;  %v8202_v48 = vld [vmem:[%s9366_s7 + $0x14c] ss:$20 sps:$4 sm:$0xff]   ;;  %v8214_v59 = vld [vmem:[%s9366_s7 + $0x174] ss:$20 sps:$4 sm:$0xff]  }
  0xa5   : > { %2683 = vmatprep.subr.bf16.mxu1 %v8163_v49  ;;  %v8275_v49 = vld [vmem:[#allocation7 + $0x128] ss:$16 sps:$4 sm:$0xff]  }
  0xa6   : > { %2503 = vmatpush1.bf16.msra.mxu0 %v8206_v58 }
  0xa7   : > { %2874 = vmatprep.subr.bf16.mxu0 %v8284_v32  ;;  %v504_v32 = vld [vmem:[%s9363_s28 + $0x48] sm:$0xff] }
  0xa8   : > { %2684 = vmatpush1.bf16.msra.mxu1 %v8161_v50  ;;  %v8280_v50 = vld [vmem:[#allocation7 + $0x10c] ss:$16 sps:$4 sm:$0xff]  }
  0xa9   : > { %2685 = vmatprep.subr.bf16.mxu1 %v8172_v53  ;;  %2145 = vmatmul.mubr.bf16.gmra.mxu0 %v9399_v51  ;;  %v9473_v53 = vld [vmem:[%s9366_s7 + $0x140] ss:$20 sps:$4 sm:$0xff]  }
  0xaa   : > { %2338 = vmatmul.mubr.bf16.gmra.mxu1 %v8145_v52  ;;  %2154 = vmatprep.mubr.bf16.mxu0 %v9403_v54  ;;  %v7681_v52 = vcombine.high %v9465_v47, %v9465_v47 }
  0xab   : > { %2347 = vmatprep.mubr.bf16.mxu1 %v8148_v55  ;;  %v8205_v55 = vld [vmem:[%s9366_s7 + $0x148] ss:$20 sps:$4 sm:$0xff]  }
  0xac   : > { %2686 = vmatpush1.bf16.msra.mxu1 %v8170_v56  ;;  %v8278_v56 = vld [vmem:[#allocation7 + $0x108] ss:$16 sps:$4 sm:$0xff]   ;;  %v2100_v58 = vand.u32 %v7681_v52, %v9382_v36  ;;  %v513_v52 = vld [vmem:[%s9363_s28 + $0x90] sm:$0xff] }
  0xad   : > { %2687 = vmatprep.subr.bf16.mxu1 %v8181_v57  ;;  %v9477_v57 = vld [vmem:[%s9366_s7 + $0x16c] ss:$20 sps:$4 sm:$0xff]  }
  0xb0   : > { %2688 = vmatpush1.bf16.msra.mxu1 %v8179_v61  ;;  %v9484_v61 = vld [vmem:[%s9366_s7 + $0x168] ss:$20 sps:$4 sm:$0xff]  }
  0xb1   : > { %2689 = vmatprep.subr.bf16.mxu1 %v8190_v62  ;;  %2155 = vmatmul.mubr.bf16.gmra.mxu0 %v9409_v60  ;;  %v8217_v62 = vld [vmem:[%s9366_s7 + $0x170] ss:$20 sps:$4 sm:$0xff]  }
  0xb2   : > { %2348 = vmatmul.mubr.bf16.gmra.mxu1 %v8151_v63  ;;  %2164 = vmatprep.mubr.bf16.mxu0 %v9413_v0  ;;  %v9488_v63 = vld [vmem:[%s9366_s7 + $0x194] ss:$20 sps:$4 sm:$0xff]  }
  0xb3   : > { %2357 = vmatprep.mubr.bf16.mxu1 %v8157_v1  ;;  %v8223_v1 = vld [vmem:[%s9366_s7 + $0x19c] ss:$20 sps:$4 sm:$0xff]  }
  0xb4   : > { %2690 = vmatpush1.bf16.msra.mxu1 %v8188_v2  ;;  %v495_v2 = vld [vmem:[%s9363_s28] sm:$0xff] }
  0xb5   : > { %2691 = vmatprep.subr.bf16.mxu1 %v8199_v3  ;;  %530 = vperm.xlu0 %8034, %v495_v2   ;;  %v496_v3 = vld [vmem:[%s9363_s28 + $0x8] sm:$0xff]  ;;  %v514_v2 = vld [vmem:[%s9363_s28 + $0x98] sm:$0xff] }
  0xb8   : > { %2692 = vmatpush1.bf16.msra.mxu1 %v8197_v5  ;;  %v9496_v5 = vld [vmem:[%s9366_s7 + $0x190] ss:$20 sps:$4 sm:$0xff]  }
  0xb9   : > { %2693 = vmatprep.subr.bf16.mxu1 %v8211_v6  ;;  %2165 = vmatmul.mubr.bf16.gmra.mxu0 %v9419_v4  ;;  %v8226_v6 = vld [vmem:[%s9366_s7 + $0x198] ss:$20 sps:$4 sm:$0xff]  }
  0xba   : > { %2358 = vmatmul.mubr.bf16.gmra.mxu1 %v8160_v7  ;;  %2174 = vmatprep.mubr.bf16.mxu0 %v9423_v8  ;;  %v9500_v7 = vld [vmem:[%s9366_s7 + $0x1bc] ss:$20 sps:$4 sm:$0xff]  }
  0xbb   : > { %2367 = vmatprep.mubr.bf16.mxu1 %v8166_v9  ;;  %533 = vperm.xlu0 %8034, %v496_v3   ;;  %v8232_v9 = vld [vmem:[%s9366_s7 + $0x1c4] ss:$20 sps:$4 sm:$0xff]   ;;  %v517_v3 = vld [vmem:[%s9363_s28 + $0xb0] sm:$0xff] }
  0xbc   : > { %2694 = vmatpush1.bf16.msra.mxu1 %v8209_v10  ;;  %v497_v10 = vld [vmem:[%s9363_s28 + $0x10] sm:$0xff] }
  0xbd   : > { %2695 = vmatprep.subr.bf16.mxu1 %v8220_v11  ;;  %v499_v11 = vld [vmem:[%s9363_s28 + $0x20] sm:$0xff]  ;;  %536 = vperm.xlu1 %8035, %v497_v10   ;;  %v516_v10 = vld [vmem:[%s9363_s28 + $0xa8] sm:$0xff] }
  0xbf   : > { %542 = vperm.xlu0 %8034, %v499_v11   ;;  %v519_v11 = vld [vmem:[%s9363_s28 + $0xc0] sm:$0xff] }
  0xc0   : > { %2696 = vmatpush1.bf16.msra.mxu1 %v8218_v13  ;;  %v498_v13 = vld [vmem:[%s9363_s28 + $0x18] sm:$0xff] }
  0xc1   : > { %2697 = vmatprep.subr.bf16.mxu1 %v8229_v14  ;;  %2175 = vmatmul.mubr.bf16.gmra.mxu0 %v9429_v12  ;;  %v9509_v14 = vld [vmem:[%s9366_s7 + $0x1b8] ss:$20 sps:$4 sm:$0xff]  }
  0xc2   : > { %2368 = vmatmul.mubr.bf16.gmra.mxu1 %v8169_v15  ;;  %2184 = vmatprep.mubr.bf16.mxu0 %v9433_v17  ;;  %v8235_v15 = vld [vmem:[%s9366_s7 + $0x1c0] ss:$20 sps:$4 sm:$0xff]  }
  0xc3   : > { %2377 = vmatprep.mubr.bf16.mxu1 %v8175_v18  ;;  %539 = vperm.xlu1 %8035, %v498_v13   ;;  %v501_v18 = vld [vmem:[%s9363_s28 + $0x30] sm:$0xff]  ;;  %v518_v13 = vld [vmem:[%s9363_s28 + $0xb8] sm:$0xff] }
  0xc4   : > { %2698 = vmatpush2.bf16.msra.mxu1 %v8227_v19  ;;  %v9514_v19 = vld [vmem:[%s9366_s7 + $0x1e4] ss:$20 sps:$4 sm:$0xff]   ;;  %548 = vperm.xlu0 %8034, %v501_v18   ;;  %v7680_v18 = vcombine.low %v9465_v47, %v9465_v47 }
  0xc5   : > { %2699 = vmatprep.subr.bf16.mxu1 %v8238_v20  ;;  %v8241_v20 = vld [vmem:[%s9366_s7 + $0x1ec] ss:$20 sps:$4 sm:$0xff]   ;;  %v8286_v47 = vld [vmem:[#allocation7 + $0x2c8] ss:$16 sps:$4 sm:$0xff]  }
  0xc8   : > { %2700 = vmatpush2.bf16.msra.mxu1 %v8236_v22  ;;  %v500_v22 = vld [vmem:[%s9363_s28 + $0x28] sm:$0xff] }
  0xc9   : > { %2701 = vmatprep.subr.bf16.mxu1 %v8247_v24  ;;  %2185 = vmatmul.mubr.bf16.gmra.mxu0 %v9439_v21  ;;  %v502_v24 = vld [vmem:[%s9363_s28 + $0x38] sm:$0xff] }
  0xca   : > { %2378 = vmatmul.mubr.bf16.gmra.mxu1 %v8178_v23  ;;  %2194 = vmatprep.mubr.bf16.mxu0 %v9443_v25  ;;  %v503_v23 = vld [vmem:[%s9363_s28 + $0x40] sm:$0xff] }
  0xcb   : > { %2387 = vmatprep.mubr.bf16.mxu1 %v8184_v26  ;;  %545 = vperm.xlu1 %8035, %v500_v22   ;;  %v9523_v26 = vld [vmem:[%s9366_s7 + $0x1e0] ss:$20 sps:$4 sm:$0xff]   ;;  %v8282_v22 = vld [vmem:[#allocation7 + $0x2e8] ss:$16 sps:$4 sm:$0xff]  }
  0xcc   : > { %2702 = vmatpush2.bf16.msra.mxu1 %v8245_v27  ;;  %554 = vperm.xlu0 %8034, %v503_v23   ;;  %v8244_v27 = vld [vmem:[%s9366_s7 + $0x1e8] ss:$20 sps:$4 sm:$0xff]  }
  0xcd   : > { %2703 = vmatprep.subr.bf16.mxu1 %v8256_v28  ;;  %v505_v28 = vld [vmem:[%s9363_s28 + $0x50] sm:$0xff]  ;;  %v520_v23 = vld [vmem:[%s9363_s28 + $0xc8] sm:$0xff] }
  0xcf   : > { %551 = vperm.xlu1 %8035, %v502_v24   ;;  %v523_v24 = vld [vmem:[%s9363_s28 + $0xe0] sm:$0xff] }
  0xd0   : > { %2704 = vmatpush2.bf16.msra.mxu1 %v8254_v30  ;;  %v9528_v30 = vld [vmem:[%s9366_s7 + $0x20c] ss:$20 sps:$4 sm:$0xff]   ;;  %560 = vperm.xlu0 %8034, %v505_v28   ;;  %v2097_v28 = vand.u32 %v7680_v18, %v9382_v36  ;;  %v8327_v36 = vld [vmem:[#allocation7 + $0x408] ss:$16 sps:$4 sm:$0xff]  }
  0xd1   : > { %2705 = vmatprep.subr.bf16.mxu1 %v8265_v31  ;;  %2195 = vmatmul.mubr.bf16.gmra.mxu0 %v9449_v29  ;;  %v8250_v31 = vld [vmem:[%s9366_s7 + $0x214] ss:$20 sps:$4 sm:$0xff]  }
  0xd2   : > { %2388 = vmatmul.mubr.bf16.gmra.mxu1 %v8187_v33  ;;  %2204 = vmatprep.mubr.bf16.mxu0 %v9453_v34  ;;  %v507_v33 = vld [vmem:[%s9363_s28 + $0x60] sm:$0xff]  ;;  %v8335_v18 = vld [vmem:[#allocation7 + $0x368] ss:$16 sps:$4 sm:$0xff]  }
  0xd3   : > { %2397 = vmatprep.mubr.bf16.mxu1 %v8193_v35  ;;  %557 = vperm.xlu1 %8035, %v504_v32   ;;  %v506_v35 = vld [vmem:[%s9363_s28 + $0x58] sm:$0xff] }
  0xd4   : > { %2706 = vmatpush2.bf16.msra.mxu1 %v8263_v37  ;;  %566 = vperm.xlu0 %8034, %v507_v33   ;;  %v509_v37 = vld [vmem:[%s9363_s28 + $0x70] sm:$0xff]  ;;  %v8292_v32 = vld [vmem:[#allocation7 + $0x2ac] ss:$16 sps:$4 sm:$0xff]  }
  0xd5   : > { %2707 = vmatprep.subr.bf16.mxu1 %v8268_v38  ;;  %v9538_v38 = vld [vmem:[%s9366_s7 + $0x208] ss:$20 sps:$4 sm:$0xff]   ;;  %v525_v33 = vld [vmem:[%s9363_s28 + $0xf0] sm:$0xff] }
  0xd7   : > { %563 = vperm.xlu1 %8035, %v506_v35   ;;  %v9592_v35 = vld [vmem:[%s9366_s7 + $0x38] ss:$20 sps:$4 sm:$0xff]  }
  0xd8   : > { %2708 = vmatpush2.bf16.msra.mxu1 %v8266_v41  ;;  %572 = vperm.xlu0 %8034, %v509_v37   ;;  %v9542_v41 = vld [vmem:[%s9366_s7 + $0x234] ss:$20 sps:$4 sm:$0xff]  }
  0xd9   : > { %2709 = vmatprep.subr.bf16.mxu1 %v8277_v46  ;;  %2205 = vmatmul.mubr.bf16.gmra.mxu0 %v9459_v39  ;;  %v8259_v46 = vld [vmem:[%s9366_s7 + $0x23c] ss:$20 sps:$4 sm:$0xff]   ;;  %v8290_v37 = vld [vmem:[#allocation7 + $0x2a8] ss:$16 sps:$4 sm:$0xff]  }
  0xda   : > { %2398 = vmatmul.mubr.bf16.gmra.mxu1 %v8196_v40  ;;  %2214 = vmatprep.mubr.bf16.mxu0 %v9463_v43  ;;  %v8253_v40 = vld [vmem:[%s9366_s7 + $0x210] ss:$20 sps:$4 sm:$0xff]  }
  0xdb   : > { %2407 = vmatprep.mubr.bf16.mxu1 %v8202_v48  ;;  %v508_v48 = vld [vmem:[%s9363_s28 + $0x68] sm:$0xff] }
  0xdc   : > { %2710 = vmatpush2.bf16.msra.mxu1 %v8275_v49  ;;  %v511_v49 = vld [vmem:[%s9363_s28 + $0x80] sm:$0xff]  ;;  %569 = vperm.xlu1 %8035, %v508_v48   ;;  %v8302_v48 = vld [vmem:[#allocation7 + $0x26c] ss:$16 sps:$4 sm:$0xff]  }
  0xdd   : > { %2711 = vmatprep.subr.bf16.mxu1 %v8280_v50  ;;  %578 = vperm.xlu0 %8034, %v511_v49   ;;  %v510_v50 = vld [vmem:[%s9363_s28 + $0x78] sm:$0xff]  ;;  %v9602_v49 = vld [vmem:[%s9366_s7 + $0x60] ss:$20 sps:$4 sm:$0xff]  }
  0xe0   : > { %2712 = vmatpush2.bf16.msra.mxu1 %v8278_v56  ;;  %575 = vperm.xlu1 %8035, %v510_v50   ;;  %v8262_v56 = vld [vmem:[%s9366_s7 + $0x238] ss:$20 sps:$4 sm:$0xff]  }
  0xe1   : > { %3079 = vmatprep.subr.bf16.mxu1 %v2100_v58  ;;  %2215 = vmatmul.mubr.bf16.gmra.mxu0 %v9473_v53  ;;  %v9556_v58 = vld [vmem:[%s9366_s7 + $0x25c] ss:$20 sps:$4 sm:$0xff]   ;;  %v8300_v50 = vld [vmem:[#allocation7 + $0x268] ss:$16 sps:$4 sm:$0xff]  }
  0xe2   : > { %2408 = vmatmul.mubr.bf16.gmra.mxu1 %v8205_v55  ;;  %2224 = vmatprep.mubr.bf16.mxu0 %v9477_v57  ;;  %v9552_v55 = vld [vmem:[%s9366_s7 + $0x230] ss:$20 sps:$4 sm:$0xff]  }
  0xe3   : > { %2417 = vmatprep.mubr.bf16.mxu1 %v8214_v59  ;;  %584 = vperm.xlu0 %8034, %v513_v52   ;;  %v8271_v59 = vld [vmem:[%s9366_s7 + $0x264] ss:$20 sps:$4 sm:$0xff]   ;;  %v8306_v52 = vld [vmem:[#allocation7 + $0x24c] ss:$16 sps:$4 sm:$0xff]  }
  0xe9   : > { %2225 = vmatmul.mubr.bf16.gmra.mxu0 %v9484_v61 }
  0xea   : > { %2418 = vmatmul.mubr.bf16.gmra.mxu1 %v8217_v62  ;;  %2234 = vmatprep.mubr.bf16.mxu0 %v9488_v63  ;;  %v512_v62 = vld [vmem:[%s9363_s28 + $0x88] sm:$0xff] }
  0xeb   : > { %2427 = vmatprep.mubr.bf16.mxu1 %v8223_v1  ;;  %v515_v1 = vld [vmem:[%s9363_s28 + $0xa0] sm:$0xff]  ;;  %581 = vperm.xlu1 %8035, %v512_v62   ;;  %v8308_v62 = vld [vmem:[#allocation7 + $0x228] ss:$16 sps:$4 sm:$0xff]  }
  0xec   : > { %590 = vperm.xlu0 %8034, %v515_v1   ;;  %v8318_v1 = vld [vmem:[#allocation7 + $0x3ec] ss:$16 sps:$4 sm:$0xff]  }
  0xef   : > { %587 = vperm.xlu1 %8035, %v514_v2   ;;  %v9622_v2 = vld [vmem:[%s9366_s7 + $0xb0] ss:$20 sps:$4 sm:$0xff]  }
  0xf0   : > { %596 = vperm.xlu0 %8034, %v517_v3   ;;  %v8316_v3 = vld [vmem:[#allocation7 + $0x3e8] ss:$16 sps:$4 sm:$0xff]  }
  0xf1   : > { %2235 = vmatmul.mubr.bf16.gmra.mxu0 %v9496_v5 }
  0xf2   : > { %2428 = vmatmul.mubr.bf16.gmra.mxu1 %v8226_v6  ;;  %2244 = vmatprep.mubr.bf16.mxu0 %v9500_v7  ;;  %v9566_v6 = vld [vmem:[%s9366_s7 + $0x258] ss:$20 sps:$4 sm:$0xff]  }
  0xf3   : > { %2437 = vmatprep.mubr.bf16.mxu1 %v8232_v9  ;;  %v8274_v9 = vld [vmem:[%s9366_s7 + $0x260] ss:$20 sps:$4 sm:$0xff]   ;;  %593 = vperm.xlu1 %8035, %v516_v10   ;;  %v9630_v10 = vld [vmem:[%s9366_s7 + $0xd8] ss:$20 sps:$4 sm:$0xff]  }
  0xf4   : > { %602 = vperm.xlu0 %8034, %v519_v11   ;;  %v8324_v11 = vld [vmem:[#allocation7 + $0x3a8] ss:$16 sps:$4 sm:$0xff]  }
  0xf7   : > { %599 = vperm.xlu1 %8035, %v518_v13   ;;  %v8333_v13 = vld [vmem:[#allocation7 + $0x38c] ss:$16 sps:$4 sm:$0xff]  }
  0xf9   : > { %2245 = vmatmul.mubr.bf16.gmra.mxu0 %v9509_v14 }
  0xfa   : > { %2438 = vmatmul.mubr.bf16.gmra.mxu1 %v8235_v15  ;;  %2254 = vmatprep.mubr.bf16.mxu0 %v9514_v19  ;;  %v521_v15 = vld [vmem:[%s9363_s28 + $0xd0] sm:$0xff] }
  0xfb   : > { %2447 = vmatprep.mubr.bf16.mxu1 %v8241_v20  ;;  %608 = vperm.xlu0 %8034, %v521_v15   ;;  %v9579_v20 = vld [vmem:[%s9366_s7 + $0x10] ss:$20 sps:$4 sm:$0xff]   ;;  %v9638_v15 = vld [vmem:[%s9366_s7 + $0x100] ss:$20 sps:$4 sm:$0xff]  }
  0xfc   : > { %605 = vperm.xlu1 %8035, %v520_v23   ;;  %v9646_v23 = vld [vmem:[%s9366_s7 + $0x128] ss:$20 sps:$4 sm:$0xff]  }
  0xff   : > { %614 = vperm.xlu0 %8034, %v523_v24   ;;  %v8343_v24 = vld [vmem:[#allocation7 + $0x328] ss:$16 sps:$4 sm:$0xff]  }
 0x101   : > { %2255 = vmatmul.mubr.bf16.gmra.mxu0 %v9523_v26 }
 0x102   : > { %2448 = vmatmul.mubr.bf16.gmra.mxu1 %v8244_v27  ;;  %2264 = vmatprep.mubr.bf16.mxu0 %v9528_v30  ;;  %v8288_v27 = vld [vmem:[#allocation7 + $0x2cc] ss:$16 sps:$4 sm:$0xff]  }
 0x103   : > { %2457 = vmatprep.mubr.bf16.mxu1 %v8250_v31  ;;  %v522_v31 = vld [vmem:[%s9363_s28 + $0xd8] sm:$0xff]  ;;  %620 = vperm.xlu0 %8034, %v525_v33  }
 0x104   : > { %611 = vperm.xlu1 %8035, %v522_v31  }
 0x109   : > { %2265 = vmatmul.mubr.bf16.gmra.mxu0 %v9538_v38 }
 0x10a   : > { %2458 = vmatmul.mubr.bf16.gmra.mxu1 %v8253_v40  ;;  %2274 = vmatprep.mubr.bf16.mxu0 %v9542_v41  ;;  %v8298_v40 = vld [vmem:[#allocation7 + $0x28c] ss:$16 sps:$4 sm:$0xff]  }
 0x10b   : > { %2467 = vmatprep.mubr.bf16.mxu1 %v8259_v46  ;;  %v8296_v46 = vld [vmem:[#allocation7 + $0x288] ss:$16 sps:$4 sm:$0xff]  }
 0x111   : > { %2275 = vmatmul.mubr.bf16.gmra.mxu0 %v9552_v55 }
 0x112   : > { %2468 = vmatmul.mubr.bf16.gmra.mxu1 %v8262_v56  ;;  %2284 = vmatprep.mubr.bf16.mxu0 %v9556_v58  ;;  %v736_v56 = vld [vmem:[%s12804_s2 + $0x78] sm:$0x1] }
 0x113   : > { %2477 = vmatprep.mubr.bf16.mxu1 %v8271_v59  ;;  %v9613_v59 = vld [vmem:[%s9366_s7 + $0x88] ss:$20 sps:$4 sm:$0xff]  }
 0x119   : > { %2285 = vmatmul.mubr.bf16.gmra.mxu0 %v9566_v6 }
 0x11a   : > { %2478 = vmatmul.mubr.bf16.gmra.mxu1 %v8274_v9  ;;  %2520 = vmatprep.mubr.bf16.mxu0 %v12811_v44  ;;  %v8322_v9 = vld [vmem:[#allocation7 + $0x3cc] ss:$16 sps:$4 sm:$0xff]  }
 0x11b   : > { %2713 = vmatprep.mubr.bf16.mxu1 %v9377_v16  ;;  %v8329_v16 = vld [vmem:[#allocation7 + $0x40c] ss:$16 sps:$4 sm:$0xff]  }
 0x121   : > { %7682 = vmatmul.mubr.msk.bf16.vlgmr.msra.gmra.mxu0 %vm2037_vm2, %v9579_v20 }
 0x122   : > { %2714 = vmatmul.mubr.bf16.vlgmr.msra.gmra.mxu1 %v9386_v42  ;;  %2875 = vmatpush1.bf16.msra.mxu0 %v8282_v22  ;;  %v524_v42 = vld [vmem:[%s9363_s28 + $0xe8] sm:$0xff] }
 0x123   : > { %2530 = vmatprep.mubr.bf16.mxu0 %v12811_v44  ;;  %2723 = vmatprep.mubr.bf16.mxu1 %v9392_v45  ;;  %v526_v45 = vld [vmem:[%s9363_s28 + $0xf8] sm:$0xff] }
 0x124   : > { %2876 = vmatprep.subr.bf16.mxu0 %v8288_v27  ;;  %3080 = vmatpush1.bf16.msra.mxu1 %v2097_v28  ;;  %v8341_v22 = vld [vmem:[#allocation7 + $0x34c] ss:$16 sps:$4 sm:$0xff]   ;;  %v734_v28 = vld [vmem:[%s12804_s2 + $0x68] sm:$0x1] }
 0x125   : > { %3081 = vmatprep.subr.bf16.mxu1 %v8329_v16  ;;  %617 = vperm.xlu1 %8035, %v524_v42   ;;  %v8349_v27 = vld [vmem:[#allocation7 + $0x30c] ss:$16 sps:$4 sm:$0xff]  }
 0x126   : > { %2877 = vmatpush1.bf16.msra.mxu0 %v8286_v47  ;;  %v9670_v42 = vld [vmem:[%s9366_s7 + $0x178] ss:$20 sps:$4 sm:$0xff]  }
 0x127   : > { %2878 = vmatprep.subr.bf16.mxu0 %v8292_v32 }
 0x128   : > { %3082 = vmatpush1.bf16.msra.mxu1 %v8327_v36 }
 0x129   : > { %7683 = vmatmul.mubr.msk.bf16.gmra.mxu0 %vm2037_vm2, %v9592_v35  ;;  %623 = vperm.xlu1 %8035, %v526_v45  }
 0x12a   : > { %2724 = vmatmul.mubr.bf16.gmra.mxu1 %v9399_v51  ;;  %2540 = vmatprep.mubr.bf16.mxu0 %v12811_v44  ;;  %v8304_v51 = vld [vmem:[#allocation7 + $0x248] ss:$16 sps:$4 sm:$0xff]  }
 0x12b   : > { %2733 = vmatprep.mubr.bf16.mxu1 %v9403_v54  ;;  %2879 = vmatpush1.bf16.msra.mxu0 %v8290_v37  ;;  %v8310_v54 = vld [vmem:[#allocation7 + $0x22c] ss:$16 sps:$4 sm:$0xff]  }
 0x12c   : > { %2880 = vmatprep.subr.bf16.mxu0 %v8298_v40  ;;  %7748 = vmatprep.subr.msk.mxu1 %vm2086_vm0, %v736_v56 }
 0x12f   : > { %2881 = vmatpush1.bf16.msra.mxu0 %v8296_v46 }
 0x130   : > { %2882 = vmatprep.subr.bf16.mxu0 %v8302_v48 }
 0x131   : > { %7684 = vmatmul.mubr.msk.bf16.gmra.mxu0 %vm2037_vm2, %v9602_v49 }
 0x132   : > { %2734 = vmatmul.mubr.bf16.gmra.mxu1 %v9409_v60  ;;  %2550 = vmatprep.mubr.bf16.mxu0 %v12811_v44  ;;  %v8314_v60 = vld [vmem:[#allocation7 + $0x20c] ss:$16 sps:$4 sm:$0xff]  }
 0x133   : > { %2743 = vmatprep.mubr.bf16.mxu1 %v9413_v0  ;;  %2883 = vmatpush1.bf16.msra.mxu0 %v8300_v50  ;;  %v8312_v0 = vld [vmem:[#allocation7 + $0x208] ss:$16 sps:$4 sm:$0xff]  }
 0x134   : > { %2884 = vmatprep.subr.bf16.mxu0 %v8306_v52 }
 0x137   : > { %2885 = vmatpush1.bf16.msra.mxu0 %v8304_v51 }
 0x138   : > { %2886 = vmatprep.subr.bf16.mxu0 %v8310_v54 }
 0x139   : > { %7685 = vmatmul.mubr.msk.bf16.gmra.mxu0 %vm2037_vm2, %v9613_v59 }
 0x13a   : > { %2744 = vmatmul.mubr.bf16.gmra.mxu1 %v9419_v4  ;;  %2560 = vmatprep.mubr.bf16.mxu0 %v12811_v44  ;;  %v8320_v4 = vld [vmem:[#allocation7 + $0x3c8] ss:$16 sps:$4 sm:$0xff]  }
 0x13b   : > { %2753 = vmatprep.mubr.bf16.mxu1 %v9423_v8  ;;  %2887 = vmatpush1.bf16.msra.mxu0 %v8308_v62  ;;  %v8326_v8 = vld [vmem:[#allocation7 + $0x3ac] ss:$16 sps:$4 sm:$0xff]   ;;  %v9686_v62 = vld [vmem:[%s9366_s7 + $0x1a0] ss:$20 sps:$4 sm:$0xff]  }
 0x13c   : > { %2888 = vmatprep.subr.bf16.mxu0 %v8314_v60 }
 0x13f   : > { %2889 = vmatpush1.bf16.msra.mxu0 %v8312_v0 }
 0x140   : > { %2890 = vmatprep.subr.bf16.mxu0 %v8318_v1 }
 0x141   : > { %7686 = vmatmul.mubr.msk.bf16.gmra.mxu0 %vm2037_vm2, %v9622_v2 }
 0x142   : > { %2754 = vmatmul.mubr.bf16.gmra.mxu1 %v9429_v12  ;;  %2570 = vmatprep.mubr.bf16.mxu0 %v12811_v44  ;;  %v8331_v12 = vld [vmem:[#allocation7 + $0x388] ss:$16 sps:$4 sm:$0xff]  }
 0x143   : > { %2763 = vmatprep.mubr.bf16.mxu1 %v9433_v17  ;;  %2891 = vmatpush2.bf16.msra.mxu0 %v8316_v3  ;;  %v8337_v17 = vld [vmem:[#allocation7 + $0x36c] ss:$16 sps:$4 sm:$0xff]  }
 0x144   : > { %2892 = vmatprep.subr.bf16.mxu0 %v8322_v9 }
 0x147   : > { %2893 = vmatpush2.bf16.msra.mxu0 %v8320_v4 }
 0x148   : > { %2894 = vmatprep.subr.bf16.mxu0 %v8326_v8 }
 0x149   : > { %7687 = vmatmul.mubr.msk.bf16.gmra.mxu0 %vm2037_vm2, %v9630_v10 }
 0x14a   : > { %2764 = vmatmul.mubr.bf16.gmra.mxu1 %v9439_v21  ;;  %2580 = vmatprep.mubr.bf16.mxu0 %v12811_v44  ;;  %v8339_v21 = vld [vmem:[#allocation7 + $0x348] ss:$16 sps:$4 sm:$0xff]  }
 0x14b   : > { %2773 = vmatprep.mubr.bf16.mxu1 %v9443_v25  ;;  %2895 = vmatpush2.bf16.msra.mxu0 %v8324_v11  ;;  %v8345_v25 = vld [vmem:[#allocation7 + $0x32c] ss:$16 sps:$4 sm:$0xff]  }
 0x14c   : > { %2896 = vmatprep.subr.bf16.mxu0 %v8333_v13 }
 0x14f   : > { %2897 = vmatpush2.bf16.msra.mxu0 %v8331_v12 }
 0x150   : > { %2898 = vmatprep.subr.bf16.mxu0 %v8337_v17  ;;  %v9702_v17 = vld [vmem:[%s9366_s7 + $0x1c8] ss:$20 sps:$4 sm:$0xff]  }
 0x151   : > { %7688 = vmatmul.mubr.msk.bf16.gmra.mxu0 %vm2037_vm2, %v9638_v15 }
 0x152   : > { %2774 = vmatmul.mubr.bf16.gmra.mxu1 %v9449_v29  ;;  %2590 = vmatprep.mubr.bf16.mxu0 %v12811_v44  ;;  %v8347_v29 = vld [vmem:[#allocation7 + $0x308] ss:$16 sps:$4 sm:$0xff]  }
 0x153   : > { %2783 = vmatprep.mubr.bf16.mxu1 %v9453_v34  ;;  %2899 = vmatpush2.bf16.msra.mxu0 %v8335_v18  ;;  %v9654_v34 = vld [vmem:[%s9366_s7 + $0x150] ss:$20 sps:$4 sm:$0xff]  }
 0x154   : > { %2900 = vmatprep.subr.bf16.mxu0 %v8341_v22 }
 0x157   : > { %2901 = vmatpush2.bf16.msra.mxu0 %v8339_v21 }
 0x158   : > { %2902 = vmatprep.subr.bf16.mxu0 %v8345_v25 }
 0x159   : > { %7689 = vmatmul.mubr.msk.bf16.gmra.mxu0 %vm2037_vm2, %v9646_v23 }
 0x15a   : > { %2784 = vmatmul.mubr.bf16.gmra.mxu1 %v9459_v39  ;;  %2600 = vmatprep.mubr.bf16.mxu0 %v12811_v44 }
 0x15b   : > { %2793 = vmatprep.mubr.bf16.mxu1 %v9463_v43  ;;  %2903 = vmatpush2.bf16.msra.mxu0 %v8343_v24 }
 0x15c   : > { %2904 = vmatprep.subr.bf16.mxu0 %v8349_v27 }
 0x15f   : > { %2905 = vmatpush2.bf16.msra.mxu0 %v8347_v29 }
 0x160   : > { %7714 = vmatprep.subr.msk.mxu0 %vm2086_vm0, %v734_v28 }
 0x161   : > { %v2136_v16 = vpop.f32.mrf.mxu0  ;;  %7690 = vmatmul.mubr.msk.bf16.gmra.mxu0 %vm2037_vm2, %v9654_v34 }
 0x162   : > { %v2329_v47 = vpop.f32.mrf.mxu1  ;;  %2794 = vmatmul.mubr.bf16.gmra.mxu1 %v9473_v53  ;;  %2610 = vmatprep.mubr.bf16.mxu0 %v12811_v44 }
 0x163   : > { %v9663_v39 = vadd.f32 %v2329_v47, %v2136_v16  ;;  %2803 = vmatprep.mubr.bf16.mxu1 %v9477_v57  ;;  %v2138_v43 = vpop.f32.mrf.mxu0 }
 0x164   : > { %v2331_v31 = vpop.f32.mrf.mxu1 }
 0x165   : > { %v9667_v32 = vadd.f32 %v2331_v31, %v2138_v43  ;;  %v2140_v33 = vpop.f32.mrf.mxu0  ;;  %v9718_v43 = vld [vmem:[%s9366_s7 + $0x1f0] ss:$20 sps:$4 sm:$0xff]  }
 0x166   : > { %v2333_v36 = vpop.f32.mrf.mxu1 }
 0x167   : > { %v9672_v37 = vadd.f32 %v2333_v36, %v2140_v33  ;;  %v2142_v40 = vpop.f32.mrf.mxu0 }
 0x168   : > { %v2335_v45 = vpop.f32.mrf.mxu1 }
 0x169   : > { %v9674_v53 = vadd.f32 %v2335_v45, %v2142_v40  ;;  %v2146_v46 = vpop.f32.mrf.mxu0  ;;  %7691 = vmatmul.mubr.msk.bf16.gmra.mxu0 %vm2037_vm2, %v9670_v42 }
 0x16a   : > { %v2339_v48 = vpop.f32.mrf.mxu1  ;;  %2804 = vmatmul.mubr.bf16.gmra.mxu1 %v9484_v61  ;;  %2620 = vmatprep.mubr.bf16.mxu0 %v12811_v44 }
 0x16b   : > { %v9679_v57 = vadd.f32 %v2339_v48, %v2146_v46  ;;  %2813 = vmatprep.mubr.bf16.mxu1 %v9488_v63  ;;  %v2148_v50 = vpop.f32.mrf.mxu0 }
 0x16c   : > { %v2341_v52 = vpop.f32.mrf.mxu1 }
 0x16d   : > { %v9683_v51 = vadd.f32 %v2341_v52, %v2148_v50  ;;  %v2150_v54 = vpop.f32.mrf.mxu0 }
 0x16e   : > { %v2343_v56 = vpop.f32.mrf.mxu1 }
 0x16f   : > { %v9688_v60 = vadd.f32 %v2343_v56, %v2150_v54  ;;  %v2152_v0 = vpop.f32.mrf.mxu0  ;;  %v9734_v56 = vld [vmem:[%s9366_s7 + $0x218] ss:$20 sps:$4 sm:$0xff]  }
 0x170   : > { %v2345_v1 = vpop.f32.mrf.mxu1 }
 0x171   : > { %v9690_v61 = vadd.f32 %v2345_v1, %v2152_v0  ;;  %v2156_v3 = vpop.f32.mrf.mxu0  ;;  %7692 = vmatmul.mubr.msk.bf16.gmra.mxu0 %vm2037_vm2, %v9686_v62 }
 0x172   : > { %v2349_v9 = vpop.f32.mrf.mxu1  ;;  %2814 = vmatmul.mubr.bf16.gmra.mxu1 %v9496_v5  ;;  %2630 = vmatprep.mubr.bf16.mxu0 %v12811_v44 }
 0x173   : > { %v9695_v63 = vadd.f32 %v2349_v9, %v2156_v3  ;;  %2823 = vmatprep.mubr.bf16.mxu1 %v9500_v7  ;;  %v2158_v4 = vpop.f32.mrf.mxu0 }
 0x174   : > { %v2351_v8 = vpop.f32.mrf.mxu1 }
 0x175   : > { %v9699_v11 = vadd.f32 %v2351_v8, %v2158_v4  ;;  %v2160_v13 = vpop.f32.mrf.mxu0 }
 0x176   : > { %v2353_v12 = vpop.f32.mrf.mxu1 }
 0x177   : > { %v9704_v18 = vadd.f32 %v2353_v12, %v2160_v13  ;;  %v2162_v22 = vpop.f32.mrf.mxu0 }
 0x178   : > { %v2355_v21 = vpop.f32.mrf.mxu1 }
 0x179   : > { %v9706_v5 = vadd.f32 %v2355_v21, %v2162_v22  ;;  %v2166_v25 = vpop.f32.mrf.mxu0  ;;  %7693 = vmatmul.mubr.msk.bf16.gmra.mxu0 %vm2037_vm2, %v9702_v17 }
 0x17a   : > { %v2359_v24 = vpop.f32.mrf.mxu1  ;;  %2824 = vmatmul.mubr.bf16.gmra.mxu1 %v9509_v14  ;;  %2640 = vmatprep.mubr.bf16.mxu0 %v12811_v44 }
 0x17b   : > { %v9711_v7 = vadd.f32 %v2359_v24, %v2166_v25  ;;  %2833 = vmatprep.mubr.bf16.mxu1 %v9514_v19  ;;  %v2168_v27 = vpop.f32.mrf.mxu0  ;;  %v9750_v25 = vld [vmem:[%s9366_s7 + $0x240] ss:$20 sps:$4 sm:$0xff]  }
 0x17c   : > { %v2361_v29 = vpop.f32.mrf.mxu1 }
 0x17d   : > { %v9715_v28 = vadd.f32 %v2361_v29, %v2168_v27  ;;  %v2170_v16 = vpop.f32.mrf.mxu0 }
 0x17e   : > { %v2363_v47 = vpop.f32.mrf.mxu1 }
 0x17f   : > { %v9720_v31 = vadd.f32 %v2363_v47, %v2170_v16  ;;  %v2172_v33 = vpop.f32.mrf.mxu0 }
 0x180   : > { %v2365_v36 = vpop.f32.mrf.mxu1 }
 0x181   : > { %v9722_v14 = vadd.f32 %v2365_v36, %v2172_v33  ;;  %v2176_v40 = vpop.f32.mrf.mxu0  ;;  %7694 = vmatmul.mubr.msk.bf16.gmra.mxu0 %vm2037_vm2, %v9718_v43 }
 0x182   : > { %v2369_v45 = vpop.f32.mrf.mxu1  ;;  %2834 = vmatmul.mubr.bf16.gmra.mxu1 %v9523_v26  ;;  %2650 = vmatprep.mubr.bf16.mxu0 %v12811_v44 }
 0x183   : > { %v9727_v19 = vadd.f32 %v2369_v45, %v2176_v40  ;;  %2843 = vmatprep.mubr.bf16.mxu1 %v9528_v30  ;;  %v2178_v46 = vpop.f32.mrf.mxu0 }
 0x184   : > { %v2371_v48 = vpop.f32.mrf.mxu1 }
 0x185   : > { %v9731_v50 = vadd.f32 %v2371_v48, %v2178_v46  ;;  %v2180_v52 = vpop.f32.mrf.mxu0  ;;  %v9766_v48 = vld [vmem:[%s9366_s7 + $0x268] ss:$20 sps:$4 sm:$0xff]  }
 0x186   : > { %v2373_v54 = vpop.f32.mrf.mxu1 }
 0x187   : > { %v9736_v0 = vadd.f32 %v2373_v54, %v2180_v52  ;;  %v2182_v1 = vpop.f32.mrf.mxu0 }
 0x188   : > { %v2375_v3 = vpop.f32.mrf.mxu1 }
 0x189   : > { %v9738_v26 = vadd.f32 %v2375_v3, %v2182_v1  ;;  %v2186_v9 = vpop.f32.mrf.mxu0  ;;  %7695 = vmatmul.mubr.msk.bf16.gmra.mxu0 %vm2037_vm2, %v9734_v56 }
 0x18a   : > { %v2379_v4 = vpop.f32.mrf.mxu1  ;;  %2844 = vmatmul.mubr.bf16.gmra.mxu1 %v9538_v38  ;;  %2660 = vmatprep.mubr.bf16.mxu0 %v12811_v44 }
 0x18b   : > { %v9743_v30 = vadd.f32 %v2379_v4, %v2186_v9  ;;  %2853 = vmatprep.mubr.bf16.mxu1 %v9542_v41  ;;  %v2188_v8 = vpop.f32.mrf.mxu0  ;;  %v8922_v4 = vld [vmem:[%s9366_s7 + $0xc] ss:$20 sps:$4 sm:$0xff]  }
 0x18c   : > { %v2381_v13 = vpop.f32.mrf.mxu1 }
 0x18d   : > { %v9747_v12 = vadd.f32 %v2381_v13, %v2188_v8  ;;  %v2190_v22 = vpop.f32.mrf.mxu0 }
 0x18e   : > { %v2383_v21 = vpop.f32.mrf.mxu1 }
 0x18f   : > { %v9752_v24 = vadd.f32 %v2383_v21, %v2190_v22  ;;  %v2192_v27 = vpop.f32.mrf.mxu0 }
 0x190   : > { %v2385_v29 = vpop.f32.mrf.mxu1 }
 0x191   : > { %v9754_v38 = vadd.f32 %v2385_v29, %v2192_v27  ;;  %v2196_v16 = vpop.f32.mrf.mxu0  ;;  %7696 = vmatmul.mubr.msk.bf16.gmra.mxu0 %vm2037_vm2, %v9750_v25 }
 0x192   : > { %v2389_v47 = vpop.f32.mrf.mxu1  ;;  %2854 = vmatmul.mubr.bf16.gmra.mxu1 %v9552_v55  ;;  %2670 = vmatprep.mubr.bf16.mxu0 %v12811_v44 }
 0x193   : > { %v9759_v41 = vadd.f32 %v2389_v47, %v2196_v16  ;;  %2863 = vmatprep.mubr.bf16.mxu1 %v9556_v58  ;;  %v2198_v33 = vpop.f32.mrf.mxu0 }
 0x194   : > { %v2391_v36 = vpop.f32.mrf.mxu1 }
 0x195   : > { %v9763_v40 = vadd.f32 %v2391_v36, %v2198_v33  ;;  %v2200_v45 = vpop.f32.mrf.mxu0  ;;  %v735_v36 = vld [vmem:[%s12804_s2 + $0x70] sm:$0x1] }
 0x196   : > { %v2393_v46 = vpop.f32.mrf.mxu1 }
 0x197   : > { %v9768_v52 = vadd.f32 %v2393_v46, %v2200_v45  ;;  %v2202_v54 = vpop.f32.mrf.mxu0 }
 0x198   : > { %v2395_v1 = vpop.f32.mrf.mxu1 }
 0x199   : > { %v9770_v55 = vadd.f32 %v2395_v1, %v2202_v54  ;;  %v2206_v3 = vpop.f32.mrf.mxu0  ;;  %7697 = vmatmul.mubr.msk.bf16.gmra.mxu0 %vm2037_vm2, %v9766_v48  ;;  %v8923_v54 = vld [vmem:[%s9366_s7 + $0x8] ss:$20 sps:$4 sm:$0xff]  }
 0x19a   : > { %v2399_v9 = vpop.f32.mrf.mxu1  ;;  %2864 = vmatmul.mubr.bf16.gmra.mxu1 %v9566_v6  ;;  %2906 = vmatprep.mubr.bf16.mxu0 %v8922_v4  ;;  %v733_v6 = vld [vmem:[%s12804_s2 + $0x60] sm:$0x1]  ;;  %v730_v1 = vld [vmem:[%s12804_s2 + $0x48] sm:$0xff] }
 0x19b   : > { %v9775_v58 = vadd.f32 %v2399_v9, %v2206_v3  ;;  %3099 = vmatprep.mubr.bf16.mxu1 %v12811_v44  ;;  %v2208_v8 = vpop.f32.mrf.mxu0  ;;  %v732_v3 = vld [vmem:[%s12804_s2 + $0x58] sm:$0xff]  ;;  %v8924_v4 = vld [vmem:[%s9366_s7 + $0x34] ss:$20 sps:$4 sm:$0xff]  }
 0x19c   : > { %v2401_v13 = vpop.f32.mrf.mxu1 }
 0x19d   : > { %v9779_v22 = vadd.f32 %v2401_v13, %v2208_v8  ;;  %v2210_v21 = vpop.f32.mrf.mxu0  ;;  %v729_v8 = vld [vmem:[%s12804_s2 + $0x40] sm:$0xff] }
 0x19e   : > { %v2403_v27 = vpop.f32.mrf.mxu1 }
 0x19f   : > { %v9781_v29 = vadd.f32 %v2403_v27, %v2210_v21  ;;  %v2212_v16 = vpop.f32.mrf.mxu0  ;;  %v726_v27 = vld [vmem:[%s12804_s2 + $0x28] sm:$0xff] }
 0x1a0   : > { %v2405_v47 = vpop.f32.mrf.mxu1 }
 0x1a1   : > { %v9786_v33 = vadd.f32 %v2405_v47, %v2212_v16  ;;  %v2216_v45 = vpop.f32.mrf.mxu0  ;;  %2907 = vmatmul.mubr.bf16.vlgmr.msra.gmra.mxu0 %v8923_v54  ;;  %v728_v16 = vld [vmem:[%s12804_s2 + $0x38] sm:$0xff]  ;;  %v722_v54 = vld [vmem:[%s12804_s2 + $0x8] sm:$0xff] }
 0x1a2   : > { %v2409_v46 = vpop.f32.mrf.mxu1  ;;  %7698 = vmatmul.mubr.msk.bf16.vlgmr.msra.gmra.mxu1 %vm2037_vm2, %v9579_v20  ;;  %7715 = vmatpush1.msk.msra.mxu0 %vm2086_vm0, %v733_v6  ;;  %v731_v20 = vld [vmem:[%s12804_s2 + $0x50] sm:$0xff]  ;;  %v725_v6 = vld [vmem:[%s12804_s2 + $0x20] sm:$0xff] }
 0x1a3   : > { %v9800_v9 = vadd.f32 %v2409_v46, %v2216_v45  ;;  %2916 = vmatprep.mubr.bf16.mxu0 %v8924_v4  ;;  %v2218_v13 = vpop.f32.mrf.mxu0  ;;  %3109 = vmatprep.mubr.bf16.mxu1 %v12811_v44 }
 0x1a4   : > { %v2411_v21 = vpop.f32.mrf.mxu1  ;;  %7749 = vmatpush1.msk.msra.mxu1 %vm2086_vm0, %v735_v36  ;;  %3395 = vmatprep.subr.mxu0 %v730_v1  ;;  %v727_v36 = vld [vmem:[%s12804_s2 + $0x30] sm:$0xff]  ;;  %v724_v1 = vld [vmem:[%s12804_s2 + $0x18] sm:$0xff] }
 0x1a5   : > { %v9818_v47 = vadd.f32 %v2411_v21, %v2218_v13  ;;  %3652 = vmatprep.subr.mxu1 %v732_v3  ;;  %v2220_v45 = vpop.f32.mrf.mxu0  ;;  %3396 = vmatpush1.msra.mxu0 %v729_v8  ;;  %v723_v21 = vld [vmem:[%s12804_s2 + $0x10] sm:$0xff] }
 0x1a6   : > { %v2413_v46 = vpop.f32.mrf.mxu1  ;;  %3653 = vmatpush1.msra.mxu1 %v731_v20  ;;  %3397 = vmatprep.subr.mxu0 %v726_v27  ;;  %v721_v20 = vld [vmem:[%s12804_s2] sm:$0xff] }
 0x1a7   : > { %v9832_v3 = vadd.f32 %v2413_v46, %v2220_v45  ;;  %3654 = vmatprep.subr.mxu1 %v728_v16  ;;  %v2222_v4 = vpop.f32.mrf.mxu0  ;;  %3398 = vmatpush1.msra.mxu0 %v725_v6  ;;  %v9845_v27 = vld [vmem:[%s12806_s4 + $0xe4] ss:$16 sps:$4 sm:$0xff]   ;;  %v8926_v46 = vld [vmem:[%s9366_s7 + $0x5c] ss:$20 sps:$4 sm:$0xff]  }
 0x1a8   : > { %v2415_v13 = vpop.f32.mrf.mxu1  ;;  %3655 = vmatpush1.msra.mxu1 %v727_v36  ;;  %3399 = vmatprep.subr.mxu0 %v722_v54  ;;  %12865 = vst [vmem:[#allocation19_spill] sm:$0xff] %v9845_v27  ;;  %v8925_v36 = vld [vmem:[%s9366_s7 + $0x30] ss:$20 sps:$4 sm:$0xff]  }
 0x1a9   : > { %v9834_v8 = vadd.f32 %v2415_v13, %v2222_v4  ;;  %3656 = vmatprep.subr.mxu1 %v724_v1  ;;  %v2226_v16 = vpop.f32.mrf.mxu0  ;;  %2917 = vmatmul.mubr.bf16.gmra.mxu0 %v8925_v36 }
 0x1aa   : > { %v2419_v6 = vpop.f32.mrf.mxu1  ;;  %7699 = vmatmul.mubr.msk.bf16.gmra.mxu1 %vm2037_vm2, %v9592_v35  ;;  %2926 = vmatprep.mubr.bf16.mxu0 %v8926_v46 }
 0x1ab   : > { %12864 = vst [vmem:[#allocation18_spill] sm:$0xff] %v9834_v8  ;;  %v9850_v45 = vadd.f32 %v2419_v6, %v2226_v16  ;;  %3119 = vmatprep.mubr.bf16.mxu1 %v12811_v44  ;;  %v2228_v54 = vpop.f32.mrf.mxu0  ;;  %3400 = vmatpush1.msra.mxu0 %v721_v20  ;;  %v8927_v44 = vld [vmem:[%s9366_s7 + $0x58] ss:$20 sps:$4 sm:$0xff]  }
 0x1ac   : > { %v2421_v1 = vpop.f32.mrf.mxu1  ;;  %3657 = vmatpush1.msra.mxu1 %v723_v21  ;;  %4811 = vmatprep.subr.bf16.mxu0 %v9845_v27  ;;  %v8928_v21 = vld [vmem:[%s9366_s7 + $0x84] ss:$20 sps:$4 sm:$0xff]  }
 0x1ad   : > { %12866 = vst [vmem:[#allocation20_spill] sm:$0xff] %v9850_v45  ;;  %v9854_v4 = vadd.f32 %v2421_v1, %v2228_v54  ;;  %v2230_v13 = vpop.f32.mrf.mxu0  ;;  %v12869_v54 = vmov 0  }
 0x1ae   : > { %v2423_v36 = vpop.f32.mrf.mxu1 }
 0x1af   : > { %v9857_v8 = vadd.f32 %v2423_v36, %v2230_v13  ;;  %v2232_v35 = vpop.f32.mrf.mxu0 }
 0x1b0   : > { %v2425_v16 = vpop.f32.mrf.mxu1 }
 0x1b1   : > { %v9859_v6 = vadd.f32 %v2425_v16, %v2232_v35  ;;  %v2236_v46 = vpop.f32.mrf.mxu0  ;;  %2927 = vmatmul.mubr.bf16.gmra.mxu0 %v8927_v44  ;;  %v9873_v35 = vld [vmem:[%s12806_s4 + $0xec] ss:$16 sps:$4 sm:$0xff]  }
 0x1b2   : > { %v2429_v45 = vpop.f32.mrf.mxu1  ;;  %7700 = vmatmul.mubr.msk.bf16.gmra.mxu1 %vm2037_vm2, %v9602_v49  ;;  %2936 = vmatprep.mubr.bf16.mxu0 %v8928_v21  ;;  %12871 = vst [vmem:[#allocation24_spill] sm:$0xff] %v9873_v35 }
 0x1b3   : > { %12867 = vst [vmem:[#allocation21_spill] sm:$0xff] %v9859_v6  ;;  %v9864_v20 = vadd.f32 %v2429_v45, %v2236_v46  ;;  %3129 = vmatprep.mubr.bf16.mxu1 %v12869_v54  ;;  %v2238_v1 = vpop.f32.mrf.mxu0  ;;  %4854 = vmatprep.subr.bf16.mxu1 %v9873_v35  ;;  %v8929_v6 = vld [vmem:[%s9366_s7 + $0x80] ss:$20 sps:$4 sm:$0xff]  }
 0x1b4   : > { %v2431_v13 = vpop.f32.mrf.mxu1 }
 0x1b5   : > { %12868 = vst [vmem:[#allocation22_spill] sm:$0xff] %v9864_v20  ;;  %v9868_v36 = vadd.f32 %v2431_v13, %v2238_v1  ;;  %v2240_v44 = vpop.f32.mrf.mxu0  ;;  %v8930_v13 = vld [vmem:[%s9366_s7 + $0xac] ss:$20 sps:$4 sm:$0xff]  }
 0x1b6   : > { %v2433_v16 = vpop.f32.mrf.mxu1 }
 0x1b7   : > { %12870 = vst [vmem:[#allocation23_spill] sm:$0xff] %v9868_v36  ;;  %v9875_v49 = vadd.f32 %v2433_v16, %v2240_v44  ;;  %v2242_v45 = vpop.f32.mrf.mxu0 }
 0x1b8   : > { %v2435_v46 = vpop.f32.mrf.mxu1 }
 0x1b9   : > { %12872 = vst [vmem:[#allocation25_spill] sm:$0xff] %v9875_v49  ;;  %v9878_v21 = vadd.f32 %v2435_v46, %v2242_v45  ;;  %v2246_v27 = vpop.f32.mrf.mxu0  ;;  %2937 = vmatmul.mubr.bf16.gmra.mxu0 %v8929_v6 }
 0x1ba   : > { %v2439_v20 = vpop.f32.mrf.mxu1  ;;  %7701 = vmatmul.mubr.msk.bf16.gmra.mxu1 %vm2037_vm2, %v9613_v59  ;;  %2946 = vmatprep.mubr.bf16.mxu0 %v8930_v13 }
 0x1bb   : > { %12873 = vst [vmem:[#allocation26_spill] sm:$0xff] %v9878_v21  ;;  %v9883_v1 = vadd.f32 %v2439_v20, %v2246_v27  ;;  %3139 = vmatprep.mubr.bf16.mxu1 %v12869_v54  ;;  %v2248_v44 = vpop.f32.mrf.mxu0  ;;  %v8931_v20 = vld [vmem:[%s9366_s7 + $0xa8] ss:$20 sps:$4 sm:$0xff]  }
 0x1bc   : > { %v2441_v16 = vpop.f32.mrf.mxu1 }
 0x1bd   : > { %v9887_v35 = vadd.f32 %v2441_v16, %v2248_v44  ;;  %v2250_v45 = vpop.f32.mrf.mxu0  ;;  %v8932_v44 = vld [vmem:[%s9366_s7 + $0xd4] ss:$20 sps:$4 sm:$0xff]  }
 0x1be   : > { %v2443_v46 = vpop.f32.mrf.mxu1 }
 0x1bf   : > { %12874 = vst [vmem:[#allocation27_spill] sm:$0xff] %v9887_v35  ;;  %v9889_v21 = vadd.f32 %v2443_v46, %v2250_v45  ;;  %v2252_v6 = vpop.f32.mrf.mxu0 }
 0x1c0   : > { %v2445_v49 = vpop.f32.mrf.mxu1 }
 0x1c1   : > { %12875 = vst [vmem:[#allocation28_spill] sm:$0xff] %v9889_v21  ;;  %v9891_v36 = vadd.f32 %v2445_v49, %v2252_v6  ;;  %v2256_v59 = vpop.f32.mrf.mxu0  ;;  %2947 = vmatmul.mubr.bf16.gmra.mxu0 %v8931_v20 }
 0x1c2   : > { %v2449_v27 = vpop.f32.mrf.mxu1  ;;  %7702 = vmatmul.mubr.msk.bf16.gmra.mxu1 %vm2037_vm2, %v9622_v2  ;;  %2956 = vmatprep.mubr.bf16.mxu0 %v8932_v44 }
 0x1c3   : > { %12876 = vst [vmem:[#allocation29_spill] sm:$0xff] %v9891_v36  ;;  %v9896_v13 = vadd.f32 %v2449_v27, %v2256_v59  ;;  %3149 = vmatprep.mubr.bf16.mxu1 %v12869_v54  ;;  %v2258_v16 = vpop.f32.mrf.mxu0  ;;  %v8933_v27 = vld [vmem:[%s9366_s7 + $0xd0] ss:$20 sps:$4 sm:$0xff]  }
 0x1c4   : > { %v2451_v45 = vpop.f32.mrf.mxu1 }
 0x1c5   : > { %v9900_v46 = vadd.f32 %v2451_v45, %v2258_v16  ;;  %v2260_v49 = vpop.f32.mrf.mxu0  ;;  %v8934_v16 = vld [vmem:[%s9366_s7 + $0xfc] ss:$20 sps:$4 sm:$0xff]  }
 0x1c6   : > { %v2453_v6 = vpop.f32.mrf.mxu1 }
 0x1c7   : > { %12877 = vst [vmem:[#allocation30_spill] sm:$0xff] %v9900_v46  ;;  %v9902_v36 = vadd.f32 %v2453_v6, %v2260_v49  ;;  %v2262_v20 = vpop.f32.mrf.mxu0 }
 0x1c8   : > { %v2455_v21 = vpop.f32.mrf.mxu1 }
 0x1c9   : > { %12878 = vst [vmem:[#allocation31_spill] sm:$0xff] %v9902_v36  ;;  %v9904_v35 = vadd.f32 %v2455_v21, %v2262_v20  ;;  %v2266_v2 = vpop.f32.mrf.mxu0  ;;  %2957 = vmatmul.mubr.bf16.gmra.mxu0 %v8933_v27 }
 0x1ca   : > { %v2459_v59 = vpop.f32.mrf.mxu1  ;;  %7703 = vmatmul.mubr.msk.bf16.gmra.mxu1 %vm2037_vm2, %v9630_v10  ;;  %2966 = vmatprep.mubr.bf16.mxu0 %v8934_v16 }
 0x1cb   : > { %12879 = vst [vmem:[#allocation32_spill] sm:$0xff] %v9904_v35  ;;  %v9909_v44 = vadd.f32 %v2459_v59, %v2266_v2  ;;  %3159 = vmatprep.mubr.bf16.mxu1 %v12869_v54  ;;  %v2268_v45 = vpop.f32.mrf.mxu0  ;;  %v8935_v59 = vld [vmem:[%s9366_s7 + $0xf8] ss:$20 sps:$4 sm:$0xff]  }
 0x1cc   : > { %v2461_v49 = vpop.f32.mrf.mxu1 }
 0x1cd   : > { %v9913_v6 = vadd.f32 %v2461_v49, %v2268_v45  ;;  %v2270_v21 = vpop.f32.mrf.mxu0  ;;  %v8936_v45 = vld [vmem:[%s9366_s7 + $0x124] ss:$20 sps:$4 sm:$0xff]  }
 0x1ce   : > { %v2463_v20 = vpop.f32.mrf.mxu1 }
 0x1cf   : > { %12880 = vst [vmem:[#allocation33_spill] sm:$0xff] %v9913_v6  ;;  %v9915_v35 = vadd.f32 %v2463_v20, %v2270_v21  ;;  %v2272_v27 = vpop.f32.mrf.mxu0 }
 0x1d0   : > { %v2465_v36 = vpop.f32.mrf.mxu1 }
 0x1d1   : > { %12881 = vst [vmem:[#allocation34_spill] sm:$0xff] %v9915_v35  ;;  %v9917_v46 = vadd.f32 %v2465_v36, %v2272_v27  ;;  %v2276_v10 = vpop.f32.mrf.mxu0  ;;  %2967 = vmatmul.mubr.bf16.gmra.mxu0 %v8935_v59 }
 0x1d2   : > { %v2469_v2 = vpop.f32.mrf.mxu1  ;;  %7704 = vmatmul.mubr.msk.bf16.gmra.mxu1 %vm2037_vm2, %v9638_v15  ;;  %2976 = vmatprep.mubr.bf16.mxu0 %v8936_v45 }
 0x1d3   : > { %12882 = vst [vmem:[#allocation35_spill] sm:$0xff] %v9917_v46  ;;  %v9922_v16 = vadd.f32 %v2469_v2, %v2276_v10  ;;  %3169 = vmatprep.mubr.bf16.mxu1 %v12869_v54  ;;  %v2278_v49 = vpop.f32.mrf.mxu0  ;;  %v8937_v2 = vld [vmem:[%s9366_s7 + $0x120] ss:$20 sps:$4 sm:$0xff]  }
 0x1d4   : > { %v2471_v21 = vpop.f32.mrf.mxu1 }
 0x1d5   : > { %v9926_v20 = vadd.f32 %v2471_v21, %v2278_v49  ;;  %v2280_v36 = vpop.f32.mrf.mxu0  ;;  %v8938_v49 = vld [vmem:[%s9366_s7 + $0x14c] ss:$20 sps:$4 sm:$0xff]  }
 0x1d6   : > { %v2473_v27 = vpop.f32.mrf.mxu1 }
 0x1d7   : > { %12883 = vst [vmem:[#allocation36_spill] sm:$0xff] %v9926_v20  ;;  %v9928_v46 = vadd.f32 %v2473_v27, %v2280_v36  ;;  %v2282_v59 = vpop.f32.mrf.mxu0 }
 0x1d8   : > { %v2475_v35 = vpop.f32.mrf.mxu1 }
 0x1d9   : > { %12884 = vst [vmem:[#allocation37_spill] sm:$0xff] %v9928_v46  ;;  %v9930_v6 = vadd.f32 %v2475_v35, %v2282_v59  ;;  %v2286_v15 = vpop.f32.mrf.mxu0  ;;  %2977 = vmatmul.mubr.bf16.gmra.mxu0 %v8937_v2 }
 0x1da   : > { %v2479_v10 = vpop.f32.mrf.mxu1  ;;  %7705 = vmatmul.mubr.msk.bf16.gmra.mxu1 %vm2037_vm2, %v9646_v23  ;;  %2986 = vmatprep.mubr.bf16.mxu0 %v8938_v49 }
 0x1db   : > { %12885 = vst [vmem:[#allocation38_spill] sm:$0xff] %v9930_v6  ;;  %v9935_v45 = vadd.f32 %v2479_v10, %v2286_v15  ;;  %3179 = vmatprep.mubr.bf16.mxu1 %v12869_v54  ;;  %v2288_v21 = vpop.f32.mrf.mxu0  ;;  %v8939_v10 = vld [vmem:[%s9366_s7 + $0x148] ss:$20 sps:$4 sm:$0xff]  }
 0x1dc   : > { %v2481_v36 = vpop.f32.mrf.mxu1 }
 0x1dd   : > { %v9939_v27 = vadd.f32 %v2481_v36, %v2288_v21  ;;  %v2290_v35 = vpop.f32.mrf.mxu0  ;;  %v8940_v21 = vld [vmem:[%s9366_s7 + $0x174] ss:$20 sps:$4 sm:$0xff]  }
 0x1de   : > { %v2483_v59 = vpop.f32.mrf.mxu1 }
 0x1df   : > { %v9941_v6 = vadd.f32 %v2483_v59, %v2290_v35  ;;  %v2292_v2 = vpop.f32.mrf.mxu0 }
 0x1e0   : > { %v2485_v46 = vpop.f32.mrf.mxu1 }
 0x1e1   : > { %v9943_v20 = vadd.f32 %v2485_v46, %v2292_v2  ;;  %v2522_v23 = vpop.f32.mrf.mxu0  ;;  %2987 = vmatmul.mubr.bf16.gmra.mxu0 %v8939_v10 }
 0x1e2   : > { %v9945_v15 = vpop.f32.mrf.mxu1  ;;  %7706 = vmatmul.mubr.msk.bf16.gmra.mxu1 %vm2037_vm2, %v9654_v34  ;;  %v9951_v49 = vadd.f32 %v2522_v23, %v9663_v39  ;;  %2996 = vmatprep.mubr.bf16.mxu0 %v8940_v21 }
 0x1e3   : > { %12886 = vst [vmem:[#allocation39_spill] sm:$0xff] %v9945_v15  ;;  %3189 = vmatprep.mubr.bf16.mxu1 %v12869_v54  ;;  %v2524_v36 = vpop.f32.mrf.mxu0  ;;  %v8941_v15 = vld [vmem:[%s9366_s7 + $0x170] ss:$20 sps:$4 sm:$0xff]  }
 0x1e4   : > { %12887 = vst [vmem:[#allocation40_spill] sm:$0xff] %v9951_v49  ;;  %v9955_v46 = vpop.f32.mrf.mxu1  ;;  %v9958_v35 = vadd.f32 %v2524_v36, %v9667_v32 }
 0x1e5   : > { %v2526_v59 = vpop.f32.mrf.mxu0 }
 0x1e6   : > { %12888 = vst [vmem:[#allocation41_spill] sm:$0xff] %v9958_v35  ;;  %v9960_v2 = vpop.f32.mrf.mxu1  ;;  %v9963_v34 = vadd.f32 %v2526_v59, %v9672_v37  ;;  %v8942_v37 = vld [vmem:[%s9366_s7 + $0x19c] ss:$20 sps:$4 sm:$0xff]  }
 0x1e7   : > { %v2528_v10 = vpop.f32.mrf.mxu0 }
 0x1e8   : > { %12889 = vst [vmem:[#allocation42_spill] sm:$0xff] %v9963_v34  ;;  %v9965_v39 = vpop.f32.mrf.mxu1  ;;  %v9968_v23 = vadd.f32 %v2528_v10, %v9674_v53  ;;  %v8943_v34 = vld [vmem:[%s9366_s7 + $0x198] ss:$20 sps:$4 sm:$0xff]  }
 0x1e9   : > { %v2532_v21 = vpop.f32.mrf.mxu0  ;;  %2997 = vmatmul.mubr.bf16.gmra.mxu0 %v8941_v15 }
 0x1ea   : > { %12890 = vst [vmem:[#allocation43_spill] sm:$0xff] %v9968_v23  ;;  %v9970_v49 = vpop.f32.mrf.mxu1  ;;  %7707 = vmatmul.mubr.msk.bf16.gmra.mxu1 %vm2037_vm2, %v9670_v42  ;;  %v9976_v32 = vadd.f32 %v2532_v21, %v9679_v57  ;;  %3006 = vmatprep.mubr.bf16.mxu0 %v8942_v37 }
 0x1eb   : > { %3199 = vmatprep.mubr.bf16.mxu1 %v12869_v54  ;;  %v2534_v36 = vpop.f32.mrf.mxu0 }
 0x1ec   : > { %12891 = vst [vmem:[#allocation44_spill] sm:$0xff] %v9976_v32  ;;  %v9980_v53 = vpop.f32.mrf.mxu1  ;;  %v9983_v59 = vadd.f32 %v2534_v36, %v9683_v51 }
 0x1ed   : > { %v2536_v10 = vpop.f32.mrf.mxu0 }
 0x1ee   : > { %12892 = vst [vmem:[#allocation45_spill] sm:$0xff] %v9983_v59  ;;  %v9985_v15 = vpop.f32.mrf.mxu1  ;;  %v9988_v42 = vadd.f32 %v2536_v10, %v9688_v60  ;;  %v8944_v60 = vld [vmem:[%s9366_s7 + $0x1c4] ss:$20 sps:$4 sm:$0xff]  }
 0x1ef   : > { %v2538_v23 = vpop.f32.mrf.mxu0 }
 0x1f0   : > { %12893 = vst [vmem:[#allocation46_spill] sm:$0xff] %v9988_v42  ;;  %v9990_v57 = vpop.f32.mrf.mxu1  ;;  %v9993_v21 = vadd.f32 %v2538_v23, %v9690_v61  ;;  %v8945_v42 = vld [vmem:[%s9366_s7 + $0x1c0] ss:$20 sps:$4 sm:$0xff]  }
 0x1f1   : > { %v2542_v37 = vpop.f32.mrf.mxu0  ;;  %3007 = vmatmul.mubr.bf16.gmra.mxu0 %v8943_v34 }
 0x1f2   : > { %12894 = vst [vmem:[#allocation47_spill] sm:$0xff] %v9993_v21  ;;  %v9995_v32 = vpop.f32.mrf.mxu1  ;;  %7708 = vmatmul.mubr.msk.bf16.gmra.mxu1 %vm2037_vm2, %v9686_v62  ;;  %v10001_v51 = vadd.f32 %v2542_v37, %v9695_v63  ;;  %3016 = vmatprep.mubr.bf16.mxu0 %v8944_v60 }
 0x1f3   : > { %3209 = vmatprep.mubr.bf16.mxu1 %v12869_v54  ;;  %v2544_v36 = vpop.f32.mrf.mxu0 }
 0x1f4   : > { %12895 = vst [vmem:[#allocation48_spill] sm:$0xff] %v10001_v51  ;;  %v10005_v61 = vpop.f32.mrf.mxu1  ;;  %v10008_v23 = vadd.f32 %v2544_v36, %v9699_v11 }
 0x1f5   : > { %v2546_v10 = vpop.f32.mrf.mxu0 }
 0x1f6   : > { %12896 = vst [vmem:[#allocation49_spill] sm:$0xff] %v10008_v23  ;;  %v10010_v34 = vpop.f32.mrf.mxu1  ;;  %v10013_v62 = vadd.f32 %v2546_v10, %v9704_v18  ;;  %v8946_v18 = vld [vmem:[%s9366_s7 + $0x1ec] ss:$20 sps:$4 sm:$0xff]   ;;  %v10305_v23 = vld [vmem:[%s12806_s4 + $0x68] ss:$16 sps:$4 sm:$0xff]  }
 0x1f7   : > { %v2548_v21 = vpop.f32.mrf.mxu0  ;;  %12941 = vst [vmem:[#allocation87_spill] sm:$0xff] %v10305_v23 }
 0x1f8   : > { %12897 = vst [vmem:[#allocation50_spill] sm:$0xff] %v10013_v62  ;;  %v10015_v63 = vpop.f32.mrf.mxu1  ;;  %v10018_v37 = vadd.f32 %v2548_v21, %v9706_v5  ;;  %v8947_v62 = vld [vmem:[%s9366_s7 + $0x1e8] ss:$20 sps:$4 sm:$0xff]  }
 0x1f9   : > { %v2552_v60 = vpop.f32.mrf.mxu0  ;;  %3017 = vmatmul.mubr.bf16.gmra.mxu0 %v8945_v42 }
 0x1fa   : > { %12898 = vst [vmem:[#allocation51_spill] sm:$0xff] %v10018_v37  ;;  %v10020_v51 = vpop.f32.mrf.mxu1  ;;  %7709 = vmatmul.mubr.msk.bf16.gmra.mxu1 %vm2037_vm2, %v9702_v17  ;;  %v10026_v11 = vadd.f32 %v2552_v60, %v9711_v7  ;;  %3026 = vmatprep.mubr.bf16.mxu0 %v8946_v18 }
 0x1fb   : > { %3219 = vmatprep.mubr.bf16.mxu1 %v12869_v54  ;;  %v2554_v36 = vpop.f32.mrf.mxu0 }
 0x1fc   : > { %12899 = vst [vmem:[#allocation52_spill] sm:$0xff] %v10026_v11  ;;  %v10030_v5 = vpop.f32.mrf.mxu1  ;;  %v10033_v21 = vadd.f32 %v2554_v36, %v9715_v28 }
 0x1fd   : > { %v2556_v10 = vpop.f32.mrf.mxu0 }
 0x1fe   : > { %12900 = vst [vmem:[#allocation53_spill] sm:$0xff] %v10033_v21  ;;  %v10035_v42 = vpop.f32.mrf.mxu1  ;;  %v10038_v17 = vadd.f32 %v2556_v10, %v9720_v31  ;;  %v8948_v31 = vld [vmem:[%s9366_s7 + $0x214] ss:$20 sps:$4 sm:$0xff]  }
 0x1ff   : > { %v2558_v37 = vpop.f32.mrf.mxu0 }
 0x200   : > { %12901 = vst [vmem:[#allocation54_spill] sm:$0xff] %v10038_v17  ;;  %v10040_v7 = vpop.f32.mrf.mxu1  ;;  %v10043_v60 = vadd.f32 %v2558_v37, %v9722_v14  ;;  %v8949_v17 = vld [vmem:[%s9366_s7 + $0x210] ss:$20 sps:$4 sm:$0xff]  }
 0x201   : > { %v2562_v18 = vpop.f32.mrf.mxu0  ;;  %3027 = vmatmul.mubr.bf16.gmra.mxu0 %v8947_v62 }
 0x202   : > { %12902 = vst [vmem:[#allocation55_spill] sm:$0xff] %v10043_v60  ;;  %v10045_v11 = vpop.f32.mrf.mxu1  ;;  %7710 = vmatmul.mubr.msk.bf16.gmra.mxu1 %vm2037_vm2, %v9718_v43  ;;  %v10051_v28 = vadd.f32 %v2562_v18, %v9727_v19  ;;  %3036 = vmatprep.mubr.bf16.mxu0 %v8948_v31 }
 0x203   : > { %3229 = vmatprep.mubr.bf16.mxu1 %v12869_v54  ;;  %v2564_v36 = vpop.f32.mrf.mxu0 }
 0x204   : > { %12903 = vst [vmem:[#allocation56_spill] sm:$0xff] %v10051_v28  ;;  %v10055_v14 = vpop.f32.mrf.mxu1  ;;  %v10058_v37 = vadd.f32 %v2564_v36, %v9731_v50 }
 0x205   : > { %v2566_v10 = vpop.f32.mrf.mxu0 }
 0x206   : > { %12904 = vst [vmem:[#allocation57_spill] sm:$0xff] %v10058_v37  ;;  %v10060_v62 = vpop.f32.mrf.mxu1  ;;  %v10063_v43 = vadd.f32 %v2566_v10, %v9736_v0  ;;  %v8950_v0 = vld [vmem:[%s9366_s7 + $0x23c] ss:$20 sps:$4 sm:$0xff]  }
 0x207   : > { %v2568_v60 = vpop.f32.mrf.mxu0 }
 0x208   : > { %12905 = vst [vmem:[#allocation58_spill] sm:$0xff] %v10063_v43  ;;  %v10065_v19 = vpop.f32.mrf.mxu1  ;;  %v10068_v18 = vadd.f32 %v2568_v60, %v9738_v26  ;;  %v8951_v43 = vld [vmem:[%s9366_s7 + $0x238] ss:$20 sps:$4 sm:$0xff]  }
 0x209   : > { %v2572_v31 = vpop.f32.mrf.mxu0  ;;  %3037 = vmatmul.mubr.bf16.gmra.mxu0 %v8949_v17 }
 0x20a   : > { %12906 = vst [vmem:[#allocation59_spill] sm:$0xff] %v10068_v18  ;;  %v10070_v28 = vpop.f32.mrf.mxu1  ;;  %7711 = vmatmul.mubr.msk.bf16.gmra.mxu1 %vm2037_vm2, %v9734_v56  ;;  %v10076_v50 = vadd.f32 %v2572_v31, %v9743_v30  ;;  %3046 = vmatprep.mubr.bf16.mxu0 %v8950_v0 }
 0x20b   : > { %3239 = vmatprep.mubr.bf16.mxu1 %v12869_v54  ;;  %v2574_v36 = vpop.f32.mrf.mxu0 }
 0x20c   : > { %12907 = vst [vmem:[#allocation60_spill] sm:$0xff] %v10076_v50  ;;  %v10080_v26 = vpop.f32.mrf.mxu1  ;;  %v10083_v60 = vadd.f32 %v2574_v36, %v9747_v12  ;;  %v8952_v36 = vld [vmem:[%s9366_s7 + $0x264] ss:$20 sps:$4 sm:$0xff]  }
 0x20d   : > { %v2576_v10 = vpop.f32.mrf.mxu0 }
 0x20e   : > { %12908 = vst [vmem:[#allocation61_spill] sm:$0xff] %v10083_v60  ;;  %v10085_v17 = vpop.f32.mrf.mxu1  ;;  %v10088_v56 = vadd.f32 %v2576_v10, %v9752_v24  ;;  %v12815_v24 = vlaneseq }
 0x20f   : > { %v2578_v18 = vpop.f32.mrf.mxu0 }
 0x210   : > { %12909 = vst [vmem:[#allocation62_spill] sm:$0xff] %v10088_v56  ;;  %v10090_v30 = vpop.f32.mrf.mxu1  ;;  %v10093_v31 = vadd.f32 %v2578_v18, %v9754_v38 }
 0x211   : > { %12910 = vst [vmem:[#allocation63_spill] sm:$0xff] %v10090_v30  ;;  %v2582_v0 = vpop.f32.mrf.mxu0  ;;  %3047 = vmatmul.mubr.bf16.gmra.mxu0 %v8951_v43 }
 0x212   : > { %12911 = vst [vmem:[#allocation64_spill] sm:$0xff] %v10093_v31  ;;  %v10095_v50 = vpop.f32.mrf.mxu1  ;;  %7712 = vmatmul.mubr.msk.bf16.gmra.mxu1 %vm2037_vm2, %v9750_v25  ;;  %v10101_v12 = vadd.f32 %v2582_v0, %v9759_v41  ;;  %3056 = vmatprep.mubr.bf16.mxu0 %v8952_v36  ;;  %v10116_v41 = vand.u32 127, %v12815_v24 }
 0x213   : > { %3249 = vmatprep.mubr.bf16.mxu1 %v12869_v54  ;;  %v2584_v10 = vpop.f32.mrf.mxu0 }
 0x214   : > { %12912 = vst [vmem:[#allocation65_spill] sm:$0xff] %v10101_v12  ;;  %v10105_v38 = vpop.f32.mrf.mxu1  ;;  %v10108_v18 = vadd.f32 %v2584_v10, %v9763_v40  ;;  %v8953_v40 = vld [vmem:[%s9366_s7 + $0x260] ss:$20 sps:$4 sm:$0xff]   ;;  %v531_v10 = vpop.permute.xlu0 %530 }
 0x215   : > { %v2586_v31 = vpop.f32.mrf.mxu0  ;;  %vm625_vm3 = vcmp.eq.s32.totalorder %v531_v10, %v10116_v41 }
 0x216   : > { %12913 = vst [vmem:[#allocation66_spill] sm:$0xff] %v10108_v18  ;;  %v10110_v43 = vpop.f32.mrf.mxu1  ;;  %v10113_v25 = vadd.f32 %v2586_v31, %v9768_v52  ;;  %v12816_v31 = vmov 0.0  }
 0x217   : > { %v2588_v0 = vpop.f32.mrf.mxu0 }
 0x218   : > { %12914 = vst [vmem:[#allocation67_spill] sm:$0xff] %v10113_v25  ;;  %v10118_v36 = vpop.f32.mrf.mxu1  ;;  %v10121_v12 = vadd.f32 %v2588_v0, %v9770_v55  ;;  %v8355_v25 = vld [vmem:[%s12806_s4 + $0xc0] ss:$16 sps:$4 sm:$0xff]  }
 0x219   : > { %12915 = vst [vmem:[#allocation68_spill] sm:$0xff] %v10118_v36  ;;  %v2592_v56 = vpop.f32.mrf.mxu0  ;;  %3057 = vmatmul.mubr.bf16.gmra.mxu0 %v8953_v40 }
 0x21a   : > { %12916 = vst [vmem:[#allocation69_spill] sm:$0xff] %v10121_v12  ;;  %v10123_v60 = vpop.f32.mrf.mxu1  ;;  %7713 = vmatmul.mubr.msk.bf16.gmra.mxu1 %vm2037_vm2, %v9766_v48  ;;  %v10129_v52 = vadd.f32 %v2592_v56, %v9775_v58  ;;  %3433 = vmatprep.mubr.f32.mxu0 %v12816_v31  ;;  %v7434_v48 = vsel %vm625_vm3, 1.0, %v12816_v31  ;;  %v8352_v56 = vld [vmem:[%s12806_s4 + $0xe0] ss:$16 sps:$4 sm:$0xff]  }
 0x21b   : > { %3690 = vmatprep.mubr.f32.mxu1 %v12816_v31  ;;  %v2594_v55 = vpop.f32.mrf.mxu0 }
 0x21c   : > { %12917 = vst [vmem:[#allocation70_spill] sm:$0xff] %v10129_v52  ;;  %v10134_v0 = vpop.f32.mrf.mxu1  ;;  %v10137_v24 = vadd.f32 %v2594_v55, %v9779_v22  ;;  %v8353_v22 = vld [vmem:[%s12806_s4 + $0xc4] ss:$16 sps:$4 sm:$0xff]   ;;  %v534_v55 = vpop.permute.xlu0 %533 }
 0x21d   : > { %v2596_v40 = vpop.f32.mrf.mxu0  ;;  %vm626_vm5 = vcmp.eq.s32.totalorder %v534_v55, %v10116_v41 }
 0x21e   : > { %12918 = vst [vmem:[#allocation71_spill] sm:$0xff] %v10137_v24  ;;  %v10139_v12 = vpop.f32.mrf.mxu1  ;;  %v10143_v58 = vadd.f32 %v2596_v40, %v9781_v29  ;;  %v8358_v29 = vld [vmem:[%s12806_s4 + $0xe8] ss:$16 sps:$4 sm:$0xff]  }
 0x21f   : > { %v2598_v10 = vpop.f32.mrf.mxu0 }
 0x220   : > { %12919 = vst [vmem:[#allocation72_spill] sm:$0xff] %v10143_v58  ;;  %v10148_v52 = vpop.f32.mrf.mxu1  ;;  %v10154_v24 = vadd.f32 %v2598_v10, %v9786_v33  ;;  %v537_v58 = vpop.permute.xlu1 %536  ;;  %v12923_v33 = vmov 0.0  }
 0x221   : > { %12920 = vst [vmem:[#allocation73_spill] sm:$0xff] %v10148_v52  ;;  %v2602_v40 = vpop.f32.mrf.mxu0  ;;  %7716 = vmatmul.mubr.msk.f32.vlgmr.msra.gmra.mxu0 %vm3260_vm4, %v7434_v48  ;;  %vm627_vm6 = vcmp.eq.s32.totalorder %v537_v58, %v10116_v41  ;;  %v10213_v58 = vld [vmem:[%s12806_s4 + $0xac] ss:$16 sps:$4 sm:$0xff]  }
 0x222   : > { %12921 = vst [vmem:[#allocation74_spill] sm:$0xff] %v10154_v24  ;;  %v10160_v31 = vpop.f32.mrf.mxu1  ;;  %7750 = vmatmul.mubr.msk.f32.vlgmr.msra.gmra.mxu1 %vm3260_vm4, %v7434_v48  ;;  %v10165_v52 = vadd.f32 %v2602_v40, %v9800_v9  ;;  %4812 = vmatpush1.bf16.msra.mxu0 %v8352_v56  ;;  %v10178_v9 = vld [vmem:[%s12806_s4 + $0xcc] ss:$16 sps:$4 sm:$0xff]   ;;  %v7435_v48 = vsel %vm626_vm5, 1.0, %v12923_v33  ;;  %v8364_v40 = vld [vmem:[%s12806_s4 + $0xc8] ss:$16 sps:$4 sm:$0xff]  }
 0x223   : > { %3439 = vmatprep.mubr.f32.mxu0 %v12923_v33  ;;  %v2604_v10 = vpop.f32.mrf.mxu0  ;;  %3696 = vmatprep.mubr.f32.mxu1 %v12923_v33 }
 0x224   : > { %12922 = vst [vmem:[#allocation75_spill] sm:$0xff] %v10165_v52  ;;  %v10169_v24 = vpop.f32.mrf.mxu1  ;;  %4813 = vmatprep.subr.bf16.mxu0 %v8353_v22  ;;  %v10184_v56 = vadd.f32 %v2604_v10, %v9818_v47  ;;  %4855 = vmatpush1.bf16.msra.mxu1 %v8358_v29  ;;  %v8359_v22 = vld [vmem:[%s12806_s4 + $0xa4] ss:$16 sps:$4 sm:$0xff]   ;;  %v7436_v47 = vsel %vm627_vm6, 1.0, %v12923_v33 }
 0x225   : > { %v2606_v52 = vpop.f32.mrf.mxu0  ;;  %7717 = vmatmul.mubr.msk.f32.gmra.mxu0 %vm3260_vm4, %v7435_v48  ;;  %4856 = vmatprep.subr.bf16.mxu1 %v10178_v9 }
 0x226   : > { %12924 = vst [vmem:[#allocation76_spill] sm:$0xff] %v10184_v56  ;;  %v10192_v18 = vpop.f32.mrf.mxu1  ;;  %7751 = vmatmul.mubr.msk.f32.gmra.mxu1 %vm3260_vm4, %v7435_v48  ;;  %v10200_v55 = vadd.f32 %v2606_v52, %v9832_v3  ;;  %3445 = vmatprep.mubr.f32.mxu0 %v12923_v33  ;;  %v8361_v56 = vld [vmem:[%s12806_s4 + $0xa0] ss:$16 sps:$4 sm:$0xff]   ;;  %v540_v3 = vpop.permute.xlu1 %539 }
 0x227   : > { %3702 = vmatprep.mubr.f32.mxu1 %v12923_v33  ;;  %v2608_v29 = vpop.f32.mrf.mxu0  ;;  %4814 = vmatpush1.bf16.msra.mxu0 %v8355_v25  ;;  %v12927_v52 = vld [vmem:[#allocation18_spill] sm:$0xff]  ;;  %vm628_vm7 = vcmp.eq.s32.totalorder %v540_v3, %v10116_v41 }
 0x228   : > { %12925 = vst [vmem:[#allocation77_spill] sm:$0xff] %v10200_v55  ;;  %v10204_v10 = vpop.f32.mrf.mxu1  ;;  %v10216_v48 = vadd.f32 %v2608_v29, %v12927_v52  ;;  %4815 = vmatprep.subr.bf16.mxu0 %v8359_v22  ;;  %4857 = vmatpush1.bf16.msra.mxu1 %v8364_v40  ;;  %v10221_v25 = vld [vmem:[%s12806_s4 + $0x84] ss:$16 sps:$4 sm:$0xff]   ;;  %v10243_v3 = vld [vmem:[%s12806_s4 + $0x80] ss:$16 sps:$4 sm:$0xff]  }
 0x229   : > { %12926 = vst [vmem:[#allocation78_spill] sm:$0xff] %v10204_v10  ;;  %v10226_v10 = vld [vmem:[%s12806_s4 + $0xa8] ss:$16 sps:$4 sm:$0xff]   ;;  %v2612_v55 = vpop.f32.mrf.mxu0  ;;  %7718 = vmatmul.mubr.msk.f32.gmra.mxu0 %vm3260_vm4, %v7436_v47  ;;  %v12929_v22 = vld [vmem:[#allocation20_spill] sm:$0xff]  ;;  %4858 = vmatprep.subr.bf16.mxu1 %v10213_v58 }
 0x22a   : > { %12928 = vst [vmem:[#allocation18_spill] sm:$0xff] %v10216_v48  ;;  %v10229_v36 = vpop.f32.mrf.mxu1  ;;  %7752 = vmatmul.mubr.msk.f32.gmra.mxu1 %vm3260_vm4, %v7436_v47  ;;  %v10234_v40 = vadd.f32 %v2612_v55, %v12929_v22  ;;  %3451 = vmatprep.mubr.f32.mxu0 %v12923_v33  ;;  %v10249_v47 = vld [vmem:[%s12806_s4 + $0x8c] ss:$16 sps:$4 sm:$0xff]   ;;  %v543_v55 = vpop.permute.xlu0 %542  ;;  %v7437_v22 = vsel %vm628_vm7, 1.0, %v12923_v33  ;;  %v10265_v48 = vld [vmem:[%s12806_s4 + $0x88] ss:$16 sps:$4 sm:$0xff]  }
 0x22b   : > { %3708 = vmatprep.mubr.f32.mxu1 %v12923_v33  ;;  %v2614_v29 = vpop.f32.mrf.mxu0  ;;  %4816 = vmatpush1.bf16.msra.mxu0 %v8361_v56  ;;  %v10260_v56 = vld [vmem:[%s12806_s4 + $0x64] ss:$16 sps:$4 sm:$0xff]   ;;  %12933 = vst [vmem:[#allocation81_spill] sm:$0xff] %v10265_v48  ;;  %vm629_vm8 = vcmp.eq.s32.totalorder %v543_v55, %v10116_v41  ;;  %v10283_v55 = vld [vmem:[%s12806_s4 + $0x60] ss:$16 sps:$4 sm:$0xff]  }
 0x22c   : > { %12930 = vst [vmem:[#allocation20_spill] sm:$0xff] %v10234_v40  ;;  %v10238_v52 = vpop.f32.mrf.mxu1  ;;  %v10253_v40 = vadd.f32 %v2614_v29, %v9854_v4  ;;  %4817 = vmatprep.subr.bf16.mxu0 %v10221_v25  ;;  %4859 = vmatpush1.bf16.msra.mxu1 %v10226_v10  ;;  %12932 = vst [vmem:[#allocation80_spill] sm:$0xff] %v10260_v56 }
 0x22d   : > { %v2616_v30 = vpop.f32.mrf.mxu0  ;;  %7719 = vmatmul.mubr.msk.f32.gmra.mxu0 %vm3260_vm4, %v7437_v22  ;;  %12936 = vst [vmem:[#allocation84_spill] sm:$0xff] %v10283_v55  ;;  %4860 = vmatprep.subr.bf16.mxu1 %v10249_v47 }
 0x22e   : > { %12931 = vst [vmem:[#allocation79_spill] sm:$0xff] %v10253_v40  ;;  %v10268_v37 = vpop.f32.mrf.mxu1  ;;  %7753 = vmatmul.mubr.msk.f32.gmra.mxu1 %vm3260_vm4, %v7437_v22  ;;  %v10273_v4 = vadd.f32 %v2616_v30, %v9857_v8  ;;  %3457 = vmatprep.mubr.f32.mxu0 %v12923_v33  ;;  %v10289_v8 = vld [vmem:[%s12806_s4 + $0x6c] ss:$16 sps:$4 sm:$0xff]   ;;  %v7438_v30 = vsel %vm629_vm8, 1.0, %v12923_v33  ;;  %v546_v22 = vpop.permute.xlu1 %545 }
 0x22f   : > { %3714 = vmatprep.mubr.f32.mxu1 %v12923_v33  ;;  %v2618_v29 = vpop.f32.mrf.mxu0  ;;  %4818 = vmatpush1.bf16.msra.mxu0 %v10243_v3  ;;  %12937 = vst [vmem:[#allocation85_spill] sm:$0xff] %v10289_v8  ;;  %vm630_vm9 = vcmp.eq.s32.totalorder %v546_v22, %v10116_v41  ;;  %v10323_v22 = vld [vmem:[%s12806_s4 + $0x40] ss:$16 sps:$4 sm:$0xff]  }
 0x230   : > { %12934 = vst [vmem:[#allocation82_spill] sm:$0xff] %v10273_v4  ;;  %v10277_v40 = vpop.f32.mrf.mxu1  ;;  %v12938_v4 = vld [vmem:[#allocation21_spill] sm:$0xff]  ;;  %4819 = vmatprep.subr.bf16.mxu0 %v10260_v56  ;;  %4861 = vmatpush1.bf16.msra.mxu1 %v10265_v48  ;;  %12946 = vst [vmem:[#allocation90_spill] sm:$0xff] %v10323_v22 }
 0x231   : > { %12935 = vst [vmem:[#allocation83_spill] sm:$0xff] %v10277_v40  ;;  %v10293_v21 = vadd.f32 %v2618_v29, %v12938_v4  ;;  %v10300_v40 = vld [vmem:[%s12806_s4 + $0x44] ss:$16 sps:$4 sm:$0xff]   ;;  %v2622_v59 = vpop.f32.mrf.mxu0  ;;  %7720 = vmatmul.mubr.msk.f32.gmra.mxu0 %vm3260_vm4, %v7438_v30  ;;  %4862 = vmatprep.subr.bf16.mxu1 %v10289_v8 }
 0x232   : > { %12940 = vst [vmem:[#allocation86_spill] sm:$0xff] %v10300_v40  ;;  %v10308_v35 = vpop.f32.mrf.mxu1  ;;  %7754 = vmatmul.mubr.msk.f32.gmra.mxu1 %vm3260_vm4, %v7438_v30  ;;  %v12943_v4 = vld [vmem:[#allocation22_spill] sm:$0xff]  ;;  %3463 = vmatprep.mubr.f32.mxu0 %v12923_v33  ;;  %v549_v30 = vpop.permute.xlu0 %548 }
 0x233   : > { %12939 = vst [vmem:[#allocation21_spill] sm:$0xff] %v10293_v21  ;;  %12942 = vst [vmem:[#allocation88_spill] sm:$0xff] %v10308_v35  ;;  %v10313_v29 = vadd.f32 %v2622_v59, %v12943_v4  ;;  %3720 = vmatprep.mubr.f32.mxu1 %v12923_v33  ;;  %v2624_v21 = vpop.f32.mrf.mxu0  ;;  %4820 = vmatpush1.bf16.msra.mxu0 %v10283_v55  ;;  %v10329_v59 = vld [vmem:[%s12806_s4 + $0x4c] ss:$16 sps:$4 sm:$0xff]   ;;  %v7439_v4 = vsel %vm630_vm9, 1.0, %v12923_v33  ;;  %vm631_vm10 = vcmp.eq.s32.totalorder %v549_v30, %v10116_v41 }
 0x234   : > { %v10317_v56 = vpop.f32.mrf.mxu1  ;;  %12947 = vst [vmem:[#allocation91_spill] sm:$0xff] %v10329_v59  ;;  %4821 = vmatprep.subr.bf16.mxu0 %v10300_v40  ;;  %4863 = vmatpush1.bf16.msra.mxu1 %v10305_v23  ;;  %v10345_v55 = vld [vmem:[%s12806_s4 + $0x48] ss:$16 sps:$4 sm:$0xff]   ;;  %v10363_v30 = vld [vmem:[%s12806_s4 + $0x20] ss:$16 sps:$4 sm:$0xff]  }
 0x235   : > { %12944 = vst [vmem:[#allocation22_spill] sm:$0xff] %v10313_v29  ;;  %12945 = vst [vmem:[#allocation89_spill] sm:$0xff] %v10317_v56  ;;  %v12948_v29 = vld [vmem:[#allocation23_spill] sm:$0xff]  ;;  %v10340_v56 = vld [vmem:[%s12806_s4 + $0x24] ss:$16 sps:$4 sm:$0xff]   ;;  %v2626_v8 = vpop.f32.mrf.mxu0  ;;  %7721 = vmatmul.mubr.msk.f32.gmra.mxu0 %vm3260_vm4, %v7439_v4  ;;  %4864 = vmatprep.subr.bf16.mxu1 %v10329_v59 }
 0x236   : > { %v10333_v35 = vadd.f32 %v2624_v21, %v12948_v29  ;;  %12950 = vst [vmem:[#allocation92_spill] sm:$0xff] %v10340_v56  ;;  %v10348_v48 = vpop.f32.mrf.mxu1  ;;  %7755 = vmatmul.mubr.msk.f32.gmra.mxu1 %vm3260_vm4, %v7439_v4  ;;  %v12952_v21 = vld [vmem:[#allocation25_spill] sm:$0xff]  ;;  %3469 = vmatprep.mubr.f32.mxu0 %v12923_v33  ;;  %12955 = vst [vmem:[#allocation95_spill] sm:$0xff] %v10363_v30  ;;  %v7440_v4 = vsel %vm631_vm10, 1.0, %v12923_v33 }
 0x237   : > { %12951 = vst [vmem:[#allocation93_spill] sm:$0xff] %v10348_v48  ;;  %v10353_v29 = vadd.f32 %v2626_v8, %v12952_v21  ;;  %3726 = vmatprep.mubr.f32.mxu1 %v12923_v33  ;;  %4822 = vmatpush1.bf16.msra.mxu0 %v10323_v22  ;;  %v10369_v8 = vld [vmem:[%s12806_s4 + $0x2c] ss:$16 sps:$4 sm:$0xff]   ;;  %v552_v21 = vpop.permute.xlu1 %551  ;;  %v10385_v22 = vld [vmem:[%s12806_s4 + $0x28] ss:$16 sps:$4 sm:$0xff]  }
 0x238   : > { %12949 = vst [vmem:[#allocation23_spill] sm:$0xff] %v10333_v35  ;;  %v2628_v35 = vpop.f32.mrf.mxu0  ;;  %v10357_v40 = vpop.f32.mrf.mxu1  ;;  %12956 = vst [vmem:[#allocation96_spill] sm:$0xff] %v10369_v8  ;;  %4823 = vmatprep.subr.bf16.mxu0 %v10340_v56  ;;  %4865 = vmatpush1.bf16.msra.mxu1 %v10345_v55  ;;  %vm632_vm11 = vcmp.eq.s32.totalorder %v552_v21, %v10116_v41  ;;  %v10403_v21 = vld [vmem:[%s12806_s4] ss:$16 sps:$4 sm:$0xff]  }
 0x239   : > { %12953 = vst [vmem:[#allocation25_spill] sm:$0xff] %v10353_v29  ;;  %12954 = vst [vmem:[#allocation94_spill] sm:$0xff] %v10357_v40  ;;  %v12957_v29 = vld [vmem:[#allocation26_spill] sm:$0xff]  ;;  %7722 = vmatmul.mubr.msk.f32.gmra.mxu0 %vm3260_vm4, %v7440_v4  ;;  %4866 = vmatprep.subr.bf16.mxu1 %v10369_v8 }
 0x23a   : > { %v10373_v48 = vadd.f32 %v2628_v35, %v12957_v29  ;;  %v10380_v40 = vld [vmem:[%s12806_s4 + $0x4] ss:$16 sps:$4 sm:$0xff]   ;;  %12960 = vst [vmem:[#allocation98_spill] sm:$0xff] %v10385_v22  ;;  %v2632_v59 = vpop.f32.mrf.mxu0  ;;  %v10388_v23 = vpop.f32.mrf.mxu1  ;;  %7756 = vmatmul.mubr.msk.f32.gmra.mxu1 %vm3260_vm4, %v7440_v4  ;;  %3475 = vmatprep.mubr.f32.mxu0 %v12923_v33  ;;  %v7441_v4 = vsel %vm632_vm11, 1.0, %v12923_v33 }
 0x23b   : > { %12959 = vst [vmem:[#allocation97_spill] sm:$0xff] %v10380_v40  ;;  %12961 = vst [vmem:[#allocation99_spill] sm:$0xff] %v10388_v23  ;;  %v10393_v35 = vadd.f32 %v2632_v59, %v9883_v1  ;;  %3732 = vmatprep.mubr.f32.mxu1 %v12923_v33  ;;  %4824 = vmatpush1.bf16.msra.mxu0 %v10363_v30  ;;  %v10409_v1 = vld [vmem:[%s12806_s4 + $0xc] ss:$16 sps:$4 sm:$0xff]   ;;  %v555_v59 = vpop.permute.xlu0 %554 }
 0x23c   : > { %12958 = vst [vmem:[#allocation26_spill] sm:$0xff] %v10373_v48  ;;  %v2634_v29 = vpop.f32.mrf.mxu0  ;;  %v10397_v48 = vpop.f32.mrf.mxu1  ;;  %4825 = vmatprep.subr.bf16.mxu0 %v10380_v40  ;;  %4867 = vmatpush1.bf16.msra.mxu1 %v10385_v22  ;;  %vm633_vm12 = vcmp.eq.s32.totalorder %v555_v59, %v10116_v41  ;;  %v12970_v22 = vld [vmem:[#allocation29_spill] sm:$0xff] }
 0x23d   : > { %12962 = vst [vmem:[#allocation100_spill] sm:$0xff] %v10393_v35  ;;  %12963 = vst [vmem:[#allocation101_spill] sm:$0xff] %v10397_v48  ;;  %v12964_v35 = vld [vmem:[#allocation27_spill] sm:$0xff]  ;;  %7723 = vmatmul.mubr.msk.f32.gmra.mxu0 %vm3260_vm4, %v7441_v4  ;;  %4868 = vmatprep.subr.bf16.mxu1 %v10409_v1  ;;  %v7442_v59 = vsel %vm633_vm12, 1.0, %v12923_v33 }
 0x23e   : > { %v10413_v23 = vadd.f32 %v2634_v29, %v12964_v35  ;;  %v10420_v48 = vld [vmem:[%s12806_s4 + $0x8] ss:$16 sps:$4 sm:$0xff]   ;;  %v2636_v30 = vpop.f32.mrf.mxu0  ;;  %v10423_v8 = vpop.f32.mrf.mxu1  ;;  %7757 = vmatmul.mubr.msk.f32.gmra.mxu1 %vm3260_vm4, %v7441_v4  ;;  %v12967_v35 = vld [vmem:[#allocation28_spill] sm:$0xff]  ;;  %3481 = vmatprep.mubr.f32.mxu0 %v12923_v33 }
 0x23f   : > { %12966 = vst [vmem:[#allocation102_spill] sm:$0xff] %v10423_v8  ;;  %v10428_v29 = vadd.f32 %v2636_v30, %v12967_v35  ;;  %3738 = vmatprep.mubr.f32.mxu1 %v12923_v33  ;;  %4826 = vmatpush1.bf16.msra.mxu0 %v10403_v21  ;;  %v558_v8 = vpop.permute.xlu1 %557  ;;  %v12972_v30 = vld [vmem:[#allocation19_spill] sm:$0xff] }
 0x240   : > { %12965 = vst [vmem:[#allocation27_spill] sm:$0xff] %v10413_v23  ;;  %v2638_v23 = vpop.f32.mrf.mxu0  ;;  %v10432_v40 = vpop.f32.mrf.mxu1  ;;  %4869 = vmatpush1.bf16.msra.mxu1 %v10420_v48  ;;  %4965 = vmatprep.subr.bf16.mxu0 %v12972_v30  ;;  %vm634_vm13 = vcmp.eq.s32.totalorder %v558_v8, %v10116_v41  ;;  %v12976_v30 = vld [vmem:[#allocation24_spill] sm:$0xff] }
 0x241   : > { %12968 = vst [vmem:[#allocation28_spill] sm:$0xff] %v10428_v29  ;;  %12969 = vst [vmem:[#allocation103_spill] sm:$0xff] %v10432_v40  ;;  %v10438_v56 = vadd.f32 %v2638_v23, %v12970_v22  ;;  %7724 = vmatmul.mubr.msk.f32.gmra.mxu0 %vm3260_vm4, %v7442_v59  ;;  %5008 = vmatprep.subr.bf16.mxu1 %v12976_v30  ;;  %v561_v8 = vpop.permute.xlu0 %560  ;;  %v12977_v40 = vld [vmem:[#allocation30_spill] sm:$0xff] }
 0x242   : > { %v2642_v4 = vpop.f32.mrf.mxu0  ;;  %v10443_v35 = vpop.f32.mrf.mxu1  ;;  %7758 = vmatmul.mubr.msk.f32.gmra.mxu1 %vm3260_vm4, %v7442_v59  ;;  %3487 = vmatprep.mubr.f32.mxu0 %v12923_v33  ;;  %vm635_vm14 = vcmp.eq.s32.totalorder %v561_v8, %v10116_v41  ;;  %v12983_v8 = vld [vmem:[#allocation32_spill] sm:$0xff] }
 0x243   : > { %12971 = vst [vmem:[#allocation29_spill] sm:$0xff] %v10438_v56  ;;  %12973 = vst [vmem:[#allocation19_spill] sm:$0xff] %v10443_v35  ;;  %v10448_v29 = vadd.f32 %v2642_v4, %v9896_v13  ;;  %3744 = vmatprep.mubr.f32.mxu1 %v12923_v33  ;;  %v7443_v56 = vsel %vm634_vm13, 1.0, %v12923_v33  ;;  %v12980_v4 = vld [vmem:[#allocation31_spill] sm:$0xff] }
 0x244   : > { %v2644_v23 = vpop.f32.mrf.mxu0  ;;  %v10452_v22 = vpop.f32.mrf.mxu1 }
 0x245   : > { %12974 = vst [vmem:[#allocation104_spill] sm:$0xff] %v10448_v29  ;;  %12975 = vst [vmem:[#allocation105_spill] sm:$0xff] %v10452_v22  ;;  %v10457_v35 = vadd.f32 %v2644_v23, %v12977_v40  ;;  %7725 = vmatmul.mubr.msk.f32.gmra.mxu0 %vm3260_vm4, %v7443_v56  ;;  %v7444_v40 = vsel %vm635_vm14, 1.0, %v12923_v33  ;;  %v564_v23 = vpop.permute.xlu1 %563 }
 0x246   : > { %v2646_v59 = vpop.f32.mrf.mxu0  ;;  %v10460_v13 = vpop.f32.mrf.mxu1  ;;  %7759 = vmatmul.mubr.msk.f32.gmra.mxu1 %vm3260_vm4, %v7443_v56  ;;  %3493 = vmatprep.mubr.f32.mxu0 %v12923_v33  ;;  %vm636_vm15 = vcmp.eq.s32.totalorder %v564_v23, %v10116_v41 }
 0x247   : > { %12978 = vst [vmem:[#allocation24_spill] sm:$0xff] %v10457_v35  ;;  %12979 = vst [vmem:[#allocation30_spill] sm:$0xff] %v10460_v13  ;;  %v10465_v29 = vadd.f32 %v2646_v59, %v12980_v4  ;;  %3750 = vmatprep.mubr.f32.mxu1 %v12923_v33  ;;  %v7445_v23 = vsel %vm636_vm15, 1.0, %v12923_v33 }
 0x248   : > { %v2648_v30 = vpop.f32.mrf.mxu0  ;;  %v10469_v22 = vpop.f32.mrf.mxu1 }
 0x249   : > { %12981 = vst [vmem:[#allocation31_spill] sm:$0xff] %v10465_v29  ;;  %12982 = vst [vmem:[#allocation106_spill] sm:$0xff] %v10469_v22  ;;  %v10473_v35 = vadd.f32 %v2648_v30, %v12983_v8  ;;  %7726 = vmatmul.mubr.msk.f32.gmra.mxu0 %vm3260_vm4, %v7444_v40  ;;  %v567_v30 = vpop.permute.xlu0 %566  ;;  %v12987_v8 = vld [vmem:[#allocation33_spill] sm:$0xff] }
 0x24a   : > { %v2652_v13 = vpop.f32.mrf.mxu0  ;;  %v10476_v56 = vpop.f32.mrf.mxu1  ;;  %7760 = vmatmul.mubr.msk.f32.gmra.mxu1 %vm3260_vm4, %v7444_v40  ;;  %3499 = vmatprep.mubr.f32.mxu0 %v12923_v33  ;;  %vm637_vm0 = vcmp.eq.s32.totalorder %v567_v30, %v10116_v41 }
 0x24b   : > { %12984 = vst [vmem:[#allocation32_spill] sm:$0xff] %v10473_v35  ;;  %v10481_v59 = vadd.f32 %v2652_v13, %v9909_v44  ;;  %3756 = vmatprep.mubr.f32.mxu1 %v12923_v33  ;;  %v12990_v44 = vld [vmem:[#allocation34_spill] sm:$0xff]  ;;  %v570_v30 = vpop.permute.xlu1 %569 }
 0x24c   : > { %v2654_v4 = vpop.f32.mrf.mxu0  ;;  %v10485_v22 = vpop.f32.mrf.mxu1  ;;  %vm638_vm1 = vcmp.eq.s32.totalorder %v570_v30, %v10116_v41 }
 0x24d   : > { %12985 = vst [vmem:[#allocation107_spill] sm:$0xff] %v10481_v59  ;;  %12986 = vst [vmem:[#allocation108_spill] sm:$0xff] %v10485_v22  ;;  %v10489_v35 = vadd.f32 %v2654_v4, %v12987_v8  ;;  %7727 = vmatmul.mubr.msk.f32.gmra.mxu0 %vm3260_vm4, %v7445_v23  ;;  %v7446_v4 = vsel %vm637_vm0, 1.0, %v12923_v33  ;;  %v12993_v8 = vld [vmem:[#allocation35_spill] sm:$0xff]  ;;  %v7447_v30 = vsel %vm638_vm1, 1.0, %v12923_v33 }
 0x24e   : > { %v2656_v29 = vpop.f32.mrf.mxu0  ;;  %v10492_v40 = vpop.f32.mrf.mxu1  ;;  %7761 = vmatmul.mubr.msk.f32.gmra.mxu1 %vm3260_vm4, %v7445_v23  ;;  %3505 = vmatprep.mubr.f32.mxu0 %v12923_v33 }
 0x24f   : > { %12988 = vst [vmem:[#allocation33_spill] sm:$0xff] %v10489_v35  ;;  %12989 = vst [vmem:[#allocation109_spill] sm:$0xff] %v10492_v40  ;;  %v10497_v13 = vadd.f32 %v2656_v29, %v12990_v44  ;;  %3762 = vmatprep.mubr.f32.mxu1 %v12923_v33 }
 0x250   : > { %v2658_v59 = vpop.f32.mrf.mxu0  ;;  %v10501_v22 = vpop.f32.mrf.mxu1 }
 0x251   : > { %12991 = vst [vmem:[#allocation34_spill] sm:$0xff] %v10497_v13  ;;  %12992 = vst [vmem:[#allocation110_spill] sm:$0xff] %v10501_v22  ;;  %v10505_v35 = vadd.f32 %v2658_v59, %v12993_v8  ;;  %7728 = vmatmul.mubr.msk.f32.gmra.mxu0 %vm3260_vm4, %v7446_v4  ;;  %v573_v59 = vpop.permute.xlu0 %572  ;;  %v12998_v8 = vld [vmem:[#allocation36_spill] sm:$0xff] }
 0x252   : > { %v2662_v40 = vpop.f32.mrf.mxu0  ;;  %v10508_v23 = vpop.f32.mrf.mxu1  ;;  %7762 = vmatmul.mubr.msk.f32.gmra.mxu1 %vm3260_vm4, %v7446_v4  ;;  %3511 = vmatprep.mubr.f32.mxu0 %v12923_v33  ;;  %vm639_vm2 = vcmp.eq.s32.totalorder %v573_v59, %v10116_v41 }
 0x253   : > { %12994 = vst [vmem:[#allocation35_spill] sm:$0xff] %v10505_v35  ;;  %12995 = vst [vmem:[#allocation111_spill] sm:$0xff] %v10508_v23  ;;  %v10513_v29 = vadd.f32 %v2662_v40, %v9922_v16  ;;  %3768 = vmatprep.mubr.f32.mxu1 %v12923_v33  ;;  %v13001_v16 = vld [vmem:[#allocation37_spill] sm:$0xff]  ;;  %v576_v59 = vpop.permute.xlu1 %575 }
 0x254   : > { %v2664_v44 = vpop.f32.mrf.mxu0  ;;  %v10517_v13 = vpop.f32.mrf.mxu1  ;;  %vm640_vm3 = vcmp.eq.s32.totalorder %v576_v59, %v10116_v41 }
 0x255   : > { %12996 = vst [vmem:[#allocation112_spill] sm:$0xff] %v10513_v29  ;;  %12997 = vst [vmem:[#allocation113_spill] sm:$0xff] %v10517_v13  ;;  %v10521_v35 = vadd.f32 %v2664_v44, %v12998_v8  ;;  %7729 = vmatmul.mubr.msk.f32.gmra.mxu0 %vm3260_vm4, %v7447_v30  ;;  %v7448_v44 = vsel %vm639_vm2, 1.0, %v12923_v33  ;;  %v13004_v8 = vld [vmem:[#allocation38_spill] sm:$0xff]  ;;  %v579_v59 = vpop.permute.xlu0 %578 }
 0x256   : > { %v2666_v22 = vpop.f32.mrf.mxu0  ;;  %v10524_v4 = vpop.f32.mrf.mxu1  ;;  %7763 = vmatmul.mubr.msk.f32.gmra.mxu1 %vm3260_vm4, %v7447_v30  ;;  %3517 = vmatprep.mubr.f32.mxu0 %v12923_v33  ;;  %vm641_vm5 = vcmp.eq.s32.totalorder %v579_v59, %v10116_v41 }
 0x257   : > { %12999 = vst [vmem:[#allocation36_spill] sm:$0xff] %v10521_v35  ;;  %13000 = vst [vmem:[#allocation114_spill] sm:$0xff] %v10524_v4  ;;  %v10529_v40 = vadd.f32 %v2666_v22, %v13001_v16  ;;  %3774 = vmatprep.mubr.f32.mxu1 %v12923_v33 }
 0x258   : > { %v2668_v29 = vpop.f32.mrf.mxu0  ;;  %v10533_v13 = vpop.f32.mrf.mxu1 }
 0x259   : > { %13002 = vst [vmem:[#allocation37_spill] sm:$0xff] %v10529_v40  ;;  %13003 = vst [vmem:[#allocation115_spill] sm:$0xff] %v10533_v13  ;;  %v10537_v35 = vadd.f32 %v2668_v29, %v13004_v8  ;;  %7730 = vmatmul.mubr.msk.f32.gmra.mxu0 %vm3260_vm4, %v7448_v44  ;;  %v9141_v29 = vmov 1966171168  }
 0x25a   : > { %v2672_v4 = vpop.f32.mrf.mxu0  ;;  %v10540_v30 = vpop.f32.mrf.mxu1  ;;  %7764 = vmatmul.mubr.msk.f32.gmra.mxu1 %vm3260_vm4, %v7448_v44  ;;  %3523 = vmatprep.mubr.f32.mxu0 %v12923_v33  ;;  %v3904_v8 = vunpack.c.l.s4 %v9141_v29 }
 0x25b   : > { %13005 = vst [vmem:[#allocation38_spill] sm:$0xff] %v10537_v35  ;;  %13006 = vst [vmem:[#allocation116_spill] sm:$0xff] %v10540_v30  ;;  %v10545_v22 = vadd.f32 %v2672_v4, %v9935_v45  ;;  %3780 = vmatprep.mubr.f32.mxu1 %v12923_v33  ;;  %v7449_v35 = vsel %vm640_vm3, 1.0, %v12923_v33 }
 0x25c   : > { %v2674_v16 = vpop.f32.mrf.mxu0  ;;  %v10549_v40 = vpop.f32.mrf.mxu1 }
 0x25d   : > { %13007 = vst [vmem:[#allocation117_spill] sm:$0xff] %v10545_v22  ;;  %13008 = vst [vmem:[#allocation118_spill] sm:$0xff] %v10549_v40  ;;  %v10553_v13 = vadd.f32 %v2674_v16, %v9939_v27  ;;  %7731 = vmatmul.mubr.msk.f32.gmra.mxu0 %vm3260_vm4, %v7449_v35  ;;  %v3905_v27 = vunpack.c.0.s8 %v3904_v8  ;;  %v13013_v16 = vlaneseq }
 0x25e   : > { %v2676_v44 = vpop.f32.mrf.mxu0  ;;  %v10556_v45 = vpop.f32.mrf.mxu1  ;;  %7765 = vmatmul.mubr.msk.f32.gmra.mxu1 %vm3260_vm4, %v7449_v35  ;;  %3529 = vmatprep.mubr.f32.mxu0 %v12923_v33 }
 0x25f   : > { %13009 = vst [vmem:[#allocation119_spill] sm:$0xff] %v10553_v13  ;;  %13010 = vst [vmem:[#allocation120_spill] sm:$0xff] %v10556_v45  ;;  %v10561_v4 = vadd.f32 %v2676_v44, %v9941_v6  ;;  %3786 = vmatprep.mubr.f32.mxu1 %v12923_v33  ;;  %v10568_v59 = vshrl.u32 %v13013_v16, 7  ;;  %v7450_v13 = vsel %vm641_vm5, 1.0, %v12923_v33  ;;  %v582_v45 = vpop.permute.xlu1 %581  ;;  %v13016_v44 = vld [vmem:[#allocation39_spill] sm:$0xff] }
 0x260   : > { %v2678_v29 = vpop.f32.mrf.mxu0  ;;  %v10565_v22 = vpop.f32.mrf.mxu1  ;;  %vm642_vm6 = vcmp.eq.s32.totalorder %v582_v45, %v10116_v41  ;;  %v8400_v45 = vld [vmem:[%s12807_s5 + $0x10] ss:$8 sps:$4 sm:$0xff]  }
 0x261   : > { %13011 = vst [vmem:[#allocation121_spill] sm:$0xff] %v10561_v4  ;;  %13012 = vst [vmem:[#allocation122_spill] sm:$0xff] %v10565_v22  ;;  %v10572_v40 = vadd.f32 %v2678_v29, %v9943_v20  ;;  %7732 = vmatmul.mubr.msk.f32.gmra.mxu0 %vm3260_vm4, %v7450_v13  ;;  %v8398_v20 = vld [vmem:[%s12807_s5] ss:$8 sps:$4 sm:$0xff]   ;;  %v10587_v29 = vsub.s32 %v3905_v27, %v10568_v59 }
 0x262   : > { %13014 = vst [vmem:[#allocation123_spill] sm:$0xff] %v10568_v59  ;;  %v2908_v6 = vpop.f32.mrf.mxu0  ;;  %v3101_v35 = vpop.f32.mrf.mxu1  ;;  %7766 = vmatmul.mubr.msk.f32.gmra.mxu1 %vm3260_vm4, %v7450_v13  ;;  %3535 = vmatprep.mubr.f32.mxu0 %v12923_v33 }
 0x263   : > { %13015 = vst [vmem:[#allocation124_spill] sm:$0xff] %v10572_v40  ;;  %v2909_v4 = vadd.f32 %v2908_v6, %v13016_v44  ;;  %3792 = vmatprep.mubr.f32.mxu1 %v12923_v33  ;;  %v585_v13 = vpop.permute.xlu0 %584  ;;  %v7451_v6 = vsel %vm642_vm6, 1.0, %v12923_v33  ;;  %v588_v59 = vpop.permute.xlu1 %587 }
 0x264   : > { %v2910_v8 = vpop.f32.mrf.mxu0  ;;  %v3103_v16 = vpop.f32.mrf.mxu1  ;;  %vm643_vm7 = vcmp.eq.s32.totalorder %v585_v13, %v10116_v41  ;;  %vm644_vm8 = vcmp.eq.s32.totalorder %v588_v59, %v10116_v41 }
 0x265   : > { %v10590_v44 = vadd.f32 %v3101_v35, %v2909_v4  ;;  %v2911_v40 = vadd.f32 %v2910_v8, %v9955_v46  ;;  %7733 = vmatmul.mubr.msk.f32.gmra.mxu0 %vm3260_vm4, %v7451_v6  ;;  %v10602_v46 = vrot.slane %v8398_v20, %v10587_v29  ;;  %v10605_v8 = vrot.slane %v8400_v45, %v10587_v29 }
 0x266   : > { %v2912_v22 = vpop.f32.mrf.mxu0  ;;  %v3105_v30 = vpop.f32.mrf.mxu1  ;;  %7767 = vmatmul.mubr.msk.f32.gmra.mxu1 %vm3260_vm4, %v7451_v6  ;;  %3541 = vmatprep.mubr.f32.mxu0 %v12923_v33  ;;  %v7452_v13 = vsel %vm643_vm7, 1.0, %v12923_v33 }
 0x267   : > { %v10596_v23 = vadd.f32 %v3103_v16, %v2911_v40  ;;  %v2913_v27 = vadd.f32 %v2912_v22, %v9960_v2  ;;  %3798 = vmatprep.mubr.f32.mxu1 %v12923_v33  ;;  %v591_v59 = vpop.permute.xlu0 %590 }
 0x268   : > { %v2914_v4 = vpop.f32.mrf.mxu0  ;;  %v3107_v35 = vpop.f32.mrf.mxu1  ;;  %vm645_vm9 = vcmp.eq.s32.totalorder %v591_v59, %v10116_v41 }
 0x269   : > { %v10608_v6 = vadd.f32 %v3105_v30, %v2913_v27  ;;  %v2915_v40 = vadd.f32 %v2914_v4, %v9965_v39  ;;  %7734 = vmatmul.mubr.msk.f32.gmra.mxu0 %vm3260_vm4, %v7452_v13  ;;  %v7453_v27 = vsel %vm644_vm8, 1.0, %v12923_v33 }
 0x26a   : > { %v2918_v2 = vpop.f32.mrf.mxu0  ;;  %v3111_v22 = vpop.f32.mrf.mxu1  ;;  %7768 = vmatmul.mubr.msk.f32.gmra.mxu1 %vm3260_vm4, %v7452_v13  ;;  %3547 = vmatprep.mubr.f32.mxu0 %v12923_v33 }
 0x26b   : > { %v10616_v20 = vadd.f32 %v3107_v35, %v2915_v40  ;;  %v2919_v45 = vadd.f32 %v2918_v2, %v9970_v49  ;;  %3804 = vmatprep.mubr.f32.mxu1 %v12923_v33 }
 0x26c   : > { %v2920_v39 = vpop.f32.mrf.mxu0  ;;  %v3113_v30 = vpop.f32.mrf.mxu1 }
 0x26d   : > { %13017 = vst [vmem:[#allocation39_spill] sm:$0xff] %v10616_v20  ;;  %v10622_v4 = vadd.f32 %v3111_v22, %v2919_v45  ;;  %v2921_v13 = vadd.f32 %v2920_v39, %v9980_v53  ;;  %7735 = vmatmul.mubr.msk.f32.gmra.mxu0 %vm3260_vm4, %v7453_v27  ;;  %v7454_v53 = vsel %vm645_vm9, 1.0, %v12923_v33  ;;  %v594_v45 = vpop.permute.xlu1 %593 }
 0x26e   : > { %v2922_v16 = vpop.f32.mrf.mxu0  ;;  %v3115_v35 = vpop.f32.mrf.mxu1  ;;  %7769 = vmatmul.mubr.msk.f32.gmra.mxu1 %vm3260_vm4, %v7453_v27  ;;  %3553 = vmatprep.mubr.f32.mxu0 %v12923_v33  ;;  %vm646_vm10 = vcmp.eq.s32.totalorder %v594_v45, %v10116_v41 }
 0x26f   : > { %v10628_v49 = vadd.f32 %v3113_v30, %v2921_v13  ;;  %v2923_v40 = vadd.f32 %v2922_v16, %v9985_v15  ;;  %3810 = vmatprep.mubr.f32.mxu1 %v12923_v33 }
 0x270   : > { %v2924_v2 = vpop.f32.mrf.mxu0  ;;  %v3117_v22 = vpop.f32.mrf.mxu1 }
 0x271   : > { %v10634_v39 = vadd.f32 %v3115_v35, %v2923_v40  ;;  %v2925_v59 = vadd.f32 %v2924_v2, %v9990_v57  ;;  %7736 = vmatmul.mubr.msk.f32.gmra.mxu0 %vm3260_vm4, %v7454_v53  ;;  %v597_v40 = vpop.permute.xlu0 %596  ;;  %v7455_v57 = vsel %vm646_vm10, 1.0, %v12923_v33 }
 0x272   : > { %v2928_v27 = vpop.f32.mrf.mxu0  ;;  %v3121_v30 = vpop.f32.mrf.mxu1  ;;  %7770 = vmatmul.mubr.msk.f32.gmra.mxu1 %vm3260_vm4, %v7454_v53  ;;  %3559 = vmatprep.mubr.f32.mxu0 %v12923_v33  ;;  %vm647_vm11 = vcmp.eq.s32.totalorder %v597_v40, %v10116_v41 }
 0x273   : > { %v10640_v15 = vadd.f32 %v3117_v22, %v2925_v59  ;;  %v2929_v16 = vadd.f32 %v2928_v27, %v9995_v32  ;;  %3816 = vmatprep.mubr.f32.mxu1 %v12923_v33 }
 0x274   : > { %v2930_v13 = vpop.f32.mrf.mxu0  ;;  %v3123_v35 = vpop.f32.mrf.mxu1 }
 0x275   : > { %v10646_v2 = vadd.f32 %v3121_v30, %v2929_v16  ;;  %v2931_v45 = vadd.f32 %v2930_v13, %v10005_v61  ;;  %7737 = vmatmul.mubr.msk.f32.gmra.mxu0 %vm3260_vm4, %v7455_v57  ;;  %v7456_v61 = vsel %vm647_vm11, 1.0, %v12923_v33  ;;  %v600_v16 = vpop.permute.xlu1 %599 }
 0x276   : > { %v2932_v53 = vpop.f32.mrf.mxu0  ;;  %v3125_v22 = vpop.f32.mrf.mxu1  ;;  %7771 = vmatmul.mubr.msk.f32.gmra.mxu1 %vm3260_vm4, %v7455_v57  ;;  %3565 = vmatprep.mubr.f32.mxu0 %v12923_v33  ;;  %vm648_vm12 = vcmp.eq.s32.totalorder %v600_v16, %v10116_v41 }
 0x277   : > { %v10652_v32 = vadd.f32 %v3123_v35, %v2931_v45  ;;  %v2933_v59 = vadd.f32 %v2932_v53, %v10010_v34  ;;  %3822 = vmatprep.mubr.f32.mxu1 %v12923_v33 }
 0x278   : > { %v2934_v27 = vpop.f32.mrf.mxu0  ;;  %v3127_v30 = vpop.f32.mrf.mxu1 }
 0x279   : > { %v10658_v13 = vadd.f32 %v3125_v22, %v2933_v59  ;;  %v2935_v40 = vadd.f32 %v2934_v27, %v10015_v63  ;;  %7738 = vmatmul.mubr.msk.f32.gmra.mxu0 %vm3260_vm4, %v7456_v61  ;;  %v603_v59 = vpop.permute.xlu0 %602  ;;  %v7457_v63 = vsel %vm648_vm12, 1.0, %v12923_v33 }
 0x27a   : > { %v2938_v57 = vpop.f32.mrf.mxu0  ;;  %v3131_v35 = vpop.f32.mrf.mxu1  ;;  %7772 = vmatmul.mubr.msk.f32.gmra.mxu1 %vm3260_vm4, %v7456_v61  ;;  %3571 = vmatprep.mubr.f32.mxu0 %v12923_v33  ;;  %vm649_vm13 = vcmp.eq.s32.totalorder %v603_v59, %v10116_v41 }
 0x27b   : > { %v10664_v34 = vadd.f32 %v3127_v30, %v2935_v40  ;;  %v2939_v45 = vadd.f32 %v2938_v57, %v10020_v51  ;;  %3828 = vmatprep.mubr.f32.mxu1 %v12923_v33 }
 0x27c   : > { %v2940_v53 = vpop.f32.mrf.mxu0  ;;  %v3133_v22 = vpop.f32.mrf.mxu1 }
 0x27d   : > { %v10670_v27 = vadd.f32 %v3131_v35, %v2939_v45  ;;  %v2941_v16 = vadd.f32 %v2940_v53, %v10030_v5  ;;  %7739 = vmatmul.mubr.msk.f32.gmra.mxu0 %vm3260_vm4, %v7457_v63  ;;  %v7458_v5 = vsel %vm649_vm13, 1.0, %v12923_v33  ;;  %v606_v45 = vpop.permute.xlu1 %605 }
 0x27e   : > { %v2942_v61 = vpop.f32.mrf.mxu0  ;;  %v3135_v30 = vpop.f32.mrf.mxu1  ;;  %7773 = vmatmul.mubr.msk.f32.gmra.mxu1 %vm3260_vm4, %v7457_v63  ;;  %3577 = vmatprep.mubr.f32.mxu0 %v12923_v33  ;;  %vm650_vm14 = vcmp.eq.s32.totalorder %v606_v45, %v10116_v41 }
 0x27f   : > { %v10676_v51 = vadd.f32 %v3133_v22, %v2941_v16  ;;  %v2943_v40 = vadd.f32 %v2942_v61, %v10035_v42  ;;  %3834 = vmatprep.mubr.f32.mxu1 %v12923_v33 }
 0x280   : > { %v2944_v57 = vpop.f32.mrf.mxu0  ;;  %v3137_v35 = vpop.f32.mrf.mxu1 }
 0x281   : > { %v10682_v53 = vadd.f32 %v3135_v30, %v2943_v40  ;;  %v2945_v59 = vadd.f32 %v2944_v57, %v10040_v7  ;;  %7740 = vmatmul.mubr.msk.f32.gmra.mxu0 %vm3260_vm4, %v7458_v5  ;;  %v8402_v7 = vld [vmem:[%s12807_s5 + $0x4] ss:$8 sps:$4 sm:$0xff]   ;;  %v8403_v40 = vld [vmem:[%s12807_s5 + $0x14] ss:$8 sps:$4 sm:$0xff]   ;;  %v609_v57 = vpop.permute.xlu0 %608 }
 0x282   : > { %v2948_v63 = vpop.f32.mrf.mxu0  ;;  %v3141_v22 = vpop.f32.mrf.mxu1  ;;  %7774 = vmatmul.mubr.msk.f32.gmra.mxu1 %vm3260_vm4, %v7458_v5  ;;  %3583 = vmatprep.mubr.f32.mxu0 %v12923_v33  ;;  %vm651_vm15 = vcmp.eq.s32.totalorder %v609_v57, %v10116_v41 }
 0x283   : > { %v10688_v42 = vadd.f32 %v3137_v35, %v2945_v59  ;;  %v2949_v16 = vadd.f32 %v2948_v63, %v10045_v11  ;;  %3840 = vmatprep.mubr.f32.mxu1 %v12923_v33  ;;  %v7459_v35 = vsel %vm650_vm14, 1.0, %v12923_v33  ;;  %v7460_v57 = vsel %vm651_vm15, 1.0, %v12923_v33 }
 0x284   : > { %v2950_v61 = vpop.f32.mrf.mxu0  ;;  %v3143_v30 = vpop.f32.mrf.mxu1 }
 0x285   : > { %v10700_v5 = vadd.f32 %v3141_v22, %v2949_v16  ;;  %v2951_v11 = vadd.f32 %v2950_v61, %v10055_v14  ;;  %7741 = vmatmul.mubr.msk.f32.gmra.mxu0 %vm3260_vm4, %v7459_v35  ;;  %v10712_v14 = vrot.slane %v8402_v7, %v10587_v29  ;;  %v10715_v61 = vrot.slane %v8403_v40, %v10587_v29 }
 0x286   : > { %v2952_v45 = vpop.f32.mrf.mxu0  ;;  %v3145_v59 = vpop.f32.mrf.mxu1  ;;  %7775 = vmatmul.mubr.msk.f32.gmra.mxu1 %vm3260_vm4, %v7459_v35  ;;  %3589 = vmatprep.mubr.f32.mxu0 %v12923_v33 }
 0x287   : > { %13018 = vst [vmem:[#allocation125_spill] sm:$0xff] %v10700_v5  ;;  %v10706_v63 = vadd.f32 %v3143_v30, %v2951_v11  ;;  %v2953_v20 = vadd.f32 %v2952_v45, %v10060_v62  ;;  %3846 = vmatprep.mubr.f32.mxu1 %v12923_v33  ;;  %v612_v5 = vpop.permute.xlu1 %611 }
 0x288   : > { %v2954_v22 = vpop.f32.mrf.mxu0  ;;  %v3147_v16 = vpop.f32.mrf.mxu1  ;;  %vm652_vm0 = vcmp.eq.s32.totalorder %v612_v5, %v10116_v41 }
 0x289   : > { %v10718_v35 = vadd.f32 %v3145_v59, %v2953_v20  ;;  %v2955_v30 = vadd.f32 %v2954_v22, %v10065_v19  ;;  %7742 = vmatmul.mubr.msk.f32.gmra.mxu0 %vm3260_vm4, %v7460_v57  ;;  %v615_v5 = vpop.permute.xlu0 %614  ;;  %v7461_v59 = vsel %vm652_vm0, 1.0, %v12923_v33 }
 0x28a   : > { %v2958_v62 = vpop.f32.mrf.mxu0  ;;  %v3151_v11 = vpop.f32.mrf.mxu1  ;;  %7776 = vmatmul.mubr.msk.f32.gmra.mxu1 %vm3260_vm4, %v7460_v57  ;;  %3595 = vmatprep.mubr.f32.mxu0 %v12923_v33  ;;  %vm653_vm1 = vcmp.eq.s32.totalorder %v615_v5, %v10116_v41 }
 0x28b   : > { %v10726_v40 = vadd.f32 %v3147_v16, %v2955_v30  ;;  %v2959_v45 = vadd.f32 %v2958_v62, %v10070_v28  ;;  %3852 = vmatprep.mubr.f32.mxu1 %v12923_v33 }
 0x28c   : > { %v2960_v19 = vpop.f32.mrf.mxu0  ;;  %v3153_v20 = vpop.f32.mrf.mxu1 }
 0x28d   : > { %v10732_v22 = vadd.f32 %v3151_v11, %v2959_v45  ;;  %v2961_v57 = vadd.f32 %v2960_v19, %v10080_v26  ;;  %7743 = vmatmul.mubr.msk.f32.gmra.mxu0 %vm3260_vm4, %v7461_v59  ;;  %v7462_v26 = vsel %vm653_vm1, 1.0, %v12923_v33  ;;  %v618_v45 = vpop.permute.xlu1 %617 }
 0x28e   : > { %v2962_v7 = vpop.f32.mrf.mxu0  ;;  %v3155_v16 = vpop.f32.mrf.mxu1  ;;  %7777 = vmatmul.mubr.msk.f32.gmra.mxu1 %vm3260_vm4, %v7461_v59  ;;  %3601 = vmatprep.mubr.f32.mxu0 %v12923_v33  ;;  %vm654_vm2 = vcmp.eq.s32.totalorder %v618_v45, %v10116_v41 }
 0x28f   : > { %v10738_v28 = vadd.f32 %v3153_v20, %v2961_v57  ;;  %v2963_v30 = vadd.f32 %v2962_v7, %v10085_v17  ;;  %3858 = vmatprep.mubr.f32.mxu1 %v12923_v33  ;;  %v621_v17 = vpop.permute.xlu0 %620 }
 0x290   : > { %v10743_v62 = vpop.f32.mrf.mxu0  ;;  %v10745_v11 = vpop.f32.mrf.mxu1  ;;  %vm655_vm3 = vcmp.eq.s32.totalorder %v621_v17, %v10116_v41 }
 0x291   : > { %13019 = vst [vmem:[#allocation126_spill] sm:$0xff] %v10745_v11  ;;  %v10748_v19 = vadd.f32 %v3155_v16, %v2963_v30  ;;  %7744 = vmatmul.mubr.msk.f32.gmra.mxu0 %vm3260_vm4, %v7462_v26  ;;  %v7463_v16 = vsel %vm654_vm2, 1.0, %v12923_v33  ;;  %v7464_v17 = vsel %vm655_vm3, 1.0, %v12923_v33 }
 0x292   : > { %v2968_v5 = vpop.f32.mrf.mxu0  ;;  %v3161_v20 = vpop.f32.mrf.mxu1  ;;  %7778 = vmatmul.mubr.msk.f32.gmra.mxu1 %vm3260_vm4, %v7462_v26  ;;  %3607 = vmatprep.mubr.f32.mxu0 %v12923_v33 }
 0x293   : > { %13020 = vst [vmem:[#allocation127_spill] sm:$0xff] %v10748_v19  ;;  %v2969_v7 = vadd.f32 %v2968_v5, %v10095_v50  ;;  %3864 = vmatprep.mubr.f32.mxu1 %v12923_v33  ;;  %v624_v50 = vpop.permute.xlu1 %623 }
 0x294   : > { %v2970_v59 = vpop.f32.mrf.mxu0  ;;  %v3163_v57 = vpop.f32.mrf.mxu1  ;;  %vm656_vm5 = vcmp.eq.s32.totalorder %v624_v50, %v10116_v41 }
 0x295   : > { %v10757_v30 = vadd.f32 %v3161_v20, %v2969_v7  ;;  %v2971_v45 = vadd.f32 %v2970_v59, %v10105_v38  ;;  %7745 = vmatmul.mubr.msk.f32.gmra.mxu0 %vm3260_vm4, %v7463_v16 }
 0x296   : > { %v2972_v19 = vpop.f32.mrf.mxu0  ;;  %v3165_v11 = vpop.f32.mrf.mxu1  ;;  %7779 = vmatmul.mubr.msk.f32.gmra.mxu1 %vm3260_vm4, %v7463_v16  ;;  %3613 = vmatprep.mubr.f32.mxu0 %v12923_v33 }
 0x297   : > { %v10763_v26 = vadd.f32 %v3163_v57, %v2971_v45  ;;  %v2973_v5 = vadd.f32 %v2972_v19, %v10110_v43  ;;  %3870 = vmatprep.mubr.f32.mxu1 %v12923_v33  ;;  %v7465_v45 = vsel %vm656_vm5, 1.0, %v12923_v33 }
 0x298   : > { %v10768_v20 = vpop.f32.mrf.mxu0  ;;  %v10770_v38 = vpop.f32.mrf.mxu1 }
 0x299   : > { %v10773_v7 = vadd.f32 %v3165_v11, %v2973_v5  ;;  %7746 = vmatmul.mubr.msk.f32.gmra.mxu0 %vm3260_vm4, %v7464_v17 }
 0x29a   : > { %v2978_v59 = vpop.f32.mrf.mxu0  ;;  %v3171_v16 = vpop.f32.mrf.mxu1  ;;  %7780 = vmatmul.mubr.msk.f32.gmra.mxu1 %vm3260_vm4, %v7464_v17  ;;  %3619 = vmatprep.mubr.f32.mxu0 %v12923_v33 }
 0x29b   : > { %v2979_v43 = vadd.f32 %v2978_v59, %v10123_v60  ;;  %3876 = vmatprep.mubr.f32.mxu1 %v12923_v33 }
 0x29c   : > { %v2980_v19 = vpop.f32.mrf.mxu0  ;;  %v3173_v57 = vpop.f32.mrf.mxu1 }
 0x29d   : > { %v10782_v11 = vadd.f32 %v3171_v16, %v2979_v43  ;;  %v2981_v41 = vadd.f32 %v2980_v19, %v10134_v0  ;;  %7747 = vmatmul.mubr.msk.f32.gmra.mxu0 %vm3260_vm4, %v7465_v45 }
 0x29e   : > { %v2982_v50 = vpop.f32.mrf.mxu0  ;;  %v3175_v5 = vpop.f32.mrf.mxu1  ;;  %7781 = vmatmul.mubr.msk.f32.gmra.mxu1 %vm3260_vm4, %v7465_v45  ;;  %4843 = vmatprep.mubr.bf16.mxu0 %v12869_v54 }
 0x29f   : > { %v10787_v17 = vadd.f32 %v3173_v57, %v2981_v41  ;;  %v2983_v60 = vadd.f32 %v2982_v50, %v10139_v12  ;;  %4886 = vmatprep.mubr.bf16.mxu1 %v12869_v54  ;;  %v8954_v12 = vld [vmem:[%s12806_s4 + $0xe0] ss:$16 sps:$4 sm:$0xff]   ;;  %v8955_v57 = vld [vmem:[%s12806_s4 + $0xe8] ss:$16 sps:$4 sm:$0xff]   ;;  %v8956_v50 = vld [vmem:[%s12806_s4 + $0xc4] ss:$16 sps:$4 sm:$0xff]  }
 0x2a0   : > { %v10792_v59 = vpop.f32.mrf.mxu0  ;;  %v10794_v33 = vpop.f32.mrf.mxu1 }
 0x2a1   : > { %v10796_v16 = vadd.f32 %v3175_v5, %v2983_v60  ;;  %4844 = vmatmul.mubr.bf16.vlgmr.msra.gmra.mxu0 %v12869_v54  ;;  %v8406_v5 = vld [vmem:[%s12807_s5 + $0x30] ss:$8 sps:$4 sm:$0xff]  }
 0x2a2   : > { %v2988_v0 = vpop.f32.mrf.mxu0  ;;  %v3181_v43 = vpop.f32.mrf.mxu1  ;;  %4887 = vmatmul.mubr.bf16.vlgmr.msra.gmra.mxu1 %v12869_v54  ;;  %4966 = vmatpush1.bf16.msra.mxu0 %v8954_v12 }
 0x2a3   : > { %13021 = vst [vmem:[#allocation128_spill] sm:$0xff] %v10796_v16  ;;  %v2989_v19 = vadd.f32 %v2988_v0, %v10160_v31  ;;  %5009 = vmatpush1.bf16.msra.mxu1 %v8955_v57  ;;  %4967 = vmatprep.subr.bf16.mxu0 %v8956_v50  ;;  %v8404_v31 = vld [vmem:[%s12807_s5 + $0x20] ss:$8 sps:$4 sm:$0xff]  }
 0x2a4   : > { %v2990_v45 = vpop.f32.mrf.mxu0  ;;  %v3183_v41 = vpop.f32.mrf.mxu1  ;;  %5010 = vmatprep.subr.bf16.mxu1 %v10178_v9  ;;  %4997 = vmatprep.mubr.bf16.mxu0 %v12869_v54  ;;  %v8957_v16 = vld [vmem:[%s12806_s4 + $0xc0] ss:$16 sps:$4 sm:$0xff]  }
 0x2a5   : > { %v10817_v60 = vadd.f32 %v3181_v43, %v2989_v19  ;;  %v2991_v0 = vadd.f32 %v2990_v45, %v10169_v24  ;;  %5040 = vmatprep.mubr.bf16.mxu1 %v12869_v54  ;;  %v8958_v43 = vld [vmem:[%s12806_s4 + $0xc8] ss:$16 sps:$4 sm:$0xff]   ;;  %v8959_v45 = vld [vmem:[%s12806_s4 + $0xa4] ss:$16 sps:$4 sm:$0xff]  }
 0x2a6   : > { %v2992_v12 = vpop.f32.mrf.mxu0  ;;  %v3185_v57 = vpop.f32.mrf.mxu1  ;;  %4968 = vmatpush1.bf16.msra.mxu0 %v8957_v16  ;;  %v10843_v16 = vrot.slane %v8406_v5, %v10587_v29  ;;  %v13034_v54 = vld [vmem:[#allocation91_spill] sm:$0xff] }
 0x2a7   : > { %v10822_v50 = vadd.f32 %v3183_v41, %v2991_v0  ;;  %v2993_v9 = vadd.f32 %v2992_v12, %v10192_v18  ;;  %5011 = vmatpush1.bf16.msra.mxu1 %v8958_v43  ;;  %4969 = vmatprep.subr.bf16.mxu0 %v8959_v45  ;;  %v10840_v18 = vrot.slane %v8404_v31, %v10587_v29  ;;  %v8960_v45 = vld [vmem:[%s12806_s4 + $0xa0] ss:$16 sps:$4 sm:$0xff]  }
 0x2a8   : > { %v10831_v24 = vpop.f32.mrf.mxu0  ;;  %v10833_v19 = vpop.f32.mrf.mxu1  ;;  %5012 = vmatprep.subr.bf16.mxu1 %v10213_v58 }
 0x2a9   : > { %13022 = vst [vmem:[#allocation129_spill] sm:$0xff] %v10831_v24  ;;  %13023 = vst [vmem:[#allocation130_spill] sm:$0xff] %v10833_v19  ;;  %v10845_v41 = vadd.f32 %v3185_v57, %v2993_v9 }
 0x2aa   : > { %v2998_v0 = vpop.f32.mrf.mxu0  ;;  %v3191_v12 = vpop.f32.mrf.mxu1  ;;  %4970 = vmatpush1.bf16.msra.mxu0 %v8960_v45  ;;  %v13025_v45 = vld [vmem:[#allocation81_spill] sm:$0xff] }
 0x2ab   : > { %v2999_v19 = vadd.f32 %v2998_v0, %v10229_v36  ;;  %5013 = vmatpush1.bf16.msra.mxu1 %v10226_v10  ;;  %4971 = vmatprep.subr.bf16.mxu0 %v10221_v25  ;;  %v13027_v25 = vld [vmem:[#allocation80_spill] sm:$0xff] }
 0x2ac   : > { %v3000_v58 = vpop.f32.mrf.mxu0  ;;  %v3193_v31 = vpop.f32.mrf.mxu1  ;;  %5014 = vmatprep.subr.bf16.mxu1 %v10249_v47  ;;  %v13028_v47 = vld [vmem:[#allocation85_spill] sm:$0xff] }
 0x2ad   : > { %v10856_v5 = vadd.f32 %v3191_v12, %v2999_v19  ;;  %v3001_v57 = vadd.f32 %v3000_v58, %v10238_v52  ;;  %v13030_v58 = vld [vmem:[#allocation88_spill] sm:$0xff] }
 0x2ae   : > { %v3002_v9 = vpop.f32.mrf.mxu0  ;;  %v3195_v43 = vpop.f32.mrf.mxu1  ;;  %4972 = vmatpush1.bf16.msra.mxu0 %v10243_v3 }
 0x2af   : > { %v10859_v36 = vadd.f32 %v3193_v31, %v3001_v57  ;;  %v3003_v0 = vadd.f32 %v3002_v9, %v10268_v37  ;;  %5015 = vmatpush1.bf16.msra.mxu1 %v13025_v45  ;;  %4973 = vmatprep.subr.bf16.mxu0 %v13027_v25  ;;  %v13031_v57 = vld [vmem:[#allocation84_spill] sm:$0xff]  ;;  %v13032_v37 = vld [vmem:[#allocation87_spill] sm:$0xff]  ;;  %v13033_v45 = vld [vmem:[#allocation86_spill] sm:$0xff] }
 0x2b0   : > { %v10864_v10 = vpop.f32.mrf.mxu0  ;;  %v10866_v24 = vpop.f32.mrf.mxu1  ;;  %5016 = vmatprep.subr.bf16.mxu1 %v13028_v47  ;;  %v13036_v25 = vld [vmem:[#allocation89_spill] sm:$0xff] }
 0x2b1   : > { %13024 = vst [vmem:[#allocation131_spill] sm:$0xff] %v10859_v36  ;;  %13026 = vst [vmem:[#allocation81_spill] sm:$0xff] %v10866_v24  ;;  %v10870_v19 = vadd.f32 %v3195_v43, %v3003_v0  ;;  %v13038_v36 = vld [vmem:[#allocation93_spill] sm:$0xff] }
 0x2b2   : > { %v3008_v52 = vpop.f32.mrf.mxu0  ;;  %v3201_v12 = vpop.f32.mrf.mxu1  ;;  %4974 = vmatpush1.bf16.msra.mxu0 %v13031_v57 }
 0x2b3   : > { %13029 = vst [vmem:[#allocation80_spill] sm:$0xff] %v10870_v19  ;;  %v3009_v31 = vadd.f32 %v3008_v52, %v13030_v58  ;;  %5017 = vmatpush1.bf16.msra.mxu1 %v13032_v37  ;;  %4975 = vmatprep.subr.bf16.mxu0 %v13033_v45  ;;  %v13039_v58 = vld [vmem:[#allocation90_spill] sm:$0xff]  ;;  %v13042_v45 = vld [vmem:[#allocation92_spill] sm:$0xff] }
 0x2b4   : > { %v3010_v3 = vpop.f32.mrf.mxu0  ;;  %v3203_v9 = vpop.f32.mrf.mxu1  ;;  %5018 = vmatprep.subr.bf16.mxu1 %v13034_v54  ;;  %v13043_v54 = vld [vmem:[#allocation96_spill] sm:$0xff] }
 0x2b5   : > { %v10877_v24 = vadd.f32 %v3201_v12, %v3009_v31  ;;  %v3011_v47 = vadd.f32 %v3010_v3, %v13036_v25 }
 0x2b6   : > { %v3012_v43 = vpop.f32.mrf.mxu0  ;;  %v3205_v0 = vpop.f32.mrf.mxu1  ;;  %4976 = vmatpush1.bf16.msra.mxu0 %v13039_v58  ;;  %v13048_v58 = vld [vmem:[#allocation97_spill] sm:$0xff] }
 0x2b7   : > { %13035 = vst [vmem:[#allocation85_spill] sm:$0xff] %v10877_v24  ;;  %v10880_v19 = vadd.f32 %v3203_v9, %v3011_v47  ;;  %v3013_v52 = vadd.f32 %v3012_v43, %v13038_v36  ;;  %5019 = vmatpush1.bf16.msra.mxu1 %v10345_v55  ;;  %4977 = vmatprep.subr.bf16.mxu0 %v13042_v45  ;;  %v13045_v9 = vld [vmem:[#allocation99_spill] sm:$0xff]  ;;  %v13047_v36 = vld [vmem:[#allocation98_spill] sm:$0xff]  ;;  %v13050_v45 = vld [vmem:[#allocation101_spill] sm:$0xff] }
 0x2b8   : > { %v10885_v57 = vpop.f32.mrf.mxu0  ;;  %v10887_v37 = vpop.f32.mrf.mxu1  ;;  %5020 = vmatprep.subr.bf16.mxu1 %v13043_v54  ;;  %v13046_v47 = vld [vmem:[#allocation95_spill] sm:$0xff] }
 0x2b9   : > { %13037 = vst [vmem:[#allocation88_spill] sm:$0xff] %v10880_v19  ;;  %13040 = vst [vmem:[#allocation84_spill] sm:$0xff] %v10885_v57  ;;  %v10891_v12 = vadd.f32 %v3205_v0, %v3013_v52  ;;  %v13052_v19 = vld [vmem:[#allocation102_spill] sm:$0xff] }
 0x2ba   : > { %13041 = vst [vmem:[#allocation87_spill] sm:$0xff] %v10887_v37  ;;  %v3018_v31 = vpop.f32.mrf.mxu0  ;;  %v3211_v3 = vpop.f32.mrf.mxu1  ;;  %4978 = vmatpush1.bf16.msra.mxu0 %v13046_v47 }
 0x2bb   : > { %13044 = vst [vmem:[#allocation86_spill] sm:$0xff] %v10891_v12  ;;  %v3019_v25 = vadd.f32 %v3018_v31, %v13045_v9  ;;  %5021 = vmatpush1.bf16.msra.mxu1 %v13047_v36  ;;  %4979 = vmatprep.subr.bf16.mxu0 %v13048_v58  ;;  %v13056_v36 = vld [vmem:[#allocation19_spill] sm:$0xff]  ;;  %v8408_v58 = vld [vmem:[%s12807_s5 + $0x24] ss:$8 sps:$4 sm:$0xff]  }
 0x2bc   : > { %v3020_v43 = vpop.f32.mrf.mxu0  ;;  %v3213_v55 = vpop.f32.mrf.mxu1  ;;  %5022 = vmatprep.subr.bf16.mxu1 %v10409_v1  ;;  %v8961_v1 = vld [vmem:[%s12806_s4 + $0xe4] ss:$16 sps:$4 sm:$0xff]  }
 0x2bd   : > { %v10898_v37 = vadd.f32 %v3211_v3, %v3019_v25  ;;  %v3021_v54 = vadd.f32 %v3020_v43, %v13050_v45  ;;  %v8962_v3 = vld [vmem:[%s12806_s4 + $0xec] ss:$16 sps:$4 sm:$0xff]  }
 0x2be   : > { %v3022_v0 = vpop.f32.mrf.mxu0  ;;  %v3215_v52 = vpop.f32.mrf.mxu1  ;;  %4980 = vmatpush1.bf16.msra.mxu0 %v10403_v21  ;;  %v8409_v45 = vld [vmem:[%s12807_s5 + $0x34] ss:$8 sps:$4 sm:$0xff]  }
 0x2bf   : > { %13049 = vst [vmem:[#allocation91_spill] sm:$0xff] %v10898_v37  ;;  %v10901_v12 = vadd.f32 %v3213_v55, %v3021_v54  ;;  %v3023_v31 = vadd.f32 %v3022_v0, %v13052_v19  ;;  %5023 = vmatpush1.bf16.msra.mxu1 %v10420_v48  ;;  %5120 = vmatprep.subr.bf16.mxu0 %v8961_v1  ;;  %v13058_v0 = vld [vmem:[#allocation105_spill] sm:$0xff] }
 0x2c0   : > { %v10906_v9 = vpop.f32.mrf.mxu0  ;;  %v10908_v47 = vpop.f32.mrf.mxu1  ;;  %5163 = vmatprep.subr.bf16.mxu1 %v8962_v3  ;;  %v10939_v37 = vrot.slane %v8409_v45, %v10587_v29  ;;  %v13069_v45 = vld [vmem:[#allocation109_spill] sm:$0xff] }
 0x2c1   : > { %13051 = vst [vmem:[#allocation89_spill] sm:$0xff] %v10901_v12  ;;  %13053 = vst [vmem:[#allocation93_spill] sm:$0xff] %v10906_v9  ;;  %v10916_v25 = vadd.f32 %v3215_v52, %v3023_v31  ;;  %v10936_v12 = vrot.slane %v8408_v58, %v10587_v29 }
 0x2c2   : > { %13054 = vst [vmem:[#allocation90_spill] sm:$0xff] %v10908_v47  ;;  %v3028_v19 = vpop.f32.mrf.mxu0  ;;  %v3221_v21 = vpop.f32.mrf.mxu1  ;;  %13064 = vst [vmem:[#allocation101_spill] sm:$0xff] %v10939_v37 }
 0x2c3   : > { %13055 = vst [vmem:[#allocation92_spill] sm:$0xff] %v10916_v25  ;;  %v3029_v48 = vadd.f32 %v3028_v19, %v13056_v36  ;;  %v13060_v25 = vld [vmem:[#allocation30_spill] sm:$0xff]  ;;  %13063 = vst [vmem:[#allocation97_spill] sm:$0xff] %v10936_v12 }
 0x2c4   : > { %v3030_v43 = vpop.f32.mrf.mxu0  ;;  %v3223_v55 = vpop.f32.mrf.mxu1 }
 0x2c5   : > { %v10925_v54 = vadd.f32 %v3221_v21, %v3029_v48  ;;  %v3031_v1 = vadd.f32 %v3030_v43, %v13058_v0 }
 0x2c6   : > { %v3032_v52 = vpop.f32.mrf.mxu0  ;;  %v3225_v31 = vpop.f32.mrf.mxu1 }
 0x2c7   : > { %13057 = vst [vmem:[#allocation96_spill] sm:$0xff] %v10925_v54  ;;  %v10928_v3 = vadd.f32 %v3223_v55, %v3031_v1  ;;  %v3033_v19 = vadd.f32 %v3032_v52, %v13060_v25 }
 0x2c8   : > { %v10931_v36 = vpop.f32.mrf.mxu0  ;;  %v10933_v47 = vpop.f32.mrf.mxu1 }
 0x2c9   : > { %13059 = vst [vmem:[#allocation99_spill] sm:$0xff] %v10928_v3  ;;  %13061 = vst [vmem:[#allocation95_spill] sm:$0xff] %v10931_v36  ;;  %v10941_v21 = vadd.f32 %v3225_v31, %v3033_v19 }
 0x2ca   : > { %13062 = vst [vmem:[#allocation98_spill] sm:$0xff] %v10933_v47  ;;  %v3038_v48 = vpop.f32.mrf.mxu0  ;;  %v3231_v43 = vpop.f32.mrf.mxu1  ;;  %v13067_v47 = vld [vmem:[#allocation108_spill] sm:$0xff] }
 0x2cb   : > { %13065 = vst [vmem:[#allocation102_spill] sm:$0xff] %v10941_v21  ;;  %v3039_v0 = vadd.f32 %v3038_v48, %v10476_v56  ;;  %v13073_v48 = vld [vmem:[#allocation111_spill] sm:$0xff] }
 0x2cc   : > { %v3040_v25 = vpop.f32.mrf.mxu0  ;;  %v3233_v1 = vpop.f32.mrf.mxu1 }
 0x2cd   : > { %v10946_v52 = vadd.f32 %v3231_v43, %v3039_v0  ;;  %v3041_v36 = vadd.f32 %v3040_v25, %v13067_v47  ;;  %v13075_v47 = vld [vmem:[#allocation113_spill] sm:$0xff] }
 0x2ce   : > { %v3042_v58 = vpop.f32.mrf.mxu0  ;;  %v3235_v3 = vpop.f32.mrf.mxu1 }
 0x2cf   : > { %13066 = vst [vmem:[#allocation19_spill] sm:$0xff] %v10946_v52  ;;  %v10949_v54 = vadd.f32 %v3233_v1, %v3041_v36  ;;  %v3043_v31 = vadd.f32 %v3042_v58, %v13069_v45  ;;  %v13077_v58 = vld [vmem:[#allocation114_spill] sm:$0xff] }
 0x2d0   : > { %v10952_v19 = vpop.f32.mrf.mxu0  ;;  %v10954_v21 = vpop.f32.mrf.mxu1 }
 0x2d1   : > { %13068 = vst [vmem:[#allocation105_spill] sm:$0xff] %v10949_v54  ;;  %13070 = vst [vmem:[#allocation30_spill] sm:$0xff] %v10952_v19  ;;  %v10956_v9 = vadd.f32 %v3235_v3, %v3043_v31 }
 0x2d2   : > { %13071 = vst [vmem:[#allocation108_spill] sm:$0xff] %v10954_v21  ;;  %v3048_v55 = vpop.f32.mrf.mxu0  ;;  %v3241_v56 = vpop.f32.mrf.mxu1 }
 0x2d3   : > { %13072 = vst [vmem:[#allocation109_spill] sm:$0xff] %v10956_v9  ;;  %v3049_v37 = vadd.f32 %v3048_v55, %v13073_v48  ;;  %v13081_v48 = vld [vmem:[#allocation116_spill] sm:$0xff] }
 0x2d4   : > { %v3050_v43 = vpop.f32.mrf.mxu0  ;;  %v3243_v0 = vpop.f32.mrf.mxu1 }
 0x2d5   : > { %v10959_v52 = vadd.f32 %v3241_v56, %v3049_v37  ;;  %v3051_v25 = vadd.f32 %v3050_v43, %v13075_v47  ;;  %v13083_v43 = vld [vmem:[#allocation118_spill] sm:$0xff] }
 0x2d6   : > { %v3052_v36 = vpop.f32.mrf.mxu0  ;;  %v3245_v1 = vpop.f32.mrf.mxu1 }
 0x2d7   : > { %13074 = vst [vmem:[#allocation111_spill] sm:$0xff] %v10959_v52  ;;  %v10962_v54 = vadd.f32 %v3243_v0, %v3051_v25  ;;  %v3053_v45 = vadd.f32 %v3052_v36, %v13077_v58  ;;  %v13085_v36 = vld [vmem:[#allocation120_spill] sm:$0xff] }
 0x2d8   : > { %v10965_v19 = vpop.f32.mrf.mxu0  ;;  %v10967_v3 = vpop.f32.mrf.mxu1 }
 0x2d9   : > { %13076 = vst [vmem:[#allocation113_spill] sm:$0xff] %v10962_v54  ;;  %13078 = vst [vmem:[#allocation114_spill] sm:$0xff] %v10965_v19  ;;  %v10969_v31 = vadd.f32 %v3245_v1, %v3053_v45 }
 0x2da   : > { %13079 = vst [vmem:[#allocation132_spill] sm:$0xff] %v10967_v3  ;;  %v3058_v9 = vpop.f32.mrf.mxu0  ;;  %v3251_v55 = vpop.f32.mrf.mxu1 }
 0x2db   : > { %13080 = vst [vmem:[#allocation133_spill] sm:$0xff] %v10969_v31  ;;  %v3059_v21 = vadd.f32 %v3058_v9, %v13081_v48  ;;  %v13089_v48 = vld [vmem:[#allocation40_spill] sm:$0xff] }
 0x2dc   : > { %v3060_v37 = vpop.f32.mrf.mxu0  ;;  %v3253_v56 = vpop.f32.mrf.mxu1 }
 0x2dd   : > { %v10972_v52 = vadd.f32 %v3251_v55, %v3059_v21  ;;  %v3061_v47 = vadd.f32 %v3060_v37, %v13083_v43 }
 0x2de   : > { %v3062_v0 = vpop.f32.mrf.mxu0  ;;  %v3255_v25 = vpop.f32.mrf.mxu1 }
 0x2df   : > { %13082 = vst [vmem:[#allocation116_spill] sm:$0xff] %v10972_v52  ;;  %v10975_v54 = vadd.f32 %v3253_v56, %v3061_v47  ;;  %v3063_v58 = vadd.f32 %v3062_v0, %v13085_v36  ;;  %v13092_v56 = vld [vmem:[#allocation41_spill] sm:$0xff]  ;;  %v13095_v0 = vcombine.high %v10602_v46, %v10605_v8 }
 0x2e0   : > { %v10978_v19 = vpop.f32.mrf.mxu0  ;;  %v10980_v1 = vpop.f32.mrf.mxu1 }
 0x2e1   : > { %13084 = vst [vmem:[#allocation118_spill] sm:$0xff] %v10975_v54  ;;  %13086 = vst [vmem:[#allocation120_spill] sm:$0xff] %v10978_v19  ;;  %v10982_v45 = vadd.f32 %v3255_v25, %v3063_v58  ;;  %v3955_v25 = vrot.slane %v13095_v0, %v10587_v29 }
 0x2e2   : > { %13087 = vst [vmem:[#allocation134_spill] sm:$0xff] %v10980_v1  ;;  %v3435_v31 = vpop.f32.mrf.mxu0  ;;  %v3692_v9 = vpop.f32.mrf.mxu1 }
 0x2e3   : > { %13088 = vst [vmem:[#allocation135_spill] sm:$0xff] %v10982_v45  ;;  %v10985_v3 = vadd.f32 %v3435_v31, %v13089_v48  ;;  %v10988_v21 = vadd.f32 %v3692_v9, %v10590_v44  ;;  %v3931_v31 = vcombine.low %v10602_v46, %v10605_v8  ;;  %v13096_v44 = vld [vmem:[#allocation42_spill] sm:$0xff]  ;;  %v13108_v45 = vld [vmem:[#allocation45_spill] sm:$0xff] }
 0x2e4   : > { %v3437_v55 = vpop.f32.mrf.mxu0  ;;  %v3694_v37 = vpop.f32.mrf.mxu1 }
 0x2e5   : > { %13090 = vst [vmem:[#allocation40_spill] sm:$0xff] %v10985_v3  ;;  %13091 = vst [vmem:[#allocation136_spill] sm:$0xff] %v10988_v21  ;;  %v10991_v43 = vadd.f32 %v3437_v55, %v13092_v56  ;;  %v10994_v47 = vadd.f32 %v3694_v37, %v10596_v23  ;;  %v13099_v55 = vld [vmem:[#allocation123_spill] sm:$0xff] }
 0x2e6   : > { %v3441_v36 = vpop.f32.mrf.mxu0  ;;  %v3698_v58 = vpop.f32.mrf.mxu1  ;;  %v11009_v56 = vsub.s32 0, %v13099_v55  ;;  %v11012_v23 = vsub.s32 2, %v13099_v55  ;;  %v11019_v21 = vsub.s32 1, %v13099_v55  ;;  %v11022_v46 = vsub.s32 3, %v13099_v55 }
 0x2e7   : > { %13093 = vst [vmem:[#allocation41_spill] sm:$0xff] %v10991_v43  ;;  %13094 = vst [vmem:[#allocation137_spill] sm:$0xff] %v10994_v47  ;;  %v11003_v9 = vadd.f32 %v3441_v36, %v13096_v44  ;;  %v11006_v48 = vadd.f32 %v3698_v58, %v10608_v6  ;;  %v11027_v44 = vrot.slane %v3931_v31, %v10587_v29 }
 0x2e8   : > { %13100 = vst [vmem:[#allocation123_spill] sm:$0xff] %v11009_v56  ;;  %13101 = vst [vmem:[#allocation139_spill] sm:$0xff] %v11012_v23  ;;  %v11014_v37 = vpop.f32.mrf.mxu0  ;;  %v11016_v0 = vpop.f32.mrf.mxu1  ;;  %v4054_v8 = vrot.slane %v3955_v25, %v11009_v56  ;;  %v4062_v6 = vrot.slane %v3955_v25, %v11012_v23 }
 0x2e9   : > { %13097 = vst [vmem:[#allocation42_spill] sm:$0xff] %v11003_v9  ;;  %13098 = vst [vmem:[#allocation138_spill] sm:$0xff] %v11006_v48  ;;  %v13107_v48 = vld [vmem:[#allocation44_spill] sm:$0xff]  ;;  %v3963_v3 = vcombine.high %v11027_v44, %v11027_v44 }
 0x2ea   : > { %13102 = vst [vmem:[#allocation140_spill] sm:$0xff] %v11014_v37  ;;  %13103 = vst [vmem:[#allocation141_spill] sm:$0xff] %v11016_v0  ;;  %v3447_v36 = vpop.f32.mrf.mxu0  ;;  %v3704_v58 = vpop.f32.mrf.mxu1  ;;  %v4058_v0 = vrot.slane %v3955_v25, %v11019_v21  ;;  %v4066_v37 = vrot.slane %v3955_v25, %v11022_v46 }
 0x2eb   : > { %13104 = vst [vmem:[#allocation142_spill] sm:$0xff] %v11019_v21  ;;  %13105 = vst [vmem:[#allocation143_spill] sm:$0xff] %v11022_v46  ;;  %v3448_v47 = vadd.f32 %v3447_v36, %v13107_v48  ;;  %v3705_v9 = vadd.f32 %v3704_v58, %v10622_v4  ;;  %v13111_v4 = vld [vmem:[#allocation46_spill] sm:$0xff] }
 0x2ec   : > { %13106 = vst [vmem:[#allocation144_spill] sm:$0xff] %v11027_v44  ;;  %v3449_v43 = vpop.f32.mrf.mxu0  ;;  %v3706_v55 = vpop.f32.mrf.mxu1 }
 0x2ed   : > { %v3450_v1 = vadd.f32 %v3449_v43, %v13108_v45  ;;  %v3707_v54 = vadd.f32 %v3706_v55, %v10628_v49  ;;  %v11037_v52 = vadd.f32 %v4054_v8, %v3448_v47  ;;  %v11039_v31 = vadd.f32 %v4062_v6, %v3705_v9  ;;  %v13114_v43 = vld [vmem:[#allocation47_spill] sm:$0xff] }
 0x2ee   : > { %v3453_v48 = vpop.f32.mrf.mxu0  ;;  %v3710_v36 = vpop.f32.mrf.mxu1  ;;  %v4070_v45 = vrot.slane %v3963_v3, %v11009_v56  ;;  %v4078_v49 = vrot.slane %v3963_v3, %v11012_v23 }
 0x2ef   : > { %13109 = vst [vmem:[#allocation44_spill] sm:$0xff] %v11037_v52  ;;  %13110 = vst [vmem:[#allocation45_spill] sm:$0xff] %v11039_v31  ;;  %v3454_v58 = vadd.f32 %v3453_v48, %v13111_v4  ;;  %v3711_v19 = vadd.f32 %v3710_v36, %v10634_v39  ;;  %v11043_v12 = vadd.f32 %v4058_v0, %v3450_v1  ;;  %v13116_v36 = vld [vmem:[#allocation48_spill] sm:$0xff] }
 0x2f0   : > { %v11045_v24 = vadd.f32 %v4066_v37, %v3707_v54  ;;  %v3455_v57 = vpop.f32.mrf.mxu0  ;;  %v3712_v44 = vpop.f32.mrf.mxu1  ;;  %v4074_v1 = vrot.slane %v3963_v3, %v11019_v21  ;;  %v4082_v54 = vrot.slane %v3963_v3, %v11022_v46 }
 0x2f1   : > { %13112 = vst [vmem:[#allocation46_spill] sm:$0xff] %v11043_v12  ;;  %v3456_v47 = vadd.f32 %v3455_v57, %v13114_v43  ;;  %v3713_v9 = vadd.f32 %v3712_v44, %v10640_v15  ;;  %v11051_v55 = vadd.f32 %v4054_v8, %v3454_v58  ;;  %v11053_v31 = vadd.f32 %v4062_v6, %v3711_v19  ;;  %v13117_v44 = vld [vmem:[#allocation49_spill] sm:$0xff] }
 0x2f2   : > { %13113 = vst [vmem:[#allocation145_spill] sm:$0xff] %v11045_v24  ;;  %v3459_v48 = vpop.f32.mrf.mxu0  ;;  %v3716_v39 = vpop.f32.mrf.mxu1  ;;  %v3965_v8 = vcombine.high %v3955_v25, %v3955_v25 }
 0x2f3   : > { %13115 = vst [vmem:[#allocation47_spill] sm:$0xff] %v11053_v31  ;;  %v3460_v4 = vadd.f32 %v3459_v48, %v13116_v36  ;;  %v3717_v24 = vadd.f32 %v3716_v39, %v10646_v2  ;;  %v11059_v12 = vadd.f32 %v4058_v0, %v3456_v47  ;;  %v11061_v52 = vadd.f32 %v4066_v37, %v3713_v9  ;;  %v13119_v48 = vld [vmem:[#allocation50_spill] sm:$0xff]  ;;  %v13121_v39 = vld [vmem:[#allocation51_spill] sm:$0xff] }
 0x2f4   : > { %v3461_v57 = vpop.f32.mrf.mxu0  ;;  %v3718_v15 = vpop.f32.mrf.mxu1  ;;  %v4086_v9 = vrot.slane %v3965_v8, %v11009_v56 }
 0x2f5   : > { %v3462_v19 = vadd.f32 %v3461_v57, %v13117_v44  ;;  %v3719_v6 = vadd.f32 %v3718_v15, %v10652_v32  ;;  %v11065_v58 = vadd.f32 %v4070_v45, %v3460_v4  ;;  %v11067_v43 = vadd.f32 %v4078_v49, %v3717_v24 }
 0x2f6   : > { %v3465_v3 = vpop.f32.mrf.mxu0  ;;  %v3722_v31 = vpop.f32.mrf.mxu1  ;;  %v4094_v32 = vrot.slane %v3965_v8, %v11012_v23 }
 0x2f7   : > { %13118 = vst [vmem:[#allocation48_spill] sm:$0xff] %v11067_v43  ;;  %v3466_v36 = vadd.f32 %v3465_v3, %v13119_v48  ;;  %v3723_v2 = vadd.f32 %v3722_v31, %v10658_v13  ;;  %v11071_v0 = vadd.f32 %v4074_v1, %v3462_v19  ;;  %v11073_v37 = vadd.f32 %v4082_v54, %v3719_v6  ;;  %v13123_v6 = vld [vmem:[#allocation52_spill] sm:$0xff] }
 0x2f8   : > { %v3467_v47 = vpop.f32.mrf.mxu0  ;;  %v3724_v25 = vpop.f32.mrf.mxu1  ;;  %v4090_v31 = vrot.slane %v3965_v8, %v11019_v21  ;;  %v4098_v19 = vrot.slane %v3965_v8, %v11022_v46 }
 0x2f9   : > { %13120 = vst [vmem:[#allocation49_spill] sm:$0xff] %v11073_v37  ;;  %v3468_v4 = vadd.f32 %v3467_v47, %v13121_v39  ;;  %v3725_v24 = vadd.f32 %v3724_v25, %v10664_v34  ;;  %v11079_v57 = vadd.f32 %v4070_v45, %v3466_v36  ;;  %v11081_v15 = vadd.f32 %v4078_v49, %v3723_v2  ;;  %v13124_v45 = vld [vmem:[#allocation53_spill] sm:$0xff] }
 0x2fa   : > { %v3471_v44 = vpop.f32.mrf.mxu0  ;;  %v3728_v13 = vpop.f32.mrf.mxu1 }
 0x2fb   : > { %13122 = vst [vmem:[#allocation50_spill] sm:$0xff] %v11081_v15  ;;  %v3472_v3 = vadd.f32 %v3471_v44, %v13123_v6  ;;  %v3729_v48 = vadd.f32 %v3728_v13, %v10670_v27  ;;  %v11087_v43 = vadd.f32 %v4074_v1, %v3468_v4  ;;  %v11089_v37 = vadd.f32 %v4082_v54, %v3725_v24  ;;  %v13126_v15 = vld [vmem:[#allocation54_spill] sm:$0xff]  ;;  %v13128_v13 = vld [vmem:[#allocation55_spill] sm:$0xff] }
 0x2fc   : > { %v3473_v47 = vpop.f32.mrf.mxu0  ;;  %v3730_v34 = vpop.f32.mrf.mxu1 }
 0x2fd   : > { %v3474_v36 = vadd.f32 %v3473_v47, %v13124_v45  ;;  %v3731_v49 = vadd.f32 %v3730_v34, %v10676_v51  ;;  %v11093_v2 = vadd.f32 %v4086_v9, %v3472_v3  ;;  %v11095_v25 = vadd.f32 %v4094_v32, %v3729_v48  ;;  %v13131_v45 = vld [vmem:[#allocation56_spill] sm:$0xff] }
 0x2fe   : > { %v3477_v39 = vpop.f32.mrf.mxu0  ;;  %v3734_v8 = vpop.f32.mrf.mxu1 }
 0x2ff   : > { %13125 = vst [vmem:[#allocation51_spill] sm:$0xff] %v11095_v25  ;;  %v3478_v44 = vadd.f32 %v3477_v39, %v13126_v15  ;;  %v3735_v27 = vadd.f32 %v3734_v8, %v10682_v53  ;;  %v11099_v1 = vadd.f32 %v4090_v31, %v3474_v36  ;;  %v11101_v54 = vadd.f32 %v4098_v19, %v3731_v49  ;;  %v13133_v53 = vld [vmem:[#allocation125_spill] sm:$0xff] }
 0x300   : > { %v3479_v4 = vpop.f32.mrf.mxu0  ;;  %v3736_v24 = vpop.f32.mrf.mxu1 }
 0x301   : > { %13127 = vst [vmem:[#allocation52_spill] sm:$0xff] %v11101_v54  ;;  %v3480_v6 = vadd.f32 %v3479_v4, %v13128_v13  ;;  %v3737_v51 = vadd.f32 %v3736_v24, %v10688_v42  ;;  %v11105_v3 = vadd.f32 %v4086_v9, %v3478_v44  ;;  %v11107_v48 = vadd.f32 %v4094_v32, %v3735_v27  ;;  %v13137_v13 = vld [vmem:[#allocation57_spill] sm:$0xff] }
 0x302   : > { %v3483_v47 = vpop.f32.mrf.mxu0  ;;  %v3740_v34 = vpop.f32.mrf.mxu1  ;;  %v13140_v32 = vcombine.high %v10712_v14, %v10715_v61 }
 0x303   : > { %13129 = vst [vmem:[#allocation53_spill] sm:$0xff] %v11105_v3  ;;  %13130 = vst [vmem:[#allocation54_spill] sm:$0xff] %v11107_v48  ;;  %v11110_v15 = vadd.f32 %v3483_v47, %v13131_v45  ;;  %v11113_v36 = vadd.f32 %v3740_v34, %v13133_v53  ;;  %v11115_v49 = vadd.f32 %v4090_v31, %v3480_v6  ;;  %v13345_v3 = vld [vmem:[#allocation47_spill] sm:$0xff] }
 0x304   : > { %v11117_v39 = vadd.f32 %v4098_v19, %v3737_v51  ;;  %v3485_v8 = vpop.f32.mrf.mxu0  ;;  %v3742_v4 = vpop.f32.mrf.mxu1  ;;  %v3962_v44 = vrot.slane %v13140_v32, %v10587_v29  ;;  %v3933_v31 = vcombine.low %v10712_v14, %v10715_v61  ;;  %v13141_v19 = vld [vmem:[#allocation58_spill] sm:$0xff] }
 0x305   : > { %13132 = vst [vmem:[#allocation55_spill] sm:$0xff] %v11110_v15  ;;  %13134 = vst [vmem:[#allocation56_spill] sm:$0xff] %v11113_v36  ;;  %v11120_v42 = vadd.f32 %v3485_v8, %v13137_v13  ;;  %v11123_v9 = vadd.f32 %v3742_v4, %v10706_v63  ;;  %v13144_v63 = vld [vmem:[#allocation59_spill] sm:$0xff] }
 0x306   : > { %13135 = vst [vmem:[#allocation125_spill] sm:$0xff] %v11115_v49  ;;  %13136 = vst [vmem:[#allocation146_spill] sm:$0xff] %v11117_v39  ;;  %v3489_v27 = vpop.f32.mrf.mxu0  ;;  %v3746_v24 = vpop.f32.mrf.mxu1  ;;  %v4118_v8 = vrot.slane %v3962_v44, %v11009_v56  ;;  %v4126_v4 = vrot.slane %v3962_v44, %v11012_v23  ;;  %v13147_v13 = vld [vmem:[#allocation63_spill] sm:$0xff]  ;;  %v13344_v49 = vld [vmem:[#allocation45_spill] sm:$0xff] }
 0x307   : > { %13138 = vst [vmem:[#allocation57_spill] sm:$0xff] %v11120_v42  ;;  %13139 = vst [vmem:[#allocation147_spill] sm:$0xff] %v11123_v9  ;;  %v11132_v6 = vadd.f32 %v3489_v27, %v13141_v19  ;;  %v11135_v51 = vadd.f32 %v3746_v24, %v10718_v35  ;;  %v2965_v14 = vadd.f32 %v10743_v62, %v13147_v13  ;;  %v13149_v27 = vld [vmem:[#allocation60_spill] sm:$0xff]  ;;  %v13154_v9 = vld [vmem:[#allocation62_spill] sm:$0xff] }
 0x308   : > { %v3491_v47 = vpop.f32.mrf.mxu0  ;;  %v3748_v34 = vpop.f32.mrf.mxu1  ;;  %v11148_v35 = vrot.slane %v3933_v31, %v10587_v29 }
 0x309   : > { %13142 = vst [vmem:[#allocation58_spill] sm:$0xff] %v11132_v6  ;;  %13143 = vst [vmem:[#allocation148_spill] sm:$0xff] %v11135_v51  ;;  %v11138_v45 = vadd.f32 %v3491_v47, %v13144_v63  ;;  %v11141_v53 = vadd.f32 %v3748_v34, %v10726_v40  ;;  %v4122_v47 = vrot.slane %v3962_v44, %v11019_v21  ;;  %v13155_v6 = vld [vmem:[#allocation127_spill] sm:$0xff] }
 0x30a   : > { %v3495_v61 = vpop.f32.mrf.mxu0  ;;  %v3752_v32 = vpop.f32.mrf.mxu1  ;;  %13148 = vst [vmem:[#allocation63_spill] sm:$0xff] %v11148_v35  ;;  %v4130_v40 = vrot.slane %v3962_v44, %v11022_v46  ;;  %v3964_v51 = vcombine.high %v11148_v35, %v11148_v35 }
 0x30b   : > { %13145 = vst [vmem:[#allocation59_spill] sm:$0xff] %v11138_v45  ;;  %13146 = vst [vmem:[#allocation149_spill] sm:$0xff] %v11141_v53  ;;  %v3496_v24 = vadd.f32 %v3495_v61, %v13149_v27  ;;  %v3753_v19 = vadd.f32 %v3752_v32, %v10732_v22  ;;  %v13150_v53 = vld [vmem:[#allocation61_spill] sm:$0xff]  ;;  %v13153_v61 = vld [vmem:[#allocation126_spill] sm:$0xff] }
 0x30c   : > { %v3497_v34 = vpop.f32.mrf.mxu0  ;;  %v3754_v63 = vpop.f32.mrf.mxu1  ;;  %v3158_v27 = vadd.f32 %v13153_v61, %v2965_v14 }
 0x30d   : > { %v3498_v62 = vadd.f32 %v3497_v34, %v13150_v53  ;;  %v3755_v13 = vadd.f32 %v3754_v63, %v10738_v28  ;;  %v11158_v36 = vadd.f32 %v4118_v8, %v3496_v24  ;;  %v11160_v31 = vadd.f32 %v4126_v4, %v3753_v19  ;;  %v13158_v19 = vld [vmem:[#allocation64_spill] sm:$0xff] }
 0x30e   : > { %v3501_v22 = vpop.f32.mrf.mxu0  ;;  %v3758_v32 = vpop.f32.mrf.mxu1  ;;  %v4134_v28 = vrot.slane %v3964_v51, %v11009_v56  ;;  %v4142_v24 = vrot.slane %v3964_v51, %v11012_v23 }
 0x30f   : > { %13151 = vst [vmem:[#allocation60_spill] sm:$0xff] %v11158_v36  ;;  %13152 = vst [vmem:[#allocation61_spill] sm:$0xff] %v11160_v31  ;;  %v3502_v45 = vadd.f32 %v3501_v22, %v13154_v9  ;;  %v3759_v42 = vadd.f32 %v3758_v32, %v13155_v6  ;;  %v11165_v15 = vadd.f32 %v4122_v47, %v3498_v62  ;;  %v13161_v9 = vld [vmem:[#allocation68_spill] sm:$0xff]  ;;  %v13162_v31 = vld [vmem:[#allocation65_spill] sm:$0xff] }
 0x310   : > { %v11167_v48 = vadd.f32 %v4130_v40, %v3755_v13  ;;  %v3503_v35 = vpop.f32.mrf.mxu0  ;;  %v3760_v53 = vpop.f32.mrf.mxu1  ;;  %v2975_v6 = vadd.f32 %v10768_v20, %v13161_v9  ;;  %v4138_v13 = vrot.slane %v3964_v51, %v11019_v21  ;;  %v4146_v32 = vrot.slane %v3964_v51, %v11022_v46 }
 0x311   : > { %13156 = vst [vmem:[#allocation126_spill] sm:$0xff] %v11165_v15  ;;  %v3504_v34 = vadd.f32 %v3503_v35, %v13158_v19  ;;  %v3761_v63 = vadd.f32 %v3760_v53, %v3158_v27  ;;  %v11172_v14 = vadd.f32 %v4118_v8, %v3502_v45  ;;  %v11174_v61 = vadd.f32 %v4126_v4, %v3759_v42  ;;  %v13165_v4 = vld [vmem:[#allocation66_spill] sm:$0xff] }
 0x312   : > { %13157 = vst [vmem:[#allocation62_spill] sm:$0xff] %v11167_v48  ;;  %v3507_v62 = vpop.f32.mrf.mxu0  ;;  %v3764_v22 = vpop.f32.mrf.mxu1  ;;  %v3966_v8 = vcombine.high %v3962_v44, %v3962_v44  ;;  %v3168_v51 = vadd.f32 %v10770_v38, %v2975_v6 }
 0x313   : > { %13159 = vst [vmem:[#allocation127_spill] sm:$0xff] %v11172_v14  ;;  %13160 = vst [vmem:[#allocation64_spill] sm:$0xff] %v11174_v61  ;;  %v3508_v48 = vadd.f32 %v3507_v62, %v13162_v31  ;;  %v3765_v15 = vadd.f32 %v3764_v22, %v10757_v30  ;;  %v11182_v36 = vadd.f32 %v4122_v47, %v3504_v34  ;;  %v13168_v30 = vld [vmem:[#allocation67_spill] sm:$0xff]  ;;  %v13342_v61 = vld [vmem:[#allocation46_spill] sm:$0xff] }
 0x314   : > { %v11184_v35 = vadd.f32 %v4130_v40, %v3761_v63  ;;  %v3509_v45 = vpop.f32.mrf.mxu0  ;;  %v3766_v42 = vpop.f32.mrf.mxu1 }
 0x315   : > { %13163 = vst [vmem:[#allocation68_spill] sm:$0xff] %v11182_v36  ;;  %v3510_v27 = vadd.f32 %v3509_v45, %v13165_v4  ;;  %v3767_v20 = vadd.f32 %v3766_v42, %v10763_v26  ;;  %v11188_v53 = vadd.f32 %v4134_v28, %v3508_v48  ;;  %v11190_v19 = vadd.f32 %v4142_v24, %v3765_v15  ;;  %v13171_v15 = vld [vmem:[#allocation69_spill] sm:$0xff] }
 0x316   : > { %13164 = vst [vmem:[#allocation65_spill] sm:$0xff] %v11184_v35  ;;  %v3513_v31 = vpop.f32.mrf.mxu0  ;;  %v3770_v9 = vpop.f32.mrf.mxu1  ;;  %v4150_v26 = vrot.slane %v3966_v8, %v11009_v56  ;;  %v4158_v48 = vrot.slane %v3966_v8, %v11012_v23  ;;  %v13174_v42 = vld [vmem:[#allocation73_spill] sm:$0xff] }
 0x317   : > { %13166 = vst [vmem:[#allocation66_spill] sm:$0xff] %v11188_v53  ;;  %13167 = vst [vmem:[#allocation150_spill] sm:$0xff] %v11190_v19  ;;  %v3514_v47 = vadd.f32 %v3513_v31, %v13168_v30  ;;  %v3771_v40 = vadd.f32 %v3770_v9, %v10773_v7  ;;  %v11195_v34 = vadd.f32 %v4138_v13, %v3510_v27  ;;  %v13175_v9 = vld [vmem:[#allocation70_spill] sm:$0xff] }
 0x318   : > { %v11197_v63 = vadd.f32 %v4146_v32, %v3767_v20  ;;  %v3515_v44 = vpop.f32.mrf.mxu0  ;;  %v3772_v62 = vpop.f32.mrf.mxu1  ;;  %v2985_v7 = vadd.f32 %v10792_v59, %v13174_v42  ;;  %v4154_v20 = vrot.slane %v3966_v8, %v11019_v21  ;;  %v4162_v31 = vrot.slane %v3966_v8, %v11022_v46 }
 0x319   : > { %13169 = vst [vmem:[#allocation67_spill] sm:$0xff] %v11195_v34  ;;  %v3516_v22 = vadd.f32 %v3515_v44, %v13171_v15  ;;  %v3773_v45 = vadd.f32 %v3772_v62, %v3168_v51  ;;  %v11202_v38 = vadd.f32 %v4134_v28, %v3514_v47  ;;  %v11204_v6 = vadd.f32 %v4142_v24, %v3771_v40  ;;  %v13178_v47 = vld [vmem:[#allocation71_spill] sm:$0xff] }
 0x31a   : > { %13170 = vst [vmem:[#allocation151_spill] sm:$0xff] %v11197_v63  ;;  %v3519_v4 = vpop.f32.mrf.mxu0  ;;  %v3776_v27 = vpop.f32.mrf.mxu1  ;;  %v3178_v8 = vadd.f32 %v10794_v33, %v2985_v7 }
 0x31b   : > { %13172 = vst [vmem:[#allocation69_spill] sm:$0xff] %v11202_v38  ;;  %13173 = vst [vmem:[#allocation152_spill] sm:$0xff] %v11204_v6  ;;  %v3520_v30 = vadd.f32 %v3519_v4, %v13175_v9  ;;  %v3777_v19 = vadd.f32 %v3776_v27, %v10782_v11  ;;  %v11212_v63 = vadd.f32 %v4138_v13, %v3516_v22  ;;  %v13181_v4 = vld [vmem:[#allocation72_spill] sm:$0xff] }
 0x31c   : > { %v11214_v51 = vadd.f32 %v4146_v32, %v3773_v45  ;;  %v3521_v28 = vpop.f32.mrf.mxu0  ;;  %v3778_v24 = vpop.f32.mrf.mxu1  ;;  %v13182_v13 = vld [vmem:[#allocation128_spill] sm:$0xff] }
 0x31d   : > { %13176 = vst [vmem:[#allocation73_spill] sm:$0xff] %v11212_v63  ;;  %v3522_v40 = vadd.f32 %v3521_v28, %v13178_v47  ;;  %v3779_v59 = vadd.f32 %v3778_v24, %v10787_v17  ;;  %v11218_v44 = vadd.f32 %v4150_v26, %v3520_v30  ;;  %v11220_v62 = vadd.f32 %v4158_v48, %v3777_v19  ;;  %v13185_v28 = vld [vmem:[#allocation74_spill] sm:$0xff]  ;;  %v13188_v47 = vld [vmem:[#allocation75_spill] sm:$0xff] }
 0x31e   : > { %13177 = vst [vmem:[#allocation70_spill] sm:$0xff] %v11214_v51  ;;  %v3525_v15 = vpop.f32.mrf.mxu0  ;;  %v3782_v42 = vpop.f32.mrf.mxu1  ;;  %v13341_v51 = vld [vmem:[#allocation44_spill] sm:$0xff] }
 0x31f   : > { %13179 = vst [vmem:[#allocation71_spill] sm:$0xff] %v11218_v44  ;;  %13180 = vst [vmem:[#allocation153_spill] sm:$0xff] %v11220_v62  ;;  %v3526_v11 = vadd.f32 %v3525_v15, %v13181_v4  ;;  %v3783_v22 = vadd.f32 %v3782_v42, %v13182_v13  ;;  %v11225_v32 = vadd.f32 %v4154_v20, %v3522_v40  ;;  %v13193_v13 = vld [vmem:[#allocation76_spill] sm:$0xff]  ;;  %v11707_v44 = vld [vmem:[%s12806_s4 + $0xec] ss:$16 sps:$4 sm:$0xff]  }
 0x320   : > { %v11227_v45 = vadd.f32 %v4162_v31, %v3779_v59  ;;  %v3527_v27 = vpop.f32.mrf.mxu0  ;;  %v3784_v9 = vpop.f32.mrf.mxu1 }
 0x321   : > { %13183 = vst [vmem:[#allocation72_spill] sm:$0xff] %v11225_v32  ;;  %v3528_v17 = vadd.f32 %v3527_v27, %v13185_v28  ;;  %v3785_v30 = vadd.f32 %v3784_v9, %v3178_v8  ;;  %v11230_v24 = vadd.f32 %v4150_v26, %v3526_v11  ;;  %v11232_v19 = vadd.f32 %v4158_v48, %v3783_v22  ;;  %v11701_v32 = vld [vmem:[%s12806_s4 + $0xe4] ss:$16 sps:$4 sm:$0xff]  }
 0x322   : > { %13184 = vst [vmem:[#allocation128_spill] sm:$0xff] %v11227_v45  ;;  %v3531_v33 = vpop.f32.mrf.mxu0  ;;  %v3788_v7 = vpop.f32.mrf.mxu1  ;;  %v13196_v48 = vcombine.high %v10840_v18, %v10843_v16 }
 0x323   : > { %13186 = vst [vmem:[#allocation74_spill] sm:$0xff] %v11230_v24  ;;  %13187 = vst [vmem:[#allocation154_spill] sm:$0xff] %v11232_v19  ;;  %v11235_v62 = vadd.f32 %v3531_v33, %v13188_v47  ;;  %v11238_v15 = vadd.f32 %v3788_v7, %v10817_v60  ;;  %v11240_v40 = vadd.f32 %v4154_v20, %v3528_v17  ;;  %v13203_v47 = vld [vmem:[#allocation83_spill] sm:$0xff] }
 0x324   : > { %v11242_v59 = vadd.f32 %v4162_v31, %v3785_v30  ;;  %v3533_v42 = vpop.f32.mrf.mxu0  ;;  %v3790_v4 = vpop.f32.mrf.mxu1  ;;  %v4023_v11 = vrot.slane %v13196_v48, %v10587_v29  ;;  %v3999_v20 = vcombine.low %v10840_v18, %v10843_v16  ;;  %v13197_v31 = vld [vmem:[#allocation77_spill] sm:$0xff] }
 0x325   : > { %13189 = vst [vmem:[#allocation75_spill] sm:$0xff] %v11235_v62  ;;  %13190 = vst [vmem:[#allocation155_spill] sm:$0xff] %v11238_v15  ;;  %v11245_v8 = vadd.f32 %v3533_v42, %v13193_v13  ;;  %v11248_v26 = vadd.f32 %v3790_v4, %v10822_v50  ;;  %v13201_v50 = vld [vmem:[#allocation18_spill] sm:$0xff]  ;;  %v3005_v42 = vadd.f32 %v10864_v10, %v13203_v47  ;;  %v13207_v47 = vld [vmem:[#allocation131_spill] sm:$0xff] }
 0x326   : > { %13191 = vst [vmem:[#allocation156_spill] sm:$0xff] %v11240_v40  ;;  %13192 = vst [vmem:[#allocation157_spill] sm:$0xff] %v11242_v59  ;;  %v3537_v22 = vpop.f32.mrf.mxu0  ;;  %v3794_v60 = vpop.f32.mrf.mxu1  ;;  %v4182_v33 = vrot.slane %v4023_v11, %v11009_v56  ;;  %v4190_v7 = vrot.slane %v4023_v11, %v11012_v23  ;;  %v11272_v4 = vrot.slane %v3999_v20, %v10587_v29  ;;  %v11689_v40 = vld [vmem:[%s12806_s4] ss:$16 sps:$4 sm:$0xff]   ;;  %v11695_v24 = vld [vmem:[%s12806_s4 + $0x8] ss:$16 sps:$4 sm:$0xff]  }
 0x327   : > { %13194 = vst [vmem:[#allocation76_spill] sm:$0xff] %v11245_v8  ;;  %13195 = vst [vmem:[#allocation158_spill] sm:$0xff] %v11248_v26  ;;  %v11257_v27 = vadd.f32 %v3537_v22, %v13197_v31  ;;  %v11260_v9 = vadd.f32 %v3794_v60, %v10845_v41  ;;  %v13205_v41 = vld [vmem:[#allocation20_spill] sm:$0xff]  ;;  %v4186_v22 = vrot.slane %v4023_v11, %v11019_v21 }
 0x328   : > { %v3539_v28 = vpop.f32.mrf.mxu0  ;;  %v11262_v17 = vpop.f32.mrf.mxu1  ;;  %13204 = vst [vmem:[#allocation83_spill] sm:$0xff] %v11272_v4  ;;  %v4194_v60 = vrot.slane %v4023_v11, %v11022_v46 }
 0x329   : > { %13198 = vst [vmem:[#allocation77_spill] sm:$0xff] %v11257_v27  ;;  %13199 = vst [vmem:[#allocation159_spill] sm:$0xff] %v11260_v9  ;;  %v11265_v30 = vadd.f32 %v3539_v28, %v13201_v50  ;;  %v4031_v50 = vcombine.high %v11272_v4, %v11272_v4  ;;  %v13206_v9 = vld [vmem:[#allocation79_spill] sm:$0xff]  ;;  %v13212_v27 = vld [vmem:[#allocation80_spill] sm:$0xff] }
 0x32a   : > { %13200 = vst [vmem:[#allocation160_spill] sm:$0xff] %v11262_v17  ;;  %v3543_v18 = vpop.f32.mrf.mxu0  ;;  %v3800_v16 = vpop.f32.mrf.mxu1  ;;  %v13211_v17 = vld [vmem:[#allocation82_spill] sm:$0xff] }
 0x32b   : > { %13202 = vst [vmem:[#allocation18_spill] sm:$0xff] %v11265_v30  ;;  %v3544_v13 = vadd.f32 %v3543_v18, %v13205_v41  ;;  %v3801_v48 = vadd.f32 %v3800_v16, %v10856_v5  ;;  %v13210_v18 = vld [vmem:[#allocation81_spill] sm:$0xff] }
 0x32c   : > { %v3545_v31 = vpop.f32.mrf.mxu0  ;;  %v3802_v28 = vpop.f32.mrf.mxu1  ;;  %v3198_v41 = vadd.f32 %v13210_v18, %v3005_v42 }
 0x32d   : > { %v3546_v10 = vadd.f32 %v3545_v31, %v13206_v9  ;;  %v3803_v15 = vadd.f32 %v3802_v28, %v13207_v47  ;;  %v11282_v26 = vadd.f32 %v4182_v33, %v3544_v13  ;;  %v11284_v20 = vadd.f32 %v4190_v7, %v3801_v48  ;;  %v13215_v48 = vld [vmem:[#allocation21_spill] sm:$0xff] }
 0x32e   : > { %v3549_v5 = vpop.f32.mrf.mxu0  ;;  %v3806_v16 = vpop.f32.mrf.mxu1  ;;  %v4198_v31 = vrot.slane %v4031_v50, %v11009_v56  ;;  %v4206_v13 = vrot.slane %v4031_v50, %v11012_v23 }
 0x32f   : > { %13208 = vst [vmem:[#allocation20_spill] sm:$0xff] %v11282_v26  ;;  %13209 = vst [vmem:[#allocation79_spill] sm:$0xff] %v11284_v20  ;;  %v3550_v30 = vadd.f32 %v3549_v5, %v13211_v17  ;;  %v3807_v8 = vadd.f32 %v3806_v16, %v13212_v27  ;;  %v11289_v62 = vadd.f32 %v4186_v22, %v3546_v10  ;;  %v13218_v17 = vld [vmem:[#allocation94_spill] sm:$0xff]  ;;  %v13219_v5 = vld [vmem:[#allocation84_spill] sm:$0xff] }
 0x330   : > { %v11291_v19 = vadd.f32 %v4194_v60, %v3803_v15  ;;  %v3551_v4 = vpop.f32.mrf.mxu0  ;;  %v3808_v9 = vpop.f32.mrf.mxu1  ;;  %v3015_v27 = vadd.f32 %v13219_v5, %v13218_v17  ;;  %v4202_v15 = vrot.slane %v4031_v50, %v11019_v21  ;;  %v4210_v20 = vrot.slane %v4031_v50, %v11022_v46  ;;  %v13221_v26 = vld [vmem:[#allocation85_spill] sm:$0xff]  ;;  %v13228_v50 = vld [vmem:[#allocation87_spill] sm:$0xff] }
 0x331   : > { %13213 = vst [vmem:[#allocation131_spill] sm:$0xff] %v11289_v62  ;;  %v3552_v28 = vadd.f32 %v3551_v4, %v13215_v48  ;;  %v3809_v47 = vadd.f32 %v3808_v9, %v3198_v41  ;;  %v11296_v42 = vadd.f32 %v4182_v33, %v3550_v30  ;;  %v11298_v18 = vadd.f32 %v4190_v7, %v3807_v8  ;;  %v13224_v7 = vld [vmem:[#allocation23_spill] sm:$0xff]  ;;  %v13225_v9 = vld [vmem:[#allocation88_spill] sm:$0xff] }
 0x332   : > { %13214 = vst [vmem:[#allocation81_spill] sm:$0xff] %v11291_v19  ;;  %v3555_v10 = vpop.f32.mrf.mxu0  ;;  %v3812_v16 = vpop.f32.mrf.mxu1  ;;  %v13220_v19 = vld [vmem:[#allocation22_spill] sm:$0xff]  ;;  %v4033_v33 = vcombine.high %v4023_v11, %v4023_v11 }
 0x333   : > { %13216 = vst [vmem:[#allocation82_spill] sm:$0xff] %v11296_v42  ;;  %13217 = vst [vmem:[#allocation80_spill] sm:$0xff] %v11298_v18  ;;  %v3556_v62 = vadd.f32 %v3555_v10, %v13220_v19  ;;  %v3813_v59 = vadd.f32 %v3812_v16, %v13221_v26  ;;  %v11306_v45 = vadd.f32 %v4186_v22, %v3552_v28  ;;  %v13229_v26 = vld [vmem:[#allocation25_spill] sm:$0xff]  ;;  %v13230_v28 = vld [vmem:[#allocation86_spill] sm:$0xff] }
 0x334   : > { %v11308_v4 = vadd.f32 %v4194_v60, %v3809_v47  ;;  %v3557_v30 = vpop.f32.mrf.mxu0  ;;  %v3814_v8 = vpop.f32.mrf.mxu1  ;;  %v3208_v18 = vadd.f32 %v13228_v50, %v3015_v27  ;;  %v11683_v42 = vld [vmem:[%s12806_s4 + $0xc] ss:$16 sps:$4 sm:$0xff]  }
 0x335   : > { %13222 = vst [vmem:[#allocation21_spill] sm:$0xff] %v11306_v45  ;;  %v3558_v41 = vadd.f32 %v3557_v30, %v13224_v7  ;;  %v3815_v48 = vadd.f32 %v3814_v8, %v13225_v9  ;;  %v11312_v17 = vadd.f32 %v4198_v31, %v3556_v62  ;;  %v11314_v5 = vadd.f32 %v4206_v13, %v3813_v59  ;;  %v13233_v59 = vld [vmem:[#allocation26_spill] sm:$0xff] }
 0x336   : > { %13223 = vst [vmem:[#allocation94_spill] sm:$0xff] %v11308_v4  ;;  %v3561_v19 = vpop.f32.mrf.mxu0  ;;  %v3818_v10 = vpop.f32.mrf.mxu1  ;;  %v4214_v8 = vrot.slane %v4033_v33, %v11009_v56  ;;  %v4222_v62 = vrot.slane %v4033_v33, %v11012_v23 }
 0x337   : > { %13226 = vst [vmem:[#allocation84_spill] sm:$0xff] %v11312_v17  ;;  %13227 = vst [vmem:[#allocation22_spill] sm:$0xff] %v11314_v5  ;;  %v3562_v22 = vadd.f32 %v3561_v19, %v13229_v26  ;;  %v3819_v60 = vadd.f32 %v3818_v10, %v13230_v28  ;;  %v11319_v47 = vadd.f32 %v4202_v15, %v3558_v41  ;;  %v13236_v19 = vld [vmem:[#allocation103_spill] sm:$0xff]  ;;  %v13237_v26 = vld [vmem:[#allocation93_spill] sm:$0xff] }
 0x338   : > { %v11321_v16 = vadd.f32 %v4210_v20, %v3815_v48  ;;  %v3563_v11 = vpop.f32.mrf.mxu0  ;;  %v3820_v30 = vpop.f32.mrf.mxu1  ;;  %v3025_v10 = vadd.f32 %v13237_v26, %v13236_v19  ;;  %v4218_v48 = vrot.slane %v4033_v33, %v11019_v21  ;;  %v4226_v5 = vrot.slane %v4033_v33, %v11022_v46  ;;  %v13239_v17 = vld [vmem:[#allocation91_spill] sm:$0xff]  ;;  %v13246_v26 = vld [vmem:[#allocation90_spill] sm:$0xff] }
 0x339   : > { %13231 = vst [vmem:[#allocation85_spill] sm:$0xff] %v11319_v47  ;;  %v3564_v7 = vadd.f32 %v3563_v11, %v13233_v59  ;;  %v3821_v9 = vadd.f32 %v3820_v30, %v3208_v18  ;;  %v11326_v27 = vadd.f32 %v4198_v31, %v3562_v22  ;;  %v11328_v50 = vadd.f32 %v4206_v13, %v3819_v60  ;;  %v13242_v22 = vld [vmem:[#allocation27_spill] sm:$0xff]  ;;  %v13243_v11 = vld [vmem:[#allocation89_spill] sm:$0xff] }
 0x33a   : > { %13232 = vst [vmem:[#allocation23_spill] sm:$0xff] %v11321_v16  ;;  %v3567_v41 = vpop.f32.mrf.mxu0  ;;  %v3824_v28 = vpop.f32.mrf.mxu1  ;;  %v13238_v16 = vld [vmem:[#allocation100_spill] sm:$0xff]  ;;  %v3218_v33 = vadd.f32 %v13246_v26, %v3025_v10 }
 0x33b   : > { %13234 = vst [vmem:[#allocation88_spill] sm:$0xff] %v11326_v27  ;;  %13235 = vst [vmem:[#allocation87_spill] sm:$0xff] %v11328_v50  ;;  %v3568_v47 = vadd.f32 %v3567_v41, %v13238_v16  ;;  %v3825_v4 = vadd.f32 %v3824_v28, %v13239_v17  ;;  %v11336_v45 = vadd.f32 %v4202_v15, %v3564_v7  ;;  %v13247_v41 = vld [vmem:[#allocation28_spill] sm:$0xff] }
 0x33c   : > { %v11338_v18 = vadd.f32 %v4210_v20, %v3821_v9  ;;  %v3569_v31 = vpop.f32.mrf.mxu0  ;;  %v3826_v13 = vpop.f32.mrf.mxu1  ;;  %v13248_v15 = vld [vmem:[#allocation92_spill] sm:$0xff] }
 0x33d   : > { %13240 = vst [vmem:[#allocation25_spill] sm:$0xff] %v11336_v45  ;;  %v3570_v60 = vadd.f32 %v3569_v31, %v13242_v22  ;;  %v3827_v30 = vadd.f32 %v3826_v13, %v13243_v11  ;;  %v11342_v59 = vadd.f32 %v4214_v8, %v3568_v47  ;;  %v11344_v19 = vadd.f32 %v4222_v62, %v3825_v4  ;;  %v13251_v22 = vld [vmem:[#allocation29_spill] sm:$0xff] }
 0x33e   : > { %13241 = vst [vmem:[#allocation86_spill] sm:$0xff] %v11338_v18  ;;  %v3573_v50 = vpop.f32.mrf.mxu0  ;;  %v3830_v16 = vpop.f32.mrf.mxu1 }
 0x33f   : > { %13244 = vst [vmem:[#allocation26_spill] sm:$0xff] %v11342_v59  ;;  %13245 = vst [vmem:[#allocation103_spill] sm:$0xff] %v11344_v19  ;;  %v3574_v17 = vadd.f32 %v3573_v50, %v13247_v41  ;;  %v3831_v7 = vadd.f32 %v3830_v16, %v13248_v15  ;;  %v11349_v20 = vadd.f32 %v4218_v48, %v3570_v60  ;;  %v13254_v19 = vld [vmem:[#allocation104_spill] sm:$0xff] }
 0x340   : > { %v11351_v9 = vadd.f32 %v4226_v5, %v3827_v30  ;;  %v3575_v28 = vpop.f32.mrf.mxu0  ;;  %v3832_v31 = vpop.f32.mrf.mxu1  ;;  %v13256_v50 = vld [vmem:[#allocation96_spill] sm:$0xff] }
 0x341   : > { %13249 = vst [vmem:[#allocation93_spill] sm:$0xff] %v11349_v20  ;;  %v3576_v13 = vadd.f32 %v3575_v28, %v13251_v22  ;;  %v3833_v47 = vadd.f32 %v3832_v31, %v3218_v33  ;;  %v11354_v11 = vadd.f32 %v4214_v8, %v3574_v17  ;;  %v11356_v4 = vadd.f32 %v4222_v62, %v3831_v7  ;;  %v13260_v28 = vld [vmem:[#allocation24_spill] sm:$0xff]  ;;  %v13262_v8 = vld [vmem:[#allocation99_spill] sm:$0xff]  ;;  %v13264_v17 = vld [vmem:[#allocation97_spill] sm:$0xff] }
 0x342   : > { %13250 = vst [vmem:[#allocation100_spill] sm:$0xff] %v11351_v9  ;;  %v3579_v10 = vpop.f32.mrf.mxu0  ;;  %v3836_v26 = vpop.f32.mrf.mxu1  ;;  %v13265_v7 = vld [vmem:[#allocation101_spill] sm:$0xff] }
 0x343   : > { %13252 = vst [vmem:[#allocation91_spill] sm:$0xff] %v11354_v11  ;;  %13253 = vst [vmem:[#allocation27_spill] sm:$0xff] %v11356_v4  ;;  %v11359_v59 = vadd.f32 %v3579_v10, %v13254_v19  ;;  %v11362_v16 = vadd.f32 %v3836_v26, %v13256_v50  ;;  %v11364_v60 = vadd.f32 %v4218_v48, %v3576_v13 }
 0x344   : > { %v11366_v30 = vadd.f32 %v4226_v5, %v3833_v47  ;;  %v3581_v41 = vpop.f32.mrf.mxu0  ;;  %v3838_v15 = vpop.f32.mrf.mxu1  ;;  %v13266_v19 = vcombine.high %v13264_v17, %v13265_v7  ;;  %v4001_v48 = vcombine.low %v13264_v17, %v13265_v7  ;;  %v13267_v5 = vld [vmem:[#allocation31_spill] sm:$0xff]  ;;  %v13269_v47 = vld [vmem:[#allocation102_spill] sm:$0xff] }
 0x345   : > { %13255 = vst [vmem:[#allocation89_spill] sm:$0xff] %v11359_v59  ;;  %13257 = vst [vmem:[#allocation90_spill] sm:$0xff] %v11362_v16  ;;  %v11369_v33 = vadd.f32 %v3581_v41, %v13260_v28  ;;  %v11372_v62 = vadd.f32 %v3838_v15, %v13262_v8  ;;  %v13272_v15 = vld [vmem:[#allocation32_spill] sm:$0xff]  ;;  %v13274_v16 = vld [vmem:[#allocation110_spill] sm:$0xff] }
 0x346   : > { %13258 = vst [vmem:[#allocation28_spill] sm:$0xff] %v11364_v60  ;;  %13259 = vst [vmem:[#allocation92_spill] sm:$0xff] %v11366_v30  ;;  %v4030_v31 = vrot.slane %v13266_v19, %v10587_v29  ;;  %v3585_v22 = vpop.f32.mrf.mxu0  ;;  %v3842_v10 = vpop.f32.mrf.mxu1  ;;  %v13279_v59 = vld [vmem:[#allocation33_spill] sm:$0xff] }
 0x347   : > { %13261 = vst [vmem:[#allocation29_spill] sm:$0xff] %v11369_v33  ;;  %13263 = vst [vmem:[#allocation104_spill] sm:$0xff] %v11372_v62  ;;  %v11381_v13 = vadd.f32 %v3585_v22, %v13267_v5  ;;  %v11384_v26 = vadd.f32 %v3842_v10, %v13269_v47  ;;  %v13275_v62 = vld [vmem:[#allocation30_spill] sm:$0xff]  ;;  %v11396_v22 = vrot.slane %v4001_v48, %v10587_v29  ;;  %v13277_v10 = vld [vmem:[#allocation107_spill] sm:$0xff] }
 0x348   : > { %v3587_v50 = vpop.f32.mrf.mxu0  ;;  %v11386_v41 = vpop.f32.mrf.mxu1  ;;  %v4246_v8 = vrot.slane %v4030_v31, %v11009_v56  ;;  %v4254_v19 = vrot.slane %v4030_v31, %v11012_v23  ;;  %v3045_v33 = vadd.f32 %v13275_v62, %v13274_v16  ;;  %v13278_v47 = vld [vmem:[#allocation19_spill] sm:$0xff]  ;;  %v13280_v62 = vld [vmem:[#allocation105_spill] sm:$0xff]  ;;  %v13283_v48 = vld [vmem:[#allocation108_spill] sm:$0xff] }
 0x349   : > { %13268 = vst [vmem:[#allocation96_spill] sm:$0xff] %v11381_v13  ;;  %13270 = vst [vmem:[#allocation24_spill] sm:$0xff] %v11384_v26  ;;  %v11389_v28 = vadd.f32 %v3587_v50, %v13272_v15  ;;  %v4258_v50 = vrot.slane %v4030_v31, %v11022_v46  ;;  %v4032_v13 = vcombine.high %v11396_v22, %v11396_v22  ;;  %v13285_v60 = vld [vmem:[#allocation109_spill] sm:$0xff] }
 0x34a   : > { %13271 = vst [vmem:[#allocation99_spill] sm:$0xff] %v11386_v41  ;;  %v3591_v17 = vpop.f32.mrf.mxu0  ;;  %v3848_v7 = vpop.f32.mrf.mxu1  ;;  %13276 = vst [vmem:[#allocation101_spill] sm:$0xff] %v11396_v22  ;;  %v4250_v41 = vrot.slane %v4030_v31, %v11019_v21 }
 0x34b   : > { %13273 = vst [vmem:[#allocation97_spill] sm:$0xff] %v11389_v28  ;;  %v3592_v5 = vadd.f32 %v3591_v17, %v13277_v10  ;;  %v3849_v26 = vadd.f32 %v3848_v7, %v13278_v47  ;;  %v3238_v17 = vadd.f32 %v13283_v48, %v3045_v33  ;;  %v13284_v47 = vld [vmem:[#allocation34_spill] sm:$0xff] }
 0x34c   : > { %v3593_v15 = vpop.f32.mrf.mxu0  ;;  %v3850_v28 = vpop.f32.mrf.mxu1 }
 0x34d   : > { %v3594_v16 = vadd.f32 %v3593_v15, %v13279_v59  ;;  %v3851_v4 = vadd.f32 %v3850_v28, %v13280_v62  ;;  %v11406_v30 = vadd.f32 %v4246_v8, %v3592_v5  ;;  %v11408_v29 = vadd.f32 %v4254_v19, %v3849_v26  ;;  %v13288_v26 = vld [vmem:[#allocation35_spill] sm:$0xff] }
 0x34e   : > { %v3597_v7 = vpop.f32.mrf.mxu0  ;;  %v3854_v10 = vpop.f32.mrf.mxu1  ;;  %v4262_v28 = vrot.slane %v4032_v13, %v11009_v56  ;;  %v4270_v5 = vrot.slane %v4032_v13, %v11012_v23 }
 0x34f   : > { %13281 = vst [vmem:[#allocation31_spill] sm:$0xff] %v11406_v30  ;;  %13282 = vst [vmem:[#allocation102_spill] sm:$0xff] %v11408_v29  ;;  %v3598_v9 = vadd.f32 %v3597_v7, %v13284_v47  ;;  %v3855_v11 = vadd.f32 %v3854_v10, %v13285_v60  ;;  %v11413_v20 = vadd.f32 %v4250_v41, %v3594_v16  ;;  %v13291_v7 = vld [vmem:[#allocation115_spill] sm:$0xff]  ;;  %v13292_v47 = vld [vmem:[#allocation114_spill] sm:$0xff] }
 0x350   : > { %v11415_v18 = vadd.f32 %v4258_v50, %v3851_v4  ;;  %v3599_v22 = vpop.f32.mrf.mxu0  ;;  %v3856_v59 = vpop.f32.mrf.mxu1  ;;  %v3055_v60 = vadd.f32 %v13292_v47, %v13291_v7  ;;  %v4266_v4 = vrot.slane %v4032_v13, %v11019_v21  ;;  %v4274_v29 = vrot.slane %v4032_v13, %v11022_v46  ;;  %v13294_v30 = vld [vmem:[#allocation111_spill] sm:$0xff]  ;;  %v13301_v13 = vld [vmem:[#allocation132_spill] sm:$0xff] }
 0x351   : > { %13286 = vst [vmem:[#allocation32_spill] sm:$0xff] %v11413_v20  ;;  %v3600_v15 = vadd.f32 %v3599_v22, %v13288_v26  ;;  %v3857_v62 = vadd.f32 %v3856_v59, %v3238_v17  ;;  %v11420_v33 = vadd.f32 %v4246_v8, %v3598_v9  ;;  %v11422_v48 = vadd.f32 %v4254_v19, %v3855_v11  ;;  %v13297_v19 = vld [vmem:[#allocation36_spill] sm:$0xff]  ;;  %v13298_v59 = vld [vmem:[#allocation113_spill] sm:$0xff] }
 0x352   : > { %13287 = vst [vmem:[#allocation110_spill] sm:$0xff] %v11415_v18  ;;  %v3603_v16 = vpop.f32.mrf.mxu0  ;;  %v3860_v10 = vpop.f32.mrf.mxu1  ;;  %v13293_v18 = vld [vmem:[#allocation112_spill] sm:$0xff]  ;;  %v4034_v8 = vcombine.high %v4030_v31, %v4030_v31 }
 0x353   : > { %13289 = vst [vmem:[#allocation30_spill] sm:$0xff] %v11420_v33  ;;  %13290 = vst [vmem:[#allocation107_spill] sm:$0xff] %v11422_v48  ;;  %v3604_v20 = vadd.f32 %v3603_v16, %v13293_v18  ;;  %v3861_v45 = vadd.f32 %v3860_v10, %v13294_v30  ;;  %v11430_v27 = vadd.f32 %v4250_v41, %v3600_v15  ;;  %v13302_v30 = vld [vmem:[#allocation37_spill] sm:$0xff] }
 0x354   : > { %v11432_v22 = vadd.f32 %v4258_v50, %v3857_v62  ;;  %v3605_v9 = vpop.f32.mrf.mxu0  ;;  %v3862_v11 = vpop.f32.mrf.mxu1  ;;  %v3248_v48 = vadd.f32 %v13301_v13, %v3055_v60  ;;  %v13303_v15 = vld [vmem:[#allocation133_spill] sm:$0xff] }
 0x355   : > { %13295 = vst [vmem:[#allocation19_spill] sm:$0xff] %v11430_v27  ;;  %v3606_v17 = vadd.f32 %v3605_v9, %v13297_v19  ;;  %v3863_v26 = vadd.f32 %v3862_v11, %v13298_v59  ;;  %v11436_v7 = vadd.f32 %v4262_v28, %v3604_v20  ;;  %v11438_v47 = vadd.f32 %v4270_v5, %v3861_v45  ;;  %v13306_v45 = vld [vmem:[#allocation38_spill] sm:$0xff] }
 0x356   : > { %13296 = vst [vmem:[#allocation33_spill] sm:$0xff] %v11432_v22  ;;  %v3609_v18 = vpop.f32.mrf.mxu0  ;;  %v3866_v16 = vpop.f32.mrf.mxu1  ;;  %v4278_v11 = vrot.slane %v4034_v8, %v11009_v56  ;;  %v4286_v20 = vrot.slane %v4034_v8, %v11012_v23 }
 0x357   : > { %13299 = vst [vmem:[#allocation105_spill] sm:$0xff] %v11436_v7  ;;  %13300 = vst [vmem:[#allocation108_spill] sm:$0xff] %v11438_v47  ;;  %v3610_v41 = vadd.f32 %v3609_v18, %v13302_v30  ;;  %v3867_v50 = vadd.f32 %v3866_v16, %v13303_v15  ;;  %v11443_v62 = vadd.f32 %v4266_v4, %v3606_v17  ;;  %v13309_v18 = vld [vmem:[#allocation122_spill] sm:$0xff]  ;;  %v13310_v30 = vld [vmem:[#allocation120_spill] sm:$0xff] }
 0x358   : > { %v11445_v10 = vadd.f32 %v4274_v29, %v3863_v26  ;;  %v3611_v31 = vpop.f32.mrf.mxu0  ;;  %v3868_v9 = vpop.f32.mrf.mxu1  ;;  %v3065_v16 = vadd.f32 %v13310_v30, %v13309_v18  ;;  %v4282_v26 = vrot.slane %v4034_v8, %v11019_v21  ;;  %v4290_v47 = vrot.slane %v4034_v8, %v11022_v46  ;;  %v13312_v7 = vld [vmem:[#allocation116_spill] sm:$0xff] }
 0x359   : > { %13304 = vst [vmem:[#allocation34_spill] sm:$0xff] %v11443_v62  ;;  %v3612_v19 = vadd.f32 %v3611_v31, %v13306_v45  ;;  %v3869_v59 = vadd.f32 %v3868_v9, %v3248_v48  ;;  %v11450_v60 = vadd.f32 %v4262_v28, %v3610_v41  ;;  %v11452_v13 = vadd.f32 %v4270_v5, %v3867_v50  ;;  %v13315_v41 = vld [vmem:[#allocation144_spill] sm:$0xff]  ;;  %v13316_v31 = vld [vmem:[#allocation119_spill] sm:$0xff]  ;;  %v13317_v45 = vld [vmem:[#allocation118_spill] sm:$0xff] }
 0x35a   : > { %13305 = vst [vmem:[#allocation109_spill] sm:$0xff] %v11445_v10  ;;  %v3615_v17 = vpop.f32.mrf.mxu0  ;;  %v3872_v15 = vpop.f32.mrf.mxu1  ;;  %v13311_v10 = vld [vmem:[#allocation117_spill] sm:$0xff]  ;;  %v4038_v50 = vrot.slane %v13315_v41, %v11009_v56 }
 0x35b   : > { %13307 = vst [vmem:[#allocation35_spill] sm:$0xff] %v11450_v60  ;;  %13308 = vst [vmem:[#allocation115_spill] sm:$0xff] %v11452_v13  ;;  %v3616_v62 = vadd.f32 %v3615_v17, %v13311_v10  ;;  %v3873_v22 = vadd.f32 %v3872_v15, %v13312_v7  ;;  %v11460_v27 = vadd.f32 %v4266_v4, %v3612_v19  ;;  %v13320_v10 = vld [vmem:[#allocation134_spill] sm:$0xff]  ;;  %v13321_v19 = vld [vmem:[#allocation121_spill] sm:$0xff] }
 0x35c   : > { %v11462_v48 = vadd.f32 %v4274_v29, %v3869_v59  ;;  %v3617_v28 = vpop.f32.mrf.mxu0  ;;  %v3874_v5 = vpop.f32.mrf.mxu1  ;;  %v3258_v17 = vadd.f32 %v13320_v10, %v3065_v16  ;;  %v4042_v29 = vrot.slane %v13315_v41, %v11019_v21  ;;  %v13322_v15 = vld [vmem:[#allocation135_spill] sm:$0xff]  ;;  %v13329_v60 = vld [vmem:[#allocation41_spill] sm:$0xff] }
 0x35d   : > { %13313 = vst [vmem:[#allocation114_spill] sm:$0xff] %v11460_v27  ;;  %v3618_v9 = vadd.f32 %v3617_v28, %v13316_v31  ;;  %v3875_v18 = vadd.f32 %v3874_v5, %v13317_v45  ;;  %v11468_v30 = vadd.f32 %v4278_v11, %v3616_v62  ;;  %v11470_v8 = vadd.f32 %v4286_v20, %v3873_v22  ;;  %v13325_v31 = vld [vmem:[#allocation40_spill] sm:$0xff] }
 0x35e   : > { %13314 = vst [vmem:[#allocation112_spill] sm:$0xff] %v11462_v48  ;;  %v3621_v7 = vpop.f32.mrf.mxu0  ;;  %v3878_v4 = vpop.f32.mrf.mxu1  ;;  %v4355_v22 = vadd.f32 %v4038_v50, %v13325_v31  ;;  %v13326_v45 = vld [vmem:[#allocation124_spill] sm:$0xff] }
 0x35f   : > { %13318 = vst [vmem:[#allocation111_spill] sm:$0xff] %v11468_v30  ;;  %13319 = vst [vmem:[#allocation36_spill] sm:$0xff] %v11470_v8  ;;  %v3622_v59 = vadd.f32 %v3621_v7, %v13321_v19  ;;  %v3879_v13 = vadd.f32 %v3878_v4, %v13322_v15  ;;  %v11477_v48 = vadd.f32 %v4282_v26, %v3618_v9  ;;  %v13330_v19 = vld [vmem:[#allocation43_spill] sm:$0xff]  ;;  %v13331_v4 = vld [vmem:[#allocation140_spill] sm:$0xff] }
 0x360   : > { %v11479_v28 = vadd.f32 %v4290_v47, %v3875_v18  ;;  %v3623_v5 = vpop.f32.mrf.mxu0  ;;  %v3880_v62 = vpop.f32.mrf.mxu1  ;;  %v4356_v7 = vadd.f32 %v4042_v29, %v13329_v60  ;;  %v3444_v9 = vadd.f32 %v13331_v4, %v13330_v19  ;;  %v13337_v19 = vld [vmem:[#allocation137_spill] sm:$0xff] }
 0x361   : > { %13323 = vst [vmem:[#allocation113_spill] sm:$0xff] %v11477_v48  ;;  %v3624_v8 = vadd.f32 %v3623_v5, %v13326_v45  ;;  %v3881_v16 = vadd.f32 %v3880_v62, %v3258_v17  ;;  %v11483_v10 = vadd.f32 %v4278_v11, %v3622_v59  ;;  %v11485_v30 = vadd.f32 %v4286_v20, %v3879_v13  ;;  %v13334_v17 = vld [vmem:[#allocation42_spill] sm:$0xff] }
 0x362   : > { %13324 = vst [vmem:[#allocation132_spill] sm:$0xff] %v11479_v28  ;;  %v4845_v27 = vpop.f32.mrf.mxu0  ;;  %v4888_v18 = vpop.f32.mrf.mxu1  ;;  %v4359_v11 = vadd.f32 %v4038_v50, %v13334_v17  ;;  %v4360_v60 = vadd.f32 %v4042_v29, %v3444_v9  ;;  %v4050_v45 = vrot.slane %v13315_v41, %v11022_v46  ;;  %v13335_v50 = vld [vmem:[#allocation39_spill] sm:$0xff]  ;;  %v13338_v9 = vld [vmem:[#allocation136_spill] sm:$0xff] }
 0x363   : > { %13327 = vst [vmem:[#allocation37_spill] sm:$0xff] %v11483_v10  ;;  %13328 = vst [vmem:[#allocation133_spill] sm:$0xff] %v11485_v30  ;;  %v4897_v15 = vadd.f32 %v4845_v27, %v4355_v22  ;;  %v11490_v28 = vadd.f32 %v4282_v26, %v3624_v8  ;;  %v11492_v48 = vadd.f32 %v4290_v47, %v3881_v16  ;;  %v11659_v30 = vld [vmem:[%s12806_s4 + $0x2c] ss:$16 sps:$4 sm:$0xff]   ;;  %v11677_v10 = vld [vmem:[%s12806_s4 + $0x4] ss:$16 sps:$4 sm:$0xff]  }
 0x364   : > { %v4847_v31 = vpop.f32.mrf.mxu0  ;;  %v4890_v13 = vpop.f32.mrf.mxu1  ;;  %v4046_v47 = vrot.slane %v13315_v41, %v11012_v23  ;;  %v4358_v4 = vadd.f32 %v4050_v45, %v13337_v19 }
 0x365   : > { %13332 = vst [vmem:[#allocation38_spill] sm:$0xff] %v11490_v28  ;;  %13333 = vst [vmem:[#allocation122_spill] sm:$0xff] %v11492_v48  ;;  %v7814_v33 = vmul.f32 -1.442695, %v4897_v15  ;;  %v4898_v5 = vadd.f32 %v4847_v31, %v4356_v7  ;;  %v13336_v7 = vld [vmem:[#allocation141_spill] sm:$0xff] }
 0x366   : > { %v4849_v59 = vpop.f32.mrf.mxu0  ;;  %v4892_v22 = vpop.f32.mrf.mxu1  ;;  %v4900_v29 = vadd.f32 %v4890_v13, %v4358_v4  ;;  %v4357_v15 = vadd.f32 %v4046_v47, %v13338_v9  ;;  %v11665_v48 = vld [vmem:[%s12806_s4 + $0x20] ss:$16 sps:$4 sm:$0xff]   ;;  %v11671_v28 = vld [vmem:[%s12806_s4 + $0x28] ss:$16 sps:$4 sm:$0xff]  }
 0x367   : > { %8410 = vpow2.f32 %v7814_v33  ;;  %v7816_v20 = vmul.f32 -1.442695, %v4898_v5  ;;  %v4901_v62 = vadd.f32 %v4849_v59, %v4359_v11  ;;  %v3701_v33 = vadd.f32 %v13336_v7, %v13335_v50  ;;  %v13339_v59 = vld [vmem:[#allocation138_spill] sm:$0xff] }
 0x368   : > { %v4851_v27 = vpop.f32.mrf.mxu0  ;;  %v4894_v31 = vpop.f32.mrf.mxu1  ;;  %v4899_v17 = vadd.f32 %v4888_v18, %v4357_v15  ;;  %v7818_v11 = vmul.f32 -1.442695, %v4900_v29 }
 0x369   : > { %8412 = vpow2.f32 %v7816_v20  ;;  %v7815_v26 = vmul.f32 -1.442695, %v4901_v62  ;;  %v4902_v8 = vadd.f32 %v4851_v27, %v4360_v60  ;;  %v4362_v5 = vadd.f32 %v4050_v45, %v3701_v33 }
 0x36a   : > { %v4361_v20 = vadd.f32 %v4046_v47, %v13339_v59 }
 0x36b   : > { %8414 = vpow2.f32 %v7815_v26  ;;  %v7817_v16 = vmul.f32 -1.442695, %v4902_v8  ;;  %v4904_v62 = vadd.f32 %v4894_v31, %v4362_v5 }
 0x36c   : > { %v4903_v60 = vadd.f32 %v4892_v22, %v4361_v20 }
 0x36d   : > { %8416 = vpow2.f32 %v7817_v16  ;;  %v7819_v8 = vmul.f32 -1.442695, %v4904_v62 }
 0x36e   : > { %8418 = vtanh.f32 %v4899_v17 }
 0x36f   : > { %8420 = vpow2.f32 %v7818_v11 }
 0x374   : > { %v8411_v41 = vpop.eup %8410 }
 0x375   : > { %v4911_v27 = vadd.f32 1.0, %v8411_v41 }
 0x376   : > { %v8413_v26 = vpop.eup %8412 }
 0x377   : > { %8422 = vrcp.f32 %v4911_v27  ;;  %v4923_v50 = vadd.f32 1.0, %v8413_v26 }
 0x378   : > { %v8415_v16 = vpop.eup %8414  ;;  %8424 = vtanh.f32 %v4903_v60 }
 0x379   : > { %8426 = vrcp.f32 %v4923_v50  ;;  %v4912_v13 = vadd.f32 1.0, %v8415_v16 }
 0x37a   : > { %v8417_v7 = vpop.eup %8416  ;;  %8428 = vpow2.f32 %v7819_v8 }
 0x37b   : > { %8430 = vrcp.f32 %v4912_v13  ;;  %v4924_v18 = vadd.f32 1.0, %v8417_v7  ;;  %v8419_v45 = vpop.eup %8418  ;;  %v11519_v13 = vld [vmem:[%s12806_s4 + $0xe0] ss:$16 sps:$4 sm:$0xff]   ;;  %v11525_v7 = vld [vmem:[%s12806_s4 + $0xe8] ss:$16 sps:$4 sm:$0xff]  }
 0x37c   : > { %v8421_v47 = vpop.eup %8420 }
 0x37d   : > { %8432 = vrcp.f32 %v4924_v18  ;;  %v4937_v29 = vadd.f32 1.0, %v8421_v47  ;;  %v11531_v18 = vld [vmem:[%s12806_s4 + $0xc4] ss:$16 sps:$4 sm:$0xff]   ;;  %v13340_v47 = vmov 0  }
 0x37f   : > { %8434 = vrcp.f32 %v4937_v29  ;;  %v11569_v29 = vld [vmem:[%s12806_s4 + $0xa0] ss:$16 sps:$4 sm:$0xff]  }
 0x384   : > { %v8423_v33 = vpop.eup %8422 }
 0x385   : > { %v8425_v22 = vpop.eup %8424  ;;  %v4945_v19 = vmul.f32 %v8423_v33, %v8419_v45  ;;  %v11537_v45 = vld [vmem:[%s12806_s4 + $0xcc] ss:$16 sps:$4 sm:$0xff]   ;;  %v11545_v33 = vld [vmem:[%s12806_s4 + $0xc0] ss:$16 sps:$4 sm:$0xff]  }
 0x386   : > { %v8427_v4 = vpop.eup %8426 }
 0x387   : > { %v8429_v9 = vpop.eup %8428  ;;  %v4943_v15 = vmul.f32 0.0, %v8427_v4  ;;  %v11563_v4 = vld [vmem:[%s12806_s4 + $0xac] ss:$16 sps:$4 sm:$0xff]  }
 0x388   : > { %v8431_v31 = vpop.eup %8430  ;;  %v4938_v59 = vadd.f32 1.0, %v8429_v9  ;;  %v11575_v9 = vld [vmem:[%s12806_s4 + $0xa8] ss:$16 sps:$4 sm:$0xff]  }
 0x389   : > { %v11504_v5 = vadd.f32 %v4945_v19, %v4943_v15  ;;  %v4946_v17 = vmul.f32 %v8431_v31, %v8425_v22  ;;  %v11551_v22 = vld [vmem:[%s12806_s4 + $0xc8] ss:$16 sps:$4 sm:$0xff]   ;;  %v11557_v19 = vld [vmem:[%s12806_s4 + $0xa4] ss:$16 sps:$4 sm:$0xff]   ;;  %v11587_v31 = vld [vmem:[%s12806_s4 + $0x8c] ss:$16 sps:$4 sm:$0xff]  }
 0x38a   : > { %v8433_v11 = vpop.eup %8432  ;;  %v11581_v15 = vld [vmem:[%s12806_s4 + $0x84] ss:$16 sps:$4 sm:$0xff]  }
 0x38b   : > { %8436 = vtanh.f32 %v11504_v5  ;;  %v4944_v20 = vmul.f32 0.0, %v8433_v11  ;;  %v11599_v11 = vld [vmem:[%s12806_s4 + $0x88] ss:$16 sps:$4 sm:$0xff]  }
 0x38c   : > { %8438 = vrcp.f32 %v4938_v59  ;;  %v8435_v41 = vpop.eup %8434  ;;  %v11605_v59 = vld [vmem:[%s12806_s4 + $0x64] ss:$16 sps:$4 sm:$0xff]  }
 0x38d   : > { %v11507_v62 = vadd.f32 %v4946_v17, %v4944_v20  ;;  %v11593_v17 = vld [vmem:[%s12806_s4 + $0x80] ss:$16 sps:$4 sm:$0xff]   ;;  %v11611_v20 = vld [vmem:[%s12806_s4 + $0x6c] ss:$16 sps:$4 sm:$0xff]  }
 0x38f   : > { %8440 = vtanh.f32 %v11507_v62 }
 0x398   : > { %v8437_v60 = vpop.eup %8436 }
 0x399   : > { %v4951_v27 = vmul.f32 %v8437_v60, %v8435_v41  ;;  %v8439_v26 = vpop.eup %8438  ;;  %v11617_v41 = vld [vmem:[%s12806_s4 + $0x60] ss:$16 sps:$4 sm:$0xff]   ;;  %v11623_v60 = vld [vmem:[%s12806_s4 + $0x68] ss:$16 sps:$4 sm:$0xff]  }
 0x39b   : > { %4953 = vst [vmem:[%s11512_s20] sm:$0xff] %v4951_v27 }
 0x39c   : > { %v8441_v8 = vpop.eup %8440 }
 0x39d   : > { %v4952_v50 = vmul.f32 %v8441_v8, %v8439_v26  ;;  %v11635_v26 = vld [vmem:[%s12806_s4 + $0x4c] ss:$16 sps:$4 sm:$0xff]   ;;  %v11641_v8 = vld [vmem:[%s12806_s4 + $0x40] ss:$16 sps:$4 sm:$0xff]  }
 0x39f   : > { %4954 = vst [vmem:[%s11512_s20 + $0x8] sm:$0xff] %v4952_v50  ;;  %v4964_v16 = vpack.c.bf16 %v4952_v50, %v4951_v27  ;;  %v11629_v27 = vld [vmem:[%s12806_s4 + $0x44] ss:$16 sps:$4 sm:$0xff]   ;;  %v11647_v50 = vld [vmem:[%s12806_s4 + $0x48] ss:$16 sps:$4 sm:$0xff]  }
 0x3a1   : > { %4998 = vmatmul.mubr.bf16.vlgmr.msra.gmra.mxu0 %v4964_v16  ;;  %5041 = vmatmul.mubr.bf16.vlgmr.msra.gmra.mxu1 %v4964_v16  ;;  %v11653_v16 = vld [vmem:[%s12806_s4 + $0x24] ss:$16 sps:$4 sm:$0xff]  }
 0x3a2   : > { %5121 = vmatpush1.bf16.msra.mxu0 %v11519_v13  ;;  %5164 = vmatpush1.bf16.msra.mxu1 %v11525_v7 }
 0x3a3   : > { %5122 = vmatprep.subr.bf16.mxu0 %v11531_v18  ;;  %5165 = vmatprep.subr.bf16.mxu1 %v11537_v45 }
 0x3a4   : > { %5152 = vmatprep.mubr.bf16.mxu0 %v13340_v47  ;;  %5195 = vmatprep.mubr.bf16.mxu1 %v13340_v47 }
 0x3a6   : > { %5123 = vmatpush1.bf16.msra.mxu0 %v11545_v33  ;;  %5166 = vmatpush1.bf16.msra.mxu1 %v11551_v22 }
 0x3a7   : > { %5124 = vmatprep.subr.bf16.mxu0 %v11557_v19  ;;  %5167 = vmatprep.subr.bf16.mxu1 %v11563_v4 }
 0x3aa   : > { %5125 = vmatpush1.bf16.msra.mxu0 %v11569_v29  ;;  %5168 = vmatpush1.bf16.msra.mxu1 %v11575_v9 }
 0x3ab   : > { %5126 = vmatprep.subr.bf16.mxu0 %v11581_v15  ;;  %5169 = vmatprep.subr.bf16.mxu1 %v11587_v31 }
 0x3ae   : > { %5127 = vmatpush1.bf16.msra.mxu0 %v11593_v17  ;;  %5170 = vmatpush1.bf16.msra.mxu1 %v11599_v11 }
 0x3af   : > { %5128 = vmatprep.subr.bf16.mxu0 %v11605_v59  ;;  %5171 = vmatprep.subr.bf16.mxu1 %v11611_v20 }
 0x3b2   : > { %5129 = vmatpush1.bf16.msra.mxu0 %v11617_v41  ;;  %5172 = vmatpush1.bf16.msra.mxu1 %v11623_v60 }
 0x3b3   : > { %5130 = vmatprep.subr.bf16.mxu0 %v11629_v27  ;;  %5173 = vmatprep.subr.bf16.mxu1 %v11635_v26 }
 0x3b6   : > { %5131 = vmatpush1.bf16.msra.mxu0 %v11641_v8  ;;  %5174 = vmatpush1.bf16.msra.mxu1 %v11647_v50 }
 0x3b7   : > { %5132 = vmatprep.subr.bf16.mxu0 %v11653_v16  ;;  %5175 = vmatprep.subr.bf16.mxu1 %v11659_v30 }
 0x3ba   : > { %5133 = vmatpush1.bf16.msra.mxu0 %v11665_v48  ;;  %5176 = vmatpush1.bf16.msra.mxu1 %v11671_v28 }
 0x3bb   : > { %5134 = vmatprep.subr.bf16.mxu0 %v11677_v10  ;;  %5177 = vmatprep.subr.bf16.mxu1 %v11683_v42 }
 0x3be   : > { %5135 = vmatpush1.bf16.msra.mxu0 %v11689_v40  ;;  %5178 = vmatpush1.bf16.msra.mxu1 %v11695_v24 }
 0x3bf   : > { %5275 = vmatprep.subr.bf16.mxu0 %v11701_v32  ;;  %5318 = vmatprep.subr.bf16.mxu1 %v11707_v44 }
 0x461   : > { %v4999_v6 = vpop.f32.mrf.mxu0  ;;  %v5042_v38 = vpop.f32.mrf.mxu1 }
 0x462   : > { %v5051_v63 = vadd.f32 %v4999_v6, %v13341_v51  ;;  %v13343_v6 = vld [vmem:[#allocation145_spill] sm:$0xff] }
 0x463   : > { %v5001_v34 = vpop.f32.mrf.mxu0  ;;  %v5044_v23 = vpop.f32.mrf.mxu1 }
 0x464   : > { %v7820_v53 = vmul.f32 -1.442695, %v5051_v63  ;;  %v5052_v35 = vadd.f32 %v5001_v34, %v13342_v61  ;;  %v5054_v51 = vadd.f32 %v5044_v23, %v13343_v6  ;;  %v5053_v61 = vadd.f32 %v5042_v38, %v13344_v49 }
 0x465   : > { %v5003_v36 = vpop.f32.mrf.mxu0  ;;  %v5046_v25 = vpop.f32.mrf.mxu1 }
 0x466   : > { %8442 = vpow2.f32 %v7820_v53  ;;  %v7822_v14 = vmul.f32 -1.442695, %v5052_v35  ;;  %v5055_v46 = vadd.f32 %v5003_v36, %v11051_v55  ;;  %v7824_v34 = vmul.f32 -1.442695, %v5054_v51 }
 0x467   : > { %v5005_v21 = vpop.f32.mrf.mxu0  ;;  %v5048_v63 = vpop.f32.mrf.mxu1  ;;  %v5057_v55 = vadd.f32 %v5046_v25, %v13345_v3 }
 0x468   : > { %8444 = vpow2.f32 %v7822_v14  ;;  %v7821_v56 = vmul.f32 -1.442695, %v5055_v46  ;;  %v5056_v39 = vadd.f32 %v5005_v21, %v11059_v12  ;;  %v5058_v35 = vadd.f32 %v5048_v63, %v11061_v52 }
 0x46a   : > { %8446 = vpow2.f32 %v7821_v56  ;;  %v7823_v54 = vmul.f32 -1.442695, %v5056_v39  ;;  %v7825_v12 = vmul.f32 -1.442695, %v5058_v35 }
 0x46c   : > { %8448 = vpow2.f32 %v7823_v54 }
 0x46d   : > { %8450 = vtanh.f32 %v5053_v61 }
 0x46e   : > { %8452 = vpow2.f32 %v7824_v34 }
 0x473   : > { %v8443_v53 = vpop.eup %8442 }
 0x474   : > { %v5065_v36 = vadd.f32 1.0, %v8443_v53 }
 0x475   : > { %v8445_v46 = vpop.eup %8444 }
 0x476   : > { %8454 = vrcp.f32 %v5065_v36  ;;  %v5077_v21 = vadd.f32 1.0, %v8445_v46 }
 0x477   : > { %v8447_v56 = vpop.eup %8446  ;;  %8456 = vtanh.f32 %v5057_v55 }
 0x478   : > { %8458 = vrcp.f32 %v5077_v21  ;;  %v5066_v23 = vadd.f32 1.0, %v8447_v56 }
 0x479   : > { %v8449_v54 = vpop.eup %8448  ;;  %8460 = vpow2.f32 %v7825_v12 }
 0x47a   : > { %8462 = vrcp.f32 %v5066_v23  ;;  %v5078_v49 = vadd.f32 1.0, %v8449_v54  ;;  %v8451_v52 = vpop.eup %8450 }
 0x47b   : > { %v8453_v39 = vpop.eup %8452 }
 0x47c   : > { %8464 = vrcp.f32 %v5078_v49  ;;  %v5091_v6 = vadd.f32 1.0, %v8453_v39 }
 0x47e   : > { %8466 = vrcp.f32 %v5091_v6 }
 0x483   : > { %v8455_v14 = vpop.eup %8454 }
 0x484   : > { %v8457_v25 = vpop.eup %8456  ;;  %v5099_v3 = vmul.f32 %v8455_v14, %v8451_v52 }
 0x485   : > { %v8459_v38 = vpop.eup %8458 }
 0x486   : > { %v8461_v51 = vpop.eup %8460  ;;  %v5097_v63 = vmul.f32 %v8459_v38, %v11504_v5 }
 0x487   : > { %v8463_v61 = vpop.eup %8462  ;;  %v5092_v55 = vadd.f32 1.0, %v8461_v51 }
 0x488   : > { %v11719_v34 = vadd.f32 %v5099_v3, %v5097_v63  ;;  %v5100_v35 = vmul.f32 %v8463_v61, %v8457_v25 }
 0x489   : > { %v8465_v53 = vpop.eup %8464 }
 0x48a   : > { %8468 = vtanh.f32 %v11719_v34  ;;  %v5098_v36 = vmul.f32 %v8465_v53, %v11507_v62 }
 0x48b   : > { %8470 = vrcp.f32 %v5092_v55  ;;  %v8467_v12 = vpop.eup %8466 }
 0x48c   : > { %v11723_v46 = vadd.f32 %v5100_v35, %v5098_v36 }
 0x48e   : > { %8472 = vtanh.f32 %v11723_v46 }
 0x497   : > { %v8469_v5 = vpop.eup %8468 }
 0x498   : > { %v5105_v21 = vmul.f32 %v8469_v5, %v8467_v12  ;;  %v8471_v56 = vpop.eup %8470 }
 0x49a   : > { %7826 = vst [vmem:[%s11512_s20 + $0x10] sm:$0xff] %v5105_v21 }
 0x49b   : > { %v8473_v23 = vpop.eup %8472 }
 0x49c   : > { %v5106_v54 = vmul.f32 %v8473_v23, %v8471_v56 }
 0x49e   : > { %7827 = vst [vmem:[%s11512_s20 + $0x18] sm:$0xff] %v5106_v54  ;;  %v5119_v49 = vpack.c.bf16 %v5106_v54, %v5105_v21  ;;  %v13347_v21 = vld [vmem:[#allocation48_spill] sm:$0xff] }
 0x4a0   : > { %5153 = vmatmul.mubr.bf16.vlgmr.msra.gmra.mxu0 %v5119_v49  ;;  %5196 = vmatmul.mubr.bf16.vlgmr.msra.gmra.mxu1 %v5119_v49  ;;  %v13348_v49 = vld [vmem:[#allocation50_spill] sm:$0xff] }
 0x4a1   : > { %5276 = vmatpush1.bf16.msra.mxu0 %v11519_v13  ;;  %5319 = vmatpush1.bf16.msra.mxu1 %v11525_v7 }
 0x4a2   : > { %5277 = vmatprep.subr.bf16.mxu0 %v11531_v18  ;;  %5320 = vmatprep.subr.bf16.mxu1 %v11537_v45 }
 0x4a3   : > { %5307 = vmatprep.mubr.bf16.mxu0 %v13340_v47  ;;  %5350 = vmatprep.mubr.bf16.mxu1 %v13340_v47 }
 0x4a5   : > { %5278 = vmatpush1.bf16.msra.mxu0 %v11545_v33  ;;  %5321 = vmatpush1.bf16.msra.mxu1 %v11551_v22 }
 0x4a6   : > { %5279 = vmatprep.subr.bf16.mxu0 %v11557_v19  ;;  %5322 = vmatprep.subr.bf16.mxu1 %v11563_v4 }
 0x4a9   : > { %5280 = vmatpush1.bf16.msra.mxu0 %v11569_v29  ;;  %5323 = vmatpush1.bf16.msra.mxu1 %v11575_v9 }
 0x4aa   : > { %5281 = vmatprep.subr.bf16.mxu0 %v11581_v15  ;;  %5324 = vmatprep.subr.bf16.mxu1 %v11587_v31 }
 0x4ad   : > { %5282 = vmatpush1.bf16.msra.mxu0 %v11593_v17  ;;  %5325 = vmatpush1.bf16.msra.mxu1 %v11599_v11 }
 0x4ae   : > { %5283 = vmatprep.subr.bf16.mxu0 %v11605_v59  ;;  %5326 = vmatprep.subr.bf16.mxu1 %v11611_v20 }
 0x4b1   : > { %5284 = vmatpush1.bf16.msra.mxu0 %v11617_v41  ;;  %5327 = vmatpush1.bf16.msra.mxu1 %v11623_v60 }
 0x4b2   : > { %5285 = vmatprep.subr.bf16.mxu0 %v11629_v27  ;;  %5328 = vmatprep.subr.bf16.mxu1 %v11635_v26 }
 0x4b5   : > { %5286 = vmatpush1.bf16.msra.mxu0 %v11641_v8  ;;  %5329 = vmatpush1.bf16.msra.mxu1 %v11647_v50 }
 0x4b6   : > { %5287 = vmatprep.subr.bf16.mxu0 %v11653_v16  ;;  %5330 = vmatprep.subr.bf16.mxu1 %v11659_v30 }
 0x4b9   : > { %5288 = vmatpush1.bf16.msra.mxu0 %v11665_v48  ;;  %5331 = vmatpush1.bf16.msra.mxu1 %v11671_v28 }
 0x4ba   : > { %5289 = vmatprep.subr.bf16.mxu0 %v11677_v10  ;;  %5332 = vmatprep.subr.bf16.mxu1 %v11683_v42 }
 0x4bd   : > { %5290 = vmatpush1.bf16.msra.mxu0 %v11689_v40  ;;  %5333 = vmatpush1.bf16.msra.mxu1 %v11695_v24 }
 0x4be   : > { %5430 = vmatprep.subr.bf16.mxu0 %v11701_v32  ;;  %5473 = vmatprep.subr.bf16.mxu1 %v11707_v44 }
 0x560   : > { %v5154_v62 = vpop.f32.mrf.mxu0  ;;  %v5197_v39 = vpop.f32.mrf.mxu1 }
 0x561   : > { %v5206_v52 = vadd.f32 %v5154_v62, %v11065_v58  ;;  %v13346_v58 = vld [vmem:[#allocation49_spill] sm:$0xff] }
 0x562   : > { %v5156_v14 = vpop.f32.mrf.mxu0  ;;  %v5199_v51 = vpop.f32.mrf.mxu1 }
 0x563   : > { %v7828_v25 = vmul.f32 -1.442695, %v5206_v52  ;;  %v5207_v3 = vadd.f32 %v5156_v14, %v11071_v0  ;;  %v5209_v12 = vadd.f32 %v5199_v51, %v13346_v58  ;;  %v5208_v0 = vadd.f32 %v5197_v39, %v13347_v21 }
 0x564   : > { %v5158_v38 = vpop.f32.mrf.mxu0  ;;  %v5201_v55 = vpop.f32.mrf.mxu1 }
 0x565   : > { %8474 = vpow2.f32 %v7828_v25  ;;  %v7830_v6 = vmul.f32 -1.442695, %v5207_v3  ;;  %v5210_v63 = vadd.f32 %v5158_v38, %v11079_v57  ;;  %v7832_v56 = vmul.f32 -1.442695, %v5209_v12 }
 0x566   : > { %v5160_v61 = vpop.f32.mrf.mxu0  ;;  %v5203_v5 = vpop.f32.mrf.mxu1  ;;  %v5212_v57 = vadd.f32 %v5201_v55, %v13348_v49 }
 0x567   : > { %8476 = vpow2.f32 %v7830_v6  ;;  %v7829_v35 = vmul.f32 -1.442695, %v5210_v63  ;;  %v5211_v53 = vadd.f32 %v5160_v61, %v11087_v43  ;;  %v5213_v23 = vadd.f32 %v5203_v5, %v11089_v37 }
 0x569   : > { %8478 = vpow2.f32 %v7829_v35  ;;  %v7831_v36 = vmul.f32 -1.442695, %v5211_v53  ;;  %v7833_v43 = vmul.f32 -1.442695, %v5213_v23 }
 0x56b   : > { %8480 = vpow2.f32 %v7831_v36 }
 0x56c   : > { %8482 = vtanh.f32 %v5208_v0 }
 0x56d   : > { %8484 = vpow2.f32 %v7832_v56 }
 0x572   : > { %v8475_v54 = vpop.eup %8474 }
 0x573   : > { %v5220_v62 = vadd.f32 1.0, %v8475_v54 }
 0x574   : > { %v8477_v52 = vpop.eup %8476 }
 0x575   : > { %8486 = vrcp.f32 %v5220_v62  ;;  %v5232_v14 = vadd.f32 1.0, %v8477_v52 }
 0x576   : > { %v8479_v25 = vpop.eup %8478  ;;  %8488 = vtanh.f32 %v5212_v57 }
 0x577   : > { %8490 = vrcp.f32 %v5232_v14  ;;  %v5221_v3 = vadd.f32 1.0, %v8479_v25 }
 0x578   : > { %v8481_v38 = vpop.eup %8480  ;;  %8492 = vpow2.f32 %v7833_v43 }
 0x579   : > { %8494 = vrcp.f32 %v5221_v3  ;;  %v5233_v39 = vadd.f32 1.0, %v8481_v38  ;;  %v8483_v37 = vpop.eup %8482 }
 0x57a   : > { %v8485_v6 = vpop.eup %8484 }
 0x57b   : > { %8496 = vrcp.f32 %v5233_v39  ;;  %v5246_v53 = vadd.f32 1.0, %v8485_v6 }
 0x57d   : > { %8498 = vrcp.f32 %v5246_v53 }
 0x582   : > { %v8487_v51 = vpop.eup %8486 }
 0x583   : > { %v8489_v63 = vpop.eup %8488  ;;  %v5254_v61 = vmul.f32 %v8487_v51, %v8483_v37 }
 0x584   : > { %v8491_v35 = vpop.eup %8490 }
 0x585   : > { %v8493_v55 = vpop.eup %8492  ;;  %v5252_v36 = vmul.f32 %v8491_v35, %v11719_v34 }
 0x586   : > { %v8495_v58 = vpop.eup %8494  ;;  %v5247_v0 = vadd.f32 1.0, %v8493_v55  ;;  %v13350_v55 = vld [vmem:[#allocation125_spill] sm:$0xff] }
 0x587   : > { %v11771_v12 = vadd.f32 %v5254_v61, %v5252_v36  ;;  %v5255_v5 = vmul.f32 %v8495_v58, %v8489_v63  ;;  %v13349_v63 = vld [vmem:[#allocation53_spill] sm:$0xff] }
 0x588   : > { %v8497_v21 = vpop.eup %8496 }
 0x589   : > { %8500 = vtanh.f32 %v11771_v12  ;;  %v5253_v56 = vmul.f32 %v8497_v21, %v11723_v46 }
 0x58a   : > { %8502 = vrcp.f32 %v5247_v0  ;;  %v8499_v54 = vpop.eup %8498 }
 0x58b   : > { %v11775_v23 = vadd.f32 %v5255_v5, %v5253_v56  ;;  %v13352_v56 = vld [vmem:[#allocation51_spill] sm:$0xff] }
 0x58d   : > { %8504 = vtanh.f32 %v11775_v23 }
 0x596   : > { %v8501_v34 = vpop.eup %8500 }
 0x597   : > { %v5260_v49 = vmul.f32 %v8501_v34, %v8499_v54  ;;  %v8503_v57 = vpop.eup %8502  ;;  %v13353_v34 = vld [vmem:[#allocation146_spill] sm:$0xff] }
 0x599   : > { %7834 = vst [vmem:[%s11512_s20 + $0x20] sm:$0xff] %v5260_v49 }
 0x59a   : > { %v8505_v62 = vpop.eup %8504 }
 0x59b   : > { %v5261_v52 = vmul.f32 %v8505_v62, %v8503_v57  ;;  %v13354_v62 = vld [vmem:[#allocation54_spill] sm:$0xff] }
 0x59d   : > { %7835 = vst [vmem:[%s11512_s20 + $0x28] sm:$0xff] %v5261_v52  ;;  %v5274_v43 = vpack.c.bf16 %v5261_v52, %v5260_v49 }
 0x59f   : > { %5308 = vmatmul.mubr.bf16.vlgmr.msra.gmra.mxu0 %v5274_v43  ;;  %5351 = vmatmul.mubr.bf16.vlgmr.msra.gmra.mxu1 %v5274_v43 }
 0x5a0   : > { %5431 = vmatpush1.bf16.msra.mxu0 %v11519_v13  ;;  %5474 = vmatpush1.bf16.msra.mxu1 %v11525_v7 }
 0x5a1   : > { %5432 = vmatprep.subr.bf16.mxu0 %v11531_v18  ;;  %5475 = vmatprep.subr.bf16.mxu1 %v11537_v45 }
 0x5a2   : > { %5462 = vmatprep.mubr.bf16.mxu0 %v13340_v47  ;;  %5505 = vmatprep.mubr.bf16.mxu1 %v13340_v47 }
 0x5a4   : > { %5433 = vmatpush1.bf16.msra.mxu0 %v11545_v33  ;;  %5476 = vmatpush1.bf16.msra.mxu1 %v11551_v22 }
 0x5a5   : > { %5434 = vmatprep.subr.bf16.mxu0 %v11557_v19  ;;  %5477 = vmatprep.subr.bf16.mxu1 %v11563_v4 }
 0x5a8   : > { %5435 = vmatpush1.bf16.msra.mxu0 %v11569_v29  ;;  %5478 = vmatpush1.bf16.msra.mxu1 %v11575_v9 }
 0x5a9   : > { %5436 = vmatprep.subr.bf16.mxu0 %v11581_v15  ;;  %5479 = vmatprep.subr.bf16.mxu1 %v11587_v31 }
 0x5ac   : > { %5437 = vmatpush1.bf16.msra.mxu0 %v11593_v17  ;;  %5480 = vmatpush1.bf16.msra.mxu1 %v11599_v11 }
 0x5ad   : > { %5438 = vmatprep.subr.bf16.mxu0 %v11605_v59  ;;  %5481 = vmatprep.subr.bf16.mxu1 %v11611_v20 }
 0x5b0   : > { %5439 = vmatpush1.bf16.msra.mxu0 %v11617_v41  ;;  %5482 = vmatpush1.bf16.msra.mxu1 %v11623_v60 }
 0x5b1   : > { %5440 = vmatprep.subr.bf16.mxu0 %v11629_v27  ;;  %5483 = vmatprep.subr.bf16.mxu1 %v11635_v26 }
 0x5b4   : > { %5441 = vmatpush1.bf16.msra.mxu0 %v11641_v8  ;;  %5484 = vmatpush1.bf16.msra.mxu1 %v11647_v50 }
 0x5b5   : > { %5442 = vmatprep.subr.bf16.mxu0 %v11653_v16  ;;  %5485 = vmatprep.subr.bf16.mxu1 %v11659_v30 }
 0x5b8   : > { %5443 = vmatpush1.bf16.msra.mxu0 %v11665_v48  ;;  %5486 = vmatpush1.bf16.msra.mxu1 %v11671_v28 }
 0x5b9   : > { %5444 = vmatprep.subr.bf16.mxu0 %v11677_v10  ;;  %5487 = vmatprep.subr.bf16.mxu1 %v11683_v42 }
 0x5bc   : > { %5445 = vmatpush1.bf16.msra.mxu0 %v11689_v40  ;;  %5488 = vmatpush1.bf16.msra.mxu1 %v11695_v24 }
 0x5bd   : > { %5585 = vmatprep.subr.bf16.mxu0 %v11701_v32  ;;  %5628 = vmatprep.subr.bf16.mxu1 %v11707_v44 }
 0x65f   : > { %v5309_v46 = vpop.f32.mrf.mxu0  ;;  %v5352_v25 = vpop.f32.mrf.mxu1 }
 0x660   : > { %v5361_v14 = vadd.f32 %v5309_v46, %v11093_v2  ;;  %v13351_v2 = vld [vmem:[#allocation52_spill] sm:$0xff] }
 0x661   : > { %v5311_v3 = vpop.f32.mrf.mxu0  ;;  %v5354_v51 = vpop.f32.mrf.mxu1 }
 0x662   : > { %v7836_v38 = vmul.f32 -1.442695, %v5361_v14  ;;  %v5362_v39 = vadd.f32 %v5311_v3, %v11099_v1  ;;  %v5364_v21 = vadd.f32 %v5354_v51, %v13351_v2  ;;  %v5363_v1 = vadd.f32 %v5352_v25, %v13352_v56 }
 0x663   : > { %v5313_v37 = vpop.f32.mrf.mxu0  ;;  %v5356_v58 = vpop.f32.mrf.mxu1 }
 0x664   : > { %8506 = vpow2.f32 %v7836_v38  ;;  %v7838_v6 = vmul.f32 -1.442695, %v5362_v39  ;;  %v5365_v61 = vadd.f32 %v5313_v37, %v13349_v63  ;;  %v7840_v54 = vmul.f32 -1.442695, %v5364_v21 }
 0x665   : > { %v5315_v35 = vpop.f32.mrf.mxu0  ;;  %v5358_v0 = vpop.f32.mrf.mxu1  ;;  %v5367_v52 = vadd.f32 %v5356_v58, %v13354_v62 }
 0x666   : > { %8508 = vpow2.f32 %v7838_v6  ;;  %v7837_v53 = vmul.f32 -1.442695, %v5365_v61  ;;  %v5366_v36 = vadd.f32 %v5315_v35, %v13350_v55  ;;  %v5368_v49 = vadd.f32 %v5358_v0, %v13353_v34 }
 0x668   : > { %8510 = vpow2.f32 %v7837_v53  ;;  %v7839_v5 = vmul.f32 -1.442695, %v5366_v36  ;;  %v7841_v14 = vmul.f32 -1.442695, %v5368_v49 }
 0x66a   : > { %8512 = vpow2.f32 %v7839_v5 }
 0x66b   : > { %8514 = vtanh.f32 %v5363_v1 }
 0x66c   : > { %8516 = vpow2.f32 %v7840_v54 }
 0x671   : > { %v8507_v57 = vpop.eup %8506 }
 0x672   : > { %v5375_v43 = vadd.f32 1.0, %v8507_v57 }
 0x673   : > { %v8509_v46 = vpop.eup %8508 }
 0x674   : > { %8518 = vrcp.f32 %v5375_v43  ;;  %v5387_v3 = vadd.f32 1.0, %v8509_v46  ;;  %v13356_v46 = vld [vmem:[#allocation63_spill] sm:$0xff] }
 0x675   : > { %v8511_v38 = vpop.eup %8510  ;;  %8520 = vtanh.f32 %v5367_v52 }
 0x676   : > { %8522 = vrcp.f32 %v5387_v3  ;;  %v5376_v39 = vadd.f32 1.0, %v8511_v38  ;;  %v13357_v3 = vld [vmem:[#allocation142_spill] sm:$0xff] }
 0x677   : > { %v8513_v37 = vpop.eup %8512  ;;  %8524 = vpow2.f32 %v7841_v14  ;;  %v4106_v38 = vrot.slane %v13356_v46, %v13357_v3 }
 0x678   : > { %8526 = vrcp.f32 %v5376_v39  ;;  %v5388_v25 = vadd.f32 1.0, %v8513_v37  ;;  %v8515_v6 = vpop.eup %8514  ;;  %v13358_v39 = vld [vmem:[#allocation55_spill] sm:$0xff] }
 0x679   : > { %v8517_v51 = vpop.eup %8516 }
 0x67a   : > { %8528 = vrcp.f32 %v5388_v25  ;;  %v5401_v55 = vadd.f32 1.0, %v8517_v51 }
 0x67c   : > { %8530 = vrcp.f32 %v5401_v55 }
 0x681   : > { %v8519_v63 = vpop.eup %8518 }
 0x682   : > { %v8521_v61 = vpop.eup %8520  ;;  %v5409_v35 = vmul.f32 %v8519_v63, %v8515_v6  ;;  %v13359_v63 = vld [vmem:[#allocation57_spill] sm:$0xff] }
 0x683   : > { %v8523_v53 = vpop.eup %8522 }
 0x684   : > { %v8525_v36 = vpop.eup %8524  ;;  %v5407_v58 = vmul.f32 %v8523_v53, %v11771_v12 }
 0x685   : > { %v8527_v5 = vpop.eup %8526  ;;  %v5402_v56 = vadd.f32 1.0, %v8525_v36  ;;  %v13360_v36 = vld [vmem:[#allocation58_spill] sm:$0xff] }
 0x686   : > { %v11823_v2 = vadd.f32 %v5409_v35, %v5407_v58  ;;  %v5410_v21 = vmul.f32 %v8527_v5, %v8521_v61  ;;  %v4388_v61 = vadd.f32 %v4106_v38, %v13359_v63 }
 0x687   : > { %v8529_v0 = vpop.eup %8528 }
 0x688   : > { %8532 = vtanh.f32 %v11823_v2  ;;  %v5408_v1 = vmul.f32 %v8529_v0, %v11775_v23  ;;  %v13355_v23 = vld [vmem:[#allocation123_spill] sm:$0xff] }
 0x689   : > { %8534 = vrcp.f32 %v5402_v56  ;;  %v8531_v34 = vpop.eup %8530  ;;  %v4102_v14 = vrot.slane %v13356_v46, %v13355_v23 }
 0x68a   : > { %v11827_v54 = vadd.f32 %v5410_v21, %v5408_v1  ;;  %v13361_v1 = vld [vmem:[#allocation59_spill] sm:$0xff] }
 0x68b   : > { %v4387_v37 = vadd.f32 %v4102_v14, %v13358_v39  ;;  %v4391_v58 = vadd.f32 %v4102_v14, %v13360_v36 }
 0x68c   : > { %8536 = vtanh.f32 %v11827_v54 }
 0x695   : > { %v8533_v12 = vpop.eup %8532 }
 0x696   : > { %v5415_v49 = vmul.f32 %v8533_v12, %v8531_v34  ;;  %v8535_v57 = vpop.eup %8534  ;;  %v4392_v34 = vadd.f32 %v4106_v38, %v13361_v1  ;;  %v13362_v12 = vld [vmem:[#allocation143_spill] sm:$0xff] }
 0x698   : > { %7842 = vst [vmem:[%s11512_s20 + $0x30] sm:$0xff] %v5415_v49 }
 0x699   : > { %v8537_v62 = vpop.eup %8536 }
 0x69a   : > { %v5416_v52 = vmul.f32 %v8537_v62, %v8535_v57 }
 0x69c   : > { %7843 = vst [vmem:[%s11512_s20 + $0x38] sm:$0xff] %v5416_v52  ;;  %v5429_v43 = vpack.c.bf16 %v5416_v52, %v5415_v49  ;;  %v4114_v49 = vrot.slane %v13356_v46, %v13362_v12 }
 0x69e   : > { %5463 = vmatmul.mubr.bf16.vlgmr.msra.gmra.mxu0 %v5429_v43  ;;  %5506 = vmatmul.mubr.bf16.vlgmr.msra.gmra.mxu1 %v5429_v43  ;;  %v13363_v43 = vld [vmem:[#allocation139_spill] sm:$0xff] }
 0x69f   : > { %5586 = vmatpush1.bf16.msra.mxu0 %v11519_v13  ;;  %5629 = vmatpush1.bf16.msra.mxu1 %v11525_v7  ;;  %v4110_v39 = vrot.slane %v13356_v46, %v13363_v43 }
 0x6a0   : > { %5587 = vmatprep.subr.bf16.mxu0 %v11531_v18  ;;  %5630 = vmatprep.subr.bf16.mxu1 %v11537_v45 }
 0x6a1   : > { %5617 = vmatprep.mubr.bf16.mxu0 %v13340_v47  ;;  %5660 = vmatprep.mubr.bf16.mxu1 %v13340_v47 }
 0x6a3   : > { %5588 = vmatpush1.bf16.msra.mxu0 %v11545_v33  ;;  %5631 = vmatpush1.bf16.msra.mxu1 %v11551_v22 }
 0x6a4   : > { %5589 = vmatprep.subr.bf16.mxu0 %v11557_v19  ;;  %5632 = vmatprep.subr.bf16.mxu1 %v11563_v4 }
 0x6a7   : > { %5590 = vmatpush1.bf16.msra.mxu0 %v11569_v29  ;;  %5633 = vmatpush1.bf16.msra.mxu1 %v11575_v9 }
 0x6a8   : > { %5591 = vmatprep.subr.bf16.mxu0 %v11581_v15  ;;  %5634 = vmatprep.subr.bf16.mxu1 %v11587_v31 }
 0x6ab   : > { %5592 = vmatpush1.bf16.msra.mxu0 %v11593_v17  ;;  %5635 = vmatpush1.bf16.msra.mxu1 %v11599_v11 }
 0x6ac   : > { %5593 = vmatprep.subr.bf16.mxu0 %v11605_v59  ;;  %5636 = vmatprep.subr.bf16.mxu1 %v11611_v20 }
 0x6af   : > { %5594 = vmatpush1.bf16.msra.mxu0 %v11617_v41  ;;  %5637 = vmatpush1.bf16.msra.mxu1 %v11623_v60 }
 0x6b0   : > { %5595 = vmatprep.subr.bf16.mxu0 %v11629_v27  ;;  %5638 = vmatprep.subr.bf16.mxu1 %v11635_v26 }
 0x6b3   : > { %5596 = vmatpush1.bf16.msra.mxu0 %v11641_v8  ;;  %5639 = vmatpush1.bf16.msra.mxu1 %v11647_v50 }
 0x6b4   : > { %5597 = vmatprep.subr.bf16.mxu0 %v11653_v16  ;;  %5640 = vmatprep.subr.bf16.mxu1 %v11659_v30 }
 0x6b7   : > { %5598 = vmatpush1.bf16.msra.mxu0 %v11665_v48  ;;  %5641 = vmatpush1.bf16.msra.mxu1 %v11671_v28 }
 0x6b8   : > { %5599 = vmatprep.subr.bf16.mxu0 %v11677_v10  ;;  %5642 = vmatprep.subr.bf16.mxu1 %v11683_v42 }
 0x6bb   : > { %5600 = vmatpush1.bf16.msra.mxu0 %v11689_v40  ;;  %5643 = vmatpush1.bf16.msra.mxu1 %v11695_v24 }
 0x6bc   : > { %5740 = vmatprep.subr.bf16.mxu0 %v11701_v32  ;;  %5783 = vmatprep.subr.bf16.mxu1 %v11707_v44 }
 0x75e   : > { %v5464_v25 = vpop.f32.mrf.mxu0  ;;  %v5507_v51 = vpop.f32.mrf.mxu1 }
 0x75f   : > { %v5516_v6 = vadd.f32 %v5464_v25, %v4387_v37  ;;  %v13364_v25 = vld [vmem:[#allocation147_spill] sm:$0xff] }
 0x760   : > { %v5466_v35 = vpop.f32.mrf.mxu0  ;;  %v5509_v0 = vpop.f32.mrf.mxu1 }
 0x761   : > { %v7844_v53 = vmul.f32 -1.442695, %v5516_v6  ;;  %v5517_v55 = vadd.f32 %v5466_v35, %v4388_v61  ;;  %v4390_v6 = vadd.f32 %v4114_v49, %v13364_v25  ;;  %v13365_v61 = vld [vmem:[#allocation56_spill] sm:$0xff] }
 0x762   : > { %v5468_v5 = vpop.f32.mrf.mxu0  ;;  %v5511_v37 = vpop.f32.mrf.mxu1  ;;  %v4389_v35 = vadd.f32 %v4110_v39, %v13365_v61 }
 0x763   : > { %8538 = vpow2.f32 %v7844_v53  ;;  %v7846_v21 = vmul.f32 -1.442695, %v5517_v55  ;;  %v5520_v56 = vadd.f32 %v5468_v5, %v4391_v58  ;;  %v5519_v63 = vadd.f32 %v5509_v0, %v4390_v6  ;;  %v13366_v53 = vld [vmem:[#allocation149_spill] sm:$0xff]  ;;  %v13367_v5 = vld [vmem:[#allocation148_spill] sm:$0xff] }
 0x764   : > { %v5470_v57 = vpop.f32.mrf.mxu0  ;;  %v5513_v38 = vpop.f32.mrf.mxu1  ;;  %v4394_v55 = vadd.f32 %v4114_v49, %v13366_v53  ;;  %v5518_v36 = vadd.f32 %v5507_v51, %v4389_v35 }
 0x765   : > { %8540 = vpow2.f32 %v7846_v21  ;;  %v7845_v62 = vmul.f32 -1.442695, %v5520_v56  ;;  %v5521_v52 = vadd.f32 %v5470_v57, %v4392_v34  ;;  %v7848_v58 = vmul.f32 -1.442695, %v5519_v63 }
 0x766   : > { %v4393_v21 = vadd.f32 %v4110_v39, %v13367_v5  ;;  %v5523_v56 = vadd.f32 %v5513_v38, %v4394_v55 }
 0x767   : > { %8542 = vpow2.f32 %v7845_v62  ;;  %v7847_v14 = vmul.f32 -1.442695, %v5521_v52 }
 0x768   : > { %v5522_v34 = vadd.f32 %v5511_v37, %v4393_v21  ;;  %v7849_v62 = vmul.f32 -1.442695, %v5523_v56 }
 0x769   : > { %8544 = vpow2.f32 %v7847_v14 }
 0x76a   : > { %8546 = vtanh.f32 %v5518_v36 }
 0x76b   : > { %8548 = vpow2.f32 %v7848_v58 }
 0x770   : > { %v8539_v1 = vpop.eup %8538 }
 0x771   : > { %v5530_v46 = vadd.f32 1.0, %v8539_v1 }
 0x772   : > { %v8541_v57 = vpop.eup %8540 }
 0x773   : > { %8550 = vrcp.f32 %v5530_v46  ;;  %v5542_v52 = vadd.f32 1.0, %v8541_v57 }
 0x774   : > { %v8543_v0 = vpop.eup %8542  ;;  %8552 = vtanh.f32 %v5522_v34 }
 0x775   : > { %8554 = vrcp.f32 %v5542_v52  ;;  %v5531_v14 = vadd.f32 1.0, %v8543_v0 }
 0x776   : > { %v8545_v25 = vpop.eup %8544  ;;  %8556 = vpow2.f32 %v7849_v62 }
 0x777   : > { %8558 = vrcp.f32 %v5531_v14  ;;  %v5543_v51 = vadd.f32 1.0, %v8545_v25  ;;  %v8547_v49 = vpop.eup %8546 }
 0x778   : > { %v8549_v39 = vpop.eup %8548 }
 0x779   : > { %8560 = vrcp.f32 %v5543_v51  ;;  %v5556_v35 = vadd.f32 1.0, %v8549_v39 }
 0x77b   : > { %8562 = vrcp.f32 %v5556_v35 }
 0x780   : > { %v8551_v6 = vpop.eup %8550 }
 0x781   : > { %v8553_v37 = vpop.eup %8552  ;;  %v5564_v63 = vmul.f32 %v8551_v6, %v8547_v49 }
 0x782   : > { %v8555_v61 = vpop.eup %8554 }
 0x783   : > { %v8557_v38 = vpop.eup %8556  ;;  %v5562_v53 = vmul.f32 %v8555_v61, %v11823_v2 }
 0x784   : > { %v8559_v55 = vpop.eup %8558  ;;  %v5557_v21 = vadd.f32 1.0, %v8557_v38 }
 0x785   : > { %v11883_v36 = vadd.f32 %v5564_v63, %v5562_v53  ;;  %v5565_v58 = vmul.f32 %v8559_v55, %v8553_v37 }
 0x786   : > { %v8561_v5 = vpop.eup %8560 }
 0x787   : > { %8564 = vtanh.f32 %v11883_v36  ;;  %v5563_v56 = vmul.f32 %v8561_v5, %v11827_v54 }
 0x788   : > { %8566 = vrcp.f32 %v5557_v21  ;;  %v8563_v34 = vpop.eup %8562 }
 0x789   : > { %v11887_v1 = vadd.f32 %v5565_v58, %v5563_v56 }
 0x78b   : > { %8568 = vtanh.f32 %v11887_v1 }
 0x794   : > { %v8565_v2 = vpop.eup %8564 }
 0x795   : > { %v5570_v46 = vmul.f32 %v8565_v2, %v8563_v34  ;;  %v8567_v57 = vpop.eup %8566 }
 0x797   : > { %7850 = vst [vmem:[%s11512_s20 + $0x40] sm:$0xff] %v5570_v46 }
 0x798   : > { %v8569_v62 = vpop.eup %8568 }
 0x799   : > { %v5571_v52 = vmul.f32 %v8569_v62, %v8567_v57 }
 0x79b   : > { %7851 = vst [vmem:[%s11512_s20 + $0x48] sm:$0xff] %v5571_v52  ;;  %v5584_v0 = vpack.c.bf16 %v5571_v52, %v5570_v46 }
 0x79d   : > { %5618 = vmatmul.mubr.bf16.vlgmr.msra.gmra.mxu0 %v5584_v0  ;;  %5661 = vmatmul.mubr.bf16.vlgmr.msra.gmra.mxu1 %v5584_v0 }
 0x79e   : > { %5741 = vmatpush1.bf16.msra.mxu0 %v11519_v13  ;;  %5784 = vmatpush1.bf16.msra.mxu1 %v11525_v7  ;;  %v13368_v7 = vld [vmem:[#allocation60_spill] sm:$0xff] }
 0x79f   : > { %5742 = vmatprep.subr.bf16.mxu0 %v11531_v18  ;;  %5785 = vmatprep.subr.bf16.mxu1 %v11537_v45 }
 0x7a0   : > { %5772 = vmatprep.mubr.bf16.mxu0 %v13340_v47  ;;  %5815 = vmatprep.mubr.bf16.mxu1 %v13340_v47 }
 0x7a2   : > { %5743 = vmatpush1.bf16.msra.mxu0 %v11545_v33  ;;  %5786 = vmatpush1.bf16.msra.mxu1 %v11551_v22  ;;  %v13369_v33 = vld [vmem:[#allocation126_spill] sm:$0xff] }
 0x7a3   : > { %5744 = vmatprep.subr.bf16.mxu0 %v11557_v19  ;;  %5787 = vmatprep.subr.bf16.mxu1 %v11563_v4  ;;  %v13370_v19 = vld [vmem:[#allocation127_spill] sm:$0xff] }
 0x7a6   : > { %5745 = vmatpush1.bf16.msra.mxu0 %v11569_v29  ;;  %5788 = vmatpush1.bf16.msra.mxu1 %v11575_v9 }
 0x7a7   : > { %5746 = vmatprep.subr.bf16.mxu0 %v11581_v15  ;;  %5789 = vmatprep.subr.bf16.mxu1 %v11587_v31  ;;  %v13372_v15 = vld [vmem:[#allocation62_spill] sm:$0xff] }
 0x7aa   : > { %5747 = vmatpush1.bf16.msra.mxu0 %v11593_v17  ;;  %5790 = vmatpush1.bf16.msra.mxu1 %v11599_v11  ;;  %v13373_v11 = vld [vmem:[#allocation61_spill] sm:$0xff] }
 0x7ab   : > { %5748 = vmatprep.subr.bf16.mxu0 %v11605_v59  ;;  %5791 = vmatprep.subr.bf16.mxu1 %v11611_v20 }
 0x7ae   : > { %5749 = vmatpush1.bf16.msra.mxu0 %v11617_v41  ;;  %5792 = vmatpush1.bf16.msra.mxu1 %v11623_v60  ;;  %v13374_v41 = vld [vmem:[#allocation65_spill] sm:$0xff] }
 0x7af   : > { %5750 = vmatprep.subr.bf16.mxu0 %v11629_v27  ;;  %5793 = vmatprep.subr.bf16.mxu1 %v11635_v26  ;;  %v13375_v26 = vld [vmem:[#allocation64_spill] sm:$0xff] }
 0x7b2   : > { %5751 = vmatpush1.bf16.msra.mxu0 %v11641_v8  ;;  %5794 = vmatpush1.bf16.msra.mxu1 %v11647_v50 }
 0x7b3   : > { %5752 = vmatprep.subr.bf16.mxu0 %v11653_v16  ;;  %5795 = vmatprep.subr.bf16.mxu1 %v11659_v30 }
 0x7b6   : > { %5753 = vmatpush1.bf16.msra.mxu0 %v11665_v48  ;;  %5796 = vmatpush1.bf16.msra.mxu1 %v11671_v28 }
 0x7b7   : > { %5754 = vmatprep.subr.bf16.mxu0 %v11677_v10  ;;  %5797 = vmatprep.subr.bf16.mxu1 %v11683_v42 }
 0x7ba   : > { %5755 = vmatpush1.bf16.msra.mxu0 %v11689_v40  ;;  %5798 = vmatpush1.bf16.msra.mxu1 %v11695_v24 }
 0x7bb   : > { %5895 = vmatprep.subr.bf16.mxu0 %v11701_v32  ;;  %5938 = vmatprep.subr.bf16.mxu1 %v11707_v44  ;;  %v13371_v32 = vld [vmem:[#allocation68_spill] sm:$0xff] }
 0x85d   : > { %v5619_v13 = vpop.f32.mrf.mxu0  ;;  %v5662_v30 = vpop.f32.mrf.mxu1 }
 0x85e   : > { %v5671_v18 = vadd.f32 %v5619_v13, %v13368_v7  ;;  %v5673_v59 = vadd.f32 %v5662_v30, %v13373_v11  ;;  %v11953_v30 = vld [vmem:[%s12806_s4 + $0xe8] ss:$16 sps:$4 sm:$0xff]   ;;  %v12069_v11 = vld [vmem:[%s12806_s4 + $0x40] ss:$16 sps:$4 sm:$0xff]  }
 0x85f   : > { %v5621_v45 = vpop.f32.mrf.mxu0  ;;  %v5664_v42 = vpop.f32.mrf.mxu1 }
 0x860   : > { %v7852_v48 = vmul.f32 -1.442695, %v5671_v18  ;;  %v5672_v28 = vadd.f32 %v5621_v45, %v13369_v33  ;;  %v5674_v31 = vadd.f32 %v5664_v42, %v13372_v15  ;;  %v11959_v45 = vld [vmem:[%s12806_s4 + $0xc4] ss:$16 sps:$4 sm:$0xff]   ;;  %v11973_v33 = vld [vmem:[%s12806_s4 + $0xc0] ss:$16 sps:$4 sm:$0xff]  }
 0x861   : > { %v5623_v22 = vpop.f32.mrf.mxu0  ;;  %v5666_v44 = vpop.f32.mrf.mxu1  ;;  %v11997_v42 = vld [vmem:[%s12806_s4 + $0xa0] ss:$16 sps:$4 sm:$0xff]   ;;  %v12051_v15 = vld [vmem:[%s12806_s4 + $0x68] ss:$16 sps:$4 sm:$0xff]  }
 0x862   : > { %8570 = vpow2.f32 %v7852_v48  ;;  %v7854_v10 = vmul.f32 -1.442695, %v5672_v28  ;;  %v5675_v40 = vadd.f32 %v5623_v22, %v13370_v19  ;;  %v7856_v20 = vmul.f32 -1.442695, %v5674_v31  ;;  %v11965_v48 = vld [vmem:[%s12806_s4 + $0xcc] ss:$16 sps:$4 sm:$0xff]  }
 0x863   : > { %v5625_v4 = vpop.f32.mrf.mxu0  ;;  %v5668_v17 = vpop.f32.mrf.mxu1  ;;  %v5677_v8 = vadd.f32 %v5666_v44, %v13375_v26  ;;  %v11979_v28 = vld [vmem:[%s12806_s4 + $0xc8] ss:$16 sps:$4 sm:$0xff]   ;;  %v11985_v22 = vld [vmem:[%s12806_s4 + $0xa4] ss:$16 sps:$4 sm:$0xff]   ;;  %v12039_v44 = vld [vmem:[%s12806_s4 + $0x6c] ss:$16 sps:$4 sm:$0xff]  }
 0x864   : > { %8572 = vpow2.f32 %v7854_v10  ;;  %v7853_v24 = vmul.f32 -1.442695, %v5675_v40  ;;  %v5676_v29 = vadd.f32 %v5625_v4, %v13371_v32  ;;  %v5678_v60 = vadd.f32 %v5668_v17, %v13374_v41  ;;  %v11991_v10 = vld [vmem:[%s12806_s4 + $0xac] ss:$16 sps:$4 sm:$0xff]   ;;  %v12003_v19 = vld [vmem:[%s12806_s4 + $0xa8] ss:$16 sps:$4 sm:$0xff]  }
 0x865   : > { %v12009_v40 = vld [vmem:[%s12806_s4 + $0x84] ss:$16 sps:$4 sm:$0xff]   ;;  %v12015_v4 = vld [vmem:[%s12806_s4 + $0x8c] ss:$16 sps:$4 sm:$0xff]   ;;  %v12027_v32 = vld [vmem:[%s12806_s4 + $0x88] ss:$16 sps:$4 sm:$0xff]  }
 0x866   : > { %8574 = vpow2.f32 %v7853_v24  ;;  %v7855_v9 = vmul.f32 -1.442695, %v5676_v29  ;;  %v7857_v54 = vmul.f32 -1.442695, %v5678_v60  ;;  %v12021_v24 = vld [vmem:[%s12806_s4 + $0x80] ss:$16 sps:$4 sm:$0xff]  }
 0x867   : > { %v12033_v29 = vld [vmem:[%s12806_s4 + $0x64] ss:$16 sps:$4 sm:$0xff]   ;;  %v12063_v17 = vld [vmem:[%s12806_s4 + $0x4c] ss:$16 sps:$4 sm:$0xff]   ;;  %v12093_v60 = vld [vmem:[%s12806_s4 + $0x20] ss:$16 sps:$4 sm:$0xff]  }
 0x868   : > { %8576 = vpow2.f32 %v7855_v9  ;;  %v12045_v9 = vld [vmem:[%s12806_s4 + $0x60] ss:$16 sps:$4 sm:$0xff]   ;;  %v12057_v31 = vld [vmem:[%s12806_s4 + $0x44] ss:$16 sps:$4 sm:$0xff]   ;;  %v12087_v41 = vld [vmem:[%s12806_s4 + $0x2c] ss:$16 sps:$4 sm:$0xff]  }
 0x869   : > { %8578 = vtanh.f32 %v5673_v59  ;;  %v12075_v59 = vld [vmem:[%s12806_s4 + $0x48] ss:$16 sps:$4 sm:$0xff]   ;;  %v12105_v26 = vld [vmem:[%s12806_s4 + $0x4] ss:$16 sps:$4 sm:$0xff]  }
 0x86a   : > { %8580 = vpow2.f32 %v7856_v20  ;;  %v12081_v20 = vld [vmem:[%s12806_s4 + $0x24] ss:$16 sps:$4 sm:$0xff]  }
 0x86f   : > { %v8571_v27 = vpop.eup %8570 }
 0x870   : > { %v5685_v50 = vadd.f32 1.0, %v8571_v27  ;;  %v12099_v27 = vld [vmem:[%s12806_s4 + $0x28] ss:$16 sps:$4 sm:$0xff]  }
 0x871   : > { %v8573_v16 = vpop.eup %8572 }
 0x872   : > { %8582 = vrcp.f32 %v5685_v50  ;;  %v5697_v14 = vadd.f32 1.0, %v8573_v16  ;;  %v12117_v50 = vld [vmem:[%s12806_s4] ss:$16 sps:$4 sm:$0xff]   ;;  %v12123_v16 = vld [vmem:[%s12806_s4 + $0x8] ss:$16 sps:$4 sm:$0xff]  }
 0x873   : > { %v8575_v25 = vpop.eup %8574  ;;  %8584 = vtanh.f32 %v5677_v8  ;;  %v12111_v8 = vld [vmem:[%s12806_s4 + $0xc] ss:$16 sps:$4 sm:$0xff]  }
 0x874   : > { %8586 = vrcp.f32 %v5697_v14  ;;  %v5686_v51 = vadd.f32 1.0, %v8575_v25  ;;  %v12135_v14 = vld [vmem:[%s12806_s4 + $0xec] ss:$16 sps:$4 sm:$0xff]  }
 0x875   : > { %v8577_v49 = vpop.eup %8576  ;;  %8588 = vpow2.f32 %v7857_v54  ;;  %v12129_v54 = vld [vmem:[%s12806_s4 + $0xe4] ss:$16 sps:$4 sm:$0xff]  }
 0x876   : > { %8590 = vrcp.f32 %v5686_v51  ;;  %v5698_v39 = vadd.f32 1.0, %v8577_v49  ;;  %v8579_v6 = vpop.eup %8578  ;;  %v13376_v51 = vld [vmem:[#allocation66_spill] sm:$0xff] }
 0x877   : > { %v8581_v37 = vpop.eup %8580 }
 0x878   : > { %8592 = vrcp.f32 %v5698_v39  ;;  %v5711_v53 = vadd.f32 1.0, %v8581_v37 }
 0x87a   : > { %8594 = vrcp.f32 %v5711_v53 }
 0x87f   : > { %v8583_v63 = vpop.eup %8582 }
 0x880   : > { %v8585_v61 = vpop.eup %8584  ;;  %v5719_v35 = vmul.f32 %v8583_v63, %v8579_v6  ;;  %v13377_v63 = vld [vmem:[#allocation67_spill] sm:$0xff] }
 0x881   : > { %v8587_v38 = vpop.eup %8586 }
 0x882   : > { %v8589_v55 = vpop.eup %8588  ;;  %v5717_v58 = vmul.f32 %v8587_v38, %v11883_v36 }
 0x883   : > { %v8591_v5 = vpop.eup %8590  ;;  %v5712_v2 = vadd.f32 1.0, %v8589_v55  ;;  %v13378_v55 = vld [vmem:[#allocation69_spill] sm:$0xff] }
 0x884   : > { %v11935_v21 = vadd.f32 %v5719_v35, %v5717_v58  ;;  %v5720_v56 = vmul.f32 %v8591_v5, %v8585_v61 }
 0x885   : > { %v8593_v34 = vpop.eup %8592 }
 0x886   : > { %8596 = vtanh.f32 %v11935_v21  ;;  %v5718_v46 = vmul.f32 %v8593_v34, %v11887_v1  ;;  %v11947_v1 = vld [vmem:[%s12806_s4 + $0xe0] ss:$16 sps:$4 sm:$0xff]   ;;  %v13379_v34 = vld [vmem:[#allocation73_spill] sm:$0xff] }
 0x887   : > { %8598 = vrcp.f32 %v5712_v2  ;;  %v8595_v62 = vpop.eup %8594 }
 0x888   : > { %v11939_v57 = vadd.f32 %v5720_v56, %v5718_v46 }
 0x88a   : > { %8600 = vtanh.f32 %v11939_v57 }
 0x893   : > { %v8597_v36 = vpop.eup %8596 }
 0x894   : > { %v5725_v52 = vmul.f32 %v8597_v36, %v8595_v62  ;;  %v8599_v0 = vpop.eup %8598  ;;  %v13380_v36 = vld [vmem:[#allocation151_spill] sm:$0xff] }
 0x896   : > { %7858 = vst [vmem:[%s11512_s20 + $0x50] sm:$0xff] %v5725_v52 }
 0x897   : > { %v8601_v13 = vpop.eup %8600 }
 0x898   : > { %v5726_v7 = vmul.f32 %v8601_v13, %v8599_v0  ;;  %v13381_v13 = vld [vmem:[#allocation150_spill] sm:$0xff] }
 0x89a   : > { %7859 = vst [vmem:[%s11512_s20 + $0x58] sm:$0xff] %v5726_v7  ;;  %v5739_v18 = vpack.c.bf16 %v5726_v7, %v5725_v52 }
 0x89c   : > { %5773 = vmatmul.mubr.bf16.vlgmr.msra.gmra.mxu0 %v5739_v18  ;;  %5816 = vmatmul.mubr.bf16.vlgmr.msra.gmra.mxu1 %v5739_v18 }
 0x89d   : > { %5896 = vmatpush1.bf16.msra.mxu0 %v11947_v1  ;;  %5939 = vmatpush1.bf16.msra.mxu1 %v11953_v30 }
 0x89e   : > { %5897 = vmatprep.subr.bf16.mxu0 %v11959_v45  ;;  %5940 = vmatprep.subr.bf16.mxu1 %v11965_v48 }
 0x89f   : > { %5927 = vmatprep.mubr.bf16.mxu0 %v13340_v47  ;;  %5970 = vmatprep.mubr.bf16.mxu1 %v13340_v47 }
 0x8a1   : > { %5898 = vmatpush1.bf16.msra.mxu0 %v11973_v33  ;;  %5941 = vmatpush1.bf16.msra.mxu1 %v11979_v28 }
 0x8a2   : > { %5899 = vmatprep.subr.bf16.mxu0 %v11985_v22  ;;  %5942 = vmatprep.subr.bf16.mxu1 %v11991_v10 }
 0x8a5   : > { %5900 = vmatpush1.bf16.msra.mxu0 %v11997_v42  ;;  %5943 = vmatpush1.bf16.msra.mxu1 %v12003_v19 }
 0x8a6   : > { %5901 = vmatprep.subr.bf16.mxu0 %v12009_v40  ;;  %5944 = vmatprep.subr.bf16.mxu1 %v12015_v4 }
 0x8a9   : > { %5902 = vmatpush1.bf16.msra.mxu0 %v12021_v24  ;;  %5945 = vmatpush1.bf16.msra.mxu1 %v12027_v32 }
 0x8aa   : > { %5903 = vmatprep.subr.bf16.mxu0 %v12033_v29  ;;  %5946 = vmatprep.subr.bf16.mxu1 %v12039_v44 }
 0x8ad   : > { %5904 = vmatpush1.bf16.msra.mxu0 %v12045_v9  ;;  %5947 = vmatpush1.bf16.msra.mxu1 %v12051_v15 }
 0x8ae   : > { %5905 = vmatprep.subr.bf16.mxu0 %v12057_v31  ;;  %5948 = vmatprep.subr.bf16.mxu1 %v12063_v17 }
 0x8b1   : > { %5906 = vmatpush1.bf16.msra.mxu0 %v12069_v11  ;;  %5949 = vmatpush1.bf16.msra.mxu1 %v12075_v59 }
 0x8b2   : > { %5907 = vmatprep.subr.bf16.mxu0 %v12081_v20  ;;  %5950 = vmatprep.subr.bf16.mxu1 %v12087_v41 }
 0x8b5   : > { %5908 = vmatpush1.bf16.msra.mxu0 %v12093_v60  ;;  %5951 = vmatpush1.bf16.msra.mxu1 %v12099_v27 }
 0x8b6   : > { %5909 = vmatprep.subr.bf16.mxu0 %v12105_v26  ;;  %5952 = vmatprep.subr.bf16.mxu1 %v12111_v8 }
 0x8b9   : > { %5910 = vmatpush1.bf16.msra.mxu0 %v12117_v50  ;;  %5953 = vmatpush1.bf16.msra.mxu1 %v12123_v16 }
 0x8ba   : > { %6050 = vmatprep.subr.bf16.mxu0 %v12129_v54  ;;  %6093 = vmatprep.subr.bf16.mxu1 %v12135_v14 }
 0x95c   : > { %v5774_v25 = vpop.f32.mrf.mxu0  ;;  %v5817_v39 = vpop.f32.mrf.mxu1 }
 0x95d   : > { %v5826_v49 = vadd.f32 %v5774_v25, %v13376_v51  ;;  %v5828_v7 = vadd.f32 %v5817_v39, %v13381_v13  ;;  %v13382_v25 = vld [vmem:[#allocation70_spill] sm:$0xff] }
 0x95e   : > { %v5776_v6 = vpop.f32.mrf.mxu0  ;;  %v5819_v53 = vpop.f32.mrf.mxu1 }
 0x95f   : > { %v7860_v37 = vmul.f32 -1.442695, %v5826_v49  ;;  %v5827_v61 = vadd.f32 %v5776_v6, %v13377_v63  ;;  %v5829_v52 = vadd.f32 %v5819_v53, %v13380_v36  ;;  %v13383_v6 = vld [vmem:[#allocation152_spill] sm:$0xff] }
 0x960   : > { %v5778_v35 = vpop.f32.mrf.mxu0  ;;  %v5821_v46 = vpop.f32.mrf.mxu1 }
 0x961   : > { %8602 = vpow2.f32 %v7860_v37  ;;  %v7862_v38 = vmul.f32 -1.442695, %v5827_v61  ;;  %v5830_v58 = vadd.f32 %v5778_v35, %v13378_v55  ;;  %v7864_v18 = vmul.f32 -1.442695, %v5829_v52 }
 0x962   : > { %v5780_v5 = vpop.f32.mrf.mxu0  ;;  %v5823_v0 = vpop.f32.mrf.mxu1  ;;  %v5832_v37 = vadd.f32 %v5821_v46, %v13383_v6 }
 0x963   : > { %8604 = vpow2.f32 %v7862_v38  ;;  %v7861_v56 = vmul.f32 -1.442695, %v5830_v58  ;;  %v5831_v2 = vadd.f32 %v5780_v5, %v13379_v34  ;;  %v5833_v51 = vadd.f32 %v5823_v0, %v13382_v25 }
 0x965   : > { %8606 = vpow2.f32 %v7861_v56  ;;  %v7863_v62 = vmul.f32 -1.442695, %v5831_v2  ;;  %v7865_v35 = vmul.f32 -1.442695, %v5833_v51 }
 0x967   : > { %8608 = vpow2.f32 %v7863_v62 }
 0x968   : > { %8610 = vtanh.f32 %v5828_v7 }
 0x969   : > { %8612 = vpow2.f32 %v7864_v18 }
 0x96e   : > { %v8603_v49 = vpop.eup %8602 }
 0x96f   : > { %v5840_v63 = vadd.f32 1.0, %v8603_v49 }
 0x970   : > { %v8605_v61 = vpop.eup %8604 }
 0x971   : > { %8614 = vrcp.f32 %v5840_v63  ;;  %v5852_v38 = vadd.f32 1.0, %v8605_v61 }
 0x972   : > { %v8607_v55 = vpop.eup %8606  ;;  %8616 = vtanh.f32 %v5832_v37 }
 0x973   : > { %8618 = vrcp.f32 %v5852_v38  ;;  %v5841_v53 = vadd.f32 1.0, %v8607_v55 }
 0x974   : > { %v8609_v58 = vpop.eup %8608  ;;  %8620 = vpow2.f32 %v7865_v35 }
 0x975   : > { %8622 = vrcp.f32 %v5841_v53  ;;  %v5853_v39 = vadd.f32 1.0, %v8609_v58  ;;  %v8611_v5 = vpop.eup %8610  ;;  %v13384_v53 = vld [vmem:[#allocation71_spill] sm:$0xff] }
 0x976   : > { %v8613_v56 = vpop.eup %8612 }
 0x977   : > { %8624 = vrcp.f32 %v5853_v39  ;;  %v5866_v36 = vadd.f32 1.0, %v8613_v56 }
 0x979   : > { %8626 = vrcp.f32 %v5866_v36 }
 0x97e   : > { %v8615_v34 = vpop.eup %8614 }
 0x97f   : > { %v8617_v2 = vpop.eup %8616  ;;  %v5874_v46 = vmul.f32 %v8615_v34, %v8611_v5  ;;  %v13385_v34 = vld [vmem:[#allocation72_spill] sm:$0xff] }
 0x980   : > { %v8619_v62 = vpop.eup %8618 }
 0x981   : > { %v8621_v52 = vpop.eup %8620  ;;  %v5872_v0 = vmul.f32 %v8619_v62, %v11935_v21 }
 0x982   : > { %v8623_v13 = vpop.eup %8622  ;;  %v5867_v51 = vadd.f32 1.0, %v8621_v52  ;;  %v13386_v52 = vld [vmem:[#allocation74_spill] sm:$0xff] }
 0x983   : > { %v12147_v7 = vadd.f32 %v5874_v46, %v5872_v0  ;;  %v5875_v18 = vmul.f32 %v8623_v13, %v8617_v2 }
 0x984   : > { %v8625_v25 = vpop.eup %8624 }
 0x985   : > { %8628 = vtanh.f32 %v12147_v7  ;;  %v5873_v49 = vmul.f32 %v8625_v25, %v11939_v57  ;;  %v13387_v25 = vld [vmem:[#allocation156_spill] sm:$0xff] }
 0x986   : > { %8630 = vrcp.f32 %v5867_v51  ;;  %v8627_v37 = vpop.eup %8626 }
 0x987   : > { %v12151_v6 = vadd.f32 %v5875_v18, %v5873_v49 }
 0x989   : > { %8632 = vtanh.f32 %v12151_v6 }
 0x992   : > { %v8629_v21 = vpop.eup %8628 }
 0x993   : > { %v5880_v63 = vmul.f32 %v8629_v21, %v8627_v37  ;;  %v8631_v61 = vpop.eup %8630  ;;  %v13388_v21 = vld [vmem:[#allocation128_spill] sm:$0xff] }
 0x995   : > { %7866 = vst [vmem:[%s11512_s20 + $0x60] sm:$0xff] %v5880_v63 }
 0x996   : > { %v8633_v35 = vpop.eup %8632 }
 0x997   : > { %v5881_v38 = vmul.f32 %v8633_v35, %v8631_v61  ;;  %v13389_v35 = vld [vmem:[#allocation153_spill] sm:$0xff] }
 0x999   : > { %7867 = vst [vmem:[%s11512_s20 + $0x68] sm:$0xff] %v5881_v38  ;;  %v5894_v55 = vpack.c.bf16 %v5881_v38, %v5880_v63 }
 0x99b   : > { %5928 = vmatmul.mubr.bf16.vlgmr.msra.gmra.mxu0 %v5894_v55  ;;  %5971 = vmatmul.mubr.bf16.vlgmr.msra.gmra.mxu1 %v5894_v55 }
 0x99c   : > { %6051 = vmatpush1.bf16.msra.mxu0 %v11947_v1  ;;  %6094 = vmatpush1.bf16.msra.mxu1 %v11953_v30 }
 0x99d   : > { %6052 = vmatprep.subr.bf16.mxu0 %v11959_v45  ;;  %6095 = vmatprep.subr.bf16.mxu1 %v11965_v48 }
 0x99e   : > { %6082 = vmatprep.mubr.bf16.mxu0 %v13340_v47  ;;  %6125 = vmatprep.mubr.bf16.mxu1 %v13340_v47 }
 0x9a0   : > { %6053 = vmatpush1.bf16.msra.mxu0 %v11973_v33  ;;  %6096 = vmatpush1.bf16.msra.mxu1 %v11979_v28 }
 0x9a1   : > { %6054 = vmatprep.subr.bf16.mxu0 %v11985_v22  ;;  %6097 = vmatprep.subr.bf16.mxu1 %v11991_v10 }
 0x9a4   : > { %6055 = vmatpush1.bf16.msra.mxu0 %v11997_v42  ;;  %6098 = vmatpush1.bf16.msra.mxu1 %v12003_v19 }
 0x9a5   : > { %6056 = vmatprep.subr.bf16.mxu0 %v12009_v40  ;;  %6099 = vmatprep.subr.bf16.mxu1 %v12015_v4 }
 0x9a8   : > { %6057 = vmatpush1.bf16.msra.mxu0 %v12021_v24  ;;  %6100 = vmatpush1.bf16.msra.mxu1 %v12027_v32 }
 0x9a9   : > { %6058 = vmatprep.subr.bf16.mxu0 %v12033_v29  ;;  %6101 = vmatprep.subr.bf16.mxu1 %v12039_v44 }
 0x9ac   : > { %6059 = vmatpush1.bf16.msra.mxu0 %v12045_v9  ;;  %6102 = vmatpush1.bf16.msra.mxu1 %v12051_v15 }
 0x9ad   : > { %6060 = vmatprep.subr.bf16.mxu0 %v12057_v31  ;;  %6103 = vmatprep.subr.bf16.mxu1 %v12063_v17 }
 0x9b0   : > { %6061 = vmatpush1.bf16.msra.mxu0 %v12069_v11  ;;  %6104 = vmatpush1.bf16.msra.mxu1 %v12075_v59 }
 0x9b1   : > { %6062 = vmatprep.subr.bf16.mxu0 %v12081_v20  ;;  %6105 = vmatprep.subr.bf16.mxu1 %v12087_v41 }
 0x9b4   : > { %6063 = vmatpush1.bf16.msra.mxu0 %v12093_v60  ;;  %6106 = vmatpush1.bf16.msra.mxu1 %v12099_v27 }
 0x9b5   : > { %6064 = vmatprep.subr.bf16.mxu0 %v12105_v26  ;;  %6107 = vmatprep.subr.bf16.mxu1 %v12111_v8 }
 0x9b8   : > { %6065 = vmatpush1.bf16.msra.mxu0 %v12117_v50  ;;  %6108 = vmatpush1.bf16.msra.mxu1 %v12123_v16 }
 0x9b9   : > { %6205 = vmatprep.subr.bf16.mxu0 %v12129_v54  ;;  %6248 = vmatprep.subr.bf16.mxu1 %v12135_v14 }
 0xa5b   : > { %v5929_v57 = vpop.f32.mrf.mxu0  ;;  %v5972_v39 = vpop.f32.mrf.mxu1 }
 0xa5c   : > { %v5981_v58 = vadd.f32 %v5929_v57, %v13384_v53  ;;  %v5983_v38 = vadd.f32 %v5972_v39, %v13389_v35  ;;  %v13390_v57 = vld [vmem:[#allocation157_spill] sm:$0xff] }
 0xa5d   : > { %v5931_v5 = vpop.f32.mrf.mxu0  ;;  %v5974_v36 = vpop.f32.mrf.mxu1 }
 0xa5e   : > { %v7868_v56 = vmul.f32 -1.442695, %v5981_v58  ;;  %v5982_v2 = vadd.f32 %v5931_v5, %v13385_v34  ;;  %v5984_v63 = vadd.f32 %v5974_v36, %v13388_v21  ;;  %v13391_v5 = vld [vmem:[#allocation154_spill] sm:$0xff] }
 0xa5f   : > { %v5933_v46 = vpop.f32.mrf.mxu0  ;;  %v5976_v49 = vpop.f32.mrf.mxu1 }
 0xa60   : > { %8634 = vpow2.f32 %v7868_v56  ;;  %v7870_v62 = vmul.f32 -1.442695, %v5982_v2  ;;  %v5985_v0 = vadd.f32 %v5933_v46, %v13386_v52  ;;  %v7872_v55 = vmul.f32 -1.442695, %v5984_v63 }
 0xa61   : > { %v5935_v13 = vpop.f32.mrf.mxu0  ;;  %v5978_v61 = vpop.f32.mrf.mxu1  ;;  %v5987_v56 = vadd.f32 %v5976_v49, %v13391_v5 }
 0xa62   : > { %8636 = vpow2.f32 %v7870_v62  ;;  %v7869_v18 = vmul.f32 -1.442695, %v5985_v0  ;;  %v5986_v51 = vadd.f32 %v5935_v13, %v13387_v25  ;;  %v5988_v53 = vadd.f32 %v5978_v61, %v13390_v57 }
 0xa64   : > { %8638 = vpow2.f32 %v7869_v18  ;;  %v7871_v37 = vmul.f32 -1.442695, %v5986_v51  ;;  %v7873_v46 = vmul.f32 -1.442695, %v5988_v53 }
 0xa66   : > { %8640 = vpow2.f32 %v7871_v37 }
 0xa67   : > { %8642 = vtanh.f32 %v5983_v38 }
 0xa68   : > { %8644 = vpow2.f32 %v7872_v55 }
 0xa6d   : > { %v8635_v58 = vpop.eup %8634 }
 0xa6e   : > { %v5995_v34 = vadd.f32 1.0, %v8635_v58 }
 0xa6f   : > { %v8637_v2 = vpop.eup %8636 }
 0xa70   : > { %8646 = vrcp.f32 %v5995_v34  ;;  %v6007_v62 = vadd.f32 1.0, %v8637_v2 }
 0xa71   : > { %v8639_v52 = vpop.eup %8638  ;;  %8648 = vtanh.f32 %v5987_v56 }
 0xa72   : > { %8650 = vrcp.f32 %v6007_v62  ;;  %v5996_v36 = vadd.f32 1.0, %v8639_v52 }
 0xa73   : > { %v8641_v0 = vpop.eup %8640  ;;  %8652 = vpow2.f32 %v7873_v46 }
 0xa74   : > { %8654 = vrcp.f32 %v5996_v36  ;;  %v6008_v39 = vadd.f32 1.0, %v8641_v0  ;;  %v8643_v13 = vpop.eup %8642 }
 0xa75   : > { %v8645_v18 = vpop.eup %8644 }
 0xa76   : > { %8656 = vrcp.f32 %v6008_v39  ;;  %v6021_v21 = vadd.f32 1.0, %v8645_v18  ;;  %v13393_v39 = vld [vmem:[#allocation75_spill] sm:$0xff] }
 0xa78   : > { %8658 = vrcp.f32 %v6021_v21 }
 0xa7d   : > { %v8647_v25 = vpop.eup %8646 }
 0xa7e   : > { %v8649_v51 = vpop.eup %8648  ;;  %v6029_v49 = vmul.f32 %v8647_v25, %v8643_v13 }
 0xa7f   : > { %v8651_v37 = vpop.eup %8650 }
 0xa80   : > { %v8653_v63 = vpop.eup %8652  ;;  %v6027_v61 = vmul.f32 %v8651_v37, %v12147_v7 }
 0xa81   : > { %v8655_v35 = vpop.eup %8654  ;;  %v6022_v53 = vadd.f32 1.0, %v8653_v63 }
 0xa82   : > { %v12199_v38 = vadd.f32 %v6029_v49, %v6027_v61  ;;  %v6030_v55 = vmul.f32 %v8655_v35, %v8649_v51  ;;  %v13394_v49 = vld [vmem:[#allocation76_spill] sm:$0xff]  ;;  %v13395_v35 = vld [vmem:[#allocation77_spill] sm:$0xff] }
 0xa83   : > { %v8657_v57 = vpop.eup %8656 }
 0xa84   : > { %8660 = vtanh.f32 %v12199_v38  ;;  %v6028_v58 = vmul.f32 %v8657_v57, %v12151_v6  ;;  %v13392_v6 = vld [vmem:[#allocation83_spill] sm:$0xff]  ;;  %v13396_v57 = vld [vmem:[#allocation78_spill] sm:$0xff] }
 0xa85   : > { %8662 = vrcp.f32 %v6022_v53  ;;  %v8659_v56 = vpop.eup %8658  ;;  %v4166_v36 = vrot.slane %v13392_v6, %v13355_v23  ;;  %v4170_v0 = vrot.slane %v13392_v6, %v13357_v3  ;;  %v13397_v53 = vld [vmem:[#allocation129_spill] sm:$0xff] }
 0xa86   : > { %v12203_v5 = vadd.f32 %v6030_v55, %v6028_v58  ;;  %v2995_v58 = vadd.f32 %v13397_v53, %v13396_v57  ;;  %v13402_v57 = vld [vmem:[#allocation155_spill] sm:$0xff] }
 0xa87   : > { %v4419_v13 = vadd.f32 %v4166_v36, %v13393_v39  ;;  %v4420_v37 = vadd.f32 %v4170_v0, %v13394_v49  ;;  %v4423_v55 = vadd.f32 %v4166_v36, %v13395_v35  ;;  %v4174_v36 = vrot.slane %v13392_v6, %v13363_v43  ;;  %v13401_v35 = vld [vmem:[#allocation158_spill] sm:$0xff] }
 0xa88   : > { %8664 = vtanh.f32 %v12203_v5 }
 0xa89   : > { %v4421_v53 = vadd.f32 %v4174_v36, %v13402_v57 }
 0xa91   : > { %v8661_v7 = vpop.eup %8660 }
 0xa92   : > { %v6035_v34 = vmul.f32 %v8661_v7, %v8659_v56  ;;  %v8663_v2 = vpop.eup %8662 }
 0xa94   : > { %7874 = vst [vmem:[%s11512_s20 + $0x70] sm:$0xff] %v6035_v34 }
 0xa95   : > { %v8665_v46 = vpop.eup %8664 }
 0xa96   : > { %v6036_v62 = vmul.f32 %v8665_v46, %v8663_v2  ;;  %v13398_v46 = vld [vmem:[#allocation18_spill] sm:$0xff] }
 0xa98   : > { %7875 = vst [vmem:[%s11512_s20 + $0x78] sm:$0xff] %v6036_v62  ;;  %v6049_v52 = vpack.c.bf16 %v6036_v62, %v6035_v34  ;;  %v4424_v62 = vadd.f32 %v4170_v0, %v13398_v46 }
 0xa9a   : > { %6083 = vmatmul.mubr.bf16.vlgmr.msra.gmra.mxu0 %v6049_v52  ;;  %6126 = vmatmul.mubr.bf16.vlgmr.msra.gmra.mxu1 %v6049_v52  ;;  %v4178_v52 = vrot.slane %v13392_v6, %v13362_v12 }
 0xa9b   : > { %6206 = vmatpush1.bf16.msra.mxu0 %v11947_v1  ;;  %6249 = vmatpush1.bf16.msra.mxu1 %v11953_v30 }
 0xa9c   : > { %6207 = vmatprep.subr.bf16.mxu0 %v11959_v45  ;;  %6250 = vmatprep.subr.bf16.mxu1 %v11965_v48 }
 0xa9d   : > { %6237 = vmatprep.mubr.bf16.mxu0 %v13340_v47  ;;  %6280 = vmatprep.mubr.bf16.mxu1 %v13340_v47 }
 0xa9f   : > { %6208 = vmatpush1.bf16.msra.mxu0 %v11973_v33  ;;  %6251 = vmatpush1.bf16.msra.mxu1 %v11979_v28 }
 0xaa0   : > { %6209 = vmatprep.subr.bf16.mxu0 %v11985_v22  ;;  %6252 = vmatprep.subr.bf16.mxu1 %v11991_v10 }
 0xaa3   : > { %6210 = vmatpush1.bf16.msra.mxu0 %v11997_v42  ;;  %6253 = vmatpush1.bf16.msra.mxu1 %v12003_v19 }
 0xaa4   : > { %6211 = vmatprep.subr.bf16.mxu0 %v12009_v40  ;;  %6254 = vmatprep.subr.bf16.mxu1 %v12015_v4 }
 0xaa7   : > { %6212 = vmatpush1.bf16.msra.mxu0 %v12021_v24  ;;  %6255 = vmatpush1.bf16.msra.mxu1 %v12027_v32 }
 0xaa8   : > { %6213 = vmatprep.subr.bf16.mxu0 %v12033_v29  ;;  %6256 = vmatprep.subr.bf16.mxu1 %v12039_v44 }
 0xaab   : > { %6214 = vmatpush1.bf16.msra.mxu0 %v12045_v9  ;;  %6257 = vmatpush1.bf16.msra.mxu1 %v12051_v15 }
 0xaac   : > { %6215 = vmatprep.subr.bf16.mxu0 %v12057_v31  ;;  %6258 = vmatprep.subr.bf16.mxu1 %v12063_v17 }
 0xaaf   : > { %6216 = vmatpush1.bf16.msra.mxu0 %v12069_v11  ;;  %6259 = vmatpush1.bf16.msra.mxu1 %v12075_v59 }
 0xab0   : > { %6217 = vmatprep.subr.bf16.mxu0 %v12081_v20  ;;  %6260 = vmatprep.subr.bf16.mxu1 %v12087_v41 }
 0xab3   : > { %6218 = vmatpush1.bf16.msra.mxu0 %v12093_v60  ;;  %6261 = vmatpush1.bf16.msra.mxu1 %v12099_v27 }
 0xab4   : > { %6219 = vmatprep.subr.bf16.mxu0 %v12105_v26  ;;  %6262 = vmatprep.subr.bf16.mxu1 %v12111_v8 }
 0xab7   : > { %6220 = vmatpush1.bf16.msra.mxu0 %v12117_v50  ;;  %6263 = vmatpush1.bf16.msra.mxu1 %v12123_v16 }
 0xab8   : > { %6360 = vmatprep.subr.bf16.mxu0 %v12129_v54  ;;  %6403 = vmatprep.subr.bf16.mxu1 %v12135_v14 }
 0xb5a   : > { %v6084_v18 = vpop.f32.mrf.mxu0  ;;  %v6127_v51 = vpop.f32.mrf.mxu1 }
 0xb5b   : > { %v6136_v25 = vadd.f32 %v6084_v18, %v4419_v13 }
 0xb5c   : > { %v6086_v21 = vpop.f32.mrf.mxu0  ;;  %v6129_v34 = vpop.f32.mrf.mxu1 }
 0xb5d   : > { %v7876_v63 = vmul.f32 -1.442695, %v6136_v25  ;;  %v6137_v61 = vadd.f32 %v6086_v21, %v4420_v37  ;;  %v13399_v25 = vld [vmem:[#allocation130_spill] sm:$0xff] }
 0xb5e   : > { %v6088_v56 = vpop.f32.mrf.mxu0  ;;  %v3188_v49 = vadd.f32 %v13399_v25, %v2995_v58  ;;  %v6131_v37 = vpop.f32.mrf.mxu1 }
 0xb5f   : > { %8666 = vpow2.f32 %v7876_v63  ;;  %v7878_v7 = vmul.f32 -1.442695, %v6137_v61  ;;  %v6140_v2 = vadd.f32 %v6088_v56, %v4423_v55  ;;  %v13400_v63 = vld [vmem:[#allocation160_spill] sm:$0xff]  ;;  %v4422_v55 = vadd.f32 %v4178_v52, %v13401_v35 }
 0xb60   : > { %v6090_v39 = vpop.f32.mrf.mxu0  ;;  %v3797_v61 = vadd.f32 %v13400_v63, %v3188_v49  ;;  %v6133_v56 = vpop.f32.mrf.mxu1 }
 0xb61   : > { %8668 = vpow2.f32 %v7878_v7  ;;  %v7877_v13 = vmul.f32 -1.442695, %v6140_v2  ;;  %v6141_v18 = vadd.f32 %v6090_v39, %v4424_v62  ;;  %v6139_v0 = vadd.f32 %v6129_v34, %v4422_v55  ;;  %v13403_v62 = vld [vmem:[#allocation159_spill] sm:$0xff] }
 0xb62   : > { %v4426_v7 = vadd.f32 %v4178_v52, %v3797_v61  ;;  %v6138_v2 = vadd.f32 %v6127_v51, %v4421_v53  ;;  %v4425_v58 = vadd.f32 %v4174_v36, %v13403_v62 }
 0xb63   : > { %8670 = vpow2.f32 %v7877_v13  ;;  %v7879_v21 = vmul.f32 -1.442695, %v6141_v18  ;;  %v7880_v46 = vmul.f32 -1.442695, %v6139_v0 }
 0xb64   : > { %v6143_v39 = vadd.f32 %v6133_v56, %v4426_v7  ;;  %v6142_v6 = vadd.f32 %v6131_v37, %v4425_v58 }
 0xb65   : > { %8672 = vpow2.f32 %v7879_v21 }
 0xb66   : > { %8674 = vtanh.f32 %v6138_v2  ;;  %v7881_v49 = vmul.f32 -1.442695, %v6143_v39 }
 0xb67   : > { %8676 = vpow2.f32 %v7880_v46 }
 0xb6c   : > { %v8667_v25 = vpop.eup %8666 }
 0xb6d   : > { %v6150_v13 = vadd.f32 1.0, %v8667_v25 }
 0xb6e   : > { %v8669_v18 = vpop.eup %8668 }
 0xb6f   : > { %8678 = vrcp.f32 %v6150_v13  ;;  %v6162_v63 = vadd.f32 1.0, %v8669_v18 }
 0xb70   : > { %v8671_v21 = vpop.eup %8670  ;;  %8680 = vtanh.f32 %v6142_v6 }
 0xb71   : > { %8682 = vrcp.f32 %v6162_v63  ;;  %v6151_v34 = vadd.f32 1.0, %v8671_v21 }
 0xb72   : > { %v8673_v35 = vpop.eup %8672  ;;  %8684 = vpow2.f32 %v7881_v49 }
 0xb73   : > { %8686 = vrcp.f32 %v6151_v34  ;;  %v6163_v51 = vadd.f32 1.0, %v8673_v35  ;;  %v8675_v52 = vpop.eup %8674  ;;  %v13404_v34 = vld [vmem:[#allocation20_spill] sm:$0xff] }
 0xb74   : > { %v8677_v36 = vpop.eup %8676 }
 0xb75   : > { %8688 = vrcp.f32 %v6163_v51  ;;  %v6176_v57 = vadd.f32 1.0, %v8677_v36 }
 0xb77   : > { %8690 = vrcp.f32 %v6176_v57 }
 0xb7c   : > { %v8679_v61 = vpop.eup %8678 }
 0xb7d   : > { %v8681_v37 = vpop.eup %8680  ;;  %v6184_v55 = vmul.f32 %v8679_v61, %v8675_v52  ;;  %v13405_v61 = vld [vmem:[#allocation131_spill] sm:$0xff] }
 0xb7e   : > { %v8683_v0 = vpop.eup %8682 }
 0xb7f   : > { %v8685_v53 = vpop.eup %8684  ;;  %v6182_v56 = vmul.f32 %v8683_v0, %v12199_v38 }
 0xb80   : > { %v8687_v7 = vpop.eup %8686  ;;  %v6177_v58 = vadd.f32 1.0, %v8685_v53  ;;  %v13406_v53 = vld [vmem:[#allocation82_spill] sm:$0xff] }
 0xb81   : > { %v12262_v2 = vadd.f32 %v6184_v55, %v6182_v56  ;;  %v6185_v46 = vmul.f32 %v8687_v7, %v8681_v37 }
 0xb82   : > { %v8689_v62 = vpop.eup %8688 }
 0xb83   : > { %8692 = vtanh.f32 %v12262_v2  ;;  %v6183_v39 = vmul.f32 %v8689_v62, %v12203_v5  ;;  %v13407_v62 = vld [vmem:[#allocation21_spill] sm:$0xff] }
 0xb84   : > { %8694 = vrcp.f32 %v6177_v58  ;;  %v8691_v6 = vpop.eup %8690 }
 0xb85   : > { %v12266_v25 = vadd.f32 %v6185_v46, %v6183_v39 }
 0xb87   : > { %8696 = vtanh.f32 %v12266_v25 }
 0xb90   : > { %v8693_v38 = vpop.eup %8692 }
 0xb91   : > { %v6190_v13 = vmul.f32 %v8693_v38, %v8691_v6  ;;  %v8695_v18 = vpop.eup %8694  ;;  %v13408_v38 = vld [vmem:[#allocation81_spill] sm:$0xff] }
 0xb93   : > { %7882 = vst [vmem:[%s11512_s20 + $0x80] sm:$0xff] %v6190_v13 }
 0xb94   : > { %v8697_v49 = vpop.eup %8696 }
 0xb95   : > { %v6191_v63 = vmul.f32 %v8697_v49, %v8695_v18  ;;  %v13409_v49 = vld [vmem:[#allocation79_spill] sm:$0xff] }
 0xb97   : > { %7883 = vst [vmem:[%s11512_s20 + $0x88] sm:$0xff] %v6191_v63  ;;  %v6204_v21 = vpack.c.bf16 %v6191_v63, %v6190_v13 }
 0xb99   : > { %6238 = vmatmul.mubr.bf16.vlgmr.msra.gmra.mxu0 %v6204_v21  ;;  %6281 = vmatmul.mubr.bf16.vlgmr.msra.gmra.mxu1 %v6204_v21 }
 0xb9a   : > { %6361 = vmatpush1.bf16.msra.mxu0 %v11947_v1  ;;  %6404 = vmatpush1.bf16.msra.mxu1 %v11953_v30 }
 0xb9b   : > { %6362 = vmatprep.subr.bf16.mxu0 %v11959_v45  ;;  %6405 = vmatprep.subr.bf16.mxu1 %v11965_v48 }
 0xb9c   : > { %6392 = vmatprep.mubr.bf16.mxu0 %v13340_v47  ;;  %6435 = vmatprep.mubr.bf16.mxu1 %v13340_v47 }
 0xb9e   : > { %6363 = vmatpush1.bf16.msra.mxu0 %v11973_v33  ;;  %6406 = vmatpush1.bf16.msra.mxu1 %v11979_v28 }
 0xb9f   : > { %6364 = vmatprep.subr.bf16.mxu0 %v11985_v22  ;;  %6407 = vmatprep.subr.bf16.mxu1 %v11991_v10 }
 0xba2   : > { %6365 = vmatpush1.bf16.msra.mxu0 %v11997_v42  ;;  %6408 = vmatpush1.bf16.msra.mxu1 %v12003_v19 }
 0xba3   : > { %6366 = vmatprep.subr.bf16.mxu0 %v12009_v40  ;;  %6409 = vmatprep.subr.bf16.mxu1 %v12015_v4 }
 0xba6   : > { %6367 = vmatpush1.bf16.msra.mxu0 %v12021_v24  ;;  %6410 = vmatpush1.bf16.msra.mxu1 %v12027_v32 }
 0xba7   : > { %6368 = vmatprep.subr.bf16.mxu0 %v12033_v29  ;;  %6411 = vmatprep.subr.bf16.mxu1 %v12039_v44 }
 0xbaa   : > { %6369 = vmatpush1.bf16.msra.mxu0 %v12045_v9  ;;  %6412 = vmatpush1.bf16.msra.mxu1 %v12051_v15 }
 0xbab   : > { %6370 = vmatprep.subr.bf16.mxu0 %v12057_v31  ;;  %6413 = vmatprep.subr.bf16.mxu1 %v12063_v17 }
 0xbae   : > { %6371 = vmatpush1.bf16.msra.mxu0 %v12069_v11  ;;  %6414 = vmatpush1.bf16.msra.mxu1 %v12075_v59 }
 0xbaf   : > { %6372 = vmatprep.subr.bf16.mxu0 %v12081_v20  ;;  %6415 = vmatprep.subr.bf16.mxu1 %v12087_v41 }
 0xbb2   : > { %6373 = vmatpush1.bf16.msra.mxu0 %v12093_v60  ;;  %6416 = vmatpush1.bf16.msra.mxu1 %v12099_v27 }
 0xbb3   : > { %6374 = vmatprep.subr.bf16.mxu0 %v12105_v26  ;;  %6417 = vmatprep.subr.bf16.mxu1 %v12111_v8 }
 0xbb6   : > { %6375 = vmatpush1.bf16.msra.mxu0 %v12117_v50  ;;  %6418 = vmatpush1.bf16.msra.mxu1 %v12123_v16 }
 0xbb7   : > { %6515 = vmatprep.subr.bf16.mxu0 %v12129_v54  ;;  %6558 = vmatprep.subr.bf16.mxu1 %v12135_v14 }
 0xc59   : > { %v6239_v5 = vpop.f32.mrf.mxu0  ;;  %v6282_v51 = vpop.f32.mrf.mxu1 }
 0xc5a   : > { %v6291_v35 = vadd.f32 %v6239_v5, %v13404_v34  ;;  %v6293_v63 = vadd.f32 %v6282_v51, %v13409_v49  ;;  %v13410_v5 = vld [vmem:[#allocation94_spill] sm:$0xff] }
 0xc5b   : > { %v6241_v52 = vpop.f32.mrf.mxu0  ;;  %v6284_v57 = vpop.f32.mrf.mxu1 }
 0xc5c   : > { %v7884_v36 = vmul.f32 -1.442695, %v6291_v35  ;;  %v6292_v37 = vadd.f32 %v6241_v52, %v13405_v61  ;;  %v6294_v13 = vadd.f32 %v6284_v57, %v13408_v38  ;;  %v13411_v52 = vld [vmem:[#allocation80_spill] sm:$0xff] }
 0xc5d   : > { %v6243_v55 = vpop.f32.mrf.mxu0  ;;  %v6286_v39 = vpop.f32.mrf.mxu1 }
 0xc5e   : > { %8698 = vpow2.f32 %v7884_v36  ;;  %v7886_v0 = vmul.f32 -1.442695, %v6292_v37  ;;  %v6295_v56 = vadd.f32 %v6243_v55, %v13406_v53  ;;  %v7888_v21 = vmul.f32 -1.442695, %v6294_v13 }
 0xc5f   : > { %v6245_v7 = vpop.f32.mrf.mxu0  ;;  %v6288_v18 = vpop.f32.mrf.mxu1  ;;  %v6297_v36 = vadd.f32 %v6286_v39, %v13411_v52 }
 0xc60   : > { %8700 = vpow2.f32 %v7886_v0  ;;  %v7885_v46 = vmul.f32 -1.442695, %v6295_v56  ;;  %v6296_v58 = vadd.f32 %v6245_v7, %v13407_v62  ;;  %v6298_v34 = vadd.f32 %v6288_v18, %v13410_v5 }
 0xc62   : > { %8702 = vpow2.f32 %v7885_v46  ;;  %v7887_v6 = vmul.f32 -1.442695, %v6296_v58  ;;  %v7889_v55 = vmul.f32 -1.442695, %v6298_v34 }
 0xc64   : > { %8704 = vpow2.f32 %v7887_v6 }
 0xc65   : > { %8706 = vtanh.f32 %v6293_v63 }
 0xc66   : > { %8708 = vpow2.f32 %v7888_v21 }
 0xc6b   : > { %v8699_v35 = vpop.eup %8698 }
 0xc6c   : > { %v6305_v61 = vadd.f32 1.0, %v8699_v35 }
 0xc6d   : > { %v8701_v37 = vpop.eup %8700 }
 0xc6e   : > { %8710 = vrcp.f32 %v6305_v61  ;;  %v6317_v0 = vadd.f32 1.0, %v8701_v37 }
 0xc6f   : > { %v8703_v53 = vpop.eup %8702  ;;  %8712 = vtanh.f32 %v6297_v36 }
 0xc70   : > { %8714 = vrcp.f32 %v6317_v0  ;;  %v6306_v57 = vadd.f32 1.0, %v8703_v53 }
 0xc71   : > { %v8705_v56 = vpop.eup %8704  ;;  %8716 = vpow2.f32 %v7889_v55 }
 0xc72   : > { %8718 = vrcp.f32 %v6306_v57  ;;  %v6318_v51 = vadd.f32 1.0, %v8705_v56  ;;  %v8707_v7 = vpop.eup %8706 }
 0xc73   : > { %v8709_v46 = vpop.eup %8708 }
 0xc74   : > { %8720 = vrcp.f32 %v6318_v51  ;;  %v6331_v38 = vadd.f32 1.0, %v8709_v46 }
 0xc76   : > { %8722 = vrcp.f32 %v6331_v38 }
 0xc7b   : > { %v8711_v62 = vpop.eup %8710 }
 0xc7c   : > { %v8713_v58 = vpop.eup %8712  ;;  %v6339_v39 = vmul.f32 %v8711_v62, %v8707_v7 }
 0xc7d   : > { %v8715_v6 = vpop.eup %8714 }
 0xc7e   : > { %v8717_v13 = vpop.eup %8716  ;;  %v6337_v18 = vmul.f32 %v8715_v6, %v12262_v2 }
 0xc7f   : > { %v8719_v49 = vpop.eup %8718  ;;  %v6332_v34 = vadd.f32 1.0, %v8717_v13 }
 0xc80   : > { %v12314_v63 = vadd.f32 %v6339_v39, %v6337_v18  ;;  %v6340_v21 = vmul.f32 %v8719_v49, %v8713_v58 }
 0xc81   : > { %v8721_v5 = vpop.eup %8720 }
 0xc82   : > { %8724 = vtanh.f32 %v12314_v63  ;;  %v6338_v35 = vmul.f32 %v8721_v5, %v12266_v25 }
 0xc83   : > { %8726 = vrcp.f32 %v6332_v34  ;;  %v8723_v36 = vpop.eup %8722 }
 0xc84   : > { %v12318_v52 = vadd.f32 %v6340_v21, %v6338_v35 }
 0xc86   : > { %8728 = vtanh.f32 %v12318_v52 }
 0xc8f   : > { %v8725_v2 = vpop.eup %8724 }
 0xc90   : > { %v6345_v61 = vmul.f32 %v8725_v2, %v8723_v36  ;;  %v8727_v37 = vpop.eup %8726 }
 0xc92   : > { %7890 = vst [vmem:[%s11512_s20 + $0x90] sm:$0xff] %v6345_v61 }
 0xc93   : > { %v8729_v55 = vpop.eup %8728 }
 0xc94   : > { %v6346_v0 = vmul.f32 %v8729_v55, %v8727_v37 }
 0xc96   : > { %7891 = vst [vmem:[%s11512_s20 + $0x98] sm:$0xff] %v6346_v0  ;;  %v6359_v53 = vpack.c.bf16 %v6346_v0, %v6345_v61 }
 0xc98   : > { %6393 = vmatmul.mubr.bf16.vlgmr.msra.gmra.mxu0 %v6359_v53  ;;  %6436 = vmatmul.mubr.bf16.vlgmr.msra.gmra.mxu1 %v6359_v53 }
 0xc99   : > { %6516 = vmatpush1.bf16.msra.mxu0 %v11947_v1  ;;  %6559 = vmatpush1.bf16.msra.mxu1 %v11953_v30  ;;  %v13412_v30 = vld [vmem:[#allocation84_spill] sm:$0xff] }
 0xc9a   : > { %6517 = vmatprep.subr.bf16.mxu0 %v11959_v45  ;;  %6560 = vmatprep.subr.bf16.mxu1 %v11965_v48 }
 0xc9b   : > { %6547 = vmatprep.mubr.bf16.mxu0 %v13340_v47  ;;  %6590 = vmatprep.mubr.bf16.mxu1 %v13340_v47 }
 0xc9d   : > { %6518 = vmatpush1.bf16.msra.mxu0 %v11973_v33  ;;  %6561 = vmatpush1.bf16.msra.mxu1 %v11979_v28 }
 0xc9e   : > { %6519 = vmatprep.subr.bf16.mxu0 %v11985_v22  ;;  %6562 = vmatprep.subr.bf16.mxu1 %v11991_v10  ;;  %v13413_v22 = vld [vmem:[#allocation85_spill] sm:$0xff] }
 0xca1   : > { %6520 = vmatpush1.bf16.msra.mxu0 %v11997_v42  ;;  %6563 = vmatpush1.bf16.msra.mxu1 %v12003_v19 }
 0xca2   : > { %6521 = vmatprep.subr.bf16.mxu0 %v12009_v40  ;;  %6564 = vmatprep.subr.bf16.mxu1 %v12015_v4  ;;  %v13414_v4 = vld [vmem:[#allocation88_spill] sm:$0xff] }
 0xca5   : > { %6522 = vmatpush1.bf16.msra.mxu0 %v12021_v24  ;;  %6565 = vmatpush1.bf16.msra.mxu1 %v12027_v32 }
 0xca6   : > { %6523 = vmatprep.subr.bf16.mxu0 %v12033_v29  ;;  %6566 = vmatprep.subr.bf16.mxu1 %v12039_v44  ;;  %v13415_v44 = vld [vmem:[#allocation25_spill] sm:$0xff] }
 0xca9   : > { %6524 = vmatpush1.bf16.msra.mxu0 %v12045_v9  ;;  %6567 = vmatpush1.bf16.msra.mxu1 %v12051_v15 }
 0xcaa   : > { %6525 = vmatprep.subr.bf16.mxu0 %v12057_v31  ;;  %6568 = vmatprep.subr.bf16.mxu1 %v12063_v17  ;;  %v13416_v17 = vld [vmem:[#allocation23_spill] sm:$0xff] }
 0xcad   : > { %6526 = vmatpush1.bf16.msra.mxu0 %v12069_v11  ;;  %6569 = vmatpush1.bf16.msra.mxu1 %v12075_v59 }
 0xcae   : > { %6527 = vmatprep.subr.bf16.mxu0 %v12081_v20  ;;  %6570 = vmatprep.subr.bf16.mxu1 %v12087_v41  ;;  %v13417_v20 = vld [vmem:[#allocation22_spill] sm:$0xff] }
 0xcb1   : > { %6528 = vmatpush1.bf16.msra.mxu0 %v12093_v60  ;;  %6571 = vmatpush1.bf16.msra.mxu1 %v12099_v27  ;;  %v13418_v27 = vld [vmem:[#allocation86_spill] sm:$0xff] }
 0xcb2   : > { %6529 = vmatprep.subr.bf16.mxu0 %v12105_v26  ;;  %6572 = vmatprep.subr.bf16.mxu1 %v12111_v8 }
 0xcb5   : > { %6530 = vmatpush1.bf16.msra.mxu0 %v12117_v50  ;;  %6573 = vmatpush1.bf16.msra.mxu1 %v12123_v16  ;;  %v13419_v50 = vld [vmem:[#allocation87_spill] sm:$0xff] }
 0xcb6   : > { %6670 = vmatprep.subr.bf16.mxu0 %v12129_v54  ;;  %6713 = vmatprep.subr.bf16.mxu1 %v12135_v14 }
 0xd58   : > { %v6394_v1 = vpop.f32.mrf.mxu0  ;;  %v6437_v48 = vpop.f32.mrf.mxu1 }
 0xd59   : > { %v6446_v45 = vadd.f32 %v6394_v1, %v13412_v30  ;;  %v6448_v41 = vadd.f32 %v6437_v48, %v13417_v20  ;;  %v12384_v48 = vld [vmem:[%s12806_s4 + $0xe8] ss:$16 sps:$4 sm:$0xff]   ;;  %v12500_v20 = vld [vmem:[%s12806_s4 + $0x40] ss:$16 sps:$4 sm:$0xff]  }
 0xd5a   : > { %v6396_v33 = vpop.f32.mrf.mxu0  ;;  %v6439_v40 = vpop.f32.mrf.mxu1 }
 0xd5b   : > { %v7892_v28 = vmul.f32 -1.442695, %v6446_v45  ;;  %v6447_v10 = vadd.f32 %v6396_v33, %v13413_v22  ;;  %v6449_v11 = vadd.f32 %v6439_v40, %v13416_v17  ;;  %v12390_v33 = vld [vmem:[%s12806_s4 + $0xc4] ss:$16 sps:$4 sm:$0xff]   ;;  %v12404_v22 = vld [vmem:[%s12806_s4 + $0xc0] ss:$16 sps:$4 sm:$0xff]  }
 0xd5c   : > { %v6398_v42 = vpop.f32.mrf.mxu0  ;;  %v6441_v15 = vpop.f32.mrf.mxu1  ;;  %v12428_v40 = vld [vmem:[%s12806_s4 + $0xa0] ss:$16 sps:$4 sm:$0xff]   ;;  %v12482_v17 = vld [vmem:[%s12806_s4 + $0x68] ss:$16 sps:$4 sm:$0xff]  }
 0xd5d   : > { %8730 = vpow2.f32 %v7892_v28  ;;  %v7894_v19 = vmul.f32 -1.442695, %v6447_v10  ;;  %v6450_v24 = vadd.f32 %v6398_v42, %v13414_v4  ;;  %v7896_v60 = vmul.f32 -1.442695, %v6449_v11  ;;  %v12396_v28 = vld [vmem:[%s12806_s4 + $0xcc] ss:$16 sps:$4 sm:$0xff]  }
 0xd5e   : > { %v6400_v32 = vpop.f32.mrf.mxu0  ;;  %v6443_v59 = vpop.f32.mrf.mxu1  ;;  %v6452_v16 = vadd.f32 %v6441_v15, %v13419_v50  ;;  %v12410_v10 = vld [vmem:[%s12806_s4 + $0xc8] ss:$16 sps:$4 sm:$0xff]   ;;  %v12416_v42 = vld [vmem:[%s12806_s4 + $0xa4] ss:$16 sps:$4 sm:$0xff]   ;;  %v12470_v15 = vld [vmem:[%s12806_s4 + $0x6c] ss:$16 sps:$4 sm:$0xff]  }
 0xd5f   : > { %8732 = vpow2.f32 %v7894_v19  ;;  %v7893_v29 = vmul.f32 -1.442695, %v6450_v24  ;;  %v6451_v9 = vadd.f32 %v6400_v32, %v13415_v44  ;;  %v6453_v26 = vadd.f32 %v6443_v59, %v13418_v27  ;;  %v12422_v19 = vld [vmem:[%s12806_s4 + $0xac] ss:$16 sps:$4 sm:$0xff]   ;;  %v12434_v4 = vld [vmem:[%s12806_s4 + $0xa8] ss:$16 sps:$4 sm:$0xff]  }
 0xd60   : > { %v12440_v24 = vld [vmem:[%s12806_s4 + $0x84] ss:$16 sps:$4 sm:$0xff]   ;;  %v12446_v32 = vld [vmem:[%s12806_s4 + $0x8c] ss:$16 sps:$4 sm:$0xff]   ;;  %v12458_v44 = vld [vmem:[%s12806_s4 + $0x88] ss:$16 sps:$4 sm:$0xff]  }
 0xd61   : > { %8734 = vpow2.f32 %v7893_v29  ;;  %v7895_v31 = vmul.f32 -1.442695, %v6451_v9  ;;  %v7897_v25 = vmul.f32 -1.442695, %v6453_v26  ;;  %v12452_v29 = vld [vmem:[%s12806_s4 + $0x80] ss:$16 sps:$4 sm:$0xff]  }
 0xd62   : > { %v12464_v9 = vld [vmem:[%s12806_s4 + $0x64] ss:$16 sps:$4 sm:$0xff]   ;;  %v12494_v59 = vld [vmem:[%s12806_s4 + $0x4c] ss:$16 sps:$4 sm:$0xff]   ;;  %v12524_v26 = vld [vmem:[%s12806_s4 + $0x20] ss:$16 sps:$4 sm:$0xff]  }
 0xd63   : > { %8736 = vpow2.f32 %v7895_v31  ;;  %v12476_v31 = vld [vmem:[%s12806_s4 + $0x60] ss:$16 sps:$4 sm:$0xff]   ;;  %v12488_v11 = vld [vmem:[%s12806_s4 + $0x44] ss:$16 sps:$4 sm:$0xff]   ;;  %v12518_v27 = vld [vmem:[%s12806_s4 + $0x2c] ss:$16 sps:$4 sm:$0xff]  }
 0xd64   : > { %8738 = vtanh.f32 %v6448_v41  ;;  %v12506_v41 = vld [vmem:[%s12806_s4 + $0x48] ss:$16 sps:$4 sm:$0xff]   ;;  %v12536_v50 = vld [vmem:[%s12806_s4 + $0x4] ss:$16 sps:$4 sm:$0xff]  }
 0xd65   : > { %8740 = vpow2.f32 %v7896_v60  ;;  %v12512_v60 = vld [vmem:[%s12806_s4 + $0x24] ss:$16 sps:$4 sm:$0xff]  }
 0xd6a   : > { %v8731_v8 = vpop.eup %8730 }
 0xd6b   : > { %v6460_v54 = vadd.f32 1.0, %v8731_v8  ;;  %v12530_v8 = vld [vmem:[%s12806_s4 + $0x28] ss:$16 sps:$4 sm:$0xff]  }
 0xd6c   : > { %v8733_v14 = vpop.eup %8732 }
 0xd6d   : > { %8742 = vrcp.f32 %v6460_v54  ;;  %v6472_v57 = vadd.f32 1.0, %v8733_v14  ;;  %v12548_v54 = vld [vmem:[%s12806_s4] ss:$16 sps:$4 sm:$0xff]   ;;  %v12554_v14 = vld [vmem:[%s12806_s4 + $0x8] ss:$16 sps:$4 sm:$0xff]  }
 0xd6e   : > { %v8735_v56 = vpop.eup %8734  ;;  %8744 = vtanh.f32 %v6452_v16  ;;  %v12542_v16 = vld [vmem:[%s12806_s4 + $0xc] ss:$16 sps:$4 sm:$0xff]  }
 0xd6f   : > { %8746 = vrcp.f32 %v6472_v57  ;;  %v6461_v51 = vadd.f32 1.0, %v8735_v56  ;;  %v12566_v57 = vld [vmem:[%s12806_s4 + $0xec] ss:$16 sps:$4 sm:$0xff]  }
 0xd70   : > { %v8737_v7 = vpop.eup %8736  ;;  %8748 = vpow2.f32 %v7897_v25  ;;  %v12560_v25 = vld [vmem:[%s12806_s4 + $0xe4] ss:$16 sps:$4 sm:$0xff]  }
 0xd71   : > { %8750 = vrcp.f32 %v6461_v51  ;;  %v6473_v46 = vadd.f32 1.0, %v8737_v7  ;;  %v8739_v62 = vpop.eup %8738  ;;  %v13420_v51 = vld [vmem:[#allocation26_spill] sm:$0xff] }
 0xd72   : > { %v8741_v58 = vpop.eup %8740 }
 0xd73   : > { %8752 = vrcp.f32 %v6473_v46  ;;  %v6486_v18 = vadd.f32 1.0, %v8741_v58 }
 0xd75   : > { %8754 = vrcp.f32 %v6486_v18 }
 0xd7a   : > { %v8743_v39 = vpop.eup %8742 }
 0xd7b   : > { %v8745_v6 = vpop.eup %8744  ;;  %v6494_v38 = vmul.f32 %v8743_v39, %v8739_v62  ;;  %v13421_v39 = vld [vmem:[#allocation93_spill] sm:$0xff] }
 0xd7c   : > { %v8747_v13 = vpop.eup %8746 }
 0xd7d   : > { %v8749_v49 = vpop.eup %8748  ;;  %v6492_v21 = vmul.f32 %v8747_v13, %v12314_v63 }
 0xd7e   : > { %v8751_v5 = vpop.eup %8750  ;;  %v6487_v2 = vadd.f32 1.0, %v8749_v49  ;;  %v13422_v49 = vld [vmem:[#allocation91_spill] sm:$0xff] }
 0xd7f   : > { %v12366_v34 = vadd.f32 %v6494_v38, %v6492_v21  ;;  %v6495_v35 = vmul.f32 %v8751_v5, %v8745_v6 }
 0xd80   : > { %v8753_v36 = vpop.eup %8752 }
 0xd81   : > { %8756 = vtanh.f32 %v12366_v34  ;;  %v6493_v61 = vmul.f32 %v8753_v36, %v12318_v52  ;;  %v12378_v52 = vld [vmem:[%s12806_s4 + $0xe0] ss:$16 sps:$4 sm:$0xff]  }
 0xd82   : > { %8758 = vrcp.f32 %v6487_v2  ;;  %v8755_v55 = vpop.eup %8754  ;;  %v13423_v36 = vld [vmem:[#allocation28_spill] sm:$0xff] }
 0xd83   : > { %v12370_v37 = vadd.f32 %v6495_v35, %v6493_v61 }
 0xd85   : > { %8760 = vtanh.f32 %v12370_v37 }
 0xd8e   : > { %v8757_v63 = vpop.eup %8756 }
 0xd8f   : > { %v6500_v0 = vmul.f32 %v8757_v63, %v8755_v55  ;;  %v8759_v53 = vpop.eup %8758  ;;  %v13424_v63 = vld [vmem:[#allocation100_spill] sm:$0xff] }
 0xd91   : > { %7898 = vst [vmem:[%s11512_s20 + $0xa0] sm:$0xff] %v6500_v0 }
 0xd92   : > { %v8761_v1 = vpop.eup %8760 }
 0xd93   : > { %v6501_v30 = vmul.f32 %v8761_v1, %v8759_v53  ;;  %v13425_v1 = vld [vmem:[#allocation103_spill] sm:$0xff] }
 0xd95   : > { %7899 = vst [vmem:[%s11512_s20 + $0xa8] sm:$0xff] %v6501_v30  ;;  %v6514_v45 = vpack.c.bf16 %v6501_v30, %v6500_v0 }
 0xd97   : > { %6548 = vmatmul.mubr.bf16.vlgmr.msra.gmra.mxu0 %v6514_v45  ;;  %6591 = vmatmul.mubr.bf16.vlgmr.msra.gmra.mxu1 %v6514_v45 }
 0xd98   : > { %6671 = vmatpush1.bf16.msra.mxu0 %v12378_v52  ;;  %6714 = vmatpush1.bf16.msra.mxu1 %v12384_v48 }
 0xd99   : > { %6672 = vmatprep.subr.bf16.mxu0 %v12390_v33  ;;  %6715 = vmatprep.subr.bf16.mxu1 %v12396_v28 }
 0xd9a   : > { %6702 = vmatprep.mubr.bf16.mxu0 %v13340_v47  ;;  %6745 = vmatprep.mubr.bf16.mxu1 %v13340_v47 }
 0xd9c   : > { %6673 = vmatpush1.bf16.msra.mxu0 %v12404_v22  ;;  %6716 = vmatpush1.bf16.msra.mxu1 %v12410_v10 }
 0xd9d   : > { %6674 = vmatprep.subr.bf16.mxu0 %v12416_v42  ;;  %6717 = vmatprep.subr.bf16.mxu1 %v12422_v19 }
 0xda0   : > { %6675 = vmatpush1.bf16.msra.mxu0 %v12428_v40  ;;  %6718 = vmatpush1.bf16.msra.mxu1 %v12434_v4 }
 0xda1   : > { %6676 = vmatprep.subr.bf16.mxu0 %v12440_v24  ;;  %6719 = vmatprep.subr.bf16.mxu1 %v12446_v32 }
 0xda4   : > { %6677 = vmatpush1.bf16.msra.mxu0 %v12452_v29  ;;  %6720 = vmatpush1.bf16.msra.mxu1 %v12458_v44 }
 0xda5   : > { %6678 = vmatprep.subr.bf16.mxu0 %v12464_v9  ;;  %6721 = vmatprep.subr.bf16.mxu1 %v12470_v15 }
 0xda8   : > { %6679 = vmatpush1.bf16.msra.mxu0 %v12476_v31  ;;  %6722 = vmatpush1.bf16.msra.mxu1 %v12482_v17 }
 0xda9   : > { %6680 = vmatprep.subr.bf16.mxu0 %v12488_v11  ;;  %6723 = vmatprep.subr.bf16.mxu1 %v12494_v59 }
 0xdac   : > { %6681 = vmatpush1.bf16.msra.mxu0 %v12500_v20  ;;  %6724 = vmatpush1.bf16.msra.mxu1 %v12506_v41 }
 0xdad   : > { %6682 = vmatprep.subr.bf16.mxu0 %v12512_v60  ;;  %6725 = vmatprep.subr.bf16.mxu1 %v12518_v27 }
 0xdb0   : > { %6683 = vmatpush1.bf16.msra.mxu0 %v12524_v26  ;;  %6726 = vmatpush1.bf16.msra.mxu1 %v12530_v8 }
 0xdb1   : > { %6684 = vmatprep.subr.bf16.mxu0 %v12536_v50  ;;  %6727 = vmatprep.subr.bf16.mxu1 %v12542_v16 }
 0xdb4   : > { %6685 = vmatpush1.bf16.msra.mxu0 %v12548_v54  ;;  %6728 = vmatpush1.bf16.msra.mxu1 %v12554_v14 }
 0xdb5   : > { %6825 = vmatprep.subr.bf16.mxu0 %v12560_v25  ;;  %6868 = vmatprep.subr.bf16.mxu1 %v12566_v57 }
 0xe57   : > { %v6549_v56 = vpop.f32.mrf.mxu0  ;;  %v6592_v46 = vpop.f32.mrf.mxu1 }
 0xe58   : > { %v6601_v7 = vadd.f32 %v6549_v56, %v13420_v51  ;;  %v6603_v30 = vadd.f32 %v6592_v46, %v13425_v1  ;;  %v13426_v56 = vld [vmem:[#allocation92_spill] sm:$0xff] }
 0xe59   : > { %v6551_v62 = vpop.f32.mrf.mxu0  ;;  %v6594_v18 = vpop.f32.mrf.mxu1 }
 0xe5a   : > { %v7900_v58 = vmul.f32 -1.442695, %v6601_v7  ;;  %v6602_v6 = vadd.f32 %v6551_v62, %v13421_v39  ;;  %v6604_v0 = vadd.f32 %v6594_v18, %v13424_v63  ;;  %v13427_v62 = vld [vmem:[#allocation27_spill] sm:$0xff] }
 0xe5b   : > { %v6553_v38 = vpop.f32.mrf.mxu0  ;;  %v6596_v61 = vpop.f32.mrf.mxu1 }
 0xe5c   : > { %8762 = vpow2.f32 %v7900_v58  ;;  %v7902_v13 = vmul.f32 -1.442695, %v6602_v6  ;;  %v6605_v21 = vadd.f32 %v6553_v38, %v13422_v49  ;;  %v7904_v45 = vmul.f32 -1.442695, %v6604_v0 }
 0xe5d   : > { %v6555_v5 = vpop.f32.mrf.mxu0  ;;  %v6598_v53 = vpop.f32.mrf.mxu1  ;;  %v6607_v58 = vadd.f32 %v6596_v61, %v13427_v62 }
 0xe5e   : > { %8764 = vpow2.f32 %v7902_v13  ;;  %v7901_v35 = vmul.f32 -1.442695, %v6605_v21  ;;  %v6606_v2 = vadd.f32 %v6555_v5, %v13423_v36  ;;  %v6608_v51 = vadd.f32 %v6598_v53, %v13426_v56 }
 0xe60   : > { %8766 = vpow2.f32 %v7901_v35  ;;  %v7903_v55 = vmul.f32 -1.442695, %v6606_v2  ;;  %v7905_v38 = vmul.f32 -1.442695, %v6608_v51 }
 0xe62   : > { %8768 = vpow2.f32 %v7903_v55 }
 0xe63   : > { %8770 = vtanh.f32 %v6603_v30 }
 0xe64   : > { %8772 = vpow2.f32 %v7904_v45 }
 0xe69   : > { %v8763_v7 = vpop.eup %8762 }
 0xe6a   : > { %v6615_v39 = vadd.f32 1.0, %v8763_v7 }
 0xe6b   : > { %v8765_v6 = vpop.eup %8764 }
 0xe6c   : > { %8774 = vrcp.f32 %v6615_v39  ;;  %v6627_v13 = vadd.f32 1.0, %v8765_v6 }
 0xe6d   : > { %v8767_v49 = vpop.eup %8766  ;;  %8776 = vtanh.f32 %v6607_v58 }
 0xe6e   : > { %8778 = vrcp.f32 %v6627_v13  ;;  %v6616_v18 = vadd.f32 1.0, %v8767_v49 }
 0xe6f   : > { %v8769_v21 = vpop.eup %8768  ;;  %8780 = vpow2.f32 %v7905_v38 }
 0xe70   : > { %8782 = vrcp.f32 %v6616_v18  ;;  %v6628_v46 = vadd.f32 1.0, %v8769_v21  ;;  %v8771_v5 = vpop.eup %8770 }
 0xe71   : > { %v8773_v35 = vpop.eup %8772 }
 0xe72   : > { %8784 = vrcp.f32 %v6628_v46  ;;  %v6641_v63 = vadd.f32 1.0, %v8773_v35  ;;  %v13429_v46 = vld [vmem:[#allocation89_spill] sm:$0xff] }
 0xe74   : > { %8786 = vrcp.f32 %v6641_v63 }
 0xe79   : > { %v8775_v36 = vpop.eup %8774 }
 0xe7a   : > { %v8777_v2 = vpop.eup %8776  ;;  %v6649_v61 = vmul.f32 %v8775_v36, %v8771_v5 }
 0xe7b   : > { %v8779_v55 = vpop.eup %8778 }
 0xe7c   : > { %v8781_v0 = vpop.eup %8780  ;;  %v6647_v53 = vmul.f32 %v8779_v55, %v12366_v34 }
 0xe7d   : > { %v8783_v1 = vpop.eup %8782  ;;  %v6642_v51 = vadd.f32 1.0, %v8781_v0 }
 0xe7e   : > { %v12578_v30 = vadd.f32 %v6649_v61, %v6647_v53  ;;  %v6650_v45 = vmul.f32 %v8783_v1, %v8777_v2  ;;  %v13430_v61 = vld [vmem:[#allocation29_spill] sm:$0xff]  ;;  %v13431_v1 = vld [vmem:[#allocation96_spill] sm:$0xff] }
 0xe7f   : > { %v8785_v56 = vpop.eup %8784 }
 0xe80   : > { %8788 = vtanh.f32 %v12578_v30  ;;  %v6648_v7 = vmul.f32 %v8785_v56, %v12370_v37  ;;  %v13428_v37 = vld [vmem:[#allocation101_spill] sm:$0xff]  ;;  %v13432_v56 = vld [vmem:[#allocation106_spill] sm:$0xff] }
 0xe81   : > { %8790 = vrcp.f32 %v6642_v51  ;;  %v8787_v58 = vpop.eup %8786  ;;  %v4230_v18 = vrot.slane %v13428_v37, %v13355_v23  ;;  %v4234_v21 = vrot.slane %v13428_v37, %v13357_v3  ;;  %v13433_v51 = vld [vmem:[#allocation95_spill] sm:$0xff] }
 0xe82   : > { %v12582_v62 = vadd.f32 %v6650_v45, %v6648_v7  ;;  %v3035_v7 = vadd.f32 %v13433_v51, %v13432_v56 }
 0xe83   : > { %v4451_v5 = vadd.f32 %v4230_v18, %v13429_v46  ;;  %v4452_v55 = vadd.f32 %v4234_v21, %v13430_v61  ;;  %v4455_v45 = vadd.f32 %v4230_v18, %v13431_v1  ;;  %v4238_v18 = vrot.slane %v13428_v37, %v13363_v43  ;;  %v13438_v1 = vld [vmem:[#allocation90_spill] sm:$0xff] }
 0xe84   : > { %8792 = vtanh.f32 %v12582_v62 }
 0xe8d   : > { %v8789_v34 = vpop.eup %8788 }
 0xe8e   : > { %v6655_v39 = vmul.f32 %v8789_v34, %v8787_v58  ;;  %v8791_v6 = vpop.eup %8790 }
 0xe90   : > { %7906 = vst [vmem:[%s11512_s20 + $0xb0] sm:$0xff] %v6655_v39 }
 0xe91   : > { %v8793_v38 = vpop.eup %8792 }
 0xe92   : > { %v6656_v13 = vmul.f32 %v8793_v38, %v8791_v6  ;;  %v4242_v38 = vrot.slane %v13428_v37, %v13362_v12  ;;  %v4453_v12 = vadd.f32 %v4238_v18, %v13438_v1 }
 0xe94   : > { %7907 = vst [vmem:[%s11512_s20 + $0xb8] sm:$0xff] %v6656_v13  ;;  %v6669_v49 = vpack.c.bf16 %v6656_v13, %v6655_v39  ;;  %v13434_v39 = vld [vmem:[#allocation97_spill] sm:$0xff] }
 0xe95   : > { %v4456_v6 = vadd.f32 %v4234_v21, %v13434_v39 }
 0xe96   : > { %6703 = vmatmul.mubr.bf16.vlgmr.msra.gmra.mxu0 %v6669_v49  ;;  %6746 = vmatmul.mubr.bf16.vlgmr.msra.gmra.mxu1 %v6669_v49 }
 0xe97   : > { %6826 = vmatpush1.bf16.msra.mxu0 %v12378_v52  ;;  %6869 = vmatpush1.bf16.msra.mxu1 %v12384_v48 }
 0xe98   : > { %6827 = vmatprep.subr.bf16.mxu0 %v12390_v33  ;;  %6870 = vmatprep.subr.bf16.mxu1 %v12396_v28 }
 0xe99   : > { %6857 = vmatprep.mubr.bf16.mxu0 %v13340_v47  ;;  %6900 = vmatprep.mubr.bf16.mxu1 %v13340_v47 }
 0xe9b   : > { %6828 = vmatpush1.bf16.msra.mxu0 %v12404_v22  ;;  %6871 = vmatpush1.bf16.msra.mxu1 %v12410_v10 }
 0xe9c   : > { %6829 = vmatprep.subr.bf16.mxu0 %v12416_v42  ;;  %6872 = vmatprep.subr.bf16.mxu1 %v12422_v19 }
 0xe9f   : > { %6830 = vmatpush1.bf16.msra.mxu0 %v12428_v40  ;;  %6873 = vmatpush1.bf16.msra.mxu1 %v12434_v4 }
 0xea0   : > { %6831 = vmatprep.subr.bf16.mxu0 %v12440_v24  ;;  %6874 = vmatprep.subr.bf16.mxu1 %v12446_v32 }
 0xea3   : > { %6832 = vmatpush1.bf16.msra.mxu0 %v12452_v29  ;;  %6875 = vmatpush1.bf16.msra.mxu1 %v12458_v44 }
 0xea4   : > { %6833 = vmatprep.subr.bf16.mxu0 %v12464_v9  ;;  %6876 = vmatprep.subr.bf16.mxu1 %v12470_v15 }
 0xea7   : > { %6834 = vmatpush1.bf16.msra.mxu0 %v12476_v31  ;;  %6877 = vmatpush1.bf16.msra.mxu1 %v12482_v17 }
 0xea8   : > { %6835 = vmatprep.subr.bf16.mxu0 %v12488_v11  ;;  %6878 = vmatprep.subr.bf16.mxu1 %v12494_v59 }
 0xeab   : > { %6836 = vmatpush1.bf16.msra.mxu0 %v12500_v20  ;;  %6879 = vmatpush1.bf16.msra.mxu1 %v12506_v41 }
 0xeac   : > { %6837 = vmatprep.subr.bf16.mxu0 %v12512_v60  ;;  %6880 = vmatprep.subr.bf16.mxu1 %v12518_v27 }
 0xeaf   : > { %6838 = vmatpush1.bf16.msra.mxu0 %v12524_v26  ;;  %6881 = vmatpush1.bf16.msra.mxu1 %v12530_v8 }
 0xeb0   : > { %6839 = vmatprep.subr.bf16.mxu0 %v12536_v50  ;;  %6882 = vmatprep.subr.bf16.mxu1 %v12542_v16 }
 0xeb3   : > { %6840 = vmatpush1.bf16.msra.mxu0 %v12548_v54  ;;  %6883 = vmatpush1.bf16.msra.mxu1 %v12554_v14 }
 0xeb4   : > { %6980 = vmatprep.subr.bf16.mxu0 %v12560_v25  ;;  %7023 = vmatprep.subr.bf16.mxu1 %v12566_v57 }
 0xf56   : > { %v6704_v35 = vpop.f32.mrf.mxu0  ;;  %v6747_v2 = vpop.f32.mrf.mxu1 }
 0xf57   : > { %v6756_v36 = vadd.f32 %v6704_v35, %v4451_v5  ;;  %v13435_v5 = vld [vmem:[#allocation98_spill] sm:$0xff]  ;;  %v6758_v51 = vadd.f32 %v6747_v2, %v4453_v12 }
 0xf58   : > { %v6706_v63 = vpop.f32.mrf.mxu0  ;;  %v6749_v34 = vpop.f32.mrf.mxu1  ;;  %v3228_v35 = vadd.f32 %v13435_v5, %v3035_v7 }
 0xf59   : > { %v7908_v0 = vmul.f32 -1.442695, %v6756_v36  ;;  %v6757_v53 = vadd.f32 %v6706_v63, %v4452_v55  ;;  %v13436_v55 = vld [vmem:[#allocation99_spill] sm:$0xff] }
 0xf5a   : > { %v6708_v58 = vpop.f32.mrf.mxu0  ;;  %v6751_v36 = vpop.f32.mrf.mxu1  ;;  %v3845_v63 = vadd.f32 %v13436_v55, %v3228_v35 }
 0xf5b   : > { %8794 = vpow2.f32 %v7908_v0  ;;  %v7910_v23 = vmul.f32 -1.442695, %v6757_v53  ;;  %v6760_v3 = vadd.f32 %v6708_v58, %v4455_v45  ;;  %v13437_v0 = vld [vmem:[#allocation104_spill] sm:$0xff] }
 0xf5c   : > { %v6710_v13 = vpop.f32.mrf.mxu0  ;;  %v4454_v53 = vadd.f32 %v4242_v38, %v13437_v0  ;;  %v6753_v45 = vpop.f32.mrf.mxu1  ;;  %v4458_v56 = vadd.f32 %v4242_v38, %v3845_v63 }
 0xf5d   : > { %8796 = vpow2.f32 %v7910_v23  ;;  %v7909_v49 = vmul.f32 -1.442695, %v6760_v3  ;;  %v6761_v46 = vadd.f32 %v6710_v13, %v4456_v6  ;;  %v13439_v23 = vld [vmem:[#allocation24_spill] sm:$0xff] }
 0xf5e   : > { %v6759_v21 = vadd.f32 %v6749_v34, %v4454_v53  ;;  %v4457_v7 = vadd.f32 %v4238_v18, %v13439_v23  ;;  %v6763_v3 = vadd.f32 %v6753_v45, %v4458_v56 }
 0xf5f   : > { %8798 = vpow2.f32 %v7909_v49  ;;  %v7911_v61 = vmul.f32 -1.442695, %v6761_v46 }
 0xf60   : > { %v7912_v58 = vmul.f32 -1.442695, %v6759_v21  ;;  %v6762_v43 = vadd.f32 %v6751_v36, %v4457_v7  ;;  %v7913_v13 = vmul.f32 -1.442695, %v6763_v3 }
 0xf61   : > { %8800 = vpow2.f32 %v7911_v61 }
 0xf62   : > { %8802 = vtanh.f32 %v6758_v51 }
 0xf63   : > { %8804 = vpow2.f32 %v7912_v58 }
 0xf68   : > { %v8795_v39 = vpop.eup %8794 }
 0xf69   : > { %v6770_v37 = vadd.f32 1.0, %v8795_v39 }
 0xf6a   : > { %v8797_v6 = vpop.eup %8796 }
 0xf6b   : > { %8806 = vrcp.f32 %v6770_v37  ;;  %v6782_v49 = vadd.f32 1.0, %v8797_v6  ;;  %v13440_v6 = vld [vmem:[#allocation31_spill] sm:$0xff] }
 0xf6c   : > { %v8799_v46 = vpop.eup %8798  ;;  %8808 = vtanh.f32 %v6762_v43 }
 0xf6d   : > { %8810 = vrcp.f32 %v6782_v49  ;;  %v6771_v34 = vadd.f32 1.0, %v8799_v46 }
 0xf6e   : > { %v8801_v5 = vpop.eup %8800  ;;  %8812 = vpow2.f32 %v7913_v13 }
 0xf6f   : > { %8814 = vrcp.f32 %v6771_v34  ;;  %v6783_v2 = vadd.f32 1.0, %v8801_v5  ;;  %v8803_v38 = vpop.eup %8802  ;;  %v13441_v5 = vld [vmem:[#allocation32_spill] sm:$0xff] }
 0xf70   : > { %v8805_v35 = vpop.eup %8804 }
 0xf71   : > { %8816 = vrcp.f32 %v6783_v2  ;;  %v6796_v63 = vadd.f32 1.0, %v8805_v35 }
 0xf73   : > { %8818 = vrcp.f32 %v6796_v63 }
 0xf78   : > { %v8807_v18 = vpop.eup %8806 }
 0xf79   : > { %v8809_v36 = vpop.eup %8808  ;;  %v6804_v61 = vmul.f32 %v8807_v18, %v8803_v38 }
 0xf7a   : > { %v8811_v55 = vpop.eup %8810 }
 0xf7b   : > { %v8813_v0 = vpop.eup %8812  ;;  %v6802_v53 = vmul.f32 %v8811_v55, %v12578_v30 }
 0xf7c   : > { %v8815_v21 = vpop.eup %8814  ;;  %v6797_v56 = vadd.f32 1.0, %v8813_v0 }
 0xf7d   : > { %v12641_v1 = vadd.f32 %v6804_v61, %v6802_v53  ;;  %v6805_v12 = vmul.f32 %v8815_v21, %v8809_v36  ;;  %v13442_v36 = vld [vmem:[#allocation30_spill] sm:$0xff] }
 0xf7e   : > { %v8817_v45 = vpop.eup %8816  ;;  %v13444_v21 = vld [vmem:[#allocation110_spill] sm:$0xff] }
 0xf7f   : > { %8820 = vtanh.f32 %v12641_v1  ;;  %v6803_v51 = vmul.f32 %v8817_v45, %v12582_v62 }
 0xf80   : > { %8822 = vrcp.f32 %v6797_v56  ;;  %v8819_v23 = vpop.eup %8818  ;;  %v13445_v56 = vld [vmem:[#allocation102_spill] sm:$0xff] }
 0xf81   : > { %v12645_v58 = vadd.f32 %v6805_v12, %v6803_v51 }
 0xf83   : > { %8824 = vtanh.f32 %v12645_v58 }
 0xf8c   : > { %v8821_v30 = vpop.eup %8820 }
 0xf8d   : > { %v6810_v7 = vmul.f32 %v8821_v30, %v8819_v23  ;;  %v8823_v3 = vpop.eup %8822  ;;  %v13446_v30 = vld [vmem:[#allocation33_spill] sm:$0xff] }
 0xf8f   : > { %7914 = vst [vmem:[%s11512_s20 + $0xc0] sm:$0xff] %v6810_v7 }
 0xf90   : > { %v8825_v39 = vpop.eup %8824 }
 0xf91   : > { %v6811_v43 = vmul.f32 %v8825_v39, %v8823_v3  ;;  %v13447_v39 = vld [vmem:[#allocation107_spill] sm:$0xff] }
 0xf93   : > { %7915 = vst [vmem:[%s11512_s20 + $0xc8] sm:$0xff] %v6811_v43  ;;  %v6824_v37 = vpack.c.bf16 %v6811_v43, %v6810_v7 }
 0xf95   : > { %6858 = vmatmul.mubr.bf16.vlgmr.msra.gmra.mxu0 %v6824_v37  ;;  %6901 = vmatmul.mubr.bf16.vlgmr.msra.gmra.mxu1 %v6824_v37 }
 0xf96   : > { %6981 = vmatpush1.bf16.msra.mxu0 %v12378_v52  ;;  %7024 = vmatpush1.bf16.msra.mxu1 %v12384_v48 }
 0xf97   : > { %6982 = vmatprep.subr.bf16.mxu0 %v12390_v33  ;;  %7025 = vmatprep.subr.bf16.mxu1 %v12396_v28 }
 0xf98   : > { %7012 = vmatprep.mubr.bf16.mxu0 %v13340_v47  ;;  %7055 = vmatprep.mubr.bf16.mxu1 %v13340_v47 }
 0xf9a   : > { %6983 = vmatpush1.bf16.msra.mxu0 %v12404_v22  ;;  %7026 = vmatpush1.bf16.msra.mxu1 %v12410_v10 }
 0xf9b   : > { %6984 = vmatprep.subr.bf16.mxu0 %v12416_v42  ;;  %7027 = vmatprep.subr.bf16.mxu1 %v12422_v19 }
 0xf9e   : > { %6985 = vmatpush1.bf16.msra.mxu0 %v12428_v40  ;;  %7028 = vmatpush1.bf16.msra.mxu1 %v12434_v4 }
 0xf9f   : > { %6986 = vmatprep.subr.bf16.mxu0 %v12440_v24  ;;  %7029 = vmatprep.subr.bf16.mxu1 %v12446_v32 }
 0xfa2   : > { %6987 = vmatpush1.bf16.msra.mxu0 %v12452_v29  ;;  %7030 = vmatpush1.bf16.msra.mxu1 %v12458_v44 }
 0xfa3   : > { %6988 = vmatprep.subr.bf16.mxu0 %v12464_v9  ;;  %7031 = vmatprep.subr.bf16.mxu1 %v12470_v15 }
 0xfa6   : > { %6989 = vmatpush1.bf16.msra.mxu0 %v12476_v31  ;;  %7032 = vmatpush1.bf16.msra.mxu1 %v12482_v17 }
 0xfa7   : > { %6990 = vmatprep.subr.bf16.mxu0 %v12488_v11  ;;  %7033 = vmatprep.subr.bf16.mxu1 %v12494_v59 }
 0xfaa   : > { %6991 = vmatpush1.bf16.msra.mxu0 %v12500_v20  ;;  %7034 = vmatpush1.bf16.msra.mxu1 %v12506_v41 }
 0xfab   : > { %6992 = vmatprep.subr.bf16.mxu0 %v12512_v60  ;;  %7035 = vmatprep.subr.bf16.mxu1 %v12518_v27 }
 0xfae   : > { %6993 = vmatpush1.bf16.msra.mxu0 %v12524_v26  ;;  %7036 = vmatpush1.bf16.msra.mxu1 %v12530_v8 }
 0xfaf   : > { %6994 = vmatprep.subr.bf16.mxu0 %v12536_v50  ;;  %7037 = vmatprep.subr.bf16.mxu1 %v12542_v16 }
 0xfb2   : > { %6995 = vmatpush1.bf16.msra.mxu0 %v12548_v54  ;;  %7038 = vmatpush1.bf16.msra.mxu1 %v12554_v14 }
 0xfb3   : > { %7135 = vmatprep.subr.bf16.mxu0 %v12560_v25  ;;  %7178 = vmatprep.subr.bf16.mxu1 %v12566_v57  ;;  %v13443_v25 = vld [vmem:[#allocation19_spill] sm:$0xff] }
0x1055   : > { %v6859_v62 = vpop.f32.mrf.mxu0  ;;  %v6902_v49 = vpop.f32.mrf.mxu1 }
0x1056   : > { %v6911_v13 = vadd.f32 %v6859_v62, %v13440_v6  ;;  %v6913_v51 = vadd.f32 %v6902_v49, %v13445_v56 }
0x1057   : > { %v6861_v46 = vpop.f32.mrf.mxu0  ;;  %v6904_v18 = vpop.f32.mrf.mxu1 }
0x1058   : > { %v7916_v34 = vmul.f32 -1.442695, %v6911_v13  ;;  %v6912_v2 = vadd.f32 %v6861_v46, %v13441_v5  ;;  %v6914_v12 = vadd.f32 %v6904_v18, %v13444_v21 }
0x1059   : > { %v6863_v38 = vpop.f32.mrf.mxu0  ;;  %v6906_v57 = vpop.f32.mrf.mxu1 }
0x105a   : > { %8826 = vpow2.f32 %v7916_v34  ;;  %v7918_v35 = vmul.f32 -1.442695, %v6912_v2  ;;  %v6915_v61 = vadd.f32 %v6863_v38, %v13442_v36  ;;  %v7920_v23 = vmul.f32 -1.442695, %v6914_v12 }
0x105b   : > { %v6865_v55 = vpop.f32.mrf.mxu0  ;;  %v6908_v45 = vpop.f32.mrf.mxu1  ;;  %v6917_v43 = vadd.f32 %v6906_v57, %v13447_v39 }
0x105c   : > { %8828 = vpow2.f32 %v7918_v35  ;;  %v7917_v63 = vmul.f32 -1.442695, %v6915_v61  ;;  %v6916_v0 = vadd.f32 %v6865_v55, %v13443_v25  ;;  %v6918_v7 = vadd.f32 %v6908_v45, %v13446_v30 }
0x105e   : > { %8830 = vpow2.f32 %v7917_v63  ;;  %v7919_v53 = vmul.f32 -1.442695, %v6916_v0  ;;  %v7921_v6 = vmul.f32 -1.442695, %v6918_v7 }
0x1060   : > { %8832 = vpow2.f32 %v7919_v53 }
0x1061   : > { %8834 = vtanh.f32 %v6913_v51 }
0x1062   : > { %8836 = vpow2.f32 %v7920_v23 }
0x1067   : > { %v8827_v3 = vpop.eup %8826 }
0x1068   : > { %v6925_v37 = vadd.f32 1.0, %v8827_v3 }
0x1069   : > { %v8829_v62 = vpop.eup %8828 }
0x106a   : > { %8838 = vrcp.f32 %v6925_v37  ;;  %v6937_v13 = vadd.f32 1.0, %v8829_v62 }
0x106b   : > { %v8831_v46 = vpop.eup %8830  ;;  %8840 = vtanh.f32 %v6917_v43 }
0x106c   : > { %8842 = vrcp.f32 %v6937_v13  ;;  %v6926_v34 = vadd.f32 1.0, %v8831_v46 }
0x106d   : > { %v8833_v5 = vpop.eup %8832  ;;  %8844 = vpow2.f32 %v7921_v6 }
0x106e   : > { %8846 = vrcp.f32 %v6926_v34  ;;  %v6938_v49 = vadd.f32 1.0, %v8833_v5  ;;  %v8835_v2 = vpop.eup %8834 }
0x106f   : > { %v8837_v38 = vpop.eup %8836 }
0x1070   : > { %8848 = vrcp.f32 %v6938_v49  ;;  %v6951_v55 = vadd.f32 1.0, %v8837_v38 }
0x1072   : > { %8850 = vrcp.f32 %v6951_v55 }
0x1077   : > { %v8839_v35 = vpop.eup %8838 }
0x1078   : > { %v8841_v18 = vpop.eup %8840  ;;  %v6959_v36 = vmul.f32 %v8839_v35, %v8835_v2 }
0x1079   : > { %v8843_v61 = vpop.eup %8842 }
0x107a   : > { %v8845_v63 = vpop.eup %8844  ;;  %v6957_v25 = vmul.f32 %v8843_v61, %v12641_v1 }
0x107b   : > { %v8847_v0 = vpop.eup %8846  ;;  %v6952_v12 = vadd.f32 1.0, %v8845_v63 }
0x107c   : > { %v12693_v57 = vadd.f32 %v6959_v36, %v6957_v25  ;;  %v6960_v53 = vmul.f32 %v8847_v0, %v8841_v18 }
0x107d   : > { %v8849_v21 = vpop.eup %8848 }
0x107e   : > { %8852 = vtanh.f32 %v12693_v57  ;;  %v6958_v45 = vmul.f32 %v8849_v21, %v12645_v58 }
0x107f   : > { %8854 = vrcp.f32 %v6952_v12  ;;  %v8851_v51 = vpop.eup %8850 }
0x1080   : > { %v12697_v56 = vadd.f32 %v6960_v53, %v6958_v45 }
0x1082   : > { %8856 = vtanh.f32 %v12697_v56 }
0x108b   : > { %v8853_v1 = vpop.eup %8852 }
0x108c   : > { %v6965_v23 = vmul.f32 %v8853_v1, %v8851_v51  ;;  %v8855_v30 = vpop.eup %8854 }
0x108e   : > { %7922 = vst [vmem:[%s11512_s20 + $0xd0] sm:$0xff] %v6965_v23 }
0x108f   : > { %v8857_v7 = vpop.eup %8856 }
0x1090   : > { %v6966_v3 = vmul.f32 %v8857_v7, %v8855_v30 }
0x1092   : > { %7923 = vst [vmem:[%s11512_s20 + $0xd8] sm:$0xff] %v6966_v3  ;;  %v6979_v39 = vpack.c.bf16 %v6966_v3, %v6965_v23 }
0x1094   : > { %7013 = vmatmul.mubr.bf16.vlgmr.msra.gmra.mxu0 %v6979_v39  ;;  %7056 = vmatmul.mubr.bf16.vlgmr.msra.gmra.mxu1 %v6979_v39  ;;  %v13456_v39 = vld [vmem:[#allocation111_spill] sm:$0xff] }
0x1095   : > { %7136 = vmatpush1.bf16.msra.mxu0 %v12378_v52  ;;  %7179 = vmatpush1.bf16.msra.mxu1 %v12384_v48  ;;  %v13448_v52 = vld [vmem:[#allocation105_spill] sm:$0xff] }
0x1096   : > { %7137 = vmatprep.subr.bf16.mxu0 %v12390_v33  ;;  %7180 = vmatprep.subr.bf16.mxu1 %v12396_v28 }
0x1097   : > { %7167 = vmatprep.mubr.bf16.mxu0 %v13340_v47  ;;  %7210 = vmatprep.mubr.bf16.mxu1 %v13340_v47 }
0x1099   : > { %7138 = vmatpush1.bf16.msra.mxu0 %v12404_v22  ;;  %7181 = vmatpush1.bf16.msra.mxu1 %v12410_v10  ;;  %v13449_v10 = vld [vmem:[#allocation34_spill] sm:$0xff] }
0x109a   : > { %7139 = vmatprep.subr.bf16.mxu0 %v12416_v42  ;;  %7182 = vmatprep.subr.bf16.mxu1 %v12422_v19 }
0x109d   : > { %7140 = vmatpush1.bf16.msra.mxu0 %v12428_v40  ;;  %7183 = vmatpush1.bf16.msra.mxu1 %v12434_v4 }
0x109e   : > { %7141 = vmatprep.subr.bf16.mxu0 %v12440_v24  ;;  %7184 = vmatprep.subr.bf16.mxu1 %v12446_v32  ;;  %v13450_v24 = vld [vmem:[#allocation35_spill] sm:$0xff] }
0x10a1   : > { %7142 = vmatpush1.bf16.msra.mxu0 %v12452_v29  ;;  %7185 = vmatpush1.bf16.msra.mxu1 %v12458_v44 }
0x10a2   : > { %7143 = vmatprep.subr.bf16.mxu0 %v12464_v9  ;;  %7186 = vmatprep.subr.bf16.mxu1 %v12470_v15  ;;  %v13451_v9 = vld [vmem:[#allocation114_spill] sm:$0xff] }
0x10a5   : > { %7144 = vmatpush1.bf16.msra.mxu0 %v12476_v31  ;;  %7187 = vmatpush1.bf16.msra.mxu1 %v12482_v17 }
0x10a6   : > { %7145 = vmatprep.subr.bf16.mxu0 %v12488_v11  ;;  %7188 = vmatprep.subr.bf16.mxu1 %v12494_v59  ;;  %v13452_v11 = vld [vmem:[#allocation109_spill] sm:$0xff] }
0x10a9   : > { %7146 = vmatpush1.bf16.msra.mxu0 %v12500_v20  ;;  %7189 = vmatpush1.bf16.msra.mxu1 %v12506_v41  ;;  %v13453_v41 = vld [vmem:[#allocation108_spill] sm:$0xff] }
0x10aa   : > { %7147 = vmatprep.subr.bf16.mxu0 %v12512_v60  ;;  %7190 = vmatprep.subr.bf16.mxu1 %v12518_v27 }
0x10ad   : > { %7148 = vmatpush1.bf16.msra.mxu0 %v12524_v26  ;;  %7191 = vmatpush1.bf16.msra.mxu1 %v12530_v8  ;;  %v13454_v26 = vld [vmem:[#allocation112_spill] sm:$0xff] }
0x10ae   : > { %7149 = vmatprep.subr.bf16.mxu0 %v12536_v50  ;;  %7192 = vmatprep.subr.bf16.mxu1 %v12542_v16  ;;  %v13455_v16 = vld [vmem:[#allocation115_spill] sm:$0xff] }
0x10b1   : > { %7150 = vmatpush1.bf16.msra.mxu0 %v12548_v54  ;;  %7193 = vmatpush1.bf16.msra.mxu1 %v12554_v14 }
0x1154   : > { %v7014_v47 = vpop.f32.mrf.mxu0  ;;  %v7057_v33 = vpop.f32.mrf.mxu1 }
0x1155   : > { %v7066_v48 = vadd.f32 %v7014_v47, %v13448_v52  ;;  %v7068_v60 = vadd.f32 %v7057_v33, %v13453_v41  ;;  %v13457_v33 = vld [vmem:[#allocation113_spill] sm:$0xff]  ;;  %v13462_v41 = vld [vmem:[#allocation122_spill] sm:$0xff] }
0x1156   : > { %v7016_v28 = vpop.f32.mrf.mxu0  ;;  %v7059_v4 = vpop.f32.mrf.mxu1 }
0x1157   : > { %v7924_v22 = vmul.f32 -1.442695, %v7066_v48  ;;  %v7067_v42 = vadd.f32 %v7016_v28, %v13449_v10  ;;  %v7069_v59 = vadd.f32 %v7059_v4, %v13452_v11  ;;  %v13461_v11 = vld [vmem:[#allocation36_spill] sm:$0xff] }
0x1158   : > { %v7018_v19 = vpop.f32.mrf.mxu0  ;;  %v7061_v31 = vpop.f32.mrf.mxu1 }
0x1159   : > { %8858 = vpow2.f32 %v7924_v22  ;;  %v7926_v40 = vmul.f32 -1.442695, %v7067_v42  ;;  %v7070_v32 = vadd.f32 %v7018_v19, %v13450_v24  ;;  %v7928_v27 = vmul.f32 -1.442695, %v7069_v59  ;;  %v13458_v19 = vld [vmem:[#allocation37_spill] sm:$0xff] }
0x115a   : > { %v7020_v29 = vpop.f32.mrf.mxu0  ;;  %v7063_v20 = vpop.f32.mrf.mxu1  ;;  %v7072_v54 = vadd.f32 %v7061_v31, %v13455_v16 }
0x115b   : > { %8860 = vpow2.f32 %v7926_v40  ;;  %v7925_v44 = vmul.f32 -1.442695, %v7070_v32  ;;  %v7071_v15 = vadd.f32 %v7020_v29, %v13451_v9  ;;  %v7073_v8 = vadd.f32 %v7063_v20, %v13454_v26  ;;  %v13459_v32 = vld [vmem:[#allocation38_spill] sm:$0xff]  ;;  %v13463_v26 = vld [vmem:[#allocation133_spill] sm:$0xff] }
0x115d   : > { %8862 = vpow2.f32 %v7925_v44  ;;  %v7927_v17 = vmul.f32 -1.442695, %v7071_v15  ;;  %v7929_v43 = vmul.f32 -1.442695, %v7073_v8  ;;  %v13460_v15 = vld [vmem:[#allocation132_spill] sm:$0xff] }
0x115f   : > { %8864 = vpow2.f32 %v7927_v17 }
0x1160   : > { %8866 = vtanh.f32 %v7068_v60 }
0x1161   : > { %8868 = vpow2.f32 %v7928_v27 }
0x1166   : > { %v8859_v50 = vpop.eup %8858 }
0x1167   : > { %v7080_v14 = vadd.f32 1.0, %v8859_v50 }
0x1168   : > { %v8861_v58 = vpop.eup %8860 }
0x1169   : > { %8870 = vrcp.f32 %v7080_v14  ;;  %v7092_v37 = vadd.f32 1.0, %v8861_v58 }
0x116a   : > { %v8863_v62 = vpop.eup %8862  ;;  %8872 = vtanh.f32 %v7072_v54 }
0x116b   : > { %8874 = vrcp.f32 %v7092_v37  ;;  %v7081_v6 = vadd.f32 1.0, %v8863_v62 }
0x116c   : > { %v8865_v13 = vpop.eup %8864  ;;  %8876 = vpow2.f32 %v7929_v43 }
0x116d   : > { %8878 = vrcp.f32 %v7081_v6  ;;  %v7093_v46 = vadd.f32 1.0, %v8865_v13  ;;  %v8867_v34 = vpop.eup %8866 }
0x116e   : > { %v8869_v5 = vpop.eup %8868 }
0x116f   : > { %8880 = vrcp.f32 %v7093_v46  ;;  %v7106_v18 = vadd.f32 1.0, %v8869_v5 }
0x1171   : > { %8882 = vrcp.f32 %v7106_v18 }
0x1176   : > { %v8871_v49 = vpop.eup %8870 }
0x1177   : > { %v8873_v2 = vpop.eup %8872  ;;  %v7114_v38 = vmul.f32 %v8871_v49, %v8867_v34 }
0x1178   : > { %v8875_v35 = vpop.eup %8874 }
0x1179   : > { %v8877_v36 = vpop.eup %8876  ;;  %v7112_v61 = vmul.f32 %v8875_v35, %v12693_v57 }
0x117a   : > { %v8879_v55 = vpop.eup %8878  ;;  %v7107_v53 = vadd.f32 1.0, %v8877_v36 }
0x117b   : > { %v12743_v63 = vadd.f32 %v7114_v38, %v7112_v61  ;;  %v7115_v25 = vmul.f32 %v8879_v55, %v8873_v2 }
0x117c   : > { %v8881_v0 = vpop.eup %8880 }
0x117d   : > { %8884 = vtanh.f32 %v12743_v63  ;;  %v7113_v21 = vmul.f32 %v8881_v0, %v12697_v56 }
0x117e   : > { %8886 = vrcp.f32 %v7107_v53  ;;  %v8883_v45 = vpop.eup %8882 }
0x117f   : > { %v12747_v12 = vadd.f32 %v7115_v25, %v7113_v21 }
0x1181   : > { %8888 = vtanh.f32 %v12747_v12 }
0x118a   : > { %v8885_v57 = vpop.eup %8884 }
0x118b   : > { %v7120_v51 = vmul.f32 %v8885_v57, %v8883_v45  ;;  %v8887_v1 = vpop.eup %8886 }
0x118d   : > { %7930 = vst [vmem:[%s11512_s20 + $0xe0] sm:$0xff] %v7120_v51 }
0x118e   : > { %v8889_v23 = vpop.eup %8888 }
0x118f   : > { %v7121_v30 = vmul.f32 %v8889_v23, %v8887_v1 }
0x1191   : > { %7931 = vst [vmem:[%s11512_s20 + $0xe8] sm:$0xff] %v7121_v30  ;;  %v7134_v7 = vpack.c.bf16 %v7121_v30, %v7120_v51 }
0x1193   : > { %7168 = vmatmul.mubr.bf16.vlgmr.msra.gmra.mxu0 %v7134_v7  ;;  %7211 = vmatmul.mubr.bf16.vlgmr.msra.gmra.mxu1 %v7134_v7 }
0x1253   : > { %v7169_v3 = vpop.f32.mrf.mxu0  ;;  %v7212_v56 = vpop.f32.mrf.mxu1 }
0x1254   : > { %v7221_v47 = vadd.f32 %v7169_v3, %v13456_v39  ;;  %v7223_v59 = vadd.f32 %v7212_v56, %v13461_v11 }
0x1255   : > { %v7171_v52 = vpop.f32.mrf.mxu0  ;;  %v7214_v42 = vpop.f32.mrf.mxu1 }
0x1256   : > { %v7932_v48 = vmul.f32 -1.442695, %v7221_v47  ;;  %v7222_v28 = vadd.f32 %v7171_v52, %v13457_v33  ;;  %v7224_v31 = vadd.f32 %v7214_v42, %v13460_v15 }
0x1257   : > { %v7173_v22 = vpop.f32.mrf.mxu0  ;;  %v7216_v44 = vpop.f32.mrf.mxu1 }
0x1258   : > { %8890 = vpow2.f32 %v7932_v48  ;;  %v7934_v10 = vmul.f32 -1.442695, %v7222_v28  ;;  %v7225_v40 = vadd.f32 %v7173_v22, %v13458_v19  ;;  %v7936_v20 = vmul.f32 -1.442695, %v7224_v31 }
0x1259   : > { %v7175_v4 = vpop.f32.mrf.mxu0  ;;  %v7218_v17 = vpop.f32.mrf.mxu1  ;;  %v7227_v8 = vadd.f32 %v7216_v44, %v13463_v26 }
0x125a   : > { %8892 = vpow2.f32 %v7934_v10  ;;  %v7933_v24 = vmul.f32 -1.442695, %v7225_v40  ;;  %v7226_v29 = vadd.f32 %v7175_v4, %v13459_v32  ;;  %v7228_v60 = vadd.f32 %v7218_v17, %v13462_v41 }
0x125c   : > { %8894 = vpow2.f32 %v7933_v24  ;;  %v7935_v9 = vmul.f32 -1.442695, %v7226_v29  ;;  %v7937_v54 = vmul.f32 -1.442695, %v7228_v60 }
0x125e   : > { %8896 = vpow2.f32 %v7935_v9 }
0x125f   : > { %8898 = vtanh.f32 %v7223_v59 }
0x1260   : > { %8900 = vpow2.f32 %v7936_v20 }
0x1265   : > { %v8891_v27 = vpop.eup %8890 }
0x1266   : > { %v7235_v50 = vadd.f32 1.0, %v8891_v27 }
0x1267   : > { %v8893_v16 = vpop.eup %8892 }
0x1268   : > { %8902 = vrcp.f32 %v7235_v50  ;;  %v7247_v14 = vadd.f32 1.0, %v8893_v16 }
0x1269   : > { %v8895_v58 = vpop.eup %8894  ;;  %8904 = vtanh.f32 %v7227_v8 }
0x126a   : > { %8906 = vrcp.f32 %v7247_v14  ;;  %v7236_v43 = vadd.f32 1.0, %v8895_v58 }
0x126b   : > { %v8897_v37 = vpop.eup %8896  ;;  %8908 = vpow2.f32 %v7937_v54 }
0x126c   : > { %8910 = vrcp.f32 %v7236_v43  ;;  %v7248_v62 = vadd.f32 1.0, %v8897_v37  ;;  %v8899_v6 = vpop.eup %8898 }
0x126d   : > { %v8901_v13 = vpop.eup %8900 }
0x126e   : > { %8912 = vrcp.f32 %v7248_v62  ;;  %v7261_v2 = vadd.f32 1.0, %v8901_v13 }
0x1270   : > { %8914 = vrcp.f32 %v7261_v2 }
0x1275   : > { %v8903_v46 = vpop.eup %8902 }
0x1276   : > { %v8905_v34 = vpop.eup %8904  ;;  %v7269_v5 = vmul.f32 %v8903_v46, %v8899_v6 }
0x1277   : > { %v8907_v49 = vpop.eup %8906 }
0x1278   : > { %v8909_v38 = vpop.eup %8908  ;;  %v7267_v35 = vmul.f32 %v8907_v49, %v12743_v63 }
0x1279   : > { %v8911_v18 = vpop.eup %8910  ;;  %v7262_v25 = vadd.f32 1.0, %v8909_v38 }
0x127a   : > { %v7271_v36 = vadd.f32 %v7269_v5, %v7267_v35  ;;  %v7270_v61 = vmul.f32 %v8911_v18, %v8905_v34 }
0x127b   : > { %v8913_v55 = vpop.eup %8912 }
0x127c   : > { %8916 = vtanh.f32 %v7271_v36  ;;  %v7268_v0 = vmul.f32 %v8913_v55, %v12747_v12 }
0x127d   : > { %8918 = vrcp.f32 %v7262_v25  ;;  %v8915_v21 = vpop.eup %8914 }
0x127e   : > { %v7272_v53 = vadd.f32 %v7270_v61, %v7268_v0 }
0x1280   : > { %8920 = vtanh.f32 %v7272_v53 }
0x1289   : > { %v8917_v45 = vpop.eup %8916 }
0x128a   : > { %v7275_v57 = vmul.f32 %v8917_v45, %v8915_v21  ;;  %v8919_v51 = vpop.eup %8918 }
0x128c   : > { %7938 = vst [vmem:[%s11512_s20 + $0xf0] sm:$0xff] %v7275_v57 }
0x128d   : > { %v8921_v63 = vpop.eup %8920 }
0x128e   : > { %v7276_v1 = vmul.f32 %v8921_v63, %v8919_v51 }
0x1290   : > { %7939 = vst [vmem:[%s11512_s20 + $0xf8] sm:$0xff] %v7276_v1 }
0x1291   : > { %s7946_s16 = sshll.u32 %s9205_s25, 8  ;;  %s7304_s19 = sshll.u32 %s11512_s20, 4  ;;  %s7305_s19 = int_to_ptr.vmem [resolvable:$true] %s7304_s19 }
0x1292   : > { %s7293_s8 = scalar_lea.hbm %s12808_s6, %s7946_s16  ;;  %s9142_s11 = smov 256  }
0x1293   : > { %p13464_p4 = scmp.ne.s32.totalorder %s12858_s9, 0  ;;  %s9143_s0 = smov 512  }
0x1294   : > { %s9144_s3 = smov 2   ;;  %s9145_s26 = smov 128  }
0x1295   : > { %7963 = sst [smem:[#allocation13]] (%p13464_p4), %s9142_s11  ;;  %s9146_s25 = smov 8  }
0x1296   : > { %7964 = sst [smem:[#allocation13 + $0x1]] (%p13464_p4), %s9143_s0  ;;  %s9147_s20 = smov 131072  }
0x1297   : > { %7965 = sst [smem:[#allocation13 + $0x2]] (%p13464_p4), %s9144_s3  ;;  %s9148_s29 = smov 0  }
0x1298   : > { %7966 = sst [smem:[#allocation13 + $0x3]] (%p13464_p4), %s9145_s26 }
0x1299   : > { %7967 = sst [smem:[#allocation13 + $0x4]] (%p13464_p4), %s9145_s26 }
0x129a   : > { %7968 = sst [smem:[#allocation13 + $0x5]] (%p13464_p4), %s9146_s25 }
0x129b   : > { %7969 = dma.general (%p13464_p4), %s7305_s19, 4096, %s7293_s8, %s7281_s18, %s9147_s20, [#allocation13], %s9148_s29, 0  }
0x129c PF: > { %s7332_s12 = sand.u32 1, %s9115_s21   ;;  %p13465_p6 = scmp.ne.s32.totalorder %s12859_s10, 0 }
0x129d   : > { %s7333_s13 = scalar_lea.sflag [#allocation6], %s7332_s12 }
0x129e   : > { %p7976_p11 = pnand %p7421_p10, %p13465_p6 }
0x12a0   : > { %p7977_p12 = pneg %p7976_p11 }
0x12a2   : > { %9110 = dma.done.wait (%p7977_p12), %s7333_s13, 4096  }
0x12a3   : > { %9112 = vsyncadd (%p7977_p12), %s7333_s13, 4294963200  ;;  %p20_p13 = scmp.ge.s32.totalorder %s9209_s27, 4   ;;  %s13466_s21 = smov %s9119_s22 }
0x12a4   : > { %s13467_s22 = smov %s9123_s23  ;;  %s13468_s23 = smov %s9221_s30 }
0x12a5   : > { %s13469_s24 = smov %s9209_s27  ;;  %22 = sbr.rel (!%p20_p13) target bundleno = 9 (0x9), region = 179 }
0x12aa   :  { %7338 = vsyncpa [#allocation5], 1 }
0x12ab   :  { %7340 = vsyncpa [#allocation5 + $0x1], 1 }
0x12ac   :  { %7341 = vsyncpa [#allocation8], 1 }
0x12ad   :  { %7342 = vsyncpa [#allocation6], 1 }
0x12ae   :  { %7344 = vsyncpa [#allocation6 + $0x1], 1 }

</bundles_post_ra>
